<compile_context>
chip_gen: v7x
topology: tpu7x:2x2x1
jax: 0.10.0
libtpu: 0.0.40
codegen_flags: <defaults>
</compile_context>

<pallas_src>
import jax
import jax.numpy as jnp
from jax import lax
from jax.experimental import pallas as pl
from jax.experimental.pallas import tpu as pltpu

EPS = 1e-5


def _round_up(n, m):
    return (n + m - 1) // m * m


def _vmem_limit_bytes():
    # Use most of physical VMEM (default scoped limits leave half idle on
    # v5e/v6e), but keep >=16 MiB headroom so v7x's 64 MiB per-core VMEM is safe.
    try:
        cap = int(pltpu.get_tpu_info().vmem_capacity_bytes)
    except Exception:
        cap = 64 * 1024 * 1024
    return int(min(96 * 1024 * 1024, max(32 * 1024 * 1024, cap - 16 * 1024 * 1024)))


_VMEM_LIMIT = _vmem_limit_bytes()


def _choose_tm(m):
    # Large M tiles amortize the ~0.35us/grid-step overhead.
    if m >= 1024:
        return 1024
    return _round_up(m, 64)


# ----------------------------------------------------------------------------
# Kernels
# ----------------------------------------------------------------------------
def _matmul_stats_kernel(p_ref, w_ref, y_ref, s1_ref, s2_ref):
    """One M-tile of y = P @ W (bf16 operands, f32 accumulate) + partial BN stats.

    Stats are written per grid step (row-broadcast into an (8, Cout) block) and
    reduced in the wrapper, so the grid axis stays fully 'parallel'.
    """
    y = jnp.dot(p_ref[...], w_ref[...], preferred_element_type=jnp.float32)
    y_ref[...] = y.astype(y_ref.dtype)                       # bf16 store
    cout = y.shape[1]
    s1_ref[...] = jnp.broadcast_to(jnp.sum(y, axis=0, keepdims=True), (8, cout))
    s2_ref[...] = jnp.broadcast_to(jnp.sum(y * y, axis=0, keepdims=True), (8, cout))


def _conv3x3_stats_kernel(xc_ref, w_ref, y_ref, s1_ref, s2_ref):
    """Fused 3x3 'same' conv (stride 1) for one batch element + partial BN stats.

    xc : (1, H+2, W, 3*Cin) bf16 -- the three kw-shifted windows are pre-folded
         onto the channel axis in the wrapper, so the kernel is 3 fat-K MXU
         dots (K = 3*Cin) instead of 9 thin ones.
    w  : (3, 3*Cin, Cout) bf16 (per-kh slabs, row order (kw, cin))
    y  : (H*W, Cout) bf16 raw conv output for this batch element
    s1/s2: (8, Cout) f32 per-batch partial sum / sum-of-squares (row-broadcast).
    """
    _, hp, w, k3 = xc_ref.shape
    h = hp - 2
    cout = w_ref.shape[2]

    acc = jnp.zeros((h * w, cout), jnp.float32)
    for kh in range(3):
        # Only one (h, w, 3*Cin) band is staged in f32 at a time (keeps the
        # (h, w) -> h*w merge a layout-free sublane concat); no persistent f32
        # copy of the whole padded tile.
        band = xc_ref[0, pl.ds(kh, h), :, :].astype(jnp.float32)
        band = band.reshape(h * w, k3).astype(jnp.bfloat16)
        acc = acc + jnp.dot(band, w_ref[kh], preferred_element_type=jnp.float32)

    y_ref[...] = acc.astype(y_ref.dtype)
    s1_ref[...] = jnp.broadcast_to(jnp.sum(acc, axis=0, keepdims=True), (8, cout))
    s2_ref[...] = jnp.broadcast_to(jnp.sum(acc * acc, axis=0, keepdims=True), (8, cout))


def _bn_relu_kernel(y_ref, scale_ref, shift_ref, o_ref):
    """Lane-dense normalize + affine + ReLU; y is viewed as (rows, pack*Cout=128)."""
    y = y_ref[...].astype(jnp.float32)
    o_ref[...] = jnp.maximum(y * scale_ref[...] + shift_ref[...], 0.0).astype(o_ref.dtype)


def _cbam_kernel(x_ref, w1_ref, w2_ref, wsp_ref, o_ref, pad_ref):
    """Fused CBAM (SE channel attention + 7x7 spatial attention), one batch element.

    x  : (1, H, W, C) bf16
    w1 : (C, Cr) f32   w2 : (Cr, C) f32
    wsp: (98,) f32 in SMEM (flattened (2, 7, 7) spatial conv weight, [avg, max])
    o  : (1, H, W, C) f32
    pad_ref: VMEM scratch (2, H+6, W+16, 1) f32; maps placed at (3, 8) so the
             store on the sublane (W) axis is 8-aligned.  The zero halo is
             written once (first grid step) and reused for every batch element.
    """
    b = pl.program_id(0)
    _, h, w, c = x_ref.shape

    # --- SE channel attention: global avg pool -> MLP -> sigmoid -----------
    xf = x_ref[0].astype(jnp.float32)                           # transient f32
    y = jnp.mean(xf.reshape(h * w, c), axis=0, keepdims=True)   # (1, C)
    hid = jnp.maximum(
        jnp.dot(y, w1_ref[...], preferred_element_type=jnp.float32), 0.0)
    s = jax.nn.sigmoid(
        jnp.dot(hid, w2_ref[...], preferred_element_type=jnp.float32))    # (1, C)

    # --- x * s kept in bf16: halves the live full-image temporary ----------
    xse = x_ref[0] * s.astype(jnp.bfloat16).reshape(1, 1, c)    # (H, W, C) bf16

    # --- channel mean / max maps ((H, W, 1) layout) -------------------------
    xsef = xse.astype(jnp.float32)                              # transient, reductions only
    avg3 = jnp.mean(xsef, axis=2, keepdims=True)                # (H, W, 1)
    max3 = jnp.max(xsef, axis=2, keepdims=True)                 # (H, W, 1)

    # --- 7x7 "same" spatial conv via 49-tap shift-accumulate (VPU) ---------
    @pl.when(b == 0)
    def _zero_halo_once():
        pad_ref[...] = jnp.zeros_like(pad_ref)   # interior is overwritten every step

    pad_ref[0, pl.ds(3, h), pl.ds(8, w), :] = avg3
    pad_ref[1, pl.ds(3, h), pl.ds(8, w), :] = max3

    acc = jnp.zeros((h, w, 1), jnp.float32)
    for kh in range(7):
        for kw in range(7):
            wa = wsp_ref[kh * 7 + kw]            # avg-channel tap (scalar)
            wm = wsp_ref[49 + kh * 7 + kw]       # max-channel tap (scalar)
            acc = acc + wa * pad_ref[0, pl.ds(kh, h), pl.ds(5 + kw, w), :] \
                      + wm * pad_ref[1, pl.ds(kh, h), pl.ds(5 + kw, w), :]
    attn = jax.nn.sigmoid(acc)                                  # (H, W, 1)

    o_ref[...] = (xse.astype(jnp.float32) * attn).reshape(1, h, w, c)


# ----------------------------------------------------------------------------
# Wrappers / glue
# ----------------------------------------------------------------------------
def _im2col(x, k, stride, padding, dilation):
    """im2col on NHWC input -> (N, Ho, Wo, k*k*C); column order (kh, kw, cin)."""
    n, hh, ww, c = x.shape
    xp = jnp.pad(x, ((0, 0), (padding, padding), (padding, padding), (0, 0)))
    ho = (hh + 2 * padding - dilation * (k - 1) - 1) // stride + 1
    wo = (ww + 2 * padding - dilation * (k - 1) - 1) // stride + 1
    cols = []
    for kh in range(k):
        for kw in range(k):
            h0, w0 = kh * dilation, kw * dilation
            sl = xp[:, h0:h0 + stride * (ho - 1) + 1:stride,
                       w0:w0 + stride * (wo - 1) + 1:stride, :]
            cols.append(sl)
    return jnp.concatenate(cols, axis=-1), ho, wo


def _reduce_stats(s_raw, n_blocks, cout):
    # Each grid step wrote its partial sum broadcast to 8 identical rows.
    return s_raw.reshape(n_blocks, 8, cout)[:, 0, :].sum(axis=0)


def _bn_relu(y_flat, s_sum, s_sq, gamma, beta, m_true, out_dtype):
    """BatchNorm (train-mode batch stats) + ReLU over a flattened (M, Cout) conv output.

    The (M, Cout) bf16 tensor is re-viewed as (M/pack, pack*Cout=128) so every
    load/store of this memory-bound pass is lane-dense; scale/shift are tiled
    `pack`x across lanes to match.
    """
    m, cout = y_flat.shape
    mean = s_sum / float(m_true)
    var = jnp.maximum(s_sq / float(m_true) - mean * mean, 0.0)
    scale = gamma.astype(jnp.float32) * lax.rsqrt(var + EPS)
    shift = beta.astype(jnp.float32) - mean * scale

    pack = 128 // cout if (cout <= 128 and 128 % cout == 0) else 1
    lanes = pack * cout
    rows0 = -(-m // pack)
    rb = 512 if rows0 >= 512 else _round_up(rows0, 8)
    mpad = _round_up(m, pack * rb)
    if mpad != m:
        y_flat = jnp.pad(y_flat, ((0, mpad - m), (0, 0)))
    rows = mpad // pack
    y_dense = y_flat.reshape(rows, lanes)           # free: row-major reinterpret
    scale_t = jnp.tile(scale, pack).reshape(1, lanes)
    shift_t = jnp.tile(shift, pack).reshape(1, lanes)

    out = pl.pallas_call(
        _bn_relu_kernel,
        grid=(rows // rb,),
        out_shape=jax.ShapeDtypeStruct((rows, lanes), out_dtype),
        in_specs=[pl.BlockSpec((rb, lanes), lambda i: (i, 0)),
                  pl.BlockSpec((1, lanes), lambda i: (0, 0)),
                  pl.BlockSpec((1, lanes), lambda i: (0, 0))],
        out_specs=pl.BlockSpec((rb, lanes), lambda i: (i, 0)),
        compiler_params=pltpu.CompilerParams(
            dimension_semantics=("parallel",),
            vmem_limit_bytes=_VMEM_LIMIT),
    )(y_dense, scale_t, shift_t)
    return out.reshape(mpad, cout)[:m]


def conv_bn_relu_im2col(x_nhwc, w_torch, gamma, beta, *, stride, padding,
                        dilation, out_dtype=jnp.bfloat16):
    """Conv (arbitrary stride/dilation via JAX-side bf16 im2col) + BN(batch stats) + ReLU."""
    n = x_nhwc.shape[0]
    cout, cin, k, _ = w_torch.shape
    patches, ho, wo = _im2col(x_nhwc.astype(jnp.bfloat16), k, stride, padding, dilation)
    m = n * ho * wo
    kk = k * k * cin
    tm = _choose_tm(m)
    mp = _round_up(m, tm)
    n_m = mp // tm

    p2 = patches.reshape(m, kk)
    if mp != m:
        p2 = jnp.pad(p2, ((0, mp - m), (0, 0)))      # zero rows: contribute 0 to stats
    w2 = jnp.transpose(w_torch, (2, 3, 1, 0)).reshape(kk, cout).astype(jnp.bfloat16)

    y, s1, s2 = pl.pallas_call(
        _matmul_stats_kernel,
        grid=(n_m,),
        out_shape=(jax.ShapeDtypeStruct((mp, cout), jnp.bfloat16),
                   jax.ShapeDtypeStruct((n_m * 8, cout), jnp.float32),
                   jax.ShapeDtypeStruct((n_m * 8, cout), jnp.float32)),
        in_specs=[pl.BlockSpec((tm, kk), lambda i: (i, 0)),
                  pl.BlockSpec((kk, cout), lambda i: (0, 0))],
        out_specs=(pl.BlockSpec((tm, cout), lambda i: (i, 0)),
                   pl.BlockSpec((8, cout), lambda i: (i, 0)),
                   pl.BlockSpec((8, cout), lambda i: (i, 0))),
        compiler_params=pltpu.CompilerParams(
            dimension_semantics=("parallel",),       # per-tile partial stats -> no serialization
            vmem_limit_bytes=_VMEM_LIMIT),
    )(p2, w2)

    s_sum = _reduce_stats(s1, n_m, cout)
    s_sq = _reduce_stats(s2, n_m, cout)
    out = _bn_relu(y[:m], s_sum, s_sq, gamma, beta, m, out_dtype)
    return out.reshape(n, ho, wo, cout)


def conv3x3_bn_relu_fused(x_nhwc, w_torch, gamma, beta, out_dtype=jnp.bfloat16):
    """3x3 stride-1 'same' conv (kw taps folded on channels) + BN(batch stats) + ReLU."""
    n, hh, ww, cin = x_nhwc.shape
    cout = w_torch.shape[0]
    xb = x_nhwc.astype(jnp.bfloat16)
    xp = jnp.pad(xb, ((0, 0), (1, 1), (1, 1), (0, 0)))
    # Fold the 3 kw-shifted windows onto the channel axis (bf16, done once in XLA).
    xc = jnp.concatenate([xp[:, :, kw:kw + ww, :] for kw in range(3)], axis=-1)
    k3 = 3 * cin
    w3 = jnp.transpose(w_torch, (2, 3, 1, 0)).reshape(3, k3, cout).astype(jnp.bfloat16)
    hw = hh * ww

    y, s1, s2 = pl.pallas_call(
        _conv3x3_stats_kernel,
        grid=(n,),
        out_shape=(jax.ShapeDtypeStruct((n * hw, cout), jnp.bfloat16),
                   jax.ShapeDtypeStruct((n * 8, cout), jnp.float32),
                   jax.ShapeDtypeStruct((n * 8, cout), jnp.float32)),
        in_specs=[pl.BlockSpec((1, hh + 2, ww, k3), lambda b: (b, 0, 0, 0)),
                  pl.BlockSpec((3, k3, cout), lambda b: (0, 0, 0))],
        out_specs=(pl.BlockSpec((hw, cout), lambda b: (b, 0)),
                   pl.BlockSpec((8, cout), lambda b: (b, 0)),
                   pl.BlockSpec((8, cout), lambda b: (b, 0))),
        compiler_params=pltpu.CompilerParams(
            dimension_semantics=("parallel",),
            vmem_limit_bytes=_VMEM_LIMIT),
    )(xc, w3)

    s_sum = _reduce_stats(s1, n, cout)
    s_sq = _reduce_stats(s2, n, cout)
    m = n * hw
    out = _bn_relu(y, s_sum, s_sq, gamma, beta, m, out_dtype)
    return out.reshape(n, hh, ww, cout)


def cbam(x_nhwc, w1_t, w2_t, w_sp_torch):
    """Fused CBAM: SE channel attention + 7x7 spatial attention."""
    n, hh, ww, c = x_nhwc.shape
    cr = w1_t.shape[1]
    wsp = w_sp_torch.reshape(2 * 7 * 7).astype(jnp.float32)   # (c, kh, kw) order
    return pl.pallas_call(
        _cbam_kernel,
        grid=(n,),
        out_shape=jax.ShapeDtypeStruct((n, hh, ww, c), jnp.float32),
        in_specs=[pl.BlockSpec((1, hh, ww, c), lambda b: (b, 0, 0, 0)),
                  pl.BlockSpec((c, cr), lambda b: (0, 0)),
                  pl.BlockSpec((cr, c), lambda b: (0, 0)),
                  pl.BlockSpec(memory_space=pltpu.MemorySpace.SMEM)],
        out_specs=pl.BlockSpec((1, hh, ww, c), lambda b: (b, 0, 0, 0)),
        scratch_shapes=[pltpu.VMEM((2, hh + 6, ww + 16, 1), jnp.float32)],
        compiler_params=pltpu.CompilerParams(
            # 'arbitrary': the spatial-conv halo in the VMEM scratch is zeroed
            # only on the first grid step and reused, so the batch axis must run
            # sequentially on a single core.
            dimension_semantics=("arbitrary",),
            vmem_limit_bytes=_VMEM_LIMIT),
    )(x_nhwc.astype(jnp.bfloat16),
      w1_t.astype(jnp.float32), w2_t.astype(jnp.float32), wsp)


def down_forward(x_nchw, params):
    """Down(in_channels, out_channels) forward. Input NCHW f32, output NCHW f32."""
    x = jnp.transpose(x_nchw, (0, 2, 3, 1)).astype(jnp.float32)   # -> NHWC
    # down conv: Conv2d(k=3, s=2, p=2, dilation=2) + BN + ReLU
    x = conv_bn_relu_im2col(x, params["w_down"], params["bn0_g"], params["bn0_b"],
                            stride=2, padding=2, dilation=2,
                            out_dtype=jnp.bfloat16)
    # DoubleConv: (3x3 conv + BN + ReLU) x 2, kw taps folded, kh loop in-kernel
    x = conv3x3_bn_relu_fused(x, params["w_dc1"], params["bn1_g"], params["bn1_b"],
                              out_dtype=jnp.bfloat16)
    x = conv3x3_bn_relu_fused(x, params["w_dc2"], params["bn2_g"], params["bn2_b"],
                              out_dtype=jnp.bfloat16)
    # CBAM (fused SE + spatial attention)
    x = cbam(x, params["w_se1_t"], params["w_se2_t"], params["w_sp"])
    return jnp.transpose(x, (0, 3, 1, 2))                         # back to NCHW


def init_params(key, in_ch, out_ch, reduction=16):
    cr = max(out_ch // reduction, 1)
    ks = jax.random.split(key, 6)
    return {
        "w_down": 0.1 * jax.random.normal(ks[0], (out_ch, in_ch, 3, 3), jnp.float32),
        "w_dc1": 0.1 * jax.random.normal(ks[1], (out_ch, out_ch, 3, 3), jnp.float32),
        "w_dc2": 0.1 * jax.random.normal(ks[2], (out_ch, out_ch, 3, 3), jnp.float32),
        # SE Linear weights stored pre-transposed: Linear(C, Cr).weight is (Cr, C)
        "w_se1_t": 0.1 * jax.random.normal(ks[3], (cr, out_ch), jnp.float32).T,   # (C, Cr)
        "w_se2_t": 0.1 * jax.random.normal(ks[4], (out_ch, cr), jnp.float32).T,   # (Cr, C)
        "w_sp": 0.1 * jax.random.normal(ks[5], (1, 2, 7, 7), jnp.float32),
        # BatchNorm affine params (PyTorch defaults: gamma=1, beta=0)
        "bn0_g": jnp.ones((out_ch,), jnp.float32),
        "bn0_b": jnp.zeros((out_ch,), jnp.float32),
        "bn1_g": jnp.ones((out_ch,), jnp.float32),
        "bn1_b": jnp.zeros((out_ch,), jnp.float32),
        "bn2_g": jnp.ones((out_ch,), jnp.float32),
        "bn2_b": jnp.zeros((out_ch,), jnp.float32),
    }


if __name__ == "__main__":
    key = jax.random.PRNGKey(0)
    k_x, k_p = jax.random.split(key)

    N, in_ch, out_ch, H, W = 2, 4, 16, 16, 16   # out_ch=16 -> SE hidden = 1
    x = jax.random.normal(k_x, (N, in_ch, H, W), jnp.float32)
    params = init_params(k_p, in_ch, out_ch)

    fwd = jax.jit(down_forward)
    y = fwd(x, params)
    jax.block_until_ready(y)

    assert y.shape == (N, out_ch, H // 2, W // 2), y.shape
    assert bool(jnp.all(jnp.isfinite(y)))
    print("KERNEL_OK")
</pallas_src>

<mosaic_0001>
module attributes {stable_mosaic.version = 11 : i64} {
  func.func @_matmul_stats_kernel(%arg0: i32, %arg1: memref<128x36xbf16, #tpu.memory_space<vmem>>, %arg2: memref<36x16xbf16, #tpu.memory_space<vmem>>, %arg3: memref<128x16xbf16, #tpu.memory_space<vmem>>, %arg4: memref<8x16xf32, #tpu.memory_space<vmem>>, %arg5: memref<8x16xf32, #tpu.memory_space<vmem>>) attributes {dimension_semantics = [#tpu.dimension_semantics<parallel>], iteration_bounds = array<i64: 1>, scalar_prefetch = 0 : i64, scratch_operands = 0 : i64, tpu.core_type = #tpu.core_type<tc>, window_params = [{transform_indices = @transform_0, window_bounds = array<i64: 128, 36>}, {pipeline_mode = #tpu.pipeline_mode<synchronous>, transform_indices = @transform_1, window_bounds = array<i64: 36, 16>}, {transform_indices = @transform_2, window_bounds = array<i64: 128, 16>}, {transform_indices = @transform_3, window_bounds = array<i64: 8, 16>}, {transform_indices = @transform_4, window_bounds = array<i64: 8, 16>}]} {
    %c0 = arith.constant 0 : index
    %c0_0 = arith.constant 0 : index
    %0 = vector.load %arg1[%c0, %c0_0] : memref<128x36xbf16, #tpu.memory_space<vmem>>, vector<128x36xbf16>
    %c0_1 = arith.constant 0 : index
    %c0_2 = arith.constant 0 : index
    %1 = vector.load %arg2[%c0_1, %c0_2] : memref<36x16xbf16, #tpu.memory_space<vmem>>, vector<36x16xbf16>
    %cst = arith.constant dense<0.000000e+00> : vector<128x16xf32>
    %2 = tpu.matmul %0, %1, %cst {dimension_numbers = #tpu.dot_dimension_numbers<[1], [0], [0], [1], [0, 0, 1, 1], [], []>} : vector<128x36xbf16>, vector<36x16xbf16>, vector<128x16xf32> -> vector<128x16xf32>
    %3 = arith.truncf %2 : vector<128x16xf32> to vector<128x16xbf16>
    %c0_3 = arith.constant 0 : index
    %c0_4 = arith.constant 0 : index
    %4 = vector.load %arg3[%c0_3, %c0_4] : memref<128x16xbf16, #tpu.memory_space<vmem>>, vector<128x16xbf16>
    tpu.vector_store %arg3[%c0_3, %c0_4], %3 {strides = array<i32>} : memref<128x16xbf16, #tpu.memory_space<vmem>>, vector<128x16xbf16>,
    %cst_5 = arith.constant dense<0.000000e+00> : vector<16xf32>
    %5 = vector.multi_reduction <add>, %2, %cst_5 [0] : vector<128x16xf32> to vector<16xf32>
    %6 = vector.shape_cast %5 : vector<16xf32> to vector<1x16xf32>
    %7 = vector.shape_cast %6 : vector<1x16xf32> to vector<1x16xf32>
    %8 = vector.broadcast %7 : vector<1x16xf32> to vector<8x16xf32>
    %c0_6 = arith.constant 0 : index
    %c0_7 = arith.constant 0 : index
    %9 = vector.load %arg4[%c0_6, %c0_7] : memref<8x16xf32, #tpu.memory_space<vmem>>, vector<8x16xf32>
    tpu.vector_store %arg4[%c0_6, %c0_7], %8 {strides = array<i32>} : memref<8x16xf32, #tpu.memory_space<vmem>>, vector<8x16xf32>,
    %10 = arith.mulf %2, %2 : vector<128x16xf32>
    %cst_8 = arith.constant dense<0.000000e+00> : vector<16xf32>
    %11 = vector.multi_reduction <add>, %10, %cst_8 [0] : vector<128x16xf32> to vector<16xf32>
    %12 = vector.shape_cast %11 : vector<16xf32> to vector<1x16xf32>
    %13 = vector.shape_cast %12 : vector<1x16xf32> to vector<1x16xf32>
    %14 = vector.broadcast %13 : vector<1x16xf32> to vector<8x16xf32>
    %c0_9 = arith.constant 0 : index
    %c0_10 = arith.constant 0 : index
    %15 = vector.load %arg5[%c0_9, %c0_10] : memref<8x16xf32, #tpu.memory_space<vmem>>, vector<8x16xf32>
    tpu.vector_store %arg5[%c0_9, %c0_10], %14 {strides = array<i32>} : memref<8x16xf32, #tpu.memory_space<vmem>>, vector<8x16xf32>,
    return
  }
  func.func @transform_0(%arg0: i32) -> (i32, i32) {
    %c0_i32 = arith.constant 0 : i32
    %c0_i32_0 = arith.constant 0 : i32
    return %arg0, %c0_i32 : i32, i32
  }
  func.func @transform_1(%arg0: i32) -> (i32, i32) {
    %c0_i32 = arith.constant 0 : i32
    %c0_i32_0 = arith.constant 0 : i32
    %c0_i32_1 = arith.constant 0 : i32
    return %c0_i32, %c0_i32_0 : i32, i32
  }
  func.func @transform_2(%arg0: i32) -> (i32, i32) {
    %c0_i32 = arith.constant 0 : i32
    %c0_i32_0 = arith.constant 0 : i32
    return %arg0, %c0_i32 : i32, i32
  }
  func.func @transform_3(%arg0: i32) -> (i32, i32) {
    %c0_i32 = arith.constant 0 : i32
    %c0_i32_0 = arith.constant 0 : i32
    return %arg0, %c0_i32 : i32, i32
  }
  func.func @transform_4(%arg0: i32) -> (i32, i32) {
    %c0_i32 = arith.constant 0 : i32
    %c0_i32_0 = arith.constant 0 : i32
    return %arg0, %c0_i32 : i32, i32
  }
}

module attributes {stable_mosaic.version = 11 : i64} {
  func.func @_bn_relu_kernel(%arg0: i32, %arg1: memref<16x128xbf16, #tpu.memory_space<vmem>>, %arg2: memref<1x128xf32, #tpu.memory_space<vmem>>, %arg3: memref<1x128xf32, #tpu.memory_space<vmem>>, %arg4: memref<16x128xbf16, #tpu.memory_space<vmem>>) attributes {dimension_semantics = [#tpu.dimension_semantics<parallel>], iteration_bounds = array<i64: 1>, scalar_prefetch = 0 : i64, scratch_operands = 0 : i64, tpu.core_type = #tpu.core_type<tc>, window_params = [{transform_indices = @transform_0, window_bounds = array<i64: 16, 128>}, {pipeline_mode = #tpu.pipeline_mode<synchronous>, transform_indices = @transform_1, window_bounds = array<i64: 1, 128>}, {pipeline_mode = #tpu.pipeline_mode<synchronous>, transform_indices = @transform_2, window_bounds = array<i64: 1, 128>}, {transform_indices = @transform_3, window_bounds = array<i64: 16, 128>}]} {
    %c0 = arith.constant 0 : index
    %c0_0 = arith.constant 0 : index
    %0 = vector.load %arg1[%c0, %c0_0] : memref<16x128xbf16, #tpu.memory_space<vmem>>, vector<16x128xbf16>
    %1 = arith.extf %0 : vector<16x128xbf16> to vector<16x128xf32>
    %c0_1 = arith.constant 0 : index
    %c0_2 = arith.constant 0 : index
    %2 = vector.load %arg2[%c0_1, %c0_2] : memref<1x128xf32, #tpu.memory_space<vmem>>, vector<1x128xf32>
    %3 = vector.broadcast %2 : vector<1x128xf32> to vector<16x128xf32>
    %4 = arith.mulf %1, %3 : vector<16x128xf32>
    %c0_3 = arith.constant 0 : index
    %c0_4 = arith.constant 0 : index
    %5 = vector.load %arg3[%c0_3, %c0_4] : memref<1x128xf32, #tpu.memory_space<vmem>>, vector<1x128xf32>
    %6 = vector.broadcast %5 : vector<1x128xf32> to vector<16x128xf32>
    %7 = arith.addf %4, %6 : vector<16x128xf32>
    %cst = arith.constant 0.000000e+00 : f32
    %8 = vector.broadcast %cst : f32 to vector<16x128xf32>
    %9 = arith.maximumf %7, %8 : vector<16x128xf32>
    %10 = arith.truncf %9 : vector<16x128xf32> to vector<16x128xbf16>
    %c0_5 = arith.constant 0 : index
    %c0_6 = arith.constant 0 : index
    %11 = vector.load %arg4[%c0_5, %c0_6] : memref<16x128xbf16, #tpu.memory_space<vmem>>, vector<16x128xbf16>
    tpu.vector_store %arg4[%c0_5, %c0_6], %10 {strides = array<i32>} : memref<16x128xbf16, #tpu.memory_space<vmem>>, vector<16x128xbf16>,
    return
  }
  func.func @transform_0(%arg0: i32) -> (i32, i32) {
    %c0_i32 = arith.constant 0 : i32
    %c0_i32_0 = arith.constant 0 : i32
    return %arg0, %c0_i32 : i32, i32
  }
  func.func @transform_1(%arg0: i32) -> (i32, i32) {
    %c0_i32 = arith.constant 0 : i32
    %c0_i32_0 = arith.constant 0 : i32
    %c0_i32_1 = arith.constant 0 : i32
    return %c0_i32, %c0_i32_0 : i32, i32
  }
  func.func @transform_2(%arg0: i32) -> (i32, i32) {
    %c0_i32 = arith.constant 0 : i32
    %c0_i32_0 = arith.constant 0 : i32
    %c0_i32_1 = arith.constant 0 : i32
    return %c0_i32, %c0_i32_0 : i32, i32
  }
  func.func @transform_3(%arg0: i32) -> (i32, i32) {
    %c0_i32 = arith.constant 0 : i32
    %c0_i32_0 = arith.constant 0 : i32
    return %arg0, %c0_i32 : i32, i32
  }
}

module attributes {stable_mosaic.version = 11 : i64} {
  func.func @_conv3x3_stats_kernel(%arg0: i32, %arg1: memref<1x10x8x48xbf16, #tpu.memory_space<vmem>>, %arg2: memref<3x48x16xbf16, #tpu.memory_space<vmem>>, %arg3: memref<64x16xbf16, #tpu.memory_space<vmem>>, %arg4: memref<8x16xf32, #tpu.memory_space<vmem>>, %arg5: memref<8x16xf32, #tpu.memory_space<vmem>>) attributes {dimension_semantics = [#tpu.dimension_semantics<parallel>], iteration_bounds = array<i64: 2>, scalar_prefetch = 0 : i64, scratch_operands = 0 : i64, tpu.core_type = #tpu.core_type<tc>, window_params = [{transform_indices = @transform_0, window_bounds = array<i64: 1, 10, 8, 48>}, {pipeline_mode = #tpu.pipeline_mode<synchronous>, transform_indices = @transform_1, window_bounds = array<i64: 3, 48, 16>}, {transform_indices = @transform_2, window_bounds = array<i64: 64, 16>}, {transform_indices = @transform_3, window_bounds = array<i64: 8, 16>}, {transform_indices = @transform_4, window_bounds = array<i64: 8, 16>}]} {
    %cst = arith.constant 0.000000e+00 : f32
    %0 = vector.broadcast %cst : f32 to vector<64x16xf32>
    %c0 = arith.constant 0 : index
    %c0_0 = arith.constant 0 : index
    %c0_1 = arith.constant 0 : index
    %c0_2 = arith.constant 0 : index
    %1 = vector.load %arg1[%c0, %c0_0, %c0_1, %c0_2] : memref<1x10x8x48xbf16, #tpu.memory_space<vmem>>, vector<1x8x8x48xbf16>
    %2 = vector.shape_cast %1 : vector<1x8x8x48xbf16> to vector<8x8x48xbf16>
    %3 = arith.extf %2 : vector<8x8x48xbf16> to vector<8x8x48xf32>
    %4 = vector.shape_cast %3 : vector<8x8x48xf32> to vector<64x48xf32>
    %5 = arith.truncf %4 : vector<64x48xf32> to vector<64x48xbf16>
    %c0_3 = arith.constant 0 : index
    %c0_4 = arith.constant 0 : index
    %c0_5 = arith.constant 0 : index
    %6 = vector.load %arg2[%c0_3, %c0_4, %c0_5] : memref<3x48x16xbf16, #tpu.memory_space<vmem>>, vector<1x48x16xbf16>
    %7 = vector.shape_cast %6 : vector<1x48x16xbf16> to vector<48x16xbf16>
    %cst_6 = arith.constant dense<0.000000e+00> : vector<64x16xf32>
    %8 = tpu.matmul %5, %7, %cst_6 {dimension_numbers = #tpu.dot_dimension_numbers<[1], [0], [0], [1], [0, 0, 1, 1], [], []>} : vector<64x48xbf16>, vector<48x16xbf16>, vector<64x16xf32> -> vector<64x16xf32>
    %9 = arith.addf %0, %8 : vector<64x16xf32>
    %c0_7 = arith.constant 0 : index
    %c1 = arith.constant 1 : index
    %c0_8 = arith.constant 0 : index
    %c0_9 = arith.constant 0 : index
    %10 = vector.load %arg1[%c0_7, %c1, %c0_8, %c0_9] : memref<1x10x8x48xbf16, #tpu.memory_space<vmem>>, vector<1x8x8x48xbf16>
    %11 = vector.shape_cast %10 : vector<1x8x8x48xbf16> to vector<8x8x48xbf16>
    %12 = arith.extf %11 : vector<8x8x48xbf16> to vector<8x8x48xf32>
    %13 = vector.shape_cast %12 : vector<8x8x48xf32> to vector<64x48xf32>
    %14 = arith.truncf %13 : vector<64x48xf32> to vector<64x48xbf16>
    %c1_10 = arith.constant 1 : index
    %c0_11 = arith.constant 0 : index
    %c0_12 = arith.constant 0 : index
    %15 = vector.load %arg2[%c1_10, %c0_11, %c0_12] : memref<3x48x16xbf16, #tpu.memory_space<vmem>>, vector<1x48x16xbf16>
    %16 = vector.shape_cast %15 : vector<1x48x16xbf16> to vector<48x16xbf16>
    %cst_13 = arith.constant dense<0.000000e+00> : vector<64x16xf32>
    %17 = tpu.matmul %14, %16, %cst_13 {dimension_numbers = #tpu.dot_dimension_numbers<[1], [0], [0], [1], [0, 0, 1, 1], [], []>} : vector<64x48xbf16>, vector<48x16xbf16>, vector<64x16xf32> -> vector<64x16xf32>
    %18 = arith.addf %9, %17 : vector<64x16xf32>
    %c0_14 = arith.constant 0 : index
    %c2 = arith.constant 2 : index
    %c0_15 = arith.constant 0 : index
    %c0_16 = arith.constant 0 : index
    %19 = vector.load %arg1[%c0_14, %c2, %c0_15, %c0_16] : memref<1x10x8x48xbf16, #tpu.memory_space<vmem>>, vector<1x8x8x48xbf16>
    %20 = vector.shape_cast %19 : vector<1x8x8x48xbf16> to vector<8x8x48xbf16>
    %21 = arith.extf %20 : vector<8x8x48xbf16> to vector<8x8x48xf32>
    %22 = vector.shape_cast %21 : vector<8x8x48xf32> to vector<64x48xf32>
    %23 = arith.truncf %22 : vector<64x48xf32> to vector<64x48xbf16>
    %c2_17 = arith.constant 2 : index
    %c0_18 = arith.constant 0 : index
    %c0_19 = arith.constant 0 : index
    %24 = vector.load %arg2[%c2_17, %c0_18, %c0_19] : memref<3x48x16xbf16, #tpu.memory_space<vmem>>, vector<1x48x16xbf16>
    %25 = vector.shape_cast %24 : vector<1x48x16xbf16> to vector<48x16xbf16>
    %cst_20 = arith.constant dense<0.000000e+00> : vector<64x16xf32>
    %26 = tpu.matmul %23, %25, %cst_20 {dimension_numbers = #tpu.dot_dimension_numbers<[1], [0], [0], [1], [0, 0, 1, 1], [], []>} : vector<64x48xbf16>, vector<48x16xbf16>, vector<64x16xf32> -> vector<64x16xf32>
    %27 = arith.addf %18, %26 : vector<64x16xf32>
    %28 = arith.truncf %27 : vector<64x16xf32> to vector<64x16xbf16>
    %c0_21 = arith.constant 0 : index
    %c0_22 = arith.constant 0 : index
    %29 = vector.load %arg3[%c0_21, %c0_22] : memref<64x16xbf16, #tpu.memory_space<vmem>>, vector<64x16xbf16>
    tpu.vector_store %arg3[%c0_21, %c0_22], %28 {strides = array<i32>} : memref<64x16xbf16, #tpu.memory_space<vmem>>, vector<64x16xbf16>,
    %cst_23 = arith.constant dense<0.000000e+00> : vector<16xf32>
    %30 = vector.multi_reduction <add>, %27, %cst_23 [0] : vector<64x16xf32> to vector<16xf32>
    %31 = vector.shape_cast %30 : vector<16xf32> to vector<1x16xf32>
    %32 = vector.shape_cast %31 : vector<1x16xf32> to vector<1x16xf32>
    %33 = vector.broadcast %32 : vector<1x16xf32> to vector<8x16xf32>
    %c0_24 = arith.constant 0 : index
    %c0_25 = arith.constant 0 : index
    %34 = vector.load %arg4[%c0_24, %c0_25] : memref<8x16xf32, #tpu.memory_space<vmem>>, vector<8x16xf32>
    tpu.vector_store %arg4[%c0_24, %c0_25], %33 {strides = array<i32>} : memref<8x16xf32, #tpu.memory_space<vmem>>, vector<8x16xf32>,
    %35 = arith.mulf %27, %27 : vector<64x16xf32>
    %cst_26 = arith.constant dense<0.000000e+00> : vector<16xf32>
    %36 = vector.multi_reduction <add>, %35, %cst_26 [0] : vector<64x16xf32> to vector<16xf32>
    %37 = vector.shape_cast %36 : vector<16xf32> to vector<1x16xf32>
    %38 = vector.shape_cast %37 : vector<1x16xf32> to vector<1x16xf32>
    %39 = vector.broadcast %38 : vector<1x16xf32> to vector<8x16xf32>
    %c0_27 = arith.constant 0 : index
    %c0_28 = arith.constant 0 : index
    %40 = vector.load %arg5[%c0_27, %c0_28] : memref<8x16xf32, #tpu.memory_space<vmem>>, vector<8x16xf32>
    tpu.vector_store %arg5[%c0_27, %c0_28], %39 {strides = array<i32>} : memref<8x16xf32, #tpu.memory_space<vmem>>, vector<8x16xf32>,
    return
  }
  func.func @transform_0(%arg0: i32) -> (i32, i32, i32, i32) {
    %c0_i32 = arith.constant 0 : i32
    %c0_i32_0 = arith.constant 0 : i32
    %c0_i32_1 = arith.constant 0 : i32
    %c0_i32_2 = arith.constant 0 : i32
    return %arg0, %c0_i32, %c0_i32_0, %c0_i32_1 : i32, i32, i32, i32
  }
  func.func @transform_1(%arg0: i32) -> (i32, i32, i32) {
    %c0_i32 = arith.constant 0 : i32
    %c0_i32_0 = arith.constant 0 : i32
    %c0_i32_1 = arith.constant 0 : i32
    %c0_i32_2 = arith.constant 0 : i32
    return %c0_i32, %c0_i32_0, %c0_i32_1 : i32, i32, i32
  }
  func.func @transform_2(%arg0: i32) -> (i32, i32) {
    %c0_i32 = arith.constant 0 : i32
    %c0_i32_0 = arith.constant 0 : i32
    return %arg0, %c0_i32 : i32, i32
  }
  func.func @transform_3(%arg0: i32) -> (i32, i32) {
    %c0_i32 = arith.constant 0 : i32
    %c0_i32_0 = arith.constant 0 : i32
    return %arg0, %c0_i32 : i32, i32
  }
  func.func @transform_4(%arg0: i32) -> (i32, i32) {
    %c0_i32 = arith.constant 0 : i32
    %c0_i32_0 = arith.constant 0 : i32
    return %arg0, %c0_i32 : i32, i32
  }
}

module attributes {stable_mosaic.version = 11 : i64} {
  func.func @_cbam_kernel(%arg0: i32, %arg1: memref<1x8x8x16xbf16, #tpu.memory_space<vmem>>, %arg2: memref<16x1xf32, #tpu.memory_space<vmem>>, %arg3: memref<1x16xf32, #tpu.memory_space<vmem>>, %arg4: memref<98xf32, #tpu.memory_space<smem>>, %arg5: memref<1x8x8x16xf32, #tpu.memory_space<vmem>>, %arg6: memref<2x14x24x1xf32, #tpu.memory_space<vmem>>) attributes {dimension_semantics = [#tpu.dimension_semantics<arbitrary>], iteration_bounds = array<i64: 2>, scalar_prefetch = 0 : i64, scratch_operands = 1 : i64, tpu.core_type = #tpu.core_type<tc>, window_params = [{transform_indices = @transform_0, window_bounds = array<i64: 1, 8, 8, 16>}, {pipeline_mode = #tpu.pipeline_mode<synchronous>, transform_indices = @transform_1, window_bounds = array<i64: 16, 1>}, {pipeline_mode = #tpu.pipeline_mode<synchronous>, transform_indices = @transform_2, window_bounds = array<i64: 1, 16>}, {transform_indices = @transform_3, window_bounds = array<i64: 98>}, {transform_indices = @transform_4, window_bounds = array<i64: 1, 8, 8, 16>}]} {
    %c0 = arith.constant 0 : index
    %c0_0 = arith.constant 0 : index
    %c0_1 = arith.constant 0 : index
    %c0_2 = arith.constant 0 : index
    %0 = vector.load %arg1[%c0, %c0_0, %c0_1, %c0_2] : memref<1x8x8x16xbf16, #tpu.memory_space<vmem>>, vector<1x8x8x16xbf16>
    %1 = vector.shape_cast %0 : vector<1x8x8x16xbf16> to vector<8x8x16xbf16>
    %2 = arith.extf %1 : vector<8x8x16xbf16> to vector<8x8x16xf32>
    %3 = vector.shape_cast %2 : vector<8x8x16xf32> to vector<64x16xf32>
    %cst = arith.constant dense<0.000000e+00> : vector<16xf32>
    %4 = vector.multi_reduction <add>, %3, %cst [0] : vector<64x16xf32> to vector<16xf32>
    %5 = vector.shape_cast %4 : vector<16xf32> to vector<1x16xf32>
    %cst_3 = arith.constant 6.400000e+01 : f32
    %6 = vector.broadcast %cst_3 : f32 to vector<1x16xf32>
    %7 = arith.divf %5, %6 : vector<1x16xf32>
    %c0_4 = arith.constant 0 : index
    %c0_5 = arith.constant 0 : index
    %8 = vector.load %arg2[%c0_4, %c0_5] : memref<16x1xf32, #tpu.memory_space<vmem>>, vector<16x1xf32>
    %cst_6 = arith.constant dense<0.000000e+00> : vector<1x1xf32>
    %9 = tpu.matmul %7, %8, %cst_6 {dimension_numbers = #tpu.dot_dimension_numbers<[1], [0], [0], [1], [0, 0, 1, 1], [], []>} : vector<1x16xf32>, vector<16x1xf32>, vector<1x1xf32> -> vector<1x1xf32>
    %cst_7 = arith.constant 0.000000e+00 : f32
    %10 = vector.broadcast %cst_7 : f32 to vector<1x1xf32>
    %11 = arith.maximumf %9, %10 : vector<1x1xf32>
    %c0_8 = arith.constant 0 : index
    %c0_9 = arith.constant 0 : index
    %12 = vector.load %arg3[%c0_8, %c0_9] : memref<1x16xf32, #tpu.memory_space<vmem>>, vector<1x16xf32>
    %cst_10 = arith.constant dense<0.000000e+00> : vector<1x16xf32>
    %13 = tpu.matmul %11, %12, %cst_10 {dimension_numbers = #tpu.dot_dimension_numbers<[1], [0], [0], [1], [0, 0, 1, 1], [], []>} : vector<1x1xf32>, vector<1x16xf32>, vector<1x16xf32> -> vector<1x16xf32>
    %14 = arith.negf %13 : vector<1x16xf32>
    %15 = math.exp %14 : vector<1x16xf32>
    %cst_11 = arith.constant 1.000000e+00 : f32
    %16 = vector.broadcast %cst_11 : f32 to vector<1x16xf32>
    %17 = arith.addf %16, %15 : vector<1x16xf32>
    %18 = arith.divf %16, %17 : vector<1x16xf32>
    %c0_12 = arith.constant 0 : index
    %c0_13 = arith.constant 0 : index
    %c0_14 = arith.constant 0 : index
    %c0_15 = arith.constant 0 : index
    %19 = vector.load %arg1[%c0_12, %c0_13, %c0_14, %c0_15] : memref<1x8x8x16xbf16, #tpu.memory_space<vmem>>, vector<1x8x8x16xbf16>
    %20 = vector.shape_cast %19 : vector<1x8x8x16xbf16> to vector<8x8x16xbf16>
    %21 = arith.truncf %18 : vector<1x16xf32> to vector<1x16xbf16>
    %22 = vector.shape_cast %21 : vector<1x16xbf16> to vector<1x1x16xbf16>
    %23 = vector.broadcast %22 : vector<1x1x16xbf16> to vector<8x8x16xbf16>
    %24 = arith.mulf %20, %23 : vector<8x8x16xbf16>
    %25 = arith.extf %24 : vector<8x8x16xbf16> to vector<8x8x16xf32>
    %cst_16 = arith.constant dense<0.000000e+00> : vector<8x8xf32>
    %26 = vector.multi_reduction <add>, %25, %cst_16 [2] : vector<8x8x16xf32> to vector<8x8xf32>
    %27 = vector.shape_cast %26 : vector<8x8xf32> to vector<8x8x1xf32>
    %cst_17 = arith.constant 1.600000e+01 : f32
    %28 = vector.broadcast %cst_17 : f32 to vector<8x8x1xf32>
    %29 = arith.divf %27, %28 : vector<8x8x1xf32>
    %cst_18 = arith.constant dense<0xFF800000> : vector<8x8xf32>
    %30 = vector.multi_reduction <maximumf>, %25, %cst_18 [2] : vector<8x8x16xf32> to vector<8x8xf32>
    %31 = vector.shape_cast %30 : vector<8x8xf32> to vector<8x8x1xf32>
    %c0_i32 = arith.constant 0 : i32
    %32 = arith.cmpi eq, %arg0, %c0_i32 : i32
    %33 = arith.extui %32 : i1 to i32
    %c0_i32_19 = arith.constant 0 : i32
    %34 = arith.cmpi ne, %33, %c0_i32_19 : i32
    scf.if %34 {
      %cst_427 = arith.constant 0.000000e+00 : f32
      %640 = vector.broadcast %cst_427 : f32 to vector<2x14x24x1xf32>
      %c0_428 = arith.constant 0 : index
      %c0_429 = arith.constant 0 : index
      %c0_430 = arith.constant 0 : index
      %c0_431 = arith.constant 0 : index
      %641 = vector.load %arg6[%c0_428, %c0_429, %c0_430, %c0_431] : memref<2x14x24x1xf32, #tpu.memory_space<vmem>>, vector<2x14x24x1xf32>
      tpu.vector_store %arg6[%c0_428, %c0_429, %c0_430, %c0_431], %640 {strides = array<i32>} : memref<2x14x24x1xf32, #tpu.memory_space<vmem>>, vector<2x14x24x1xf32>,
    } else {
    }
    %c0_20 = arith.constant 0 : index
    %c3 = arith.constant 3 : index
    %c8 = arith.constant 8 : index
    %c0_21 = arith.constant 0 : index
    %35 = vector.load %arg6[%c0_20, %c3, %c8, %c0_21] : memref<2x14x24x1xf32, #tpu.memory_space<vmem>>, vector<1x8x8x1xf32>
    %36 = vector.shape_cast %35 : vector<1x8x8x1xf32> to vector<8x8x1xf32>
    %37 = vector.shape_cast %29 : vector<8x8x1xf32> to vector<1x8x8x1xf32>
    tpu.vector_store %arg6[%c0_20, %c3, %c8, %c0_21], %37 {strides = array<i32>} : memref<2x14x24x1xf32, #tpu.memory_space<vmem>>, vector<1x8x8x1xf32>,
    %c1 = arith.constant 1 : index
    %c3_22 = arith.constant 3 : index
    %c8_23 = arith.constant 8 : index
    %c0_24 = arith.constant 0 : index
    %38 = vector.load %arg6[%c1, %c3_22, %c8_23, %c0_24] : memref<2x14x24x1xf32, #tpu.memory_space<vmem>>, vector<1x8x8x1xf32>
    %39 = vector.shape_cast %38 : vector<1x8x8x1xf32> to vector<8x8x1xf32>
    %40 = vector.shape_cast %31 : vector<8x8x1xf32> to vector<1x8x8x1xf32>
    tpu.vector_store %arg6[%c1, %c3_22, %c8_23, %c0_24], %40 {strides = array<i32>} : memref<2x14x24x1xf32, #tpu.memory_space<vmem>>, vector<1x8x8x1xf32>,
    %cst_25 = arith.constant 0.000000e+00 : f32
    %41 = vector.broadcast %cst_25 : f32 to vector<8x8x1xf32>
    %c0_26 = arith.constant 0 : index
    %42 = memref.load %arg4[%c0_26] : memref<98xf32, #tpu.memory_space<smem>>
    %c49 = arith.constant 49 : index
    %43 = memref.load %arg4[%c49] : memref<98xf32, #tpu.memory_space<smem>>
    %c0_27 = arith.constant 0 : index
    %c0_28 = arith.constant 0 : index
    %c5 = arith.constant 5 : index
    %c0_29 = arith.constant 0 : index
    %44 = vector.load %arg6[%c0_27, %c0_28, %c5, %c0_29] : memref<2x14x24x1xf32, #tpu.memory_space<vmem>>, vector<1x8x8x1xf32>
    %45 = vector.shape_cast %44 : vector<1x8x8x1xf32> to vector<8x8x1xf32>
    %46 = vector.broadcast %42 : f32 to vector<8x8x1xf32>
    %47 = arith.mulf %46, %45 : vector<8x8x1xf32>
    %48 = arith.addf %41, %47 : vector<8x8x1xf32>
    %c1_30 = arith.constant 1 : index
    %c0_31 = arith.constant 0 : index
    %c5_32 = arith.constant 5 : index
    %c0_33 = arith.constant 0 : index
    %49 = vector.load %arg6[%c1_30, %c0_31, %c5_32, %c0_33] : memref<2x14x24x1xf32, #tpu.memory_space<vmem>>, vector<1x8x8x1xf32>
    %50 = vector.shape_cast %49 : vector<1x8x8x1xf32> to vector<8x8x1xf32>
    %51 = vector.broadcast %43 : f32 to vector<8x8x1xf32>
    %52 = arith.mulf %51, %50 : vector<8x8x1xf32>
    %53 = arith.addf %48, %52 : vector<8x8x1xf32>
    %c1_34 = arith.constant 1 : index
    %54 = memref.load %arg4[%c1_34] : memref<98xf32, #tpu.memory_space<smem>>
    %c50 = arith.constant 50 : index
    %55 = memref.load %arg4[%c50] : memref<98xf32, #tpu.memory_space<smem>>
    %c0_35 = arith.constant 0 : index
    %c0_36 = arith.constant 0 : index
    %c6 = arith.constant 6 : index
    %c0_37 = arith.constant 0 : index
    %56 = vector.load %arg6[%c0_35, %c0_36, %c6, %c0_37] : memref<2x14x24x1xf32, #tpu.memory_space<vmem>>, vector<1x8x8x1xf32>
    %57 = vector.shape_cast %56 : vector<1x8x8x1xf32> to vector<8x8x1xf32>
    %58 = vector.broadcast %54 : f32 to vector<8x8x1xf32>
    %59 = arith.mulf %58, %57 : vector<8x8x1xf32>
    %60 = arith.addf %53, %59 : vector<8x8x1xf32>
    %c1_38 = arith.constant 1 : index
    %c0_39 = arith.constant 0 : index
    %c6_40 = arith.constant 6 : index
    %c0_41 = arith.constant 0 : index
    %61 = vector.load %arg6[%c1_38, %c0_39, %c6_40, %c0_41] : memref<2x14x24x1xf32, #tpu.memory_space<vmem>>, vector<1x8x8x1xf32>
    %62 = vector.shape_cast %61 : vector<1x8x8x1xf32> to vector<8x8x1xf32>
    %63 = vector.broadcast %55 : f32 to vector<8x8x1xf32>
    %64 = arith.mulf %63, %62 : vector<8x8x1xf32>
    %65 = arith.addf %60, %64 : vector<8x8x1xf32>
    %c2 = arith.constant 2 : index
    %66 = memref.load %arg4[%c2] : memref<98xf32, #tpu.memory_space<smem>>
    %c51 = arith.constant 51 : index
    %67 = memref.load %arg4[%c51] : memref<98xf32, #tpu.memory_space<smem>>
    %c0_42 = arith.constant 0 : index
    %c0_43 = arith.constant 0 : index
    %c7 = arith.constant 7 : index
    %c0_44 = arith.constant 0 : index
    %68 = vector.load %arg6[%c0_42, %c0_43, %c7, %c0_44] : memref<2x14x24x1xf32, #tpu.memory_space<vmem>>, vector<1x8x8x1xf32>
    %69 = vector.shape_cast %68 : vector<1x8x8x1xf32> to vector<8x8x1xf32>
    %70 = vector.broadcast %66 : f32 to vector<8x8x1xf32>
    %71 = arith.mulf %70, %69 : vector<8x8x1xf32>
    %72 = arith.addf %65, %71 : vector<8x8x1xf32>
    %c1_45 = arith.constant 1 : index
    %c0_46 = arith.constant 0 : index
    %c7_47 = arith.constant 7 : index
    %c0_48 = arith.constant 0 : index
    %73 = vector.load %arg6[%c1_45, %c0_46, %c7_47, %c0_48] : memref<2x14x24x1xf32, #tpu.memory_space<vmem>>, vector<1x8x8x1xf32>
    %74 = vector.shape_cast %73 : vector<1x8x8x1xf32> to vector<8x8x1xf32>
    %75 = vector.broadcast %67 : f32 to vector<8x8x1xf32>
    %76 = arith.mulf %75, %74 : vector<8x8x1xf32>
    %77 = arith.addf %72, %76 : vector<8x8x1xf32>
    %c3_49 = arith.constant 3 : index
    %78 = memref.load %arg4[%c3_49] : memref<98xf32, #tpu.memory_space<smem>>
    %c52 = arith.constant 52 : index
    %79 = memref.load %arg4[%c52] : memref<98xf32, #tpu.memory_space<smem>>
    %c0_50 = arith.constant 0 : index
    %c0_51 = arith.constant 0 : index
    %c8_52 = arith.constant 8 : index
    %c0_53 = arith.constant 0 : index
    %80 = vector.load %arg6[%c0_50, %c0_51, %c8_52, %c0_53] : memref<2x14x24x1xf32, #tpu.memory_space<vmem>>, vector<1x8x8x1xf32>
    %81 = vector.shape_cast %80 : vector<1x8x8x1xf32> to vector<8x8x1xf32>
    %82 = vector.broadcast %78 : f32 to vector<8x8x1xf32>
    %83 = arith.mulf %82, %81 : vector<8x8x1xf32>
    %84 = arith.addf %77, %83 : vector<8x8x1xf32>
    %c1_54 = arith.constant 1 : index
    %c0_55 = arith.constant 0 : index
    %c8_56 = arith.constant 8 : index
    %c0_57 = arith.constant 0 : index
    %85 = vector.load %arg6[%c1_54, %c0_55, %c8_56, %c0_57] : memref<2x14x24x1xf32, #tpu.memory_space<vmem>>, vector<1x8x8x1xf32>
    %86 = vector.shape_cast %85 : vector<1x8x8x1xf32> to vector<8x8x1xf32>
    %87 = vector.broadcast %79 : f32 to vector<8x8x1xf32>
    %88 = arith.mulf %87, %86 : vector<8x8x1xf32>
    %89 = arith.addf %84, %88 : vector<8x8x1xf32>
    %c4 = arith.constant 4 : index
    %90 = memref.load %arg4[%c4] : memref<98xf32, #tpu.memory_space<smem>>
    %c53 = arith.constant 53 : index
    %91 = memref.load %arg4[%c53] : memref<98xf32, #tpu.memory_space<smem>>
    %c0_58 = arith.constant 0 : index
    %c0_59 = arith.constant 0 : index
    %c9 = arith.constant 9 : index
    %c0_60 = arith.constant 0 : index
    %92 = vector.load %arg6[%c0_58, %c0_59, %c9, %c0_60] : memref<2x14x24x1xf32, #tpu.memory_space<vmem>>, vector<1x8x8x1xf32>
    %93 = vector.shape_cast %92 : vector<1x8x8x1xf32> to vector<8x8x1xf32>
    %94 = vector.broadcast %90 : f32 to vector<8x8x1xf32>
    %95 = arith.mulf %94, %93 : vector<8x8x1xf32>
    %96 = arith.addf %89, %95 : vector<8x8x1xf32>
    %c1_61 = arith.constant 1 : index
    %c0_62 = arith.constant 0 : index
    %c9_63 = arith.constant 9 : index
    %c0_64 = arith.constant 0 : index
    %97 = vector.load %arg6[%c1_61, %c0_62, %c9_63, %c0_64] : memref<2x14x24x1xf32, #tpu.memory_space<vmem>>, vector<1x8x8x1xf32>
    %98 = vector.shape_cast %97 : vector<1x8x8x1xf32> to vector<8x8x1xf32>
    %99 = vector.broadcast %91 : f32 to vector<8x8x1xf32>
    %100 = arith.mulf %99, %98 : vector<8x8x1xf32>
    %101 = arith.addf %96, %100 : vector<8x8x1xf32>
    %c5_65 = arith.constant 5 : index
    %102 = memref.load %arg4[%c5_65] : memref<98xf32, #tpu.memory_space<smem>>
    %c54 = arith.constant 54 : index
    %103 = memref.load %arg4[%c54] : memref<98xf32, #tpu.memory_space<smem>>
    %c0_66 = arith.constant 0 : index
    %c0_67 = arith.constant 0 : index
    %c10 = arith.constant 10 : index
    %c0_68 = arith.constant 0 : index
    %104 = vector.load %arg6[%c0_66, %c0_67, %c10, %c0_68] : memref<2x14x24x1xf32, #tpu.memory_space<vmem>>, vector<1x8x8x1xf32>
    %105 = vector.shape_cast %104 : vector<1x8x8x1xf32> to vector<8x8x1xf32>
    %106 = vector.broadcast %102 : f32 to vector<8x8x1xf32>
    %107 = arith.mulf %106, %105 : vector<8x8x1xf32>
    %108 = arith.addf %101, %107 : vector<8x8x1xf32>
    %c1_69 = arith.constant 1 : index
    %c0_70 = arith.constant 0 : index
    %c10_71 = arith.constant 10 : index
    %c0_72 = arith.constant 0 : index
    %109 = vector.load %arg6[%c1_69, %c0_70, %c10_71, %c0_72] : memref<2x14x24x1xf32, #tpu.memory_space<vmem>>, vector<1x8x8x1xf32>
    %110 = vector.shape_cast %109 : vector<1x8x8x1xf32> to vector<8x8x1xf32>
    %111 = vector.broadcast %103 : f32 to vector<8x8x1xf32>
    %112 = arith.mulf %111, %110 : vector<8x8x1xf32>
    %113 = arith.addf %108, %112 : vector<8x8x1xf32>
    %c6_73 = arith.constant 6 : index
    %114 = memref.load %arg4[%c6_73] : memref<98xf32, #tpu.memory_space<smem>>
    %c55 = arith.constant 55 : index
    %115 = memref.load %arg4[%c55] : memref<98xf32, #tpu.memory_space<smem>>
    %c0_74 = arith.constant 0 : index
    %c0_75 = arith.constant 0 : index
    %c11 = arith.constant 11 : index
    %c0_76 = arith.constant 0 : index
    %116 = vector.load %arg6[%c0_74, %c0_75, %c11, %c0_76] : memref<2x14x24x1xf32, #tpu.memory_space<vmem>>, vector<1x8x8x1xf32>
    %117 = vector.shape_cast %116 : vector<1x8x8x1xf32> to vector<8x8x1xf32>
    %118 = vector.broadcast %114 : f32 to vector<8x8x1xf32>
    %119 = arith.mulf %118, %117 : vector<8x8x1xf32>
    %120 = arith.addf %113, %119 : vector<8x8x1xf32>
    %c1_77 = arith.constant 1 : index
    %c0_78 = arith.constant 0 : index
    %c11_79 = arith.constant 11 : index
    %c0_80 = arith.constant 0 : index
    %121 = vector.load %arg6[%c1_77, %c0_78, %c11_79, %c0_80] : memref<2x14x24x1xf32, #tpu.memory_space<vmem>>, vector<1x8x8x1xf32>
    %122 = vector.shape_cast %121 : vector<1x8x8x1xf32> to vector<8x8x1xf32>
    %123 = vector.broadcast %115 : f32 to vector<8x8x1xf32>
    %124 = arith.mulf %123, %122 : vector<8x8x1xf32>
    %125 = arith.addf %120, %124 : vector<8x8x1xf32>
    %c7_81 = arith.constant 7 : index
    %126 = memref.load %arg4[%c7_81] : memref<98xf32, #tpu.memory_space<smem>>
    %c56 = arith.constant 56 : index
    %127 = memref.load %arg4[%c56] : memref<98xf32, #tpu.memory_space<smem>>
    %c0_82 = arith.constant 0 : index
    %c1_83 = arith.constant 1 : index
    %c5_84 = arith.constant 5 : index
    %c0_85 = arith.constant 0 : index
    %128 = vector.load %arg6[%c0_82, %c1_83, %c5_84, %c0_85] : memref<2x14x24x1xf32, #tpu.memory_space<vmem>>, vector<1x8x8x1xf32>
    %129 = vector.shape_cast %128 : vector<1x8x8x1xf32> to vector<8x8x1xf32>
    %130 = vector.broadcast %126 : f32 to vector<8x8x1xf32>
    %131 = arith.mulf %130, %129 : vector<8x8x1xf32>
    %132 = arith.addf %125, %131 : vector<8x8x1xf32>
    %c1_86 = arith.constant 1 : index
    %c1_87 = arith.constant 1 : index
    %c5_88 = arith.constant 5 : index
    %c0_89 = arith.constant 0 : index
    %133 = vector.load %arg6[%c1_86, %c1_87, %c5_88, %c0_89] : memref<2x14x24x1xf32, #tpu.memory_space<vmem>>, vector<1x8x8x1xf32>
    %134 = vector.shape_cast %133 : vector<1x8x8x1xf32> to vector<8x8x1xf32>
    %135 = vector.broadcast %127 : f32 to vector<8x8x1xf32>
    %136 = arith.mulf %135, %134 : vector<8x8x1xf32>
    %137 = arith.addf %132, %136 : vector<8x8x1xf32>
    %c8_90 = arith.constant 8 : index
    %138 = memref.load %arg4[%c8_90] : memref<98xf32, #tpu.memory_space<smem>>
    %c57 = arith.constant 57 : index
    %139 = memref.load %arg4[%c57] : memref<98xf32, #tpu.memory_space<smem>>
    %c0_91 = arith.constant 0 : index
    %c1_92 = arith.constant 1 : index
    %c6_93 = arith.constant 6 : index
    %c0_94 = arith.constant 0 : index
    %140 = vector.load %arg6[%c0_91, %c1_92, %c6_93, %c0_94] : memref<2x14x24x1xf32, #tpu.memory_space<vmem>>, vector<1x8x8x1xf32>
    %141 = vector.shape_cast %140 : vector<1x8x8x1xf32> to vector<8x8x1xf32>
    %142 = vector.broadcast %138 : f32 to vector<8x8x1xf32>
    %143 = arith.mulf %142, %141 : vector<8x8x1xf32>
    %144 = arith.addf %137, %143 : vector<8x8x1xf32>
    %c1_95 = arith.constant 1 : index
    %c1_96 = arith.constant 1 : index
    %c6_97 = arith.constant 6 : index
    %c0_98 = arith.constant 0 : index
    %145 = vector.load %arg6[%c1_95, %c1_96, %c6_97, %c0_98] : memref<2x14x24x1xf32, #tpu.memory_space<vmem>>, vector<1x8x8x1xf32>
    %146 = vector.shape_cast %145 : vector<1x8x8x1xf32> to vector<8x8x1xf32>
    %147 = vector.broadcast %139 : f32 to vector<8x8x1xf32>
    %148 = arith.mulf %147, %146 : vector<8x8x1xf32>
    %149 = arith.addf %144, %148 : vector<8x8x1xf32>
    %c9_99 = arith.constant 9 : index
    %150 = memref.load %arg4[%c9_99] : memref<98xf32, #tpu.memory_space<smem>>
    %c58 = arith.constant 58 : index
    %151 = memref.load %arg4[%c58] : memref<98xf32, #tpu.memory_space<smem>>
    %c0_100 = arith.constant 0 : index
    %c1_101 = arith.constant 1 : index
    %c7_102 = arith.constant 7 : index
    %c0_103 = arith.constant 0 : index
    %152 = vector.load %arg6[%c0_100, %c1_101, %c7_102, %c0_103] : memref<2x14x24x1xf32, #tpu.memory_space<vmem>>, vector<1x8x8x1xf32>
    %153 = vector.shape_cast %152 : vector<1x8x8x1xf32> to vector<8x8x1xf32>
    %154 = vector.broadcast %150 : f32 to vector<8x8x1xf32>
    %155 = arith.mulf %154, %153 : vector<8x8x1xf32>
    %156 = arith.addf %149, %155 : vector<8x8x1xf32>
    %c1_104 = arith.constant 1 : index
    %c1_105 = arith.constant 1 : index
    %c7_106 = arith.constant 7 : index
    %c0_107 = arith.constant 0 : index
    %157 = vector.load %arg6[%c1_104, %c1_105, %c7_106, %c0_107] : memref<2x14x24x1xf32, #tpu.memory_space<vmem>>, vector<1x8x8x1xf32>
    %158 = vector.shape_cast %157 : vector<1x8x8x1xf32> to vector<8x8x1xf32>
    %159 = vector.broadcast %151 : f32 to vector<8x8x1xf32>
    %160 = arith.mulf %159, %158 : vector<8x8x1xf32>
    %161 = arith.addf %156, %160 : vector<8x8x1xf32>
    %c10_108 = arith.constant 10 : index
    %162 = memref.load %arg4[%c10_108] : memref<98xf32, #tpu.memory_space<smem>>
    %c59 = arith.constant 59 : index
    %163 = memref.load %arg4[%c59] : memref<98xf32, #tpu.memory_space<smem>>
    %c0_109 = arith.constant 0 : index
    %c1_110 = arith.constant 1 : index
    %c8_111 = arith.constant 8 : index
    %c0_112 = arith.constant 0 : index
    %164 = vector.load %arg6[%c0_109, %c1_110, %c8_111, %c0_112] : memref<2x14x24x1xf32, #tpu.memory_space<vmem>>, vector<1x8x8x1xf32>
    %165 = vector.shape_cast %164 : vector<1x8x8x1xf32> to vector<8x8x1xf32>
    %166 = vector.broadcast %162 : f32 to vector<8x8x1xf32>
    %167 = arith.mulf %166, %165 : vector<8x8x1xf32>
    %168 = arith.addf %161, %167 : vector<8x8x1xf32>
    %c1_113 = arith.constant 1 : index
    %c1_114 = arith.constant 1 : index
    %c8_115 = arith.constant 8 : index
    %c0_116 = arith.constant 0 : index
    %169 = vector.load %arg6[%c1_113, %c1_114, %c8_115, %c0_116] : memref<2x14x24x1xf32, #tpu.memory_space<vmem>>, vector<1x8x8x1xf32>
    %170 = vector.shape_cast %169 : vector<1x8x8x1xf32> to vector<8x8x1xf32>
    %171 = vector.broadcast %163 : f32 to vector<8x8x1xf32>
    %172 = arith.mulf %171, %170 : vector<8x8x1xf32>
    %173 = arith.addf %168, %172 : vector<8x8x1xf32>
    %c11_117 = arith.constant 11 : index
    %174 = memref.load %arg4[%c11_117] : memref<98xf32, #tpu.memory_space<smem>>
    %c60 = arith.constant 60 : index
    %175 = memref.load %arg4[%c60] : memref<98xf32, #tpu.memory_space<smem>>
    %c0_118 = arith.constant 0 : index
    %c1_119 = arith.constant 1 : index
    %c9_120 = arith.constant 9 : index
    %c0_121 = arith.constant 0 : index
    %176 = vector.load %arg6[%c0_118, %c1_119, %c9_120, %c0_121] : memref<2x14x24x1xf32, #tpu.memory_space<vmem>>, vector<1x8x8x1xf32>
    %177 = vector.shape_cast %176 : vector<1x8x8x1xf32> to vector<8x8x1xf32>
    %178 = vector.broadcast %174 : f32 to vector<8x8x1xf32>
    %179 = arith.mulf %178, %177 : vector<8x8x1xf32>
    %180 = arith.addf %173, %179 : vector<8x8x1xf32>
    %c1_122 = arith.constant 1 : index
    %c1_123 = arith.constant 1 : index
    %c9_124 = arith.constant 9 : index
    %c0_125 = arith.constant 0 : index
    %181 = vector.load %arg6[%c1_122, %c1_123, %c9_124, %c0_125] : memref<2x14x24x1xf32, #tpu.memory_space<vmem>>, vector<1x8x8x1xf32>
    %182 = vector.shape_cast %181 : vector<1x8x8x1xf32> to vector<8x8x1xf32>
    %183 = vector.broadcast %175 : f32 to vector<8x8x1xf32>
    %184 = arith.mulf %183, %182 : vector<8x8x1xf32>
    %185 = arith.addf %180, %184 : vector<8x8x1xf32>
    %c12 = arith.constant 12 : index
    %186 = memref.load %arg4[%c12] : memref<98xf32, #tpu.memory_space<smem>>
    %c61 = arith.constant 61 : index
    %187 = memref.load %arg4[%c61] : memref<98xf32, #tpu.memory_space<smem>>
    %c0_126 = arith.constant 0 : index
    %c1_127 = arith.constant 1 : index
    %c10_128 = arith.constant 10 : index
    %c0_129 = arith.constant 0 : index
    %188 = vector.load %arg6[%c0_126, %c1_127, %c10_128, %c0_129] : memref<2x14x24x1xf32, #tpu.memory_space<vmem>>, vector<1x8x8x1xf32>
    %189 = vector.shape_cast %188 : vector<1x8x8x1xf32> to vector<8x8x1xf32>
    %190 = vector.broadcast %186 : f32 to vector<8x8x1xf32>
    %191 = arith.mulf %190, %189 : vector<8x8x1xf32>
    %192 = arith.addf %185, %191 : vector<8x8x1xf32>
    %c1_130 = arith.constant 1 : index
    %c1_131 = arith.constant 1 : index
    %c10_132 = arith.constant 10 : index
    %c0_133 = arith.constant 0 : index
    %193 = vector.load %arg6[%c1_130, %c1_131, %c10_132, %c0_133] : memref<2x14x24x1xf32, #tpu.memory_space<vmem>>, vector<1x8x8x1xf32>
    %194 = vector.shape_cast %193 : vector<1x8x8x1xf32> to vector<8x8x1xf32>
    %195 = vector.broadcast %187 : f32 to vector<8x8x1xf32>
    %196 = arith.mulf %195, %194 : vector<8x8x1xf32>
    %197 = arith.addf %192, %196 : vector<8x8x1xf32>
    %c13 = arith.constant 13 : index
    %198 = memref.load %arg4[%c13] : memref<98xf32, #tpu.memory_space<smem>>
    %c62 = arith.constant 62 : index
    %199 = memref.load %arg4[%c62] : memref<98xf32, #tpu.memory_space<smem>>
    %c0_134 = arith.constant 0 : index
    %c1_135 = arith.constant 1 : index
    %c11_136 = arith.constant 11 : index
    %c0_137 = arith.constant 0 : index
    %200 = vector.load %arg6[%c0_134, %c1_135, %c11_136, %c0_137] : memref<2x14x24x1xf32, #tpu.memory_space<vmem>>, vector<1x8x8x1xf32>
    %201 = vector.shape_cast %200 : vector<1x8x8x1xf32> to vector<8x8x1xf32>
    %202 = vector.broadcast %198 : f32 to vector<8x8x1xf32>
    %203 = arith.mulf %202, %201 : vector<8x8x1xf32>
    %204 = arith.addf %197, %203 : vector<8x8x1xf32>
    %c1_138 = arith.constant 1 : index
    %c1_139 = arith.constant 1 : index
    %c11_140 = arith.constant 11 : index
    %c0_141 = arith.constant 0 : index
    %205 = vector.load %arg6[%c1_138, %c1_139, %c11_140, %c0_141] : memref<2x14x24x1xf32, #tpu.memory_space<vmem>>, vector<1x8x8x1xf32>
    %206 = vector.shape_cast %205 : vector<1x8x8x1xf32> to vector<8x8x1xf32>
    %207 = vector.broadcast %199 : f32 to vector<8x8x1xf32>
    %208 = arith.mulf %207, %206 : vector<8x8x1xf32>
    %209 = arith.addf %204, %208 : vector<8x8x1xf32>
    %c14 = arith.constant 14 : index
    %210 = memref.load %arg4[%c14] : memref<98xf32, #tpu.memory_space<smem>>
    %c63 = arith.constant 63 : index
    %211 = memref.load %arg4[%c63] : memref<98xf32, #tpu.memory_space<smem>>
    %c0_142 = arith.constant 0 : index
    %c2_143 = arith.constant 2 : index
    %c5_144 = arith.constant 5 : index
    %c0_145 = arith.constant 0 : index
    %212 = vector.load %arg6[%c0_142, %c2_143, %c5_144, %c0_145] : memref<2x14x24x1xf32, #tpu.memory_space<vmem>>, vector<1x8x8x1xf32>
    %213 = vector.shape_cast %212 : vector<1x8x8x1xf32> to vector<8x8x1xf32>
    %214 = vector.broadcast %210 : f32 to vector<8x8x1xf32>
    %215 = arith.mulf %214, %213 : vector<8x8x1xf32>
    %216 = arith.addf %209, %215 : vector<8x8x1xf32>
    %c1_146 = arith.constant 1 : index
    %c2_147 = arith.constant 2 : index
    %c5_148 = arith.constant 5 : index
    %c0_149 = arith.constant 0 : index
    %217 = vector.load %arg6[%c1_146, %c2_147, %c5_148, %c0_149] : memref<2x14x24x1xf32, #tpu.memory_space<vmem>>, vector<1x8x8x1xf32>
    %218 = vector.shape_cast %217 : vector<1x8x8x1xf32> to vector<8x8x1xf32>
    %219 = vector.broadcast %211 : f32 to vector<8x8x1xf32>
    %220 = arith.mulf %219, %218 : vector<8x8x1xf32>
    %221 = arith.addf %216, %220 : vector<8x8x1xf32>
    %c15 = arith.constant 15 : index
    %222 = memref.load %arg4[%c15] : memref<98xf32, #tpu.memory_space<smem>>
    %c64 = arith.constant 64 : index
    %223 = memref.load %arg4[%c64] : memref<98xf32, #tpu.memory_space<smem>>
    %c0_150 = arith.constant 0 : index
    %c2_151 = arith.constant 2 : index
    %c6_152 = arith.constant 6 : index
    %c0_153 = arith.constant 0 : index
    %224 = vector.load %arg6[%c0_150, %c2_151, %c6_152, %c0_153] : memref<2x14x24x1xf32, #tpu.memory_space<vmem>>, vector<1x8x8x1xf32>
    %225 = vector.shape_cast %224 : vector<1x8x8x1xf32> to vector<8x8x1xf32>
    %226 = vector.broadcast %222 : f32 to vector<8x8x1xf32>
    %227 = arith.mulf %226, %225 : vector<8x8x1xf32>
    %228 = arith.addf %221, %227 : vector<8x8x1xf32>
    %c1_154 = arith.constant 1 : index
    %c2_155 = arith.constant 2 : index
    %c6_156 = arith.constant 6 : index
    %c0_157 = arith.constant 0 : index
    %229 = vector.load %arg6[%c1_154, %c2_155, %c6_156, %c0_157] : memref<2x14x24x1xf32, #tpu.memory_space<vmem>>, vector<1x8x8x1xf32>
    %230 = vector.shape_cast %229 : vector<1x8x8x1xf32> to vector<8x8x1xf32>
    %231 = vector.broadcast %223 : f32 to vector<8x8x1xf32>
    %232 = arith.mulf %231, %230 : vector<8x8x1xf32>
    %233 = arith.addf %228, %232 : vector<8x8x1xf32>
    %c16 = arith.constant 16 : index
    %234 = memref.load %arg4[%c16] : memref<98xf32, #tpu.memory_space<smem>>
    %c65 = arith.constant 65 : index
    %235 = memref.load %arg4[%c65] : memref<98xf32, #tpu.memory_space<smem>>
    %c0_158 = arith.constant 0 : index
    %c2_159 = arith.constant 2 : index
    %c7_160 = arith.constant 7 : index
    %c0_161 = arith.constant 0 : index
    %236 = vector.load %arg6[%c0_158, %c2_159, %c7_160, %c0_161] : memref<2x14x24x1xf32, #tpu.memory_space<vmem>>, vector<1x8x8x1xf32>
    %237 = vector.shape_cast %236 : vector<1x8x8x1xf32> to vector<8x8x1xf32>
    %238 = vector.broadcast %234 : f32 to vector<8x8x1xf32>
    %239 = arith.mulf %238, %237 : vector<8x8x1xf32>
    %240 = arith.addf %233, %239 : vector<8x8x1xf32>
    %c1_162 = arith.constant 1 : index
    %c2_163 = arith.constant 2 : index
    %c7_164 = arith.constant 7 : index
    %c0_165 = arith.constant 0 : index
    %241 = vector.load %arg6[%c1_162, %c2_163, %c7_164, %c0_165] : memref<2x14x24x1xf32, #tpu.memory_space<vmem>>, vector<1x8x8x1xf32>
    %242 = vector.shape_cast %241 : vector<1x8x8x1xf32> to vector<8x8x1xf32>
    %243 = vector.broadcast %235 : f32 to vector<8x8x1xf32>
    %244 = arith.mulf %243, %242 : vector<8x8x1xf32>
    %245 = arith.addf %240, %244 : vector<8x8x1xf32>
    %c17 = arith.constant 17 : index
    %246 = memref.load %arg4[%c17] : memref<98xf32, #tpu.memory_space<smem>>
    %c66 = arith.constant 66 : index
    %247 = memref.load %arg4[%c66] : memref<98xf32, #tpu.memory_space<smem>>
    %c0_166 = arith.constant 0 : index
    %c2_167 = arith.constant 2 : index
    %c8_168 = arith.constant 8 : index
    %c0_169 = arith.constant 0 : index
    %248 = vector.load %arg6[%c0_166, %c2_167, %c8_168, %c0_169] : memref<2x14x24x1xf32, #tpu.memory_space<vmem>>, vector<1x8x8x1xf32>
    %249 = vector.shape_cast %248 : vector<1x8x8x1xf32> to vector<8x8x1xf32>
    %250 = vector.broadcast %246 : f32 to vector<8x8x1xf32>
    %251 = arith.mulf %250, %249 : vector<8x8x1xf32>
    %252 = arith.addf %245, %251 : vector<8x8x1xf32>
    %c1_170 = arith.constant 1 : index
    %c2_171 = arith.constant 2 : index
    %c8_172 = arith.constant 8 : index
    %c0_173 = arith.constant 0 : index
    %253 = vector.load %arg6[%c1_170, %c2_171, %c8_172, %c0_173] : memref<2x14x24x1xf32, #tpu.memory_space<vmem>>, vector<1x8x8x1xf32>
    %254 = vector.shape_cast %253 : vector<1x8x8x1xf32> to vector<8x8x1xf32>
    %255 = vector.broadcast %247 : f32 to vector<8x8x1xf32>
    %256 = arith.mulf %255, %254 : vector<8x8x1xf32>
    %257 = arith.addf %252, %256 : vector<8x8x1xf32>
    %c18 = arith.constant 18 : index
    %258 = memref.load %arg4[%c18] : memref<98xf32, #tpu.memory_space<smem>>
    %c67 = arith.constant 67 : index
    %259 = memref.load %arg4[%c67] : memref<98xf32, #tpu.memory_space<smem>>
    %c0_174 = arith.constant 0 : index
    %c2_175 = arith.constant 2 : index
    %c9_176 = arith.constant 9 : index
    %c0_177 = arith.constant 0 : index
    %260 = vector.load %arg6[%c0_174, %c2_175, %c9_176, %c0_177] : memref<2x14x24x1xf32, #tpu.memory_space<vmem>>, vector<1x8x8x1xf32>
    %261 = vector.shape_cast %260 : vector<1x8x8x1xf32> to vector<8x8x1xf32>
    %262 = vector.broadcast %258 : f32 to vector<8x8x1xf32>
    %263 = arith.mulf %262, %261 : vector<8x8x1xf32>
    %264 = arith.addf %257, %263 : vector<8x8x1xf32>
    %c1_178 = arith.constant 1 : index
    %c2_179 = arith.constant 2 : index
    %c9_180 = arith.constant 9 : index
    %c0_181 = arith.constant 0 : index
    %265 = vector.load %arg6[%c1_178, %c2_179, %c9_180, %c0_181] : memref<2x14x24x1xf32, #tpu.memory_space<vmem>>, vector<1x8x8x1xf32>
    %266 = vector.shape_cast %265 : vector<1x8x8x1xf32> to vector<8x8x1xf32>
    %267 = vector.broadcast %259 : f32 to vector<8x8x1xf32>
    %268 = arith.mulf %267, %266 : vector<8x8x1xf32>
    %269 = arith.addf %264, %268 : vector<8x8x1xf32>
    %c19 = arith.constant 19 : index
    %270 = memref.load %arg4[%c19] : memref<98xf32, #tpu.memory_space<smem>>
    %c68 = arith.constant 68 : index
    %271 = memref.load %arg4[%c68] : memref<98xf32, #tpu.memory_space<smem>>
    %c0_182 = arith.constant 0 : index
    %c2_183 = arith.constant 2 : index
    %c10_184 = arith.constant 10 : index
    %c0_185 = arith.constant 0 : index
    %272 = vector.load %arg6[%c0_182, %c2_183, %c10_184, %c0_185] : memref<2x14x24x1xf32, #tpu.memory_space<vmem>>, vector<1x8x8x1xf32>
    %273 = vector.shape_cast %272 : vector<1x8x8x1xf32> to vector<8x8x1xf32>
    %274 = vector.broadcast %270 : f32 to vector<8x8x1xf32>
    %275 = arith.mulf %274, %273 : vector<8x8x1xf32>
    %276 = arith.addf %269, %275 : vector<8x8x1xf32>
    %c1_186 = arith.constant 1 : index
    %c2_187 = arith.constant 2 : index
    %c10_188 = arith.constant 10 : index
    %c0_189 = arith.constant 0 : index
    %277 = vector.load %arg6[%c1_186, %c2_187, %c10_188, %c0_189] : memref<2x14x24x1xf32, #tpu.memory_space<vmem>>, vector<1x8x8x1xf32>
    %278 = vector.shape_cast %277 : vector<1x8x8x1xf32> to vector<8x8x1xf32>
    %279 = vector.broadcast %271 : f32 to vector<8x8x1xf32>
    %280 = arith.mulf %279, %278 : vector<8x8x1xf32>
    %281 = arith.addf %276, %280 : vector<8x8x1xf32>
    %c20 = arith.constant 20 : index
    %282 = memref.load %arg4[%c20] : memref<98xf32, #tpu.memory_space<smem>>
    %c69 = arith.constant 69 : index
    %283 = memref.load %arg4[%c69] : memref<98xf32, #tpu.memory_space<smem>>
    %c0_190 = arith.constant 0 : index
    %c2_191 = arith.constant 2 : index
    %c11_192 = arith.constant 11 : index
    %c0_193 = arith.constant 0 : index
    %284 = vector.load %arg6[%c0_190, %c2_191, %c11_192, %c0_193] : memref<2x14x24x1xf32, #tpu.memory_space<vmem>>, vector<1x8x8x1xf32>
    %285 = vector.shape_cast %284 : vector<1x8x8x1xf32> to vector<8x8x1xf32>
    %286 = vector.broadcast %282 : f32 to vector<8x8x1xf32>
    %287 = arith.mulf %286, %285 : vector<8x8x1xf32>
    %288 = arith.addf %281, %287 : vector<8x8x1xf32>
    %c1_194 = arith.constant 1 : index
    %c2_195 = arith.constant 2 : index
    %c11_196 = arith.constant 11 : index
    %c0_197 = arith.constant 0 : index
    %289 = vector.load %arg6[%c1_194, %c2_195, %c11_196, %c0_197] : memref<2x14x24x1xf32, #tpu.memory_space<vmem>>, vector<1x8x8x1xf32>
    %290 = vector.shape_cast %289 : vector<1x8x8x1xf32> to vector<8x8x1xf32>
    %291 = vector.broadcast %283 : f32 to vector<8x8x1xf32>
    %292 = arith.mulf %291, %290 : vector<8x8x1xf32>
    %293 = arith.addf %288, %292 : vector<8x8x1xf32>
    %c21 = arith.constant 21 : index
    %294 = memref.load %arg4[%c21] : memref<98xf32, #tpu.memory_space<smem>>
    %c70 = arith.constant 70 : index
    %295 = memref.load %arg4[%c70] : memref<98xf32, #tpu.memory_space<smem>>
    %c0_198 = arith.constant 0 : index
    %c3_199 = arith.constant 3 : index
    %c5_200 = arith.constant 5 : index
    %c0_201 = arith.constant 0 : index
    %296 = vector.load %arg6[%c0_198, %c3_199, %c5_200, %c0_201] : memref<2x14x24x1xf32, #tpu.memory_space<vmem>>, vector<1x8x8x1xf32>
    %297 = vector.shape_cast %296 : vector<1x8x8x1xf32> to vector<8x8x1xf32>
    %298 = vector.broadcast %294 : f32 to vector<8x8x1xf32>
    %299 = arith.mulf %298, %297 : vector<8x8x1xf32>
    %300 = arith.addf %293, %299 : vector<8x8x1xf32>
    %c1_202 = arith.constant 1 : index
    %c3_203 = arith.constant 3 : index
    %c5_204 = arith.constant 5 : index
    %c0_205 = arith.constant 0 : index
    %301 = vector.load %arg6[%c1_202, %c3_203, %c5_204, %c0_205] : memref<2x14x24x1xf32, #tpu.memory_space<vmem>>, vector<1x8x8x1xf32>
    %302 = vector.shape_cast %301 : vector<1x8x8x1xf32> to vector<8x8x1xf32>
    %303 = vector.broadcast %295 : f32 to vector<8x8x1xf32>
    %304 = arith.mulf %303, %302 : vector<8x8x1xf32>
    %305 = arith.addf %300, %304 : vector<8x8x1xf32>
    %c22 = arith.constant 22 : index
    %306 = memref.load %arg4[%c22] : memref<98xf32, #tpu.memory_space<smem>>
    %c71 = arith.constant 71 : index
    %307 = memref.load %arg4[%c71] : memref<98xf32, #tpu.memory_space<smem>>
    %c0_206 = arith.constant 0 : index
    %c3_207 = arith.constant 3 : index
    %c6_208 = arith.constant 6 : index
    %c0_209 = arith.constant 0 : index
    %308 = vector.load %arg6[%c0_206, %c3_207, %c6_208, %c0_209] : memref<2x14x24x1xf32, #tpu.memory_space<vmem>>, vector<1x8x8x1xf32>
    %309 = vector.shape_cast %308 : vector<1x8x8x1xf32> to vector<8x8x1xf32>
    %310 = vector.broadcast %306 : f32 to vector<8x8x1xf32>
    %311 = arith.mulf %310, %309 : vector<8x8x1xf32>
    %312 = arith.addf %305, %311 : vector<8x8x1xf32>
    %c1_210 = arith.constant 1 : index
    %c3_211 = arith.constant 3 : index
    %c6_212 = arith.constant 6 : index
    %c0_213 = arith.constant 0 : index
    %313 = vector.load %arg6[%c1_210, %c3_211, %c6_212, %c0_213] : memref<2x14x24x1xf32, #tpu.memory_space<vmem>>, vector<1x8x8x1xf32>
    %314 = vector.shape_cast %313 : vector<1x8x8x1xf32> to vector<8x8x1xf32>
    %315 = vector.broadcast %307 : f32 to vector<8x8x1xf32>
    %316 = arith.mulf %315, %314 : vector<8x8x1xf32>
    %317 = arith.addf %312, %316 : vector<8x8x1xf32>
    %c23 = arith.constant 23 : index
    %318 = memref.load %arg4[%c23] : memref<98xf32, #tpu.memory_space<smem>>
    %c72 = arith.constant 72 : index
    %319 = memref.load %arg4[%c72] : memref<98xf32, #tpu.memory_space<smem>>
    %c0_214 = arith.constant 0 : index
    %c3_215 = arith.constant 3 : index
    %c7_216 = arith.constant 7 : index
    %c0_217 = arith.constant 0 : index
    %320 = vector.load %arg6[%c0_214, %c3_215, %c7_216, %c0_217] : memref<2x14x24x1xf32, #tpu.memory_space<vmem>>, vector<1x8x8x1xf32>
    %321 = vector.shape_cast %320 : vector<1x8x8x1xf32> to vector<8x8x1xf32>
    %322 = vector.broadcast %318 : f32 to vector<8x8x1xf32>
    %323 = arith.mulf %322, %321 : vector<8x8x1xf32>
    %324 = arith.addf %317, %323 : vector<8x8x1xf32>
    %c1_218 = arith.constant 1 : index
    %c3_219 = arith.constant 3 : index
    %c7_220 = arith.constant 7 : index
    %c0_221 = arith.constant 0 : index
    %325 = vector.load %arg6[%c1_218, %c3_219, %c7_220, %c0_221] : memref<2x14x24x1xf32, #tpu.memory_space<vmem>>, vector<1x8x8x1xf32>
    %326 = vector.shape_cast %325 : vector<1x8x8x1xf32> to vector<8x8x1xf32>
    %327 = vector.broadcast %319 : f32 to vector<8x8x1xf32>
    %328 = arith.mulf %327, %326 : vector<8x8x1xf32>
    %329 = arith.addf %324, %328 : vector<8x8x1xf32>
    %c24 = arith.constant 24 : index
    %330 = memref.load %arg4[%c24] : memref<98xf32, #tpu.memory_space<smem>>
    %c73 = arith.constant 73 : index
    %331 = memref.load %arg4[%c73] : memref<98xf32, #tpu.memory_space<smem>>
    %c0_222 = arith.constant 0 : index
    %c3_223 = arith.constant 3 : index
    %c8_224 = arith.constant 8 : index
    %c0_225 = arith.constant 0 : index
    %332 = vector.load %arg6[%c0_222, %c3_223, %c8_224, %c0_225] : memref<2x14x24x1xf32, #tpu.memory_space<vmem>>, vector<1x8x8x1xf32>
    %333 = vector.shape_cast %332 : vector<1x8x8x1xf32> to vector<8x8x1xf32>
    %334 = vector.broadcast %330 : f32 to vector<8x8x1xf32>
    %335 = arith.mulf %334, %333 : vector<8x8x1xf32>
    %336 = arith.addf %329, %335 : vector<8x8x1xf32>
    %c1_226 = arith.constant 1 : index
    %c3_227 = arith.constant 3 : index
    %c8_228 = arith.constant 8 : index
    %c0_229 = arith.constant 0 : index
    %337 = vector.load %arg6[%c1_226, %c3_227, %c8_228, %c0_229] : memref<2x14x24x1xf32, #tpu.memory_space<vmem>>, vector<1x8x8x1xf32>
    %338 = vector.shape_cast %337 : vector<1x8x8x1xf32> to vector<8x8x1xf32>
    %339 = vector.broadcast %331 : f32 to vector<8x8x1xf32>
    %340 = arith.mulf %339, %338 : vector<8x8x1xf32>
    %341 = arith.addf %336, %340 : vector<8x8x1xf32>
    %c25 = arith.constant 25 : index
    %342 = memref.load %arg4[%c25] : memref<98xf32, #tpu.memory_space<smem>>
    %c74 = arith.constant 74 : index
    %343 = memref.load %arg4[%c74] : memref<98xf32, #tpu.memory_space<smem>>
    %c0_230 = arith.constant 0 : index
    %c3_231 = arith.constant 3 : index
    %c9_232 = arith.constant 9 : index
    %c0_233 = arith.constant 0 : index
    %344 = vector.load %arg6[%c0_230, %c3_231, %c9_232, %c0_233] : memref<2x14x24x1xf32, #tpu.memory_space<vmem>>, vector<1x8x8x1xf32>
    %345 = vector.shape_cast %344 : vector<1x8x8x1xf32> to vector<8x8x1xf32>
    %346 = vector.broadcast %342 : f32 to vector<8x8x1xf32>
    %347 = arith.mulf %346, %345 : vector<8x8x1xf32>
    %348 = arith.addf %341, %347 : vector<8x8x1xf32>
    %c1_234 = arith.constant 1 : index
    %c3_235 = arith.constant 3 : index
    %c9_236 = arith.constant 9 : index
    %c0_237 = arith.constant 0 : index
    %349 = vector.load %arg6[%c1_234, %c3_235, %c9_236, %c0_237] : memref<2x14x24x1xf32, #tpu.memory_space<vmem>>, vector<1x8x8x1xf32>
    %350 = vector.shape_cast %349 : vector<1x8x8x1xf32> to vector<8x8x1xf32>
    %351 = vector.broadcast %343 : f32 to vector<8x8x1xf32>
    %352 = arith.mulf %351, %350 : vector<8x8x1xf32>
    %353 = arith.addf %348, %352 : vector<8x8x1xf32>
    %c26 = arith.constant 26 : index
    %354 = memref.load %arg4[%c26] : memref<98xf32, #tpu.memory_space<smem>>
    %c75 = arith.constant 75 : index
    %355 = memref.load %arg4[%c75] : memref<98xf32, #tpu.memory_space<smem>>
    %c0_238 = arith.constant 0 : index
    %c3_239 = arith.constant 3 : index
    %c10_240 = arith.constant 10 : index
    %c0_241 = arith.constant 0 : index
    %356 = vector.load %arg6[%c0_238, %c3_239, %c10_240, %c0_241] : memref<2x14x24x1xf32, #tpu.memory_space<vmem>>, vector<1x8x8x1xf32>
    %357 = vector.shape_cast %356 : vector<1x8x8x1xf32> to vector<8x8x1xf32>
    %358 = vector.broadcast %354 : f32 to vector<8x8x1xf32>
    %359 = arith.mulf %358, %357 : vector<8x8x1xf32>
    %360 = arith.addf %353, %359 : vector<8x8x1xf32>
    %c1_242 = arith.constant 1 : index
    %c3_243 = arith.constant 3 : index
    %c10_244 = arith.constant 10 : index
    %c0_245 = arith.constant 0 : index
    %361 = vector.load %arg6[%c1_242, %c3_243, %c10_244, %c0_245] : memref<2x14x24x1xf32, #tpu.memory_space<vmem>>, vector<1x8x8x1xf32>
    %362 = vector.shape_cast %361 : vector<1x8x8x1xf32> to vector<8x8x1xf32>
    %363 = vector.broadcast %355 : f32 to vector<8x8x1xf32>
    %364 = arith.mulf %363, %362 : vector<8x8x1xf32>
    %365 = arith.addf %360, %364 : vector<8x8x1xf32>
    %c27 = arith.constant 27 : index
    %366 = memref.load %arg4[%c27] : memref<98xf32, #tpu.memory_space<smem>>
    %c76 = arith.constant 76 : index
    %367 = memref.load %arg4[%c76] : memref<98xf32, #tpu.memory_space<smem>>
    %c0_246 = arith.constant 0 : index
    %c3_247 = arith.constant 3 : index
    %c11_248 = arith.constant 11 : index
    %c0_249 = arith.constant 0 : index
    %368 = vector.load %arg6[%c0_246, %c3_247, %c11_248, %c0_249] : memref<2x14x24x1xf32, #tpu.memory_space<vmem>>, vector<1x8x8x1xf32>
    %369 = vector.shape_cast %368 : vector<1x8x8x1xf32> to vector<8x8x1xf32>
    %370 = vector.broadcast %366 : f32 to vector<8x8x1xf32>
    %371 = arith.mulf %370, %369 : vector<8x8x1xf32>
    %372 = arith.addf %365, %371 : vector<8x8x1xf32>
    %c1_250 = arith.constant 1 : index
    %c3_251 = arith.constant 3 : index
    %c11_252 = arith.constant 11 : index
    %c0_253 = arith.constant 0 : index
    %373 = vector.load %arg6[%c1_250, %c3_251, %c11_252, %c0_253] : memref<2x14x24x1xf32, #tpu.memory_space<vmem>>, vector<1x8x8x1xf32>
    %374 = vector.shape_cast %373 : vector<1x8x8x1xf32> to vector<8x8x1xf32>
    %375 = vector.broadcast %367 : f32 to vector<8x8x1xf32>
    %376 = arith.mulf %375, %374 : vector<8x8x1xf32>
    %377 = arith.addf %372, %376 : vector<8x8x1xf32>
    %c28 = arith.constant 28 : index
    %378 = memref.load %arg4[%c28] : memref<98xf32, #tpu.memory_space<smem>>
    %c77 = arith.constant 77 : index
    %379 = memref.load %arg4[%c77] : memref<98xf32, #tpu.memory_space<smem>>
    %c0_254 = arith.constant 0 : index
    %c4_255 = arith.constant 4 : index
    %c5_256 = arith.constant 5 : index
    %c0_257 = arith.constant 0 : index
    %380 = vector.load %arg6[%c0_254, %c4_255, %c5_256, %c0_257] : memref<2x14x24x1xf32, #tpu.memory_space<vmem>>, vector<1x8x8x1xf32>
    %381 = vector.shape_cast %380 : vector<1x8x8x1xf32> to vector<8x8x1xf32>
    %382 = vector.broadcast %378 : f32 to vector<8x8x1xf32>
    %383 = arith.mulf %382, %381 : vector<8x8x1xf32>
    %384 = arith.addf %377, %383 : vector<8x8x1xf32>
    %c1_258 = arith.constant 1 : index
    %c4_259 = arith.constant 4 : index
    %c5_260 = arith.constant 5 : index
    %c0_261 = arith.constant 0 : index
    %385 = vector.load %arg6[%c1_258, %c4_259, %c5_260, %c0_261] : memref<2x14x24x1xf32, #tpu.memory_space<vmem>>, vector<1x8x8x1xf32>
    %386 = vector.shape_cast %385 : vector<1x8x8x1xf32> to vector<8x8x1xf32>
    %387 = vector.broadcast %379 : f32 to vector<8x8x1xf32>
    %388 = arith.mulf %387, %386 : vector<8x8x1xf32>
    %389 = arith.addf %384, %388 : vector<8x8x1xf32>
    %c29 = arith.constant 29 : index
    %390 = memref.load %arg4[%c29] : memref<98xf32, #tpu.memory_space<smem>>
    %c78 = arith.constant 78 : index
    %391 = memref.load %arg4[%c78] : memref<98xf32, #tpu.memory_space<smem>>
    %c0_262 = arith.constant 0 : index
    %c4_263 = arith.constant 4 : index
    %c6_264 = arith.constant 6 : index
    %c0_265 = arith.constant 0 : index
    %392 = vector.load %arg6[%c0_262, %c4_263, %c6_264, %c0_265] : memref<2x14x24x1xf32, #tpu.memory_space<vmem>>, vector<1x8x8x1xf32>
    %393 = vector.shape_cast %392 : vector<1x8x8x1xf32> to vector<8x8x1xf32>
    %394 = vector.broadcast %390 : f32 to vector<8x8x1xf32>
    %395 = arith.mulf %394, %393 : vector<8x8x1xf32>
    %396 = arith.addf %389, %395 : vector<8x8x1xf32>
    %c1_266 = arith.constant 1 : index
    %c4_267 = arith.constant 4 : index
    %c6_268 = arith.constant 6 : index
    %c0_269 = arith.constant 0 : index
    %397 = vector.load %arg6[%c1_266, %c4_267, %c6_268, %c0_269] : memref<2x14x24x1xf32, #tpu.memory_space<vmem>>, vector<1x8x8x1xf32>
    %398 = vector.shape_cast %397 : vector<1x8x8x1xf32> to vector<8x8x1xf32>
    %399 = vector.broadcast %391 : f32 to vector<8x8x1xf32>
    %400 = arith.mulf %399, %398 : vector<8x8x1xf32>
    %401 = arith.addf %396, %400 : vector<8x8x1xf32>
    %c30 = arith.constant 30 : index
    %402 = memref.load %arg4[%c30] : memref<98xf32, #tpu.memory_space<smem>>
    %c79 = arith.constant 79 : index
    %403 = memref.load %arg4[%c79] : memref<98xf32, #tpu.memory_space<smem>>
    %c0_270 = arith.constant 0 : index
    %c4_271 = arith.constant 4 : index
    %c7_272 = arith.constant 7 : index
    %c0_273 = arith.constant 0 : index
    %404 = vector.load %arg6[%c0_270, %c4_271, %c7_272, %c0_273] : memref<2x14x24x1xf32, #tpu.memory_space<vmem>>, vector<1x8x8x1xf32>
    %405 = vector.shape_cast %404 : vector<1x8x8x1xf32> to vector<8x8x1xf32>
    %406 = vector.broadcast %402 : f32 to vector<8x8x1xf32>
    %407 = arith.mulf %406, %405 : vector<8x8x1xf32>
    %408 = arith.addf %401, %407 : vector<8x8x1xf32>
    %c1_274 = arith.constant 1 : index
    %c4_275 = arith.constant 4 : index
    %c7_276 = arith.constant 7 : index
    %c0_277 = arith.constant 0 : index
    %409 = vector.load %arg6[%c1_274, %c4_275, %c7_276, %c0_277] : memref<2x14x24x1xf32, #tpu.memory_space<vmem>>, vector<1x8x8x1xf32>
    %410 = vector.shape_cast %409 : vector<1x8x8x1xf32> to vector<8x8x1xf32>
    %411 = vector.broadcast %403 : f32 to vector<8x8x1xf32>
    %412 = arith.mulf %411, %410 : vector<8x8x1xf32>
    %413 = arith.addf %408, %412 : vector<8x8x1xf32>
    %c31 = arith.constant 31 : index
    %414 = memref.load %arg4[%c31] : memref<98xf32, #tpu.memory_space<smem>>
    %c80 = arith.constant 80 : index
    %415 = memref.load %arg4[%c80] : memref<98xf32, #tpu.memory_space<smem>>
    %c0_278 = arith.constant 0 : index
    %c4_279 = arith.constant 4 : index
    %c8_280 = arith.constant 8 : index
    %c0_281 = arith.constant 0 : index
    %416 = vector.load %arg6[%c0_278, %c4_279, %c8_280, %c0_281] : memref<2x14x24x1xf32, #tpu.memory_space<vmem>>, vector<1x8x8x1xf32>
    %417 = vector.shape_cast %416 : vector<1x8x8x1xf32> to vector<8x8x1xf32>
    %418 = vector.broadcast %414 : f32 to vector<8x8x1xf32>
    %419 = arith.mulf %418, %417 : vector<8x8x1xf32>
    %420 = arith.addf %413, %419 : vector<8x8x1xf32>
    %c1_282 = arith.constant 1 : index
    %c4_283 = arith.constant 4 : index
    %c8_284 = arith.constant 8 : index
    %c0_285 = arith.constant 0 : index
    %421 = vector.load %arg6[%c1_282, %c4_283, %c8_284, %c0_285] : memref<2x14x24x1xf32, #tpu.memory_space<vmem>>, vector<1x8x8x1xf32>
    %422 = vector.shape_cast %421 : vector<1x8x8x1xf32> to vector<8x8x1xf32>
    %423 = vector.broadcast %415 : f32 to vector<8x8x1xf32>
    %424 = arith.mulf %423, %422 : vector<8x8x1xf32>
    %425 = arith.addf %420, %424 : vector<8x8x1xf32>
    %c32 = arith.constant 32 : index
    %426 = memref.load %arg4[%c32] : memref<98xf32, #tpu.memory_space<smem>>
    %c81 = arith.constant 81 : index
    %427 = memref.load %arg4[%c81] : memref<98xf32, #tpu.memory_space<smem>>
    %c0_286 = arith.constant 0 : index
    %c4_287 = arith.constant 4 : index
    %c9_288 = arith.constant 9 : index
    %c0_289 = arith.constant 0 : index
    %428 = vector.load %arg6[%c0_286, %c4_287, %c9_288, %c0_289] : memref<2x14x24x1xf32, #tpu.memory_space<vmem>>, vector<1x8x8x1xf32>
    %429 = vector.shape_cast %428 : vector<1x8x8x1xf32> to vector<8x8x1xf32>
    %430 = vector.broadcast %426 : f32 to vector<8x8x1xf32>
    %431 = arith.mulf %430, %429 : vector<8x8x1xf32>
    %432 = arith.addf %425, %431 : vector<8x8x1xf32>
    %c1_290 = arith.constant 1 : index
    %c4_291 = arith.constant 4 : index
    %c9_292 = arith.constant 9 : index
    %c0_293 = arith.constant 0 : index
    %433 = vector.load %arg6[%c1_290, %c4_291, %c9_292, %c0_293] : memref<2x14x24x1xf32, #tpu.memory_space<vmem>>, vector<1x8x8x1xf32>
    %434 = vector.shape_cast %433 : vector<1x8x8x1xf32> to vector<8x8x1xf32>
    %435 = vector.broadcast %427 : f32 to vector<8x8x1xf32>
    %436 = arith.mulf %435, %434 : vector<8x8x1xf32>
    %437 = arith.addf %432, %436 : vector<8x8x1xf32>
    %c33 = arith.constant 33 : index
    %438 = memref.load %arg4[%c33] : memref<98xf32, #tpu.memory_space<smem>>
    %c82 = arith.constant 82 : index
    %439 = memref.load %arg4[%c82] : memref<98xf32, #tpu.memory_space<smem>>
    %c0_294 = arith.constant 0 : index
    %c4_295 = arith.constant 4 : index
    %c10_296 = arith.constant 10 : index
    %c0_297 = arith.constant 0 : index
    %440 = vector.load %arg6[%c0_294, %c4_295, %c10_296, %c0_297] : memref<2x14x24x1xf32, #tpu.memory_space<vmem>>, vector<1x8x8x1xf32>
    %441 = vector.shape_cast %440 : vector<1x8x8x1xf32> to vector<8x8x1xf32>
    %442 = vector.broadcast %438 : f32 to vector<8x8x1xf32>
    %443 = arith.mulf %442, %441 : vector<8x8x1xf32>
    %444 = arith.addf %437, %443 : vector<8x8x1xf32>
    %c1_298 = arith.constant 1 : index
    %c4_299 = arith.constant 4 : index
    %c10_300 = arith.constant 10 : index
    %c0_301 = arith.constant 0 : index
    %445 = vector.load %arg6[%c1_298, %c4_299, %c10_300, %c0_301] : memref<2x14x24x1xf32, #tpu.memory_space<vmem>>, vector<1x8x8x1xf32>
    %446 = vector.shape_cast %445 : vector<1x8x8x1xf32> to vector<8x8x1xf32>
    %447 = vector.broadcast %439 : f32 to vector<8x8x1xf32>
    %448 = arith.mulf %447, %446 : vector<8x8x1xf32>
    %449 = arith.addf %444, %448 : vector<8x8x1xf32>
    %c34 = arith.constant 34 : index
    %450 = memref.load %arg4[%c34] : memref<98xf32, #tpu.memory_space<smem>>
    %c83 = arith.constant 83 : index
    %451 = memref.load %arg4[%c83] : memref<98xf32, #tpu.memory_space<smem>>
    %c0_302 = arith.constant 0 : index
    %c4_303 = arith.constant 4 : index
    %c11_304 = arith.constant 11 : index
    %c0_305 = arith.constant 0 : index
    %452 = vector.load %arg6[%c0_302, %c4_303, %c11_304, %c0_305] : memref<2x14x24x1xf32, #tpu.memory_space<vmem>>, vector<1x8x8x1xf32>
    %453 = vector.shape_cast %452 : vector<1x8x8x1xf32> to vector<8x8x1xf32>
    %454 = vector.broadcast %450 : f32 to vector<8x8x1xf32>
    %455 = arith.mulf %454, %453 : vector<8x8x1xf32>
    %456 = arith.addf %449, %455 : vector<8x8x1xf32>
    %c1_306 = arith.constant 1 : index
    %c4_307 = arith.constant 4 : index
    %c11_308 = arith.constant 11 : index
    %c0_309 = arith.constant 0 : index
    %457 = vector.load %arg6[%c1_306, %c4_307, %c11_308, %c0_309] : memref<2x14x24x1xf32, #tpu.memory_space<vmem>>, vector<1x8x8x1xf32>
    %458 = vector.shape_cast %457 : vector<1x8x8x1xf32> to vector<8x8x1xf32>
    %459 = vector.broadcast %451 : f32 to vector<8x8x1xf32>
    %460 = arith.mulf %459, %458 : vector<8x8x1xf32>
    %461 = arith.addf %456, %460 : vector<8x8x1xf32>
    %c35 = arith.constant 35 : index
    %462 = memref.load %arg4[%c35] : memref<98xf32, #tpu.memory_space<smem>>
    %c84 = arith.constant 84 : index
    %463 = memref.load %arg4[%c84] : memref<98xf32, #tpu.memory_space<smem>>
    %c0_310 = arith.constant 0 : index
    %c5_311 = arith.constant 5 : index
    %c5_312 = arith.constant 5 : index
    %c0_313 = arith.constant 0 : index
    %464 = vector.load %arg6[%c0_310, %c5_311, %c5_312, %c0_313] : memref<2x14x24x1xf32, #tpu.memory_space<vmem>>, vector<1x8x8x1xf32>
    %465 = vector.shape_cast %464 : vector<1x8x8x1xf32> to vector<8x8x1xf32>
    %466 = vector.broadcast %462 : f32 to vector<8x8x1xf32>
    %467 = arith.mulf %466, %465 : vector<8x8x1xf32>
    %468 = arith.addf %461, %467 : vector<8x8x1xf32>
    %c1_314 = arith.constant 1 : index
    %c5_315 = arith.constant 5 : index
    %c5_316 = arith.constant 5 : index
    %c0_317 = arith.constant 0 : index
    %469 = vector.load %arg6[%c1_314, %c5_315, %c5_316, %c0_317] : memref<2x14x24x1xf32, #tpu.memory_space<vmem>>, vector<1x8x8x1xf32>
    %470 = vector.shape_cast %469 : vector<1x8x8x1xf32> to vector<8x8x1xf32>
    %471 = vector.broadcast %463 : f32 to vector<8x8x1xf32>
    %472 = arith.mulf %471, %470 : vector<8x8x1xf32>
    %473 = arith.addf %468, %472 : vector<8x8x1xf32>
    %c36 = arith.constant 36 : index
    %474 = memref.load %arg4[%c36] : memref<98xf32, #tpu.memory_space<smem>>
    %c85 = arith.constant 85 : index
    %475 = memref.load %arg4[%c85] : memref<98xf32, #tpu.memory_space<smem>>
    %c0_318 = arith.constant 0 : index
    %c5_319 = arith.constant 5 : index
    %c6_320 = arith.constant 6 : index
    %c0_321 = arith.constant 0 : index
    %476 = vector.load %arg6[%c0_318, %c5_319, %c6_320, %c0_321] : memref<2x14x24x1xf32, #tpu.memory_space<vmem>>, vector<1x8x8x1xf32>
    %477 = vector.shape_cast %476 : vector<1x8x8x1xf32> to vector<8x8x1xf32>
    %478 = vector.broadcast %474 : f32 to vector<8x8x1xf32>
    %479 = arith.mulf %478, %477 : vector<8x8x1xf32>
    %480 = arith.addf %473, %479 : vector<8x8x1xf32>
    %c1_322 = arith.constant 1 : index
    %c5_323 = arith.constant 5 : index
    %c6_324 = arith.constant 6 : index
    %c0_325 = arith.constant 0 : index
    %481 = vector.load %arg6[%c1_322, %c5_323, %c6_324, %c0_325] : memref<2x14x24x1xf32, #tpu.memory_space<vmem>>, vector<1x8x8x1xf32>
    %482 = vector.shape_cast %481 : vector<1x8x8x1xf32> to vector<8x8x1xf32>
    %483 = vector.broadcast %475 : f32 to vector<8x8x1xf32>
    %484 = arith.mulf %483, %482 : vector<8x8x1xf32>
    %485 = arith.addf %480, %484 : vector<8x8x1xf32>
    %c37 = arith.constant 37 : index
    %486 = memref.load %arg4[%c37] : memref<98xf32, #tpu.memory_space<smem>>
    %c86 = arith.constant 86 : index
    %487 = memref.load %arg4[%c86] : memref<98xf32, #tpu.memory_space<smem>>
    %c0_326 = arith.constant 0 : index
    %c5_327 = arith.constant 5 : index
    %c7_328 = arith.constant 7 : index
    %c0_329 = arith.constant 0 : index
    %488 = vector.load %arg6[%c0_326, %c5_327, %c7_328, %c0_329] : memref<2x14x24x1xf32, #tpu.memory_space<vmem>>, vector<1x8x8x1xf32>
    %489 = vector.shape_cast %488 : vector<1x8x8x1xf32> to vector<8x8x1xf32>
    %490 = vector.broadcast %486 : f32 to vector<8x8x1xf32>
    %491 = arith.mulf %490, %489 : vector<8x8x1xf32>
    %492 = arith.addf %485, %491 : vector<8x8x1xf32>
    %c1_330 = arith.constant 1 : index
    %c5_331 = arith.constant 5 : index
    %c7_332 = arith.constant 7 : index
    %c0_333 = arith.constant 0 : index
    %493 = vector.load %arg6[%c1_330, %c5_331, %c7_332, %c0_333] : memref<2x14x24x1xf32, #tpu.memory_space<vmem>>, vector<1x8x8x1xf32>
    %494 = vector.shape_cast %493 : vector<1x8x8x1xf32> to vector<8x8x1xf32>
    %495 = vector.broadcast %487 : f32 to vector<8x8x1xf32>
    %496 = arith.mulf %495, %494 : vector<8x8x1xf32>
    %497 = arith.addf %492, %496 : vector<8x8x1xf32>
    %c38 = arith.constant 38 : index
    %498 = memref.load %arg4[%c38] : memref<98xf32, #tpu.memory_space<smem>>
    %c87 = arith.constant 87 : index
    %499 = memref.load %arg4[%c87] : memref<98xf32, #tpu.memory_space<smem>>
    %c0_334 = arith.constant 0 : index
    %c5_335 = arith.constant 5 : index
    %c8_336 = arith.constant 8 : index
    %c0_337 = arith.constant 0 : index
    %500 = vector.load %arg6[%c0_334, %c5_335, %c8_336, %c0_337] : memref<2x14x24x1xf32, #tpu.memory_space<vmem>>, vector<1x8x8x1xf32>
    %501 = vector.shape_cast %500 : vector<1x8x8x1xf32> to vector<8x8x1xf32>
    %502 = vector.broadcast %498 : f32 to vector<8x8x1xf32>
    %503 = arith.mulf %502, %501 : vector<8x8x1xf32>
    %504 = arith.addf %497, %503 : vector<8x8x1xf32>
    %c1_338 = arith.constant 1 : index
    %c5_339 = arith.constant 5 : index
    %c8_340 = arith.constant 8 : index
    %c0_341 = arith.constant 0 : index
    %505 = vector.load %arg6[%c1_338, %c5_339, %c8_340, %c0_341] : memref<2x14x24x1xf32, #tpu.memory_space<vmem>>, vector<1x8x8x1xf32>
    %506 = vector.shape_cast %505 : vector<1x8x8x1xf32> to vector<8x8x1xf32>
    %507 = vector.broadcast %499 : f32 to vector<8x8x1xf32>
    %508 = arith.mulf %507, %506 : vector<8x8x1xf32>
    %509 = arith.addf %504, %508 : vector<8x8x1xf32>
    %c39 = arith.constant 39 : index
    %510 = memref.load %arg4[%c39] : memref<98xf32, #tpu.memory_space<smem>>
    %c88 = arith.constant 88 : index
    %511 = memref.load %arg4[%c88] : memref<98xf32, #tpu.memory_space<smem>>
    %c0_342 = arith.constant 0 : index
    %c5_343 = arith.constant 5 : index
    %c9_344 = arith.constant 9 : index
    %c0_345 = arith.constant 0 : index
    %512 = vector.load %arg6[%c0_342, %c5_343, %c9_344, %c0_345] : memref<2x14x24x1xf32, #tpu.memory_space<vmem>>, vector<1x8x8x1xf32>
    %513 = vector.shape_cast %512 : vector<1x8x8x1xf32> to vector<8x8x1xf32>
    %514 = vector.broadcast %510 : f32 to vector<8x8x1xf32>
    %515 = arith.mulf %514, %513 : vector<8x8x1xf32>
    %516 = arith.addf %509, %515 : vector<8x8x1xf32>
    %c1_346 = arith.constant 1 : index
    %c5_347 = arith.constant 5 : index
    %c9_348 = arith.constant 9 : index
    %c0_349 = arith.constant 0 : index
    %517 = vector.load %arg6[%c1_346, %c5_347, %c9_348, %c0_349] : memref<2x14x24x1xf32, #tpu.memory_space<vmem>>, vector<1x8x8x1xf32>
    %518 = vector.shape_cast %517 : vector<1x8x8x1xf32> to vector<8x8x1xf32>
    %519 = vector.broadcast %511 : f32 to vector<8x8x1xf32>
    %520 = arith.mulf %519, %518 : vector<8x8x1xf32>
    %521 = arith.addf %516, %520 : vector<8x8x1xf32>
    %c40 = arith.constant 40 : index
    %522 = memref.load %arg4[%c40] : memref<98xf32, #tpu.memory_space<smem>>
    %c89 = arith.constant 89 : index
    %523 = memref.load %arg4[%c89] : memref<98xf32, #tpu.memory_space<smem>>
    %c0_350 = arith.constant 0 : index
    %c5_351 = arith.constant 5 : index
    %c10_352 = arith.constant 10 : index
    %c0_353 = arith.constant 0 : index
    %524 = vector.load %arg6[%c0_350, %c5_351, %c10_352, %c0_353] : memref<2x14x24x1xf32, #tpu.memory_space<vmem>>, vector<1x8x8x1xf32>
    %525 = vector.shape_cast %524 : vector<1x8x8x1xf32> to vector<8x8x1xf32>
    %526 = vector.broadcast %522 : f32 to vector<8x8x1xf32>
    %527 = arith.mulf %526, %525 : vector<8x8x1xf32>
    %528 = arith.addf %521, %527 : vector<8x8x1xf32>
    %c1_354 = arith.constant 1 : index
    %c5_355 = arith.constant 5 : index
    %c10_356 = arith.constant 10 : index
    %c0_357 = arith.constant 0 : index
    %529 = vector.load %arg6[%c1_354, %c5_355, %c10_356, %c0_357] : memref<2x14x24x1xf32, #tpu.memory_space<vmem>>, vector<1x8x8x1xf32>
    %530 = vector.shape_cast %529 : vector<1x8x8x1xf32> to vector<8x8x1xf32>
    %531 = vector.broadcast %523 : f32 to vector<8x8x1xf32>
    %532 = arith.mulf %531, %530 : vector<8x8x1xf32>
    %533 = arith.addf %528, %532 : vector<8x8x1xf32>
    %c41 = arith.constant 41 : index
    %534 = memref.load %arg4[%c41] : memref<98xf32, #tpu.memory_space<smem>>
    %c90 = arith.constant 90 : index
    %535 = memref.load %arg4[%c90] : memref<98xf32, #tpu.memory_space<smem>>
    %c0_358 = arith.constant 0 : index
    %c5_359 = arith.constant 5 : index
    %c11_360 = arith.constant 11 : index
    %c0_361 = arith.constant 0 : index
    %536 = vector.load %arg6[%c0_358, %c5_359, %c11_360, %c0_361] : memref<2x14x24x1xf32, #tpu.memory_space<vmem>>, vector<1x8x8x1xf32>
    %537 = vector.shape_cast %536 : vector<1x8x8x1xf32> to vector<8x8x1xf32>
    %538 = vector.broadcast %534 : f32 to vector<8x8x1xf32>
    %539 = arith.mulf %538, %537 : vector<8x8x1xf32>
    %540 = arith.addf %533, %539 : vector<8x8x1xf32>
    %c1_362 = arith.constant 1 : index
    %c5_363 = arith.constant 5 : index
    %c11_364 = arith.constant 11 : index
    %c0_365 = arith.constant 0 : index
    %541 = vector.load %arg6[%c1_362, %c5_363, %c11_364, %c0_365] : memref<2x14x24x1xf32, #tpu.memory_space<vmem>>, vector<1x8x8x1xf32>
    %542 = vector.shape_cast %541 : vector<1x8x8x1xf32> to vector<8x8x1xf32>
    %543 = vector.broadcast %535 : f32 to vector<8x8x1xf32>
    %544 = arith.mulf %543, %542 : vector<8x8x1xf32>
    %545 = arith.addf %540, %544 : vector<8x8x1xf32>
    %c42 = arith.constant 42 : index
    %546 = memref.load %arg4[%c42] : memref<98xf32, #tpu.memory_space<smem>>
    %c91 = arith.constant 91 : index
    %547 = memref.load %arg4[%c91] : memref<98xf32, #tpu.memory_space<smem>>
    %c0_366 = arith.constant 0 : index
    %c6_367 = arith.constant 6 : index
    %c5_368 = arith.constant 5 : index
    %c0_369 = arith.constant 0 : index
    %548 = vector.load %arg6[%c0_366, %c6_367, %c5_368, %c0_369] : memref<2x14x24x1xf32, #tpu.memory_space<vmem>>, vector<1x8x8x1xf32>
    %549 = vector.shape_cast %548 : vector<1x8x8x1xf32> to vector<8x8x1xf32>
    %550 = vector.broadcast %546 : f32 to vector<8x8x1xf32>
    %551 = arith.mulf %550, %549 : vector<8x8x1xf32>
    %552 = arith.addf %545, %551 : vector<8x8x1xf32>
    %c1_370 = arith.constant 1 : index
    %c6_371 = arith.constant 6 : index
    %c5_372 = arith.constant 5 : index
    %c0_373 = arith.constant 0 : index
    %553 = vector.load %arg6[%c1_370, %c6_371, %c5_372, %c0_373] : memref<2x14x24x1xf32, #tpu.memory_space<vmem>>, vector<1x8x8x1xf32>
    %554 = vector.shape_cast %553 : vector<1x8x8x1xf32> to vector<8x8x1xf32>
    %555 = vector.broadcast %547 : f32 to vector<8x8x1xf32>
    %556 = arith.mulf %555, %554 : vector<8x8x1xf32>
    %557 = arith.addf %552, %556 : vector<8x8x1xf32>
    %c43 = arith.constant 43 : index
    %558 = memref.load %arg4[%c43] : memref<98xf32, #tpu.memory_space<smem>>
    %c92 = arith.constant 92 : index
    %559 = memref.load %arg4[%c92] : memref<98xf32, #tpu.memory_space<smem>>
    %c0_374 = arith.constant 0 : index
    %c6_375 = arith.constant 6 : index
    %c6_376 = arith.constant 6 : index
    %c0_377 = arith.constant 0 : index
    %560 = vector.load %arg6[%c0_374, %c6_375, %c6_376, %c0_377] : memref<2x14x24x1xf32, #tpu.memory_space<vmem>>, vector<1x8x8x1xf32>
    %561 = vector.shape_cast %560 : vector<1x8x8x1xf32> to vector<8x8x1xf32>
    %562 = vector.broadcast %558 : f32 to vector<8x8x1xf32>
    %563 = arith.mulf %562, %561 : vector<8x8x1xf32>
    %564 = arith.addf %557, %563 : vector<8x8x1xf32>
    %c1_378 = arith.constant 1 : index
    %c6_379 = arith.constant 6 : index
    %c6_380 = arith.constant 6 : index
    %c0_381 = arith.constant 0 : index
    %565 = vector.load %arg6[%c1_378, %c6_379, %c6_380, %c0_381] : memref<2x14x24x1xf32, #tpu.memory_space<vmem>>, vector<1x8x8x1xf32>
    %566 = vector.shape_cast %565 : vector<1x8x8x1xf32> to vector<8x8x1xf32>
    %567 = vector.broadcast %559 : f32 to vector<8x8x1xf32>
    %568 = arith.mulf %567, %566 : vector<8x8x1xf32>
    %569 = arith.addf %564, %568 : vector<8x8x1xf32>
    %c44 = arith.constant 44 : index
    %570 = memref.load %arg4[%c44] : memref<98xf32, #tpu.memory_space<smem>>
    %c93 = arith.constant 93 : index
    %571 = memref.load %arg4[%c93] : memref<98xf32, #tpu.memory_space<smem>>
    %c0_382 = arith.constant 0 : index
    %c6_383 = arith.constant 6 : index
    %c7_384 = arith.constant 7 : index
    %c0_385 = arith.constant 0 : index
    %572 = vector.load %arg6[%c0_382, %c6_383, %c7_384, %c0_385] : memref<2x14x24x1xf32, #tpu.memory_space<vmem>>, vector<1x8x8x1xf32>
    %573 = vector.shape_cast %572 : vector<1x8x8x1xf32> to vector<8x8x1xf32>
    %574 = vector.broadcast %570 : f32 to vector<8x8x1xf32>
    %575 = arith.mulf %574, %573 : vector<8x8x1xf32>
    %576 = arith.addf %569, %575 : vector<8x8x1xf32>
    %c1_386 = arith.constant 1 : index
    %c6_387 = arith.constant 6 : index
    %c7_388 = arith.constant 7 : index
    %c0_389 = arith.constant 0 : index
    %577 = vector.load %arg6[%c1_386, %c6_387, %c7_388, %c0_389] : memref<2x14x24x1xf32, #tpu.memory_space<vmem>>, vector<1x8x8x1xf32>
    %578 = vector.shape_cast %577 : vector<1x8x8x1xf32> to vector<8x8x1xf32>
    %579 = vector.broadcast %571 : f32 to vector<8x8x1xf32>
    %580 = arith.mulf %579, %578 : vector<8x8x1xf32>
    %581 = arith.addf %576, %580 : vector<8x8x1xf32>
    %c45 = arith.constant 45 : index
    %582 = memref.load %arg4[%c45] : memref<98xf32, #tpu.memory_space<smem>>
    %c94 = arith.constant 94 : index
    %583 = memref.load %arg4[%c94] : memref<98xf32, #tpu.memory_space<smem>>
    %c0_390 = arith.constant 0 : index
    %c6_391 = arith.constant 6 : index
    %c8_392 = arith.constant 8 : index
    %c0_393 = arith.constant 0 : index
    %584 = vector.load %arg6[%c0_390, %c6_391, %c8_392, %c0_393] : memref<2x14x24x1xf32, #tpu.memory_space<vmem>>, vector<1x8x8x1xf32>
    %585 = vector.shape_cast %584 : vector<1x8x8x1xf32> to vector<8x8x1xf32>
    %586 = vector.broadcast %582 : f32 to vector<8x8x1xf32>
    %587 = arith.mulf %586, %585 : vector<8x8x1xf32>
    %588 = arith.addf %581, %587 : vector<8x8x1xf32>
    %c1_394 = arith.constant 1 : index
    %c6_395 = arith.constant 6 : index
    %c8_396 = arith.constant 8 : index
    %c0_397 = arith.constant 0 : index
    %589 = vector.load %arg6[%c1_394, %c6_395, %c8_396, %c0_397] : memref<2x14x24x1xf32, #tpu.memory_space<vmem>>, vector<1x8x8x1xf32>
    %590 = vector.shape_cast %589 : vector<1x8x8x1xf32> to vector<8x8x1xf32>
    %591 = vector.broadcast %583 : f32 to vector<8x8x1xf32>
    %592 = arith.mulf %591, %590 : vector<8x8x1xf32>
    %593 = arith.addf %588, %592 : vector<8x8x1xf32>
    %c46 = arith.constant 46 : index
    %594 = memref.load %arg4[%c46] : memref<98xf32, #tpu.memory_space<smem>>
    %c95 = arith.constant 95 : index
    %595 = memref.load %arg4[%c95] : memref<98xf32, #tpu.memory_space<smem>>
    %c0_398 = arith.constant 0 : index
    %c6_399 = arith.constant 6 : index
    %c9_400 = arith.constant 9 : index
    %c0_401 = arith.constant 0 : index
    %596 = vector.load %arg6[%c0_398, %c6_399, %c9_400, %c0_401] : memref<2x14x24x1xf32, #tpu.memory_space<vmem>>, vector<1x8x8x1xf32>
    %597 = vector.shape_cast %596 : vector<1x8x8x1xf32> to vector<8x8x1xf32>
    %598 = vector.broadcast %594 : f32 to vector<8x8x1xf32>
    %599 = arith.mulf %598, %597 : vector<8x8x1xf32>
    %600 = arith.addf %593, %599 : vector<8x8x1xf32>
    %c1_402 = arith.constant 1 : index
    %c6_403 = arith.constant 6 : index
    %c9_404 = arith.constant 9 : index
    %c0_405 = arith.constant 0 : index
    %601 = vector.load %arg6[%c1_402, %c6_403, %c9_404, %c0_405] : memref<2x14x24x1xf32, #tpu.memory_space<vmem>>, vector<1x8x8x1xf32>
    %602 = vector.shape_cast %601 : vector<1x8x8x1xf32> to vector<8x8x1xf32>
    %603 = vector.broadcast %595 : f32 to vector<8x8x1xf32>
    %604 = arith.mulf %603, %602 : vector<8x8x1xf32>
    %605 = arith.addf %600, %604 : vector<8x8x1xf32>
    %c47 = arith.constant 47 : index
    %606 = memref.load %arg4[%c47] : memref<98xf32, #tpu.memory_space<smem>>
    %c96 = arith.constant 96 : index
    %607 = memref.load %arg4[%c96] : memref<98xf32, #tpu.memory_space<smem>>
    %c0_406 = arith.constant 0 : index
    %c6_407 = arith.constant 6 : index
    %c10_408 = arith.constant 10 : index
    %c0_409 = arith.constant 0 : index
    %608 = vector.load %arg6[%c0_406, %c6_407, %c10_408, %c0_409] : memref<2x14x24x1xf32, #tpu.memory_space<vmem>>, vector<1x8x8x1xf32>
    %609 = vector.shape_cast %608 : vector<1x8x8x1xf32> to vector<8x8x1xf32>
    %610 = vector.broadcast %606 : f32 to vector<8x8x1xf32>
    %611 = arith.mulf %610, %609 : vector<8x8x1xf32>
    %612 = arith.addf %605, %611 : vector<8x8x1xf32>
    %c1_410 = arith.constant 1 : index
    %c6_411 = arith.constant 6 : index
    %c10_412 = arith.constant 10 : index
    %c0_413 = arith.constant 0 : index
    %613 = vector.load %arg6[%c1_410, %c6_411, %c10_412, %c0_413] : memref<2x14x24x1xf32, #tpu.memory_space<vmem>>, vector<1x8x8x1xf32>
    %614 = vector.shape_cast %613 : vector<1x8x8x1xf32> to vector<8x8x1xf32>
    %615 = vector.broadcast %607 : f32 to vector<8x8x1xf32>
    %616 = arith.mulf %615, %614 : vector<8x8x1xf32>
    %617 = arith.addf %612, %616 : vector<8x8x1xf32>
    %c48 = arith.constant 48 : index
    %618 = memref.load %arg4[%c48] : memref<98xf32, #tpu.memory_space<smem>>
    %c97 = arith.constant 97 : index
    %619 = memref.load %arg4[%c97] : memref<98xf32, #tpu.memory_space<smem>>
    %c0_414 = arith.constant 0 : index
    %c6_415 = arith.constant 6 : index
    %c11_416 = arith.constant 11 : index
    %c0_417 = arith.constant 0 : index
    %620 = vector.load %arg6[%c0_414, %c6_415, %c11_416, %c0_417] : memref<2x14x24x1xf32, #tpu.memory_space<vmem>>, vector<1x8x8x1xf32>
    %621 = vector.shape_cast %620 : vector<1x8x8x1xf32> to vector<8x8x1xf32>
    %622 = vector.broadcast %618 : f32 to vector<8x8x1xf32>
    %623 = arith.mulf %622, %621 : vector<8x8x1xf32>
    %624 = arith.addf %617, %623 : vector<8x8x1xf32>
    %c1_418 = arith.constant 1 : index
    %c6_419 = arith.constant 6 : index
    %c11_420 = arith.constant 11 : index
    %c0_421 = arith.constant 0 : index
    %625 = vector.load %arg6[%c1_418, %c6_419, %c11_420, %c0_421] : memref<2x14x24x1xf32, #tpu.memory_space<vmem>>, vector<1x8x8x1xf32>
    %626 = vector.shape_cast %625 : vector<1x8x8x1xf32> to vector<8x8x1xf32>
    %627 = vector.broadcast %619 : f32 to vector<8x8x1xf32>
    %628 = arith.mulf %627, %626 : vector<8x8x1xf32>
    %629 = arith.addf %624, %628 : vector<8x8x1xf32>
    %630 = arith.negf %629 : vector<8x8x1xf32>
    %631 = math.exp %630 : vector<8x8x1xf32>
    %cst_422 = arith.constant 1.000000e+00 : f32
    %632 = vector.broadcast %cst_422 : f32 to vector<8x8x1xf32>
    %633 = arith.addf %632, %631 : vector<8x8x1xf32>
    %634 = arith.divf %632, %633 : vector<8x8x1xf32>
    %635 = arith.extf %24 : vector<8x8x16xbf16> to vector<8x8x16xf32>
    %636 = vector.broadcast %634 : vector<8x8x1xf32> to vector<8x8x16xf32>
    %637 = arith.mulf %635, %636 : vector<8x8x16xf32>
    %638 = vector.shape_cast %637 : vector<8x8x16xf32> to vector<1x8x8x16xf32>
    %c0_423 = arith.constant 0 : index
    %c0_424 = arith.constant 0 : index
    %c0_425 = arith.constant 0 : index
    %c0_426 = arith.constant 0 : index
    %639 = vector.load %arg5[%c0_423, %c0_424, %c0_425, %c0_426] : memref<1x8x8x16xf32, #tpu.memory_space<vmem>>, vector<1x8x8x16xf32>
    tpu.vector_store %arg5[%c0_423, %c0_424, %c0_425, %c0_426], %638 {strides = array<i32>} : memref<1x8x8x16xf32, #tpu.memory_space<vmem>>, vector<1x8x8x16xf32>,
    return
  }
  func.func @transform_0(%arg0: i32) -> (i32, i32, i32, i32) {
    %c0_i32 = arith.constant 0 : i32
    %c0_i32_0 = arith.constant 0 : i32
    %c0_i32_1 = arith.constant 0 : i32
    %c0_i32_2 = arith.constant 0 : i32
    return %arg0, %c0_i32, %c0_i32_0, %c0_i32_1 : i32, i32, i32, i32
  }
  func.func @transform_1(%arg0: i32) -> (i32, i32) {
    %c0_i32 = arith.constant 0 : i32
    %c0_i32_0 = arith.constant 0 : i32
    %c0_i32_1 = arith.constant 0 : i32
    return %c0_i32, %c0_i32_0 : i32, i32
  }
  func.func @transform_2(%arg0: i32) -> (i32, i32) {
    %c0_i32 = arith.constant 0 : i32
    %c0_i32_0 = arith.constant 0 : i32
    %c0_i32_1 = arith.constant 0 : i32
    return %c0_i32, %c0_i32_0 : i32, i32
  }
  func.func @transform_3(%arg0: i32) -> i32 {
    %c0_i32 = arith.constant 0 : i32
    %c0_i32_0 = arith.constant 0 : i32
    return %c0_i32 : i32
  }
  func.func @transform_4(%arg0: i32) -> (i32, i32, i32, i32) {
    %c0_i32 = arith.constant 0 : i32
    %c0_i32_0 = arith.constant 0 : i32
    %c0_i32_1 = arith.constant 0 : i32
    %c0_i32_2 = arith.constant 0 : i32
    return %arg0, %c0_i32, %c0_i32_0, %c0_i32_1 : i32, i32, i32, i32
  }
}

</mosaic_0001>

<bundles_post_ra>
// kernel: tile.33
= control target key start
LH: loop header
LB: loop body
LE: loop exit
PB: predicated region body
PF: predicated region fallthrough
CT: control target
= control target key end

     0   :  { %s22_s0 = inlined_call_operand.vmem [shape: f32[16], index: 0, kind: input, shape index: {}]   ;;  %s23_s1 = inlined_call_operand.vmem [shape: f32[8,16], index: 1, kind: output, shape index: {}]  }
   0x1   :  { %v4_v0 = vld [vmem:[%s22_s0] ss:$0 sm:$0xff] }
   0x2   :  { %5 = vst [vmem:[%s23_s1] sm:$0xff] %v4_v0 }

// kernel: tile.34
= control target key start
LH: loop header
LB: loop body
LE: loop exit
PB: predicated region body
PF: predicated region fallthrough
CT: control target
= control target key end

     0   :  { %s67_s10 = smov 112   ;;  %s68_s11 = smov 80   ;;  %vm3_vm0 = vcmask 130048   ;;  %vm9_vm1 = vcmask 1048448   ;;  %vm15_vm2 = vcmask 917248   ;;  %vm21_vm3 = vcmask 786048   ;;  %s111_s0 = inlined_call_operand.vmem [shape: f32[8,16], index: 0, kind: input, shape index: {}]   ;;  %s112_s1 = inlined_call_operand.vmem [shape: f32[1,128], index: 1, kind: output, shape index: {}]  }
   0x1   :  { %v53_v0 = vld [vmem:[%s111_s0 + $0x7] sm:$0x1]   ;;  %v55_v1 = vld [vmem:[%s111_s0 + $0x5] sm:$0x1]   ;;  %v54_v2 = vld [vmem:[%s111_s0 + $0x6] sm:$0x1]  }
   0x2   :  { %7 = vrot.lane.b32.xlu0 %v53_v0, %s67_s10  ;;  %19 = vrot.lane.b32.xlu1 %v55_v1, %s68_s11  ;;  %v56_v3 = vld [vmem:[%s111_s0 + $0x4] sm:$0x1]   ;;  %v2_v4 = vld [vmem:[%s111_s0] sm:$0x1]   ;;  %s69_s18 = smov 96   ;;  %s70_s19 = smov 64  }
   0x3   :  { %4 = vst.msk [vmem:[#allocation0] sm:$0x1] %vm3_vm0, %v2_v4   ;;  %v57_v5 = vld [vmem:[%s111_s0 + $0x3] sm:$0x1]   ;;  %v58_v6 = vld [vmem:[%s111_s0 + $0x2] sm:$0x1]  }
   0x4   :  { %s71_s24 = smov 48   ;;  %s72_s25 = smov 32   ;;  %v59_v7 = vld [vmem:[%s111_s0 + $0x1] sm:$0x1]   ;;  %vm27_vm4 = vcmask 654848   ;;  %vm33_vm5 = vcmask 523648  }
   0x5   :  { %s73_s0 = smov 16   ;;  %vm39_vm6 = vcmask 392448   ;;  %vm45_vm7 = vcmask 261248  }
   0x6   :  { %13 = vrot.lane.b32.xlu0 %v54_v2, %s69_s18  ;;  %25 = vrot.lane.b32.xlu1 %v56_v3, %s70_s19 }
   0xa   :  { %31 = vrot.lane.b32.xlu0 %v57_v5, %s71_s24  ;;  %37 = vrot.lane.b32.xlu1 %v58_v6, %s72_s25 }
   0xe   :  { %43 = vrot.lane.b32.xlu0 %v59_v7, %s73_s0 }
  0x74   :  { %v8_v8 = vpop.permute.xlu0 %7   ;;  %v20_v9 = vpop.permute.xlu1 %19  }
  0x75   :  { %10 = vst.msk [vmem:[#allocation0] sm:$0x1] %vm9_vm1, %v8_v8  }
  0x78   :  { %v14_v10 = vpop.permute.xlu0 %13   ;;  %v26_v11 = vpop.permute.xlu1 %25  }
  0x79   :  { %16 = vst.msk [vmem:[#allocation0] sm:$0x1] %vm15_vm2, %v14_v10  }
  0x7a   :  { %22 = vst.msk [vmem:[#allocation0] sm:$0x1] %vm21_vm3, %v20_v9  }
  0x7b   :  { %28 = vst.msk [vmem:[#allocation0] sm:$0x1] %vm27_vm4, %v26_v11  }
  0x7c   :  { %v32_v12 = vpop.permute.xlu0 %31   ;;  %v38_v13 = vpop.permute.xlu1 %37  }
  0x7d   :  { %34 = vst.msk [vmem:[#allocation0] sm:$0x1] %vm33_vm5, %v32_v12  }
  0x7e   :  { %40 = vst.msk [vmem:[#allocation0] sm:$0x1] %vm39_vm6, %v38_v13  }
  0x80   :  { %v44_v14 = vpop.permute.xlu0 %43  }
  0x81   :  { %46 = vst.msk [vmem:[#allocation0] sm:$0x1] %vm45_vm7, %v44_v14  }
  0x88   :  { %v50_v15 = vld [vmem:[#allocation0] sm:$0x1] }
  0x89   :  { %52 = vst [vmem:[%s112_s1] sm:$0x1] %v50_v15 }

// kernel: down_forward.8
= control target key start
LH: loop header
LB: loop body
LE: loop exit
PB: predicated region body
PF: predicated region fallthrough
CT: control target
= control target key end

     0   :  { %s99_s0 = inlined_call_operand.vmem [shape: bf16[16,128], index: 0, kind: input, shape index: {}]   ;;  %s100_s1 = inlined_call_operand.vmem [shape: f32[1,128], index: 1, kind: input, shape index: {}]   ;;  %s101_s2 = inlined_call_operand.vmem [shape: f32[1,128], index: 2, kind: input, shape index: {}]   ;;  %s102_s3 = inlined_call_operand.vmem [shape: bf16[16,128], index: 3, kind: output, shape index: {}]  }
   0x1   :  { %v59_v0 = vld [vmem:[%s99_s0] sm:$0xff]  }
   0x2   :  { %v52_v1 = vld [vmem:[%s100_s1] ss:$0 sm:$0xff]  ;;  %v60_v2 = vunpack.c.l.bf16 %v59_v0  ;;  %v61_v3 = vunpack.c.h.bf16 %v59_v0 }
   0x3   :  { %v53_v4 = vld [vmem:[%s101_s2] ss:$0 sm:$0xff] }
   0x4   :  { %v25_v5 = vmul.f32 %v60_v2, %v52_v1  ;;  %v26_v6 = vmul.f32 %v61_v3, %v52_v1 }
   0x6   :  { %v34_v7 = vadd.f32 %v53_v4, %v25_v5  ;;  %v35_v8 = vadd.f32 %v53_v4, %v26_v6 }
   0x8   :  { %v36_v9 = vmax.f32 %v34_v7, 0.0  ;;  %v37_v10 = vmax.f32 %v35_v8, 0.0 }
   0xa   :  { %v65_v11 = vpack.c.bf16 %v37_v10, %v36_v9 }
   0xc   :  { %66 = vst [vmem:[%s102_s3] sm:$0xff] %v65_v11  }

// kernel: down_forward.7
= control target key start
LH: loop header
LB: loop body
LE: loop exit
PB: predicated region body
PF: predicated region fallthrough
CT: control target
= control target key end

     0   :  { %vm91_vm0 = vcmask 293888   ;;  %vm116_vm1 = vcmask 1041408   ;;  %vm281_vm2 = vcmask 125952   ;;  %vm298_vm3 = vcmask 130048   ;;  %s718_s1 = inlined_call_operand.vmem [shape: bf16[36,16], index: 1, kind: input, shape index: {}]   ;;  %s719_s0 = inlined_call_operand.vmem [shape: bf16[128,36], index: 0, kind: input, shape index: {}]   ;;  %s720_s2 = inlined_call_operand.vmem [shape: bf16[128,16], index: 2, kind: output, shape index: {0}]   ;;  %s721_s3 = inlined_call_operand.vmem [shape: f32[8,16], index: 3, kind: output, shape index: {1}]   ;;  %s722_s4 = inlined_call_operand.vmem [shape: f32[8,16], index: 4, kind: output, shape index: {2}]  }
   0x1   :  { %v495_v0 = vld [vmem:[%s718_s1] sm:$0xff]   ;;  %v496_v1 = vld [vmem:[%s718_s1 + $0x8] sm:$0xff]   ;;  %v497_v2 = vld [vmem:[%s718_s1 + $0x10] ss:$0 sps:$4 sm:$0x33]  }
   0x2   :  { %465 = vmatprep.subr.bf16.mxu0 %v495_v0  ;;  %v498_v3 = vld [vmem:[%s719_s0] sm:$0xff]   ;;  %487 = vmatprep.subr.bf16.mxu1 %v495_v0  ;;  %v118_v5 = vsel %vm116_vm1, %v497_v2, 0  ;;  %v499_v6 = vld [vmem:[%s719_s0 + $0x8] sm:$0xff]   ;;  %v500_v8 = vld [vmem:[%s719_s0 + $0x10] sm:$0xff]  }
   0x3   :  { %466 = vmatpush3.bf16.msra.mxu0 %v495_v0  ;;  %490 = vmatpush3.bf16.msra.mxu1 %v495_v0  ;;  %v502_v4 = vld [vmem:[%s719_s0 + $0x20] sm:$0xff]   ;;  %v503_v7 = vld [vmem:[%s719_s0 + $0x28] sm:$0xff]   ;;  %v504_v9 = vld [vmem:[%s719_s0 + $0x30] sm:$0xff]  }
   0x4   :  { %467 = vmatprep.subr.bf16.mxu0 %v496_v1  ;;  %471 = vmatprep.mubr.msk.bf16.mxu0 %vm91_vm0, %v498_v3  ;;  %v501_v10 = vld [vmem:[%s719_s0 + $0x18] sm:$0xff]  }
   0x5   :  { %488 = vmatprep.subr.bf16.mxu1 %v496_v1  ;;  %479 = vmatprep.mubr.msk.bf16.mxu1 %vm91_vm0, %v502_v4  ;;  %v505_v11 = vld [vmem:[%s719_s0 + $0x38] sm:$0xff]  }
   0x7   :  { %468 = vmatpush3.bf16.msra.mxu0 %v496_v1  ;;  %491 = vmatpush3.bf16.msra.mxu1 %v496_v1 }
   0x8   :  { %493 = vmatprep.subr.msk.bf16.mxu0 %vm116_vm1, %v497_v2  ;;  %494 = vmatprep.subr.msk.bf16.mxu1 %vm116_vm1, %v497_v2 }
   0xb   :  { %470 = vmatpush3.bf16.msra.mxu0 %v118_v5  ;;  %492 = vmatpush3.bf16.msra.mxu1 %v118_v5 }
   0xe   :  { %472 = vmatmul.mubr.msk.bf16.vlgmr.msra.gmra.mrb[0].mxu0 %vm91_vm0, %v499_v6  ;;  %480 = vmatmul.mubr.msk.bf16.vlgmr.msra.gmra.mrb[0].mxu1 %vm91_vm0, %v503_v7 }
   0xf   :  { %475 = vmatprep.mubr.msk.bf16.mxu0 %vm91_vm0, %v500_v8  ;;  %483 = vmatprep.mubr.msk.bf16.mxu1 %vm91_vm0, %v504_v9 }
  0x16   :  { %476 = vmatmul.mubr.msk.bf16.gmra.mrb[4].mxu0 %vm91_vm0, %v501_v10  ;;  %484 = vmatmul.mubr.msk.bf16.gmra.mrb[4].mxu1 %vm91_vm0, %v505_v11 }
  0xe1   :  { %v473_v12 = vpop.f32.mrb[0].mxu0  ;;  %v572_v13 = vpop.f32.mrb[0].mxu1 }
  0xe2   :  { %v440_v14 = vpack.c.bf16 %v473_v12, %v473_v12  ;;  %v154_v15 = vpop.f32.mrb[1].mxu0  ;;  %v448_v16 = vpack.c.bf16 %v572_v13, %v572_v13  ;;  %v576_v17 = vpop.f32.mrb[1].mxu1  ;;  %v339_v22 = vmul.f32 %v473_v12, %v473_v12  ;;  %v302_v33 = vsel %vm298_vm3, %v473_v12, 0.0 }
  0xe3   :  { %v438_v18 = vpack.c.bf16 %v154_v15, %v154_v15  ;;  %v337_v19 = vmul.f32 %v154_v15, %v154_v15  ;;  %v474_v20 = vpop.f32.mrb[2].mxu0  ;;  %v578_v21 = vpop.f32.mrb[2].mxu1  ;;  %v299_v26 = vsel %vm298_vm3, %v154_v15, 0.0  ;;  %v446_v32 = vpack.c.bf16 %v576_v17, %v576_v17 }
  0xe4   :  { %284 = vst.msk [vmem:[%s720_s2 + $0x8] sm:$0xf] %vm281_vm2, %v440_v14  ;;  %v441_v23 = vpack.c.bf16 %v474_v20, %v474_v20  ;;  %v157_v24 = vpop.f32.mrb[3].mxu0  ;;  %292 = vst.msk [vmem:[%s720_s2 + $0x28] sm:$0xf] %vm281_vm2, %v448_v16  ;;  %v588_v25 = vpop.f32.mrb[3].mxu1  ;;  %v340_v30 = vmul.f32 %v474_v20, %v474_v20  ;;  %v449_v36 = vpack.c.bf16 %v578_v21, %v578_v21 }
  0xe5   :  { %282 = vst.msk [vmem:[%s720_s2] sm:$0xf] %vm281_vm2, %v438_v18  ;;  %v439_v27 = vpack.c.bf16 %v157_v24, %v157_v24  ;;  %v300_v28 = vsel %vm298_vm3, %v157_v24, 0.0  ;;  %v338_v29 = vmul.f32 %v157_v24, %v157_v24  ;;  %v353_v34 = vsel %vm298_vm3, %v337_v19, 0.0  ;;  %290 = vst.msk [vmem:[%s720_s2 + $0x20] sm:$0xf] %vm281_vm2, %v446_v32 }
  0xe6   :  { %285 = vst.msk [vmem:[%s720_s2 + $0xc] sm:$0xf] %vm281_vm2, %v441_v23  ;;  %v301_v31 = vadd.f32 %v300_v28, %v299_v26  ;;  %v356_v39 = vsel %vm298_vm3, %v339_v22, 0.0  ;;  %293 = vst.msk [vmem:[%s720_s2 + $0x2c] sm:$0xf] %vm281_vm2, %v449_v36  ;;  %v447_v41 = vpack.c.bf16 %v588_v25, %v588_v25  ;;  %v304_v43 = vsel %vm298_vm3, %v474_v20, 0.0 }
  0xe7   :  { %283 = vst.msk [vmem:[%s720_s2 + $0x4] sm:$0xf] %vm281_vm2, %v439_v27  ;;  %v354_v35 = vsel %vm298_vm3, %v338_v29, 0.0  ;;  %v358_v44 = vsel %vm298_vm3, %v340_v30, 0.0  ;;  %v345_v3 = vmul.f32 %v576_v17, %v576_v17  ;;  %v314_v14 = vsel %vm298_vm3, %v576_v17, 0.0 }
  0xe8   :  { %v303_v37 = vadd.f32 %v302_v33, %v301_v31  ;;  %v355_v38 = vadd.f32 %v354_v35, %v353_v34  ;;  %291 = vst.msk [vmem:[%s720_s2 + $0x24] sm:$0xf] %vm281_vm2, %v447_v41  ;;  %v346_v23 = vmul.f32 %v588_v25, %v588_v25  ;;  %v347_v26 = vmul.f32 %v572_v13, %v572_v13 }
  0xe9   :  { %v477_v40 = vpop.f32.mrb[4].mxu0  ;;  %v622_v42 = vpop.f32.mrb[4].mxu1  ;;  %v368_v22 = vsel %vm298_vm3, %v345_v3, 0.0  ;;  %v316_v27 = vsel %vm298_vm3, %v588_v25, 0.0  ;;  %v318_v30 = vsel %vm298_vm3, %v572_v13, 0.0  ;;  %v348_v31 = vmul.f32 %v578_v21, %v578_v21 }
  0xea   :  { %v357_v45 = vadd.f32 %v356_v39, %v355_v38  ;;  %v444_v46 = vpack.c.bf16 %v477_v40, %v477_v40  ;;  %v170_v47 = vpop.f32.mrb[5].mxu0  ;;  %v202_v48 = vpop.f32.mrb[5].mxu1  ;;  %v305_v50 = vadd.f32 %v304_v43, %v303_v37  ;;  %v343_v62 = vmul.f32 %v477_v40, %v477_v40 }
  0xeb   :  { %v442_v49 = vpack.c.bf16 %v170_v47, %v170_v47  ;;  %v306_v51 = vsel %vm298_vm3, %v170_v47, 0.0  ;;  %v341_v52 = vmul.f32 %v170_v47, %v170_v47  ;;  %v478_v53 = vpop.f32.mrb[6].mxu0  ;;  %v631_v54 = vpop.f32.mrb[6].mxu1  ;;  %v452_v4 = vpack.c.bf16 %v622_v42, %v622_v42 }
  0xec   :  { %288 = vst.msk [vmem:[%s720_s2 + $0x18] sm:$0xf] %vm281_vm2, %v444_v46  ;;  %v359_v55 = vadd.f32 %v358_v44, %v357_v45  ;;  %v445_v56 = vpack.c.bf16 %v478_v53, %v478_v53  ;;  %v173_v57 = vpop.f32.mrb[7].mxu0  ;;  %v205_v58 = vpop.f32.mrb[7].mxu1  ;;  %v307_v59 = vadd.f32 %v306_v51, %v305_v50  ;;  %v310_v5 = vsel %vm298_vm3, %v477_v40, 0.0 }
  0xed   :  { %286 = vst.msk [vmem:[%s720_s2 + $0x10] sm:$0xf] %vm281_vm2, %v442_v49  ;;  %v360_v60 = vsel %vm298_vm3, %v341_v52, 0.0  ;;  %v443_v61 = vpack.c.bf16 %v173_v57, %v173_v57  ;;  %v308_v0 = vsel %vm298_vm3, %v173_v57, 0.0  ;;  %v342_v1 = vmul.f32 %v173_v57, %v173_v57  ;;  %296 = vst.msk [vmem:[%s720_s2 + $0x38] sm:$0xf] %vm281_vm2, %v452_v4 }
  0xee   :  { %v361_v63 = vadd.f32 %v360_v60, %v359_v55  ;;  %289 = vst.msk [vmem:[%s720_s2 + $0x1c] sm:$0xf] %vm281_vm2, %v445_v56  ;;  %v309_v2 = vadd.f32 %v308_v0, %v307_v59  ;;  %v344_v6 = vmul.f32 %v478_v53, %v478_v53  ;;  %v450_v8 = vpack.c.bf16 %v202_v48, %v202_v48 }
  0xef   :  { %287 = vst.msk [vmem:[%s720_s2 + $0x14] sm:$0xf] %vm281_vm2, %v443_v61  ;;  %v362_v7 = vsel %vm298_vm3, %v342_v1, 0.0  ;;  %v364_v11 = vsel %vm298_vm3, %v343_v62, 0.0  ;;  %v312_v12 = vsel %vm298_vm3, %v478_v53, 0.0  ;;  %v453_v15 = vpack.c.bf16 %v631_v54, %v631_v54 }
  0xf0   :  { %v311_v9 = vadd.f32 %v310_v5, %v309_v2  ;;  %v363_v10 = vadd.f32 %v362_v7, %v361_v63  ;;  %294 = vst.msk [vmem:[%s720_s2 + $0x30] sm:$0xf] %vm281_vm2, %v450_v8  ;;  %v451_v19 = vpack.c.bf16 %v205_v58, %v205_v58  ;;  %v366_v20 = vsel %vm298_vm3, %v344_v6, 0.0 }
  0xf1   :  { %297 = vst.msk [vmem:[%s720_s2 + $0x3c] sm:$0xf] %vm281_vm2, %v453_v15  ;;  %v370_v32 = vsel %vm298_vm3, %v346_v23, 0.0  ;;  %v349_v33 = vmul.f32 %v202_v48, %v202_v48  ;;  %v372_v36 = vsel %vm298_vm3, %v347_v26, 0.0  ;;  %v320_v37 = vsel %vm298_vm3, %v578_v21, 0.0 }
  0xf2   :  { %v365_v16 = vadd.f32 %v364_v11, %v363_v10  ;;  %v313_v18 = vadd.f32 %v312_v12, %v311_v9  ;;  %295 = vst.msk [vmem:[%s720_s2 + $0x34] sm:$0xf] %vm281_vm2, %v451_v19  ;;  %v322_v25 = vsel %vm298_vm3, %v202_v48, 0.0  ;;  %v374_v40 = vsel %vm298_vm3, %v348_v31, 0.0 }
  0xf3   :  { %v376_v13 = vsel %vm298_vm3, %v349_v33, 0.0  ;;  %v350_v41 = vmul.f32 %v205_v58, %v205_v58  ;;  %v351_v45 = vmul.f32 %v622_v42, %v622_v42  ;;  %v324_v46 = vsel %vm298_vm3, %v205_v58, 0.0 }
  0xf4   :  { %v315_v17 = vadd.f32 %v314_v14, %v313_v18  ;;  %v367_v24 = vadd.f32 %v366_v20, %v365_v16  ;;  %v326_v21 = vsel %vm298_vm3, %v622_v42, 0.0  ;;  %v352_v48 = vmul.f32 %v631_v54, %v631_v54 }
  0xf5   :  { %v378_v50 = vsel %vm298_vm3, %v350_v41, 0.0  ;;  %v380_v53 = vsel %vm298_vm3, %v351_v45, 0.0  ;;  %v328_v55 = vsel %vm298_vm3, %v631_v54, 0.0 }
  0xf6   :  { %v369_v28 = vadd.f32 %v368_v22, %v367_v24  ;;  %v317_v29 = vadd.f32 %v316_v27, %v315_v17  ;;  %v382_v58 = vsel %vm298_vm3, %v352_v48, 0.0 }
  0xf8   :  { %v319_v34 = vadd.f32 %v318_v30, %v317_v29  ;;  %v371_v35 = vadd.f32 %v370_v32, %v369_v28 }
  0xfa   :  { %v373_v38 = vadd.f32 %v372_v36, %v371_v35  ;;  %v321_v39 = vadd.f32 %v320_v37, %v319_v34 }
  0xfc   :  { %v323_v43 = vadd.f32 %v322_v25, %v321_v39  ;;  %v375_v44 = vadd.f32 %v374_v40, %v373_v38 }
  0xfe   :  { %v377_v47 = vadd.f32 %v376_v13, %v375_v44  ;;  %v325_v49 = vadd.f32 %v324_v46, %v323_v43 }
 0x100   :  { %v327_v51 = vadd.f32 %v326_v21, %v325_v49  ;;  %v379_v52 = vadd.f32 %v378_v50, %v377_v47 }
 0x102   :  { %v329_v56 = vadd.f32 %v328_v55, %v327_v51  ;;  %v381_v57 = vadd.f32 %v380_v53, %v379_v52 }
 0x104   :  { %v330_v59 = vrot.slane %v329_v56, 4  ;;  %v383_v60 = vadd.f32 %v382_v58, %v381_v57 }
 0x106   :  { %v331_v61 = vadd.f32 %v330_v59, %v329_v56  ;;  %v384_v42 = vrot.slane %v383_v60, 4 }
 0x108   :  { %v332_v62 = vrot.slane %v331_v61, 2  ;;  %v385_v63 = vadd.f32 %v384_v42, %v383_v60 }
 0x10a   :  { %v333_v0 = vadd.f32 %v332_v62, %v331_v61  ;;  %v386_v1 = vrot.slane %v385_v63, 2 }
 0x10c   :  { %v334_v2 = vrot.slane %v333_v0, 1  ;;  %v387_v3 = vadd.f32 %v386_v1, %v385_v63 }
 0x10e   :  { %v335_v4 = vadd.f32 %v334_v2, %v333_v0  ;;  %v388_v5 = vrot.slane %v387_v3, 1 }
 0x110   :  { %336 = vst.msk [vmem:[%s721_s3] sm:$0xff] %vm298_vm3, %v335_v4  ;;  %v389_v54 = vadd.f32 %v388_v5, %v387_v3 }
 0x112   :  { %390 = vst.msk [vmem:[%s722_s4] sm:$0xff] %vm298_vm3, %v389_v54 }

// kernel: down_forward.9
= control target key start
LH: loop header
LB: loop body
LE: loop exit
PB: predicated region body
PF: predicated region fallthrough
CT: control target
= control target key end

     0   :  { %s1046_s15 = smov 0   ;;  %s1167_s0 = inlined_call_operand.vmem [shape: bf16[2,10,8,48], index: 0, kind: input, shape index: {}]   ;;  %s1168_s1 = inlined_call_operand.vmem [shape: bf16[3,48,16], index: 1, kind: input, shape index: {}]   ;;  %s1169_s2 = inlined_call_operand.vmem [shape: bf16[128,16], index: 2, kind: output, shape index: {0}]   ;;  %s1170_s3 = inlined_call_operand.vmem [shape: f32[16,16], index: 3, kind: output, shape index: {1}]   ;;  %s1171_s4 = inlined_call_operand.vmem [shape: f32[16,16], index: 4, kind: output, shape index: {2}]  }
   0x1 LB: > { %s1052_s16 = sadd.s32 4294967295, %s1019_s15   ;;  %p813_p0 = scmp.ge.s32.totalorder %s1019_s15, 1  ;;  %s1019_s15 = sphi %s1046_s15, %s15_s15  }
   0x2   : > { %p167_p1 = scmp.lt.s32.totalorder %s1019_s15, 3 }
   0x4   : > { %p168_p2 = pnand %p813_p0, %p167_p1 }
   0x5   : > { %v992_v0 = vld [vmem:[%s1168_s1 + $0x18] sm:$0xff] (!%p168_p2)   ;;  %p201_p3 = scmp.lt.s32.totalorder (!%p168_p2), %s1052_s16, 1  ;;  %v993_v1 = vld [vmem:[%s1168_s1] sm:$0xff] (!%p168_p2)   ;;  %v995_v3 = vld [vmem:[%s1168_s1 + $0x8] sm:$0xff] (!%p168_p2)   ;;  %vm293_vm0 = vcmask (!%p168_p2), 392192   ;;  %s815_s14 = sshll.u32 (!%p168_p2), %s1052_s16, 3 }
   0x6   : > { %171 = sbr.rel (%p168_p2) target bundleno = 284 (0x11c), region = 28  ;;  %919 = vmatprep.subr.bf16.mxu1 (!%p168_p2), %v992_v0  ;;  %v994_v2 = vld [vmem:[%s1168_s1 + $0x20] sm:$0xff] (!%p168_p2)   ;;  %933 = vmatprep.subr.bf16.mxu0 (!%p168_p2), %v993_v1  ;;  %v996_v4 = vld [vmem:[%s1168_s1 + $0x28] sm:$0xff] (!%p168_p2)   ;;  %v997_v5 = vld [vmem:[%s1168_s1 + $0x10] sm:$0xff] (!%p168_p2)   ;;  %p207_p4 = scmp.lt.s32.totalorder (!%p168_p2), %s815_s14, 15  ;;  %vm629_vm1 = vcmask (!%p168_p2), 125952  }
   0x7   : > { %920 = vmatpush3.bf16.msra.mxu1 (!%p168_p2), %v992_v0  ;;  %934 = vmatpush3.bf16.msra.mxu0 (!%p168_p2), %v993_v1  ;;  %v1002_v6 = vld [vmem:[%s1168_s1 + $0x30] sm:$0xff] (!%p168_p2)   ;;  %v1003_v11 = vld [vmem:[%s1168_s1 + $0x38] sm:$0xff] (!%p168_p2)   ;;  %v1008_v14 = vld [vmem:[%s1168_s1 + $0x40] sm:$0xff] (!%p168_p2)   ;;  %vm638_vm2 = vcmask (!%p168_p2), 130048  }
   0x8   : > { %921 = vmatprep.subr.bf16.mxu1 (!%p168_p2), %v994_v2  ;;  %935 = vmatprep.subr.bf16.mxu0 (!%p168_p2), %v995_v3 }
   0xb   : > { %922 = vmatpush3.bf16.msra.mxu1 (!%p168_p2), %v994_v2  ;;  %936 = vmatpush3.bf16.msra.mxu0 (!%p168_p2), %v995_v3 }
   0xc   : > { %923 = vmatprep.subr.bf16.mxu1 (!%p168_p2), %v996_v4  ;;  %937 = vmatprep.subr.bf16.mxu0 (!%p168_p2), %v997_v5 }
   0xd   : > { %s1067_s23 = scalar_select %p201_p3, %s1052_s16, 1 }
   0xe   : > { %s1173_s14 = smov (!%p207_p4, %s815_s14), 15 }
   0xf   : > { %s983_s28 = smul.u32 40, %s1067_s23  ;;  %924 = vmatpush3.bf16.msra.mxu1 %v996_v4  ;;  %938 = vmatpush3.bf16.msra.mxu0 %v997_v5  ;;  %s816_s17 = sshll.u32 %s1173_s14, 2 }
  0x10   : > { %961 = vmatprep.subr.bf16.mxu1 %v1002_v6  ;;  %947 = vmatprep.subr.bf16.mxu0 %v1002_v6  ;;  %s1121_s19 = scalar_lea.vmem %s1169_s2, %s816_s17  ;;  %s817_s20 = sshll.u32 %s1067_s23, 3 }
  0x11   : > { %s1082_s7 = scalar_lea.vmem %s1167_s0, %s983_s28  ;;  %s215_s24 = scalar_lea.vmem %s1170_s3, %s817_s20 }
  0x12   : > { %v998_v7 = vld [vmem:[%s1082_s7 + $0x4] sm:$0xff]   ;;  %v1000_v9 = vld [vmem:[%s1082_s7 + $0xc] sm:$0xff]   ;;  %v1004_v12 = vld [vmem:[%s1082_s7 + $0x14] sm:$0xff]   ;;  %s219_s27 = scalar_lea.vmem %s1171_s4, %s817_s20 }
  0x13   : > { %v999_v8 = vld [vmem:[%s1082_s7] sm:$0xff]   ;;  %925 = vmatprep.mubr.msk.bf16.mxu1 %vm293_vm0, %v998_v7  ;;  %v1001_v10 = vld [vmem:[%s1082_s7 + $0x8] sm:$0xff]   ;;  %v1005_v13 = vld [vmem:[%s1082_s7 + $0x10] sm:$0xff]  }
  0x14   : > { %939 = vmatprep.mubr.msk.bf16.mxu0 %vm293_vm0, %v999_v8  ;;  %926 = vmatmul.mubr.msk.bf16.vlgmr.msra.gmra.mrb[0].mxu1 %vm293_vm0, %v1000_v9  ;;  %v1006_v15 = vld [vmem:[%s1082_s7 + $0x1c] sm:$0xff]   ;;  %v1009_v17 = vld [vmem:[%s1082_s7 + $0x8] sm:$0xff]   ;;  %v1011_v20 = vld [vmem:[%s1082_s7 + $0x10] sm:$0xff]  }
  0x15   : > { %940 = vmatmul.mubr.msk.bf16.vlgmr.msra.gmra.mrb[0].mxu0 %vm293_vm0, %v1001_v10  ;;  %964 = vmatpush3.bf16.msra.mxu1 %v1002_v6  ;;  %v1007_v16 = vld [vmem:[%s1082_s7 + $0x18] sm:$0xff]   ;;  %v1012_v19 = vld [vmem:[%s1082_s7 + $0x20] sm:$0xff]  }
  0x16   : > { %948 = vmatpush3.bf16.msra.mxu0 %v1002_v6  ;;  %929 = vmatprep.mubr.msk.bf16.mxu1 %vm293_vm0, %v1004_v12  ;;  %v1010_v18 = vld [vmem:[%s1082_s7 + $0x18] sm:$0xff]  }
  0x17   : > { %949 = vmatprep.subr.bf16.mxu0 %v1003_v11  ;;  %943 = vmatprep.mubr.msk.bf16.mxu0 %vm293_vm0, %v1005_v13 }
  0x18   : > { %962 = vmatprep.subr.bf16.mxu1 %v1003_v11 }
  0x19   : > { %965 = vmatpush3.bf16.msra.mxu1 %v1003_v11 }
  0x1a   : > { %950 = vmatpush3.bf16.msra.mxu0 %v1003_v11  ;;  %963 = vmatprep.subr.bf16.mxu1 %v1008_v14 }
  0x1b   : > { %951 = vmatprep.subr.bf16.mxu0 %v1008_v14 }
  0x1c   : > { %930 = vmatmul.mubr.msk.bf16.gmra.mrb[4].mxu1 %vm293_vm0, %v1006_v15 }
  0x1d   : > { %944 = vmatmul.mubr.msk.bf16.gmra.mrb[4].mxu0 %vm293_vm0, %v1007_v16  ;;  %966 = vmatpush3.bf16.msra.mxu1 %v1008_v14 }
  0x1e   : > { %952 = vmatpush3.bf16.msra.mxu0 %v1008_v14  ;;  %953 = vmatprep.mubr.msk.bf16.mxu0 %vm293_vm0, %v1009_v17 }
  0x1f   : > { %957 = vmatprep.mubr.msk.bf16.mxu1 %vm293_vm0, %v1010_v18 }
  0x24   : > { %958 = vmatmul.mubr.msk.bf16.vlgmr.msra.gmra.mrb[8].mxu1 %vm293_vm0, %v1012_v19 }
  0x25   : > { %954 = vmatmul.mubr.msk.bf16.vlgmr.msra.gmra.mrb[0].mxu0 %vm293_vm0, %v1011_v20 }
  0xe7   : > { %v927_v21 = vpop.f32.mrb[0].mxu1 }
  0xe8   : > { %v340_v22 = vpop.f32.mrb[1].mxu1 }
  0xe9   : > { %v928_v23 = vpop.f32.mrb[2].mxu1 }
  0xea   : > { %v343_v24 = vpop.f32.mrb[3].mxu1 }
  0xef   : > { %v931_v25 = vpop.f32.mrb[4].mxu1 }
  0xf0   : > { %v945_v26 = vpop.f32.mrb[4].mxu0  ;;  %v356_v27 = vpop.f32.mrb[5].mxu1 }
  0xf1   : > { %v460_v28 = vadd.f32 %v945_v26, %v931_v25  ;;  %v451_v29 = vpop.f32.mrb[5].mxu0  ;;  %v932_v30 = vpop.f32.mrb[6].mxu1 }
  0xf2   : > { %v452_v31 = vadd.f32 %v451_v29, %v356_v27  ;;  %v946_v32 = vpop.f32.mrb[6].mxu0  ;;  %v359_v33 = vpop.f32.mrb[7].mxu1 }
  0xf3   : > { %v463_v34 = vadd.f32 %v946_v32, %v932_v30  ;;  %v454_v35 = vpop.f32.mrb[7].mxu0 }
  0xf4   : > { %v455_v36 = vadd.f32 %v454_v35, %v359_v33 }
  0xf7   : > { %v959_v37 = vpop.f32.mrb[8].mxu1 }
  0xf8   : > { %v955_v38 = vpop.f32.mrb[0].mxu0  ;;  %v595_v39 = vadd.f32 %v959_v37, %v460_v28  ;;  %v574_v40 = vpop.f32.mrb[9].mxu1 }
  0xf9   : > { %v967_v41 = vadd.f32 %v955_v38, %v927_v21  ;;  %v558_v42 = vpop.f32.mrb[1].mxu0  ;;  %v593_v43 = vadd.f32 %v574_v40, %v452_v31  ;;  %v960_v44 = vpop.f32.mrb[10].mxu1 }
  0xfa   : > { %v896_v45 = vpack.c.bf16 %v595_v39, %v595_v39  ;;  %v968_v46 = vadd.f32 %v558_v42, %v340_v22  ;;  %v956_v47 = vpop.f32.mrb[2].mxu0  ;;  %v577_v48 = vpop.f32.mrb[11].mxu1  ;;  %v596_v54 = vadd.f32 %v960_v44, %v463_v34  ;;  %v667_v19 = vmul.f32 %v595_v39, %v595_v39 }
  0xfb   : > { %v892_v49 = vpack.c.bf16 %v967_v41, %v967_v41  ;;  %v894_v50 = vpack.c.bf16 %v593_v43, %v593_v43  ;;  %v561_v51 = vpop.f32.mrb[3].mxu0  ;;  %v969_v53 = vadd.f32 %v956_v47, %v928_v23  ;;  %v594_v56 = vadd.f32 %v577_v48, %v455_v36 }
  0xfc   : > { %636 = vst.msk [vmem:[%s1121_s19 + $0x18] sm:$0xf] %vm629_vm1, %v896_v45  ;;  %v890_v52 = vpack.c.bf16 %v968_v46, %v968_v46  ;;  %v970_v55 = vadd.f32 %v561_v51, %v343_v24  ;;  %v661_v57 = vmul.f32 %v968_v46, %v968_v46  ;;  %v663_v59 = vmul.f32 %v967_v41, %v967_v41 }
  0xfd   : > { %632 = vst.msk [vmem:[%s1121_s19 + $0x8] sm:$0xf] %vm629_vm1, %v892_v49  ;;  %634 = vst.msk [vmem:[%s1121_s19 + $0x10] sm:$0xf] %vm629_vm1, %v894_v50  ;;  %v893_v58 = vpack.c.bf16 %v969_v53, %v969_v53  ;;  %v897_v60 = vpack.c.bf16 %v596_v54, %v596_v54  ;;  %v639_v62 = vsel %vm638_vm2, %v968_v46, 0.0  ;;  %v895_v1 = vpack.c.bf16 %v594_v56, %v594_v56 }
  0xfe   : > { %630 = vst.msk [vmem:[%s1121_s19] sm:$0xf] %vm629_vm1, %v890_v52  ;;  %v891_v61 = vpack.c.bf16 %v970_v55, %v970_v55  ;;  %v640_v63 = vsel %vm638_vm2, %v970_v55, 0.0  ;;  %v662_v0 = vmul.f32 %v970_v55, %v970_v55  ;;  %v642_v3 = vsel %vm638_vm2, %v967_v41, 0.0 }
  0xff   : > { %633 = vst.msk [vmem:[%s1121_s19 + $0xc] sm:$0xf] %vm629_vm1, %v893_v58  ;;  %637 = vst.msk [vmem:[%s1121_s19 + $0x1c] sm:$0xf] %vm629_vm1, %v897_v60  ;;  %v641_v2 = vadd.f32 %v640_v63, %v639_v62  ;;  %v669_v4 = vsel %vm638_vm2, %v661_v57, 0.0  ;;  %v664_v5 = vmul.f32 %v969_v53, %v969_v53  ;;  %v672_v9 = vsel %vm638_vm2, %v663_v59, 0.0 }
 0x100   : > { %631 = vst.msk [vmem:[%s1121_s19 + $0x4] sm:$0xf] %vm629_vm1, %v891_v61  ;;  %v670_v6 = vsel %vm638_vm2, %v662_v0, 0.0  ;;  %635 = vst.msk [vmem:[%s1121_s19 + $0x14] sm:$0xf] %vm629_vm1, %v895_v1  ;;  %v665_v10 = vmul.f32 %v593_v43, %v593_v43  ;;  %v644_v11 = vsel %vm638_vm2, %v969_v53, 0.0  ;;  %v666_v16 = vmul.f32 %v594_v56, %v594_v56 }
 0x101   : > { %v643_v7 = vadd.f32 %v642_v3, %v641_v2  ;;  %v671_v8 = vadd.f32 %v670_v6, %v669_v4  ;;  %v646_v14 = vsel %vm638_vm2, %v593_v43, 0.0  ;;  %v674_v15 = vsel %vm638_vm2, %v664_v5, 0.0 }
 0x102   : > { %v676_v20 = vsel %vm638_vm2, %v665_v10, 0.0  ;;  %v648_v21 = vsel %vm638_vm2, %v594_v56, 0.0  ;;  %v650_v24 = vsel %vm638_vm2, %v595_v39, 0.0  ;;  %v668_v25 = vmul.f32 %v596_v54, %v596_v54 }
 0x103   : > { %v673_v12 = vadd.f32 %v672_v9, %v671_v8  ;;  %v645_v13 = vadd.f32 %v644_v11, %v643_v7  ;;  %v678_v26 = vsel %vm638_vm2, %v666_v16, 0.0  ;;  %v680_v29 = vsel %vm638_vm2, %v667_v19, 0.0 }
 0x104   : > { %v652_v30 = vsel %vm638_vm2, %v596_v54, 0.0  ;;  %v682_v33 = vsel %vm638_vm2, %v668_v25, 0.0 }
 0x105   : > { %v647_v17 = vadd.f32 %v646_v14, %v645_v13  ;;  %v675_v18 = vadd.f32 %v674_v15, %v673_v12 }
 0x107   : > { %v649_v22 = vadd.f32 %v648_v21, %v647_v17  ;;  %v677_v23 = vadd.f32 %v676_v20, %v675_v18 }
 0x109   : > { %v651_v27 = vadd.f32 %v650_v24, %v649_v22  ;;  %v679_v28 = vadd.f32 %v678_v26, %v677_v23 }
 0x10b   : > { %v653_v31 = vadd.f32 %v652_v30, %v651_v27  ;;  %v681_v32 = vadd.f32 %v680_v29, %v679_v28 }
 0x10d   : > { %v654_v34 = vrot.slane %v653_v31, 4  ;;  %v683_v35 = vadd.f32 %v682_v33, %v681_v32 }
 0x10f   : > { %v655_v36 = vadd.f32 %v654_v34, %v653_v31  ;;  %v684_v37 = vrot.slane %v683_v35, 4 }
 0x111   : > { %v656_v38 = vrot.slane %v655_v36, 2  ;;  %v685_v39 = vadd.f32 %v684_v37, %v683_v35 }
 0x113   : > { %v657_v40 = vadd.f32 %v656_v38, %v655_v36  ;;  %v686_v41 = vrot.slane %v685_v39, 2 }
 0x115   : > { %v658_v42 = vrot.slane %v657_v40, 1  ;;  %v687_v43 = vadd.f32 %v686_v41, %v685_v39 }
 0x117   : > { %v659_v44 = vadd.f32 %v658_v42, %v657_v40  ;;  %v688_v45 = vrot.slane %v687_v43, 1 }
 0x119   : > { %660 = vst.msk [vmem:[%s215_s24] sm:$0xff] %vm638_vm2, %v659_v44  ;;  %v689_v46 = vadd.f32 %v688_v45, %v687_v43 }
 0x11b   : > { %690 = vst.msk [vmem:[%s219_s27] sm:$0xff] %vm638_vm2, %v689_v46 }
 0x11c PF: > { %s15_s15 = sadd.s32 1, %s1019_s15  }
 0x11d   : > { %p12_p5 = scmp.ge.s32.totalorder %s15_s15, 4  }
 0x11f   :  { %14 = sbr.rel (!%p12_p5) target bundleno = 1 (0x1), region = 86 }

// kernel: down_forward.13
= control target key start
LH: loop header
LB: loop body
LE: loop exit
PB: predicated region body
PF: predicated region fallthrough
CT: control target
= control target key end

     0   :  { %9 = vsyncpa [#allocation5], 0  ;;  %s6904_s0 = inlined_call_operand.vmem [shape: bf16[2,8,8,16], index: 0, kind: input, shape index: {}]   ;;  %s6905_s1 = inlined_call_operand.vmem [shape: f32[16,1], index: 1, kind: input, shape index: {}]   ;;  %s6906_s2 = inlined_call_operand.vmem [shape: f32[1,16], index: 2, kind: input, shape index: {}]   ;;  %s6907_s3 = inlined_call_operand.vmem [shape: f32[98], index: 3, kind: input, shape index: {}]   ;;  %s6908_s4 = inlined_call_operand.hbm [shape: f32[2,8,8,16], index: 4, kind: output, shape index: {}]  }
   0x1   :  { %10 = vsyncpa [#allocation4], 0 }
   0x2   :  { %12 = vsyncpa [#allocation4 + $0x1], 0  ;;  %s3714_s15 = smov 0   ;;  %s3716_s16 = smov 0  }
   0x3   :  { %s3718_s17 = smov 0   ;;  %s3720_s18 = smov 0  }
   0x4 LB: > { %s3735_s19 = sadd.s32 4294967295, %s3678_s18   ;;  %s3349_s20 = sadd.s32 4294967294, %s3678_s18   ;;  %s3678_s18 = sphi %s3720_s18, %s8033_s18   ;;  %s3674_s17 = sphi %s3718_s17, %s8032_s17   ;;  %s3670_s16 = sphi %s3716_s16, %s8031_s16   ;;  %s3666_s15 = sphi %s3714_s15, %s8030_s15  }
   0x5   : > { %s3739_s21 = sadd.s32 1, %s3678_s18   ;;  %s114_s22 = sadd.s32 1, %s3674_s17 }
   0x6   : > { %s111_s23 = ssub.s32 %s3678_s18, %s3739_s21  ;;  %p124_p0 = scmp.ne.s32.totalorder %s3674_s17, %s3670_s16 }
   0x7   : > { %p112_p1 = scmp.eq.s32.totalorder %s111_s23, 0  ;;  %p125_p2 = scmp.eq.s32.totalorder %s3735_s19, 1 }
   0x8   : > { %p130_p3 = scmp.ne.s32.totalorder %s3670_s16, %s3666_s15  ;;  %p131_p4 = scmp.eq.s32.totalorder %s3349_s20, 1 }
   0x9   : > { %s3750_s24 = scalar_select %p112_p1, %s3674_s17, %s114_s22  }
   0xa   : > { %p3752_p5 = por %p125_p2, %p124_p0  ;;  %p3756_p6 = por %p131_p4, %p130_p3 }
   0xb   : > { %p3350_p7 = scmp.ge.s32.totalorder %s3678_s18, 1  ;;  %p138_p8 = scmp.lt.s32.totalorder %s3678_s18, 3 }
   0xc   : > { %p3509_p10 = scmp.eq.s32.totalorder %s3735_s19, 0  ;;  %s157_s30 = sshll.u32 %s6907_s3, 4  ;;  %s158_s30 = int_to_ptr.vmem [resolvable:$true] %s157_s30 }
   0xd   : > { %p3764_p11 = pnand %p3350_p7, %p138_p8  ;;  %s3597_s5 = scalar_lea.vmem %s158_s30, 16 }
   0xe   : > { %p3598_p0 = scmp.ne.s32.totalorder %s158_s30, %s3597_s5  ;;  %p3605_p4 = scmp.lt.s32.totalorder %s158_s30, %s158_s30 }
   0xf   : > { %p3501_p12 = pneg %p3764_p11  ;;  %p3606_p7 = scmp.lt.s32.totalorder %s3597_s5, %s3597_s5 }
  0x11   : > { %p3502_p13 = pnand %p3509_p10, %p3501_p12  ;;  %p3607_p8 = por %p3606_p7, %p3605_p4 }
  0x13   : > { %p3599_p1 = pneg %p3502_p13 }
  0x15   : > { %p3600_p2 = pnand %p3599_p1, %p3598_p0 }
  0x17   : > { %p3601_p3 = pneg %p3600_p2 }
  0x19   : > { %p3608_p9 = pnand %p3607_p8, %p3601_p3 }
  0x1b   : > { %3611 = shalt.err (!%p3608_p9)
}
  0x1c   : > { %s3680_s6 = smov [#allocation3]   ;;  %178 = sbr.rel (%p3764_p11) target bundleno = 1442 (0x5a2), region = 36 }
  0x1d   : > { %3504 = dma.vmem_to_smem (!%p3502_p13), %s158_s30, 16, %s3680_s6, [#allocation5]  }
  0x23   : > { %3657 = dma.done.wait (%p3509_p10), [#allocation5], 16  }
  0x24   : > { %3659 = vsyncadd (%p3509_p10), [#allocation5], 4294967280 }
  0x25   : > { %184 = sfence }
  0x26   : > { %s202_s7 = sand.u32 1, %s3670_s16   ;;  %v250_v0 = vld [vmem:[%s6905_s1] sm:$0xff]  ;;  %v251_v1 = vld [vmem:[%s6905_s1 + $0x8] sm:$0xff]  ;;  %v3681_v2 = vmov 0.0|0.0   ;;  %vm3682_vm0 = vmmov 0   ;;  %v3683_v4 = vmov 0.0   ;;  %v415_v52 = vlaneseq }
  0x27   : > { %s3790_s12 = sshll.u32 %s202_s7, 6  ;;  %3492 = vmatprep.subr.bf16.mxu0 %v3681_v2  ;;  %v3493_v3 = vpack.c.bf16 %v251_v1, %v250_v0  ;;  %3484 = vmatprep.mubr.msk.f32.mxu0 %vm3682_vm0, %v3683_v4  ;;  %p205_p9 = scmp.lt.s32.totalorder %s3735_s19, 1  ;;  %vm226_vm1 = vcmask 130048   ;;  %v326_v43 = vld [vmem:[%s6906_s2] sm:$0x1]  ;;  %vm331_vm2 = vcmask 1040384  }
  0x28   : > { %3487 = vmatprep.subr.mxu1 %v3683_v4  ;;  %3489 = vmatprep.mubr.msk.f32.mxu1 %vm3682_vm0, %v3683_v4  ;;  %vm327_vm3 = vcmask 7168   ;;  %v416_v53 = vshrl.u32 %v415_v52, 7  ;;  %s3923_s29 = scalar_lea.vmem [#allocation6], %s3790_s12  ;;  %p7202_p10 = scmp.ne.s32.totalorder %s3735_s19, 0 }
  0x29   : > { %3494 = vmatpush3.bf16.msra.mxu0 %v3493_v3  ;;  %s206_s13 = scalar_select %p205_p9, %s3735_s19, 1  ;;  %3488 = vmatpush3.msk.msra.mxu1 %vm331_vm2, %v326_v43 }
  0x2a   : > { %v417_v56 = vsub.s32 0, %v416_v53 }
  0x2b   : > { %s3473_s14 = sshll.u32 %s206_s13, 5 }
  0x2c   : > { %s209_s23 = scalar_lea.vmem %s6904_s0, %s3473_s14 }
  0x2d   : > { %v3797_v5 = vld [vmem:[%s209_s23] sm:$0xf]  ;;  %v3799_v6 = vld [vmem:[%s209_s23 + $0x4] sm:$0xf]  ;;  %v3801_v7 = vld [vmem:[%s209_s23 + $0x8] sm:$0xf] }
  0x2e   : > { %v3803_v8 = vld [vmem:[%s209_s23 + $0xc] sm:$0xf]  ;;  %v3805_v9 = vld [vmem:[%s209_s23 + $0x10] sm:$0xf]  ;;  %v218_v10 = vunpack.c.l.bf16 %v3797_v5  ;;  %v219_v11 = vunpack.c.l.bf16 %v3799_v6  ;;  %v220_v12 = vunpack.c.l.bf16 %v3801_v7  ;;  %v3810_v13 = vld [vmem:[%s209_s23 + $0x14] sm:$0xf] }
  0x2f   : > { %v221_v14 = vunpack.c.l.bf16 %v3803_v8  ;;  %v222_v15 = vunpack.c.l.bf16 %v3805_v9  ;;  %v3816_v18 = vld [vmem:[%s209_s23 + $0x18] sm:$0xf]  ;;  %v223_v21 = vunpack.c.l.bf16 %v3810_v13  ;;  %v3821_v23 = vld [vmem:[%s209_s23 + $0x1c] sm:$0xf] }
  0x30   : > { %v227_v16 = vsel %vm226_vm1, %v218_v10, 0.0  ;;  %v228_v17 = vsel %vm226_vm1, %v219_v11, 0.0  ;;  %v230_v20 = vsel %vm226_vm1, %v220_v12, 0.0  ;;  %v224_v25 = vunpack.c.l.bf16 %v3816_v18 }
  0x31   : > { %v229_v19 = vadd.f32 %v228_v17, %v227_v16  ;;  %v232_v22 = vsel %vm226_vm1, %v221_v14, 0.0  ;;  %v234_v26 = vsel %vm226_vm1, %v222_v15, 0.0  ;;  %v225_v28 = vunpack.c.l.bf16 %v3821_v23 }
  0x32   : > { %v236_v29 = vsel %vm226_vm1, %v223_v21, 0.0  ;;  %v238_v31 = vsel %vm226_vm1, %v224_v25, 0.0 }
  0x33   : > { %v231_v24 = vadd.f32 %v230_v20, %v229_v19  ;;  %v240_v33 = vsel %vm226_vm1, %v225_v28, 0.0 }
  0x35   : > { %v233_v27 = vadd.f32 %v232_v22, %v231_v24 }
  0x37   : > { %v235_v30 = vadd.f32 %v234_v26, %v233_v27 }
  0x39   : > { %v237_v32 = vadd.f32 %v236_v29, %v235_v30 }
  0x3b   : > { %v239_v34 = vadd.f32 %v238_v31, %v237_v32 }
  0x3d   : > { %v241_v35 = vadd.f32 %v240_v33, %v239_v34 }
  0x3f   : > { %v242_v36 = vrot.slane %v241_v35, 4 }
  0x41   : > { %v243_v37 = vadd.f32 %v242_v36, %v241_v35 }
  0x43   : > { %v244_v38 = vrot.slane %v243_v37, 2 }
  0x45   : > { %v245_v39 = vadd.f32 %v244_v38, %v243_v37 }
  0x47   : > { %v246_v40 = vrot.slane %v245_v39, 1 }
  0x49   : > { %v247_v41 = vadd.f32 %v246_v40, %v245_v39 }
  0x4b   : > { %v249_v42 = vmul.f32 0.015625, %v247_v41 }
  0x4d   : > { %3485 = vmatmul.mubr.msk.f32.vlgmr.msra.gmra.mrb[0].mxu0 %vm226_vm1, %v249_v42 }
 0x120   : > { %v321_v44 = vpop.f32.mrb[0].mxu0 }
 0x121   : > { %v325_v45 = vmax.f32 %v321_v44, 0.0  ;;  %v3486_v46 = vpop.f32.mrb[1].mxu0 }
 0x123   : > { %3490 = vmatmul.mubr.msk.f32.vlgmr.msra.gmra.mrb[0].mxu1 %vm327_vm3, %v325_v45 }
 0x1f6   : > { %v401_v47 = vpop.f32.mrb[0].mxu1 }
 0x1f7   : > { %v3361_v48 = vmul.f32 -1.442695, %v401_v47  ;;  %v3491_v49 = vpop.f32.mrb[1].mxu1 }
 0x1f9   : > { %3552 = vpow2.f32 %v3361_v48 }
 0x203   : > { %v3553_v50 = vpop.eup %3552 }
 0x204   : > { %v408_v51 = vadd.f32 1.0, %v3553_v50 }
 0x206   : > { %3554 = vrcp.f32 %v408_v51  ;;  %v3684_v51 = vmov (!%p7202_p10), 0.0  }
 0x207   : > { %496 = vst.msk [vmem:[#allocation2] sm:$0xff] (!%p7202_p10), %vm327_vm3, %v3684_v51  ;;  %497 = vst.msk [vmem:[#allocation2 + $0x8] sm:$0xff] (!%p7202_p10), %vm327_vm3, %v3684_v51 }
 0x208   : > { %498 = vst.msk [vmem:[#allocation2 + $0x10] sm:$0xff] (!%p7202_p10), %vm327_vm3, %v3684_v51  ;;  %499 = vst.msk [vmem:[#allocation2 + $0x18] sm:$0xff] (!%p7202_p10), %vm327_vm3, %v3684_v51 }
 0x209   : > { %500 = vst.msk [vmem:[#allocation2 + $0x20] sm:$0xff] (!%p7202_p10), %vm327_vm3, %v3684_v51  ;;  %501 = vst.msk [vmem:[#allocation2 + $0x28] sm:$0xff] (!%p7202_p10), %vm327_vm3, %v3684_v51 }
 0x20a   : > { %502 = vst.msk [vmem:[#allocation2 + $0x30] sm:$0xff] (!%p7202_p10), %vm327_vm3, %v3684_v51  ;;  %503 = vst.msk [vmem:[#allocation2 + $0x38] sm:$0xff] (!%p7202_p10), %vm327_vm3, %v3684_v51 }
 0x20b   : > { %504 = vst.msk [vmem:[#allocation2 + $0x40] sm:$0xff] (!%p7202_p10), %vm327_vm3, %v3684_v51  ;;  %505 = vst.msk [vmem:[#allocation2 + $0x48] sm:$0xff] (!%p7202_p10), %vm327_vm3, %v3684_v51 }
 0x20c   : > { %506 = vst.msk [vmem:[#allocation2 + $0x50] sm:$0xff] (!%p7202_p10), %vm327_vm3, %v3684_v51  ;;  %507 = vst.msk [vmem:[#allocation2 + $0x58] sm:$0xff] (!%p7202_p10), %vm327_vm3, %v3684_v51 }
 0x20d   : > { %508 = vst.msk [vmem:[#allocation2 + $0x60] sm:$0xff] (!%p7202_p10), %vm327_vm3, %v3684_v51  ;;  %509 = vst.msk [vmem:[#allocation2 + $0x68] sm:$0xff] (!%p7202_p10), %vm327_vm3, %v3684_v51 }
 0x20e   : > { %510 = vst.msk [vmem:[#allocation2 + $0x70] sm:$0xff] (!%p7202_p10), %vm327_vm3, %v3684_v51  ;;  %511 = vst.msk [vmem:[#allocation2 + $0x78] sm:$0xff] (!%p7202_p10), %vm327_vm3, %v3684_v51 }
 0x20f   : > { %512 = vst.msk [vmem:[#allocation2 + $0x80] sm:$0xff] (!%p7202_p10), %vm327_vm3, %v3684_v51  ;;  %513 = vst.msk [vmem:[#allocation2 + $0x88] sm:$0xff] (!%p7202_p10), %vm327_vm3, %v3684_v51 }
 0x210   : > { %v3555_v54 = vpop.eup %3554  ;;  %514 = vst.msk [vmem:[#allocation2 + $0x90] sm:$0xff] (!%p7202_p10), %vm327_vm3, %v3684_v51  ;;  %515 = vst.msk [vmem:[#allocation2 + $0x98] sm:$0xff] (!%p7202_p10), %vm327_vm3, %v3684_v51 }
 0x211   : > { %v411_v55 = vpack.c.bf16 %v3555_v54, %v3555_v54  ;;  %516 = vst.msk [vmem:[#allocation2 + $0xa0] sm:$0xff] (!%p7202_p10), %vm327_vm3, %v3684_v51  ;;  %517 = vst.msk [vmem:[#allocation2 + $0xa8] sm:$0xff] (!%p7202_p10), %vm327_vm3, %v3684_v51 }
 0x212   : > { %518 = vst.msk [vmem:[#allocation2 + $0xb0] sm:$0xff] (!%p7202_p10), %vm327_vm3, %v3684_v51  ;;  %519 = vst.msk [vmem:[#allocation2 + $0xb8] sm:$0xff] (!%p7202_p10), %vm327_vm3, %v3684_v51 }
 0x213   : > { %v413_v57 = vpack.i.b16 %v411_v55, %v411_v55  ;;  %520 = vst.msk [vmem:[#allocation2 + $0xc0] sm:$0xff] (!%p7202_p10), %vm327_vm3, %v3684_v51  ;;  %521 = vst.msk [vmem:[#allocation2 + $0xc8] sm:$0xff] (!%p7202_p10), %vm327_vm3, %v3684_v51 }
 0x214   : > { %522 = vst.msk [vmem:[#allocation2 + $0xd0] sm:$0xff] (!%p7202_p10), %vm327_vm3, %v3684_v51  ;;  %523 = vst.msk [vmem:[#allocation2 + $0xd8] sm:$0xff] (!%p7202_p10), %vm327_vm3, %v3684_v51 }
 0x215   : > { %v418_v58 = vrot.slane %v413_v57, %v417_v56  ;;  %524 = vst.msk [vmem:[#allocation2 + $0xe0] sm:$0xff] (!%p7202_p10), %vm327_vm3, %v3684_v51  ;;  %525 = vst.msk [vmem:[#allocation2 + $0xe8] sm:$0xff] (!%p7202_p10), %vm327_vm3, %v3684_v51 }
 0x216   : > { %526 = vst.msk [vmem:[#allocation2 + $0xf0] sm:$0xff] (!%p7202_p10), %vm327_vm3, %v3684_v51  ;;  %527 = vst.msk [vmem:[#allocation2 + $0xf8] sm:$0xff] (!%p7202_p10), %vm327_vm3, %v3684_v51 }
 0x217   : > { %v421_v59 = vmul.bf16 %v418_v58, %v3801_v7  ;;  %v419_v60 = vmul.bf16 %v418_v58, %v3797_v5  ;;  %v422_v61 = vmul.bf16 %v418_v58, %v3803_v8  ;;  %v420_v62 = vmul.bf16 %v418_v58, %v3799_v6  ;;  %528 = vst.msk [vmem:[#allocation2 + $0x100] sm:$0xff] (!%p7202_p10), %vm327_vm3, %v3684_v51 }
 0x218   : > { %v424_v1 = vmul.bf16 %v418_v58, %v3810_v13  ;;  %v423_v2 = vmul.bf16 %v418_v58, %v3805_v9  ;;  %v426_v6 = vmul.bf16 %v418_v58, %v3821_v23  ;;  %v425_v8 = vmul.bf16 %v418_v58, %v3816_v18  ;;  %529 = vst.msk [vmem:[#allocation2 + $0x108] sm:$0xff] (!%p7202_p10), %vm327_vm3, %v3684_v51 }
 0x219   : > { %v3838_v63 = vunpack.c.l.bf16 %v421_v59  ;;  %v3840_v0 = vunpack.c.l.bf16 %v419_v60  ;;  %v3848_v7 = vunpack.c.l.bf16 %v422_v61  ;;  %v3850_v5 = vunpack.c.l.bf16 %v420_v62  ;;  %530 = vst.msk [vmem:[#allocation2 + $0x110] sm:$0xff] (!%p7202_p10), %vm327_vm3, %v3684_v51  ;;  %531 = vst.msk [vmem:[#allocation2 + $0x118] sm:$0xff] (!%p7202_p10), %vm327_vm3, %v3684_v51 }
 0x21a   : > { %v3858_v11 = vunpack.c.l.bf16 %v424_v1  ;;  %v3860_v12 = vunpack.c.l.bf16 %v423_v2  ;;  %v3866_v15 = vunpack.c.l.bf16 %v426_v6  ;;  %v3868_v16 = vunpack.c.l.bf16 %v425_v8  ;;  %532 = vst.msk [vmem:[#allocation2 + $0x120] sm:$0xff] (!%p7202_p10), %vm327_vm3, %v3684_v51  ;;  %533 = vst.msk [vmem:[#allocation2 + $0x128] sm:$0xff] (!%p7202_p10), %vm327_vm3, %v3684_v51 }
 0x21b   : > { %7194 = vst [vmem:[#allocation9_spill] sm:$0xff] %v3838_v63  ;;  %7195 = vst [vmem:[#allocation10_spill] sm:$0xff] %v3840_v0  ;;  %v441_v3 = vsel %vm226_vm1, %v3838_v63, 0.0  ;;  %v435_v4 = vsel %vm226_vm1, %v3840_v0, 0.0  ;;  %v444_v10 = vsel %vm226_vm1, %v3848_v7, 0.0  ;;  %v438_v9 = vsel %vm226_vm1, %v3850_v5, 0.0 }
 0x21c   : > { %7196 = vst [vmem:[#allocation11_spill] sm:$0xff] %v3848_v7  ;;  %7197 = vst [vmem:[#allocation12_spill] sm:$0xff] %v3850_v5  ;;  %442 = vadd.xlane.f32.xlu1 %v441_v3  ;;  %436 = vadd.xlane.f32.xlu0 %v435_v4  ;;  %v450_v13 = vsel %vm226_vm1, %v3858_v11, 0.0  ;;  %v447_v14 = vsel %vm226_vm1, %v3860_v12, 0.0  ;;  %v456_v17 = vsel %vm226_vm1, %v3866_v15, 0.0  ;;  %v453_v18 = vsel %vm226_vm1, %v3868_v16, 0.0 }
 0x21d   : > { %7198 = vst [vmem:[#allocation13_spill] sm:$0xff] %v3858_v11  ;;  %7199 = vst [vmem:[#allocation14_spill] sm:$0xff] %v3860_v12  ;;  %v471_v19 = vsel %vm226_vm1, %v3850_v5, -inf  ;;  %v468_v20 = vsel %vm226_vm1, %v3840_v0, -inf  ;;  %v477_v21 = vsel %vm226_vm1, %v3848_v7, -inf  ;;  %v474_v22 = vsel %vm226_vm1, %v3838_v63, -inf }
 0x21e   : > { %7200 = vst [vmem:[#allocation15_spill] sm:$0xff] %v3866_v15  ;;  %7201 = vst [vmem:[#allocation16_spill] sm:$0xff] %v3868_v16  ;;  %v483_v23 = vsel %vm226_vm1, %v3858_v11, -inf  ;;  %v480_v24 = vsel %vm226_vm1, %v3860_v12, -inf  ;;  %v489_v25 = vsel %vm226_vm1, %v3866_v15, -inf  ;;  %v486_v26 = vsel %vm226_vm1, %v3868_v16, -inf }
 0x21f   : > { %534 = vst.msk [vmem:[#allocation2 + $0x130] sm:$0xff] (!%p7202_p10), %vm327_vm3, %v3684_v51  ;;  %535 = vst.msk [vmem:[#allocation2 + $0x138] sm:$0xff] (!%p7202_p10), %vm327_vm3, %v3684_v51 }
 0x220   : > { %445 = vadd.xlane.f32.xlu1 %v444_v10  ;;  %439 = vadd.xlane.f32.xlu0 %v438_v9  ;;  %536 = vst.msk [vmem:[#allocation2 + $0x140] sm:$0xff] (!%p7202_p10), %vm327_vm3, %v3684_v51  ;;  %537 = vst.msk [vmem:[#allocation2 + $0x148] sm:$0xff] (!%p7202_p10), %vm327_vm3, %v3684_v51 }
 0x221   : > { %538 = vst.msk [vmem:[#allocation2 + $0x150] sm:$0xff] (!%p7202_p10), %vm327_vm3, %v3684_v51  ;;  %539 = vst.msk [vmem:[#allocation2 + $0x158] sm:$0xff] (!%p7202_p10), %vm327_vm3, %v3684_v51 }
 0x222   : > { %540 = vst.msk [vmem:[#allocation2 + $0x160] sm:$0xff] (!%p7202_p10), %vm327_vm3, %v3684_v51  ;;  %541 = vst.msk [vmem:[#allocation2 + $0x168] sm:$0xff] (!%p7202_p10), %vm327_vm3, %v3684_v51 }
 0x223   : > { %542 = vst.msk [vmem:[#allocation2 + $0x170] sm:$0xff] (!%p7202_p10), %vm327_vm3, %v3684_v51  ;;  %543 = vst.msk [vmem:[#allocation2 + $0x178] sm:$0xff] (!%p7202_p10), %vm327_vm3, %v3684_v51 }
 0x224   : > { %451 = vadd.xlane.f32.xlu1 %v450_v13  ;;  %448 = vadd.xlane.f32.xlu0 %v447_v14  ;;  %544 = vst.msk [vmem:[#allocation2 + $0x180] sm:$0xff] (!%p7202_p10), %vm327_vm3, %v3684_v51  ;;  %545 = vst.msk [vmem:[#allocation2 + $0x188] sm:$0xff] (!%p7202_p10), %vm327_vm3, %v3684_v51 }
 0x225   : > { %546 = vst.msk [vmem:[#allocation2 + $0x190] sm:$0xff] (!%p7202_p10), %vm327_vm3, %v3684_v51  ;;  %547 = vst.msk [vmem:[#allocation2 + $0x198] sm:$0xff] (!%p7202_p10), %vm327_vm3, %v3684_v51 }
 0x226   : > { %548 = vst.msk [vmem:[#allocation2 + $0x1a0] sm:$0xff] (!%p7202_p10), %vm327_vm3, %v3684_v51  ;;  %549 = vst.msk [vmem:[#allocation2 + $0x1a8] sm:$0xff] (!%p7202_p10), %vm327_vm3, %v3684_v51 }
 0x227   : > { %550 = vst.msk [vmem:[#allocation2 + $0x1b0] sm:$0xff] (!%p7202_p10), %vm327_vm3, %v3684_v51  ;;  %551 = vst.msk [vmem:[#allocation2 + $0x1b8] sm:$0xff] (!%p7202_p10), %vm327_vm3, %v3684_v51 }
 0x228   : > { %457 = vadd.xlane.f32.xlu1 %v456_v17  ;;  %454 = vadd.xlane.f32.xlu0 %v453_v18  ;;  %552 = vst.msk [vmem:[#allocation2 + $0x1c0] sm:$0xff] (!%p7202_p10), %vm327_vm3, %v3684_v51  ;;  %553 = vst.msk [vmem:[#allocation2 + $0x1c8] sm:$0xff] (!%p7202_p10), %vm327_vm3, %v3684_v51 }
 0x229   : > { %554 = vst.msk [vmem:[#allocation2 + $0x1d0] sm:$0xff] (!%p7202_p10), %vm327_vm3, %v3684_v51  ;;  %555 = vst.msk [vmem:[#allocation2 + $0x1d8] sm:$0xff] (!%p7202_p10), %vm327_vm3, %v3684_v51 }
 0x22a   : > { %556 = vst.msk [vmem:[#allocation2 + $0x1e0] sm:$0xff] (!%p7202_p10), %vm327_vm3, %v3684_v51  ;;  %557 = vst.msk [vmem:[#allocation2 + $0x1e8] sm:$0xff] (!%p7202_p10), %vm327_vm3, %v3684_v51 }
 0x22b   : > { %558 = vst.msk [vmem:[#allocation2 + $0x1f0] sm:$0xff] (!%p7202_p10), %vm327_vm3, %v3684_v51  ;;  %559 = vst.msk [vmem:[#allocation2 + $0x1f8] sm:$0xff] (!%p7202_p10), %vm327_vm3, %v3684_v51 }
 0x22c   : > { %472 = vmax.xlane.f32.xlu1 %v471_v19  ;;  %469 = vmax.xlane.f32.xlu0 %v468_v20  ;;  %560 = vst.msk [vmem:[#allocation2 + $0x200] sm:$0xff] (!%p7202_p10), %vm327_vm3, %v3684_v51  ;;  %561 = vst.msk [vmem:[#allocation2 + $0x208] sm:$0xff] (!%p7202_p10), %vm327_vm3, %v3684_v51 }
 0x22d   : > { %562 = vst.msk [vmem:[#allocation2 + $0x210] sm:$0xff] (!%p7202_p10), %vm327_vm3, %v3684_v51  ;;  %563 = vst.msk [vmem:[#allocation2 + $0x218] sm:$0xff] (!%p7202_p10), %vm327_vm3, %v3684_v51 }
 0x22e   : > { %564 = vst.msk [vmem:[#allocation2 + $0x220] sm:$0xff] (!%p7202_p10), %vm327_vm3, %v3684_v51  ;;  %565 = vst.msk [vmem:[#allocation2 + $0x228] sm:$0xff] (!%p7202_p10), %vm327_vm3, %v3684_v51 }
 0x22f   : > { %566 = vst.msk [vmem:[#allocation2 + $0x230] sm:$0xff] (!%p7202_p10), %vm327_vm3, %v3684_v51  ;;  %567 = vst.msk [vmem:[#allocation2 + $0x238] sm:$0xff] (!%p7202_p10), %vm327_vm3, %v3684_v51 }
 0x230   : > { %478 = vmax.xlane.f32.xlu1 %v477_v21  ;;  %475 = vmax.xlane.f32.xlu0 %v474_v22  ;;  %568 = vst.msk [vmem:[#allocation2 + $0x240] sm:$0xff] (!%p7202_p10), %vm327_vm3, %v3684_v51  ;;  %569 = vst.msk [vmem:[#allocation2 + $0x248] sm:$0xff] (!%p7202_p10), %vm327_vm3, %v3684_v51 }
 0x231   : > { %570 = vst.msk [vmem:[#allocation2 + $0x250] sm:$0xff] (!%p7202_p10), %vm327_vm3, %v3684_v51  ;;  %571 = vst.msk [vmem:[#allocation2 + $0x258] sm:$0xff] (!%p7202_p10), %vm327_vm3, %v3684_v51 }
 0x232   : > { %572 = vst.msk [vmem:[#allocation2 + $0x260] sm:$0xff] (!%p7202_p10), %vm327_vm3, %v3684_v51  ;;  %573 = vst.msk [vmem:[#allocation2 + $0x268] sm:$0xff] (!%p7202_p10), %vm327_vm3, %v3684_v51 }
 0x233   : > { %574 = vst.msk [vmem:[#allocation2 + $0x270] sm:$0xff] (!%p7202_p10), %vm327_vm3, %v3684_v51  ;;  %575 = vst.msk [vmem:[#allocation2 + $0x278] sm:$0xff] (!%p7202_p10), %vm327_vm3, %v3684_v51 }
 0x234   : > { %484 = vmax.xlane.f32.xlu1 %v483_v23  ;;  %481 = vmax.xlane.f32.xlu0 %v480_v24  ;;  %576 = vst.msk [vmem:[#allocation2 + $0x280] sm:$0xff] (!%p7202_p10), %vm327_vm3, %v3684_v51  ;;  %577 = vst.msk [vmem:[#allocation2 + $0x288] sm:$0xff] (!%p7202_p10), %vm327_vm3, %v3684_v51 }
 0x235   : > { %578 = vst.msk [vmem:[#allocation2 + $0x290] sm:$0xff] (!%p7202_p10), %vm327_vm3, %v3684_v51  ;;  %579 = vst.msk [vmem:[#allocation2 + $0x298] sm:$0xff] (!%p7202_p10), %vm327_vm3, %v3684_v51 }
 0x238   : > { %490 = vmax.xlane.f32.xlu1 %v489_v25  ;;  %487 = vmax.xlane.f32.xlu0 %v486_v26 }
 0x2a9   : > { %v443_v27 = vpop.xlane.xlu1 %442  ;;  %v437_v28 = vpop.xlane.xlu0 %436 }
 0x2aa   : > { %v3890_v29 = vmul.f32 0.0625, %v443_v27  ;;  %v3892_v30 = vmul.f32 0.0625, %v437_v28 }
 0x2ad   : > { %v446_v31 = vpop.xlane.xlu1 %445  ;;  %v440_v32 = vpop.xlane.xlu0 %439 }
 0x2ae   : > { %v3894_v33 = vmul.f32 0.0625, %v446_v31  ;;  %v3896_v34 = vmul.f32 0.0625, %v440_v32 }
 0x2b1   : > { %v452_v35 = vpop.xlane.xlu1 %451  ;;  %v449_v36 = vpop.xlane.xlu0 %448 }
 0x2b2   : > { %v3898_v37 = vmul.f32 0.0625, %v452_v35  ;;  %v3900_v38 = vmul.f32 0.0625, %v449_v36 }
 0x2b5   : > { %v458_v39 = vpop.xlane.xlu1 %457  ;;  %v455_v40 = vpop.xlane.xlu0 %454 }
 0x2b6   : > { %v3902_v41 = vmul.f32 0.0625, %v458_v39  ;;  %v3904_v42 = vmul.f32 0.0625, %v455_v40 }
 0x2b9   : > { %v3906_v43 = vpop.xlane.xlu1 %472  ;;  %v3908_v44 = vpop.xlane.xlu0 %469 }
 0x2bd   : > { %v3910_v45 = vpop.xlane.xlu1 %478  ;;  %v3912_v46 = vpop.xlane.xlu0 %475 }
 0x2bf   : > { %495 = sbr.rel (%p7202_p10) target bundleno = 710 (0x2c6), region = 44 }
 0x2c1   : > { %v3914_v47 = vpop.xlane.xlu1 %484  ;;  %v3916_v48 = vpop.xlane.xlu0 %481 }
 0x2c5   : > { %v3918_v49 = vpop.xlane.xlu1 %490  ;;  %v3920_v50 = vpop.xlane.xlu0 %487 }
 0x2c6 PF: > { %581 = vst.msk [vmem:[#allocation2 + $0x50] sm:$0xff] %vm327_vm3, %v3892_v30  ;;  %582 = vst.msk [vmem:[#allocation2 + $0x68] sm:$0xff] %vm327_vm3, %v3896_v34  ;;  %s598_s30 = sld [smem:[#allocation3]]  ;;  %s3363_s5 = sld [smem:[#allocation3 + $0x31]]  ;;  %v3685_v52 = vmov 0   ;;  %v600_v53 = vld [vmem:[#allocation2 + $0x5] sm:$0xff] }
 0x2c7   : > { %583 = vst.msk [vmem:[#allocation2 + $0x80] sm:$0xff] %vm327_vm3, %v3890_v29  ;;  %584 = vst.msk [vmem:[#allocation2 + $0x98] sm:$0xff] %vm327_vm3, %v3894_v33  ;;  %3557 = vset.pattern.permute.xlu1 %v3685_v52  ;;  %3556 = vset.pattern.permute.xlu0 %v3685_v52  ;;  %s3364_s6 = sld [smem:[#allocation3 + $0x1]]  ;;  %s3365_s8 = sld [smem:[#allocation3 + $0x32]]  ;;  %v626_v54 = vld [vmem:[#allocation2 + $0x155] sm:$0xff]  ;;  %v653_v55 = vld [vmem:[#allocation2 + $0x6] sm:$0xff] }
 0x2c8   : > { %590 = vst.msk [vmem:[#allocation2 + $0x1a0] sm:$0xff] %vm327_vm3, %v3908_v44  ;;  %591 = vst.msk [vmem:[#allocation2 + $0x1b8] sm:$0xff] %vm327_vm3, %v3906_v43  ;;  %s3366_s9 = sld [smem:[#allocation3 + $0x2]]  ;;  %s3367_s10 = sld [smem:[#allocation3 + $0x33]]  ;;  %v678_v58 = vld [vmem:[#allocation2 + $0x156] sm:$0xff]  ;;  %v705_v2 = vld [vmem:[#allocation2 + $0x7] sm:$0xff] }
 0x2c9   : > { %592 = vst.msk [vmem:[#allocation2 + $0x1d0] sm:$0xff] %vm327_vm3, %v3912_v46  ;;  %593 = vst.msk [vmem:[#allocation2 + $0x1e8] sm:$0xff] %vm327_vm3, %v3910_v45  ;;  %s3368_s11 = sld [smem:[#allocation3 + $0x3]]  ;;  %s3369_s12 = sld [smem:[#allocation3 + $0x34]]  ;;  %v730_v8 = vld [vmem:[#allocation2 + $0x157] sm:$0xff]  ;;  %v757_v14 = vld [vmem:[#allocation2 + $0x8] sm:$0xff] }
 0x2ca   : > { %585 = vst.msk [vmem:[#allocation2 + $0xb0] sm:$0xff] %vm327_vm3, %v3900_v38  ;;  %586 = vst.msk [vmem:[#allocation2 + $0xc8] sm:$0xff] %vm327_vm3, %v3898_v37  ;;  %s3370_s13 = sld [smem:[#allocation3 + $0x4]]  ;;  %s3371_s14 = sld [smem:[#allocation3 + $0x35]]  ;;  %v782_v20 = vld [vmem:[#allocation2 + $0x158] sm:$0xff]  ;;  %v809_v24 = vld [vmem:[#allocation2 + $0x9] sm:$0xff] }
 0x2cb   : > { %594 = vst.msk [vmem:[#allocation2 + $0x200] sm:$0xff] %vm327_vm3, %v3916_v48  ;;  %595 = vst.msk [vmem:[#allocation2 + $0x218] sm:$0xff] %vm327_vm3, %v3914_v47  ;;  %s3372_s20 = sld [smem:[#allocation3 + $0x5]]  ;;  %s3373_s22 = sld [smem:[#allocation3 + $0x36]]  ;;  %v834_v28 = vld [vmem:[#allocation2 + $0x159] sm:$0xff]  ;;  %v861_v32 = vld [vmem:[#allocation2 + $0xa] sm:$0xff] }
 0x2cc   : > { %587 = vst.msk [vmem:[#allocation2 + $0xe0] sm:$0xff] %vm327_vm3, %v3904_v42  ;;  %596 = vst.msk [vmem:[#allocation2 + $0x230] sm:$0xff] %vm327_vm3, %v3920_v50  ;;  %v4127_v56 = vstv %s598_s30  ;;  %v4129_v57 = vstv %s3363_s5  ;;  %s3374_s23 = sld [smem:[#allocation3 + $0x6]]  ;;  %s3375_s27 = sld [smem:[#allocation3 + $0x37]]  ;;  %v886_v36 = vld [vmem:[#allocation2 + $0x15a] sm:$0xff]  ;;  %v913_v40 = vld [vmem:[#allocation2 + $0xb] sm:$0xff] }
 0x2cd   : > { %588 = vst.msk [vmem:[#allocation2 + $0xf8] sm:$0xff] %vm327_vm3, %v3902_v41  ;;  %597 = vst.msk [vmem:[#allocation2 + $0x248] sm:$0xff] %vm327_vm3, %v3918_v49  ;;  %v609_v59 = vmul.f32 %v4127_v56, %v600_v53  ;;  %v635_v60 = vmul.f32 %v4129_v57, %v626_v54  ;;  %v4133_v61 = vstv %s3364_s6  ;;  %v4135_v62 = vstv %s3365_s8  ;;  %s3376_s28 = sld [smem:[#allocation3 + $0x7]]  ;;  %s3377_s30 = sld [smem:[#allocation3 + $0x38]]  ;;  %v938_v44 = vld [vmem:[#allocation2 + $0x15b] sm:$0xff]  ;;  %v992_v52 = vld [vmem:[#allocation2 + $0x16d] sm:$0xff] }
 0x2ce   : > { %7203 = vst [vmem:[#allocation17_spill] sm:$0xff] %v4127_v56  ;;  %7204 = vst [vmem:[#allocation18_spill] sm:$0xff] %v4129_v57  ;;  %v662_v1 = vmul.f32 %v4133_v61, %v653_v55  ;;  %v4138_v3 = vstv %s3366_s9  ;;  %v687_v6 = vmul.f32 %v4135_v62, %v678_v58  ;;  %v4141_v10 = vstv %s3367_s10  ;;  %s3378_s5 = sld [smem:[#allocation3 + $0x8]]  ;;  %s3379_s6 = sld [smem:[#allocation3 + $0x39]]  ;;  %v966_v48 = vld [vmem:[#allocation2 + $0x1d] sm:$0xff]  ;;  %v1514_v16 = vld [vmem:[#allocation2 + $0x188] sm:$0xff] }
 0x2cf   : > { %7205 = vst [vmem:[#allocation19_spill] sm:$0xff] %v4133_v61  ;;  %7206 = vst [vmem:[#allocation20_spill] sm:$0xff] %v4135_v62  ;;  %v643_v4 = vadd.f32 %v635_v60, %v609_v59  ;;  %v714_v13 = vmul.f32 %v4138_v3, %v705_v2  ;;  %v4144_v17 = vstv %s3368_s11  ;;  %v739_v19 = vmul.f32 %v4141_v10, %v730_v8  ;;  %s3380_s8 = sld [smem:[#allocation3 + $0x9]]  ;;  %s3381_s9 = sld [smem:[#allocation3 + $0x3a]]  ;;  %v1019_v58 = vld [vmem:[#allocation2 + $0x1e] sm:$0xff]  ;;  %v1044_v2 = vld [vmem:[#allocation2 + $0x16e] sm:$0xff] }
 0x2d0   : > { %7207 = vst [vmem:[#allocation21_spill] sm:$0xff] %v4138_v3  ;;  %7208 = vst [vmem:[#allocation22_spill] sm:$0xff] %v4141_v10  ;;  %v4147_v21 = vstv %s3369_s12  ;;  %v766_v23 = vmul.f32 %v4144_v17, %v757_v14  ;;  %v4150_v25 = vstv %s3370_s13  ;;  %v4153_v29 = vstv %s3371_s14  ;;  %s3382_s10 = sld [smem:[#allocation3 + $0xa]]  ;;  %s3383_s11 = sld [smem:[#allocation3 + $0x3b]]  ;;  %v1541_v11 = vld [vmem:[#allocation2 + $0x39] sm:$0xff]  ;;  %v1566_v12 = vld [vmem:[#allocation2 + $0x189] sm:$0xff] }
 0x2d1   : > { %v670_v9 = vadd.f32 %v662_v1, %v643_v4  ;;  %7209 = vst [vmem:[#allocation23_spill] sm:$0xff] %v4144_v17  ;;  %7210 = vst [vmem:[#allocation24_spill] sm:$0xff] %v4147_v21  ;;  %v791_v27 = vmul.f32 %v4147_v21, %v782_v20  ;;  %v818_v31 = vmul.f32 %v4150_v25, %v809_v24  ;;  %v4156_v33 = vstv %s3372_s20  ;;  %s3384_s12 = sld [smem:[#allocation3 + $0xb]]  ;;  %s3385_s13 = sld [smem:[#allocation3 + $0x3c]]  ;;  %v1123_v24 = vld [vmem:[#allocation2 + $0x20] sm:$0xff] }
 0x2d2   : > { %7211 = vst [vmem:[#allocation25_spill] sm:$0xff] %v4150_v25  ;;  %7212 = vst [vmem:[#allocation26_spill] sm:$0xff] %v4153_v29  ;;  %v843_v35 = vmul.f32 %v4153_v29, %v834_v28  ;;  %v4159_v37 = vstv %s3373_s22  ;;  %v870_v39 = vmul.f32 %v4156_v33, %v861_v32  ;;  %v4162_v41 = vstv %s3374_s23  ;;  %s3386_s14 = sld [smem:[#allocation3 + $0xc]]  ;;  %s3387_s20 = sld [smem:[#allocation3 + $0x3d]]  ;;  %v1593_v0 = vld [vmem:[#allocation2 + $0x3a] sm:$0xff] }
 0x2d3   : > { %v695_v18 = vadd.f32 %v687_v6, %v670_v9  ;;  %7213 = vst [vmem:[#allocation27_spill] sm:$0xff] %v4156_v33  ;;  %7214 = vst [vmem:[#allocation28_spill] sm:$0xff] %v4159_v37  ;;  %v895_v43 = vmul.f32 %v4159_v37, %v886_v36  ;;  %v4165_v45 = vstv %s3375_s27  ;;  %v922_v47 = vmul.f32 %v4162_v41, %v913_v40  ;;  %v1071_v9 = vld [vmem:[#allocation2 + $0x1f] sm:$0xff]  ;;  %s3388_s22 = sld [smem:[#allocation3 + $0xd]]  ;;  %s3389_s23 = sld [smem:[#allocation3 + $0x3e]]  ;;  %v1200_v40 = vld [vmem:[#allocation2 + $0x171] sm:$0xff] }
 0x2d4   : > { %7215 = vst [vmem:[#allocation29_spill] sm:$0xff] %v4162_v41  ;;  %7216 = vst [vmem:[#allocation30_spill] sm:$0xff] %v4165_v45  ;;  %v4168_v49 = vstv %s3376_s28  ;;  %v947_v51 = vmul.f32 %v4165_v45, %v938_v44  ;;  %v4171_v53 = vstv %s3377_s30  ;;  %v4174_v59 = vstv %s3378_s5  ;;  %s4195_s27 = sld [smem:[#allocation3 + $0xe]]  ;;  %s4199_s28 = sld [smem:[#allocation3 + $0x3f]] }
 0x2d5   : > { %v722_v22 = vadd.f32 %v714_v13, %v695_v18  ;;  %7217 = vst [vmem:[#allocation31_spill] sm:$0xff] %v4168_v49  ;;  %7218 = vst [vmem:[#allocation32_spill] sm:$0xff] %v4171_v53  ;;  %v975_v55 = vmul.f32 %v4168_v49, %v966_v48  ;;  %v1001_v1 = vmul.f32 %v4171_v53, %v992_v52  ;;  %v4177_v4 = vstv %s3379_s6  ;;  %s4201_s30 = sld [smem:[#allocation3 + $0xf]]  ;;  %s4206_s5 = sld [smem:[#allocation3 + $0x40]] }
 0x2d6   : > { %7219 = vst [vmem:[#allocation33_spill] sm:$0xff] %v4174_v59  ;;  %7220 = vst [vmem:[#allocation34_spill] sm:$0xff] %v4177_v4  ;;  %v1028_v8 = vmul.f32 %v4174_v59, %v1019_v58  ;;  %v4180_v13 = vstv %s3380_s8  ;;  %v1053_v18 = vmul.f32 %v4177_v4, %v1044_v2  ;;  %v4183_v20 = vstv %s3381_s9  ;;  %s4208_s6 = sld [smem:[#allocation3 + $0x10]]  ;;  %s4213_s8 = sld [smem:[#allocation3 + $0x41]]  ;;  %v1332_v58 = vld [vmem:[#allocation2 + $0x35] sm:$0xff] }
 0x2d7   : > { %v747_v26 = vadd.f32 %v739_v19, %v722_v22  ;;  %7221 = vst [vmem:[#allocation35_spill] sm:$0xff] %v4180_v13  ;;  %v1096_v19 = vld [vmem:[#allocation2 + $0x16f] sm:$0xff]  ;;  %7222 = vst [vmem:[#allocation36_spill] sm:$0xff] %v4183_v20  ;;  %v4192_v36 = vstv %s3384_s12  ;;  %s4215_s9 = sld [smem:[#allocation3 + $0x11]]  ;;  %s4226_s12 = sld [smem:[#allocation3 + $0x43]] }
 0x2d8   : > { %v1105_v28 = vmul.f32 %v4183_v20, %v1096_v19  ;;  %7225 = vst [vmem:[#allocation39_spill] sm:$0xff] %v4192_v36  ;;  %v4211_v52 = vstv %s3387_s20  ;;  %v1304_v2 = vld [vmem:[#allocation2 + $0x173] sm:$0xff]  ;;  %s4242_s20 = sld [smem:[#allocation3 + $0x14]] }
 0x2d9   : > { %v774_v30 = vadd.f32 %v766_v23, %v747_v26  ;;  %v1080_v23 = vmul.f32 %v4180_v13, %v1071_v9  ;;  %v4186_v26 = vstv %s3382_s10  ;;  %7228 = vst [vmem:[#allocation42_spill] sm:$0xff] %v4211_v52  ;;  %s4218_s10 = sld [smem:[#allocation3 + $0x42]] }
 0x2da   : > { %7223 = vst [vmem:[#allocation37_spill] sm:$0xff] %v4186_v26  ;;  %v4232_v19 = vstv %s4195_s27  ;;  %s4268_s27 = sld [smem:[#allocation3 + $0x46]] }
 0x2db   : > { %v799_v34 = vadd.f32 %v791_v27, %v774_v30  ;;  %v1148_v30 = vld [vmem:[#allocation2 + $0x170] sm:$0xff]  ;;  %7231 = vst [vmem:[#allocation45_spill] sm:$0xff] %v4232_v19 }
 0x2dd   : > { %v826_v38 = vadd.f32 %v818_v31, %v799_v34  ;;  %v4189_v31 = vstv %s3383_s11  ;;  %v1132_v34 = vmul.f32 %v4186_v26, %v1123_v24  ;;  %s4224_s11 = sld [smem:[#allocation3 + $0x12]]  ;;  %v611_v24 = vmul.f32 %v1332_v58, %v4127_v56 }
 0x2de   : > { %7224 = vst [vmem:[#allocation38_spill] sm:$0xff] %v4189_v31 }
 0x2df   : > { %v851_v42 = vadd.f32 %v843_v35, %v826_v38  ;;  %v1175_v35 = vld [vmem:[#allocation2 + $0x21] sm:$0xff] }
 0x2e0   : > { %v1184_v44 = vmul.f32 %v4192_v36, %v1175_v35  ;;  %v4251_v35 = vstv %s4208_s6  ;;  %s4292_s6 = sld [smem:[#allocation3 + $0x48]] }
 0x2e1   : > { %v878_v46 = vadd.f32 %v870_v39, %v851_v42  ;;  %v1157_v39 = vmul.f32 %v4189_v31, %v1148_v30  ;;  %v4197_v42 = vstv %s3385_s13  ;;  %s4229_s13 = sld [smem:[#allocation3 + $0x13]]  ;;  %7235 = vst [vmem:[#allocation49_spill] sm:$0xff] %v4251_v35 }
 0x2e2   : > { %7226 = vst [vmem:[#allocation40_spill] sm:$0xff] %v4197_v42 }
 0x2e3   : > { %v903_v50 = vadd.f32 %v895_v43, %v878_v46  ;;  %v1227_v46 = vld [vmem:[#allocation2 + $0x22] sm:$0xff] }
 0x2e5   : > { %v930_v54 = vadd.f32 %v922_v47, %v903_v50  ;;  %v4204_v47 = vstv %s3386_s14  ;;  %v1209_v50 = vmul.f32 %v4197_v42, %v1200_v40  ;;  %s4240_s14 = sld [smem:[#allocation3 + $0x44]] }
 0x2e6   : > { %7227 = vst [vmem:[#allocation41_spill] sm:$0xff] %v4204_v47 }
 0x2e7   : > { %v955_v60 = vadd.f32 %v947_v51, %v930_v54  ;;  %v1252_v51 = vld [vmem:[#allocation2 + $0x172] sm:$0xff]  ;;  %v4302_v15 = vstv %s4229_s13  ;;  %s4352_s13 = sld [smem:[#allocation3 + $0x4b]] }
 0x2e8   : > { %v1261_v9 = vmul.f32 %v4211_v52, %v1252_v51  ;;  %v4266_v51 = vstv %s4215_s9  ;;  %7241 = vst [vmem:[#allocation55_spill] sm:$0xff] %v4302_v15  ;;  %s4312_s9 = sld [smem:[#allocation3 + $0x49]]  ;;  %v4439_v52 = vld [vmem:[#allocation2 + $0x50] sm:$0xff] }
 0x2e9   : > { %v983_v6 = vadd.f32 %v975_v55, %v955_v60  ;;  %v1236_v55 = vmul.f32 %v4204_v47, %v1227_v46  ;;  %v1279_v60 = vld [vmem:[#allocation2 + $0x23] sm:$0xff]  ;;  %7237 = vst [vmem:[#allocation51_spill] sm:$0xff] %v4266_v51 }
 0x2eb   : > { %v1009_v14 = vadd.f32 %v1001_v1, %v983_v6  ;;  %v4220_v1 = vstv %s3388_s22  ;;  %v4222_v6 = vstv %s3389_s23  ;;  %s4253_s22 = sld [smem:[#allocation3 + $0x45]]  ;;  %v4307_v7 = vstv %s4240_s14  ;;  %s4364_s14 = sld [smem:[#allocation3 + $0x1b]] }
 0x2ec   : > { %7229 = vst [vmem:[#allocation43_spill] sm:$0xff] %v4220_v1  ;;  %7230 = vst [vmem:[#allocation44_spill] sm:$0xff] %v4222_v6  ;;  %v1313_v30 = vmul.f32 %v4222_v6, %v1304_v2  ;;  %s4255_s23 = sld [smem:[#allocation3 + $0x15]] }
 0x2ed   : > { %v1036_v22 = vadd.f32 %v1028_v8, %v1009_v14  ;;  %v1358_v14 = vld [vmem:[#allocation2 + $0x185] sm:$0xff]  ;;  %7242 = vst [vmem:[#allocation56_spill] sm:$0xff] %v4307_v7 }
 0x2ef   : > { %v1061_v27 = vadd.f32 %v1053_v18, %v1036_v22  ;;  %v1385_v18 = vld [vmem:[#allocation2 + $0x36] sm:$0xff]  ;;  %v4235_v22 = vstv %s4199_s28  ;;  %s4270_s28 = sld [smem:[#allocation3 + $0x16]] }
 0x2f0   : > { %7232 = vst [vmem:[#allocation46_spill] sm:$0xff] %v4235_v22 }
 0x2f1   : > { %v1088_v32 = vadd.f32 %v1080_v23, %v1061_v27  ;;  %v4238_v23 = vstv %s4201_s30  ;;  %s4282_s30 = sld [smem:[#allocation3 + $0x47]] }
 0x2f2   : > { %7233 = vst [vmem:[#allocation47_spill] sm:$0xff] %v4238_v23  ;;  %v1394_v46 = vmul.f32 %v4238_v23, %v1385_v18  ;;  %v4380_v23 = vld [vmem:[#allocation2 + $0x19d] sm:$0xff] }
 0x2f3   : > { %v1113_v38 = vadd.f32 %v1105_v28, %v1088_v32  ;;  %v1288_v28 = vmul.f32 %v4220_v1, %v1279_v60  ;;  %v1410_v32 = vld [vmem:[#allocation2 + $0x186] sm:$0xff] }
 0x2f5   : > { %v1140_v43 = vadd.f32 %v1132_v34, %v1113_v38  ;;  %v4248_v34 = vstv %s4206_s5  ;;  %v637_v38 = vmul.f32 %v1358_v14, %v4129_v57  ;;  %s4290_s5 = sld [smem:[#allocation3 + $0x17]] }
 0x2f6   : > { %7234 = vst [vmem:[#allocation48_spill] sm:$0xff] %v4248_v34 }
 0x2f7   : > { %v1165_v48 = vadd.f32 %v1157_v39, %v1140_v43  ;;  %v664_v39 = vmul.f32 %v1385_v18, %v4133_v61  ;;  %v1341_v43 = vmul.f32 %v4232_v19, %v1332_v58  ;;  %v4274_v58 = vmul.f32 %v4248_v34, %v1410_v32  ;;  %v4404_v19 = vld [vmem:[#allocation2 + $0x19e] sm:$0xff] }
 0x2f8   : > { %v4285_v18 = vstv %s4224_s11  ;;  %s4336_s11 = sld [smem:[#allocation3 + $0x4a]]  ;;  %v4378_v34 = vstv %s4282_s30  ;;  %s4437_s30 = sld [smem:[#allocation3 + $0x1e]] }
 0x2f9   : > { %v1192_v54 = vadd.f32 %v1184_v44, %v1165_v48  ;;  %v1367_v44 = vmul.f32 %v4235_v22, %v1358_v14  ;;  %v1437_v48 = vld [vmem:[#allocation2 + $0x37] sm:$0xff]  ;;  %7239 = vst [vmem:[#allocation53_spill] sm:$0xff] %v4285_v18  ;;  %v4319_v5 = vmul.f32 %v4285_v18, %v1541_v11  ;;  %v4342_v18 = vmul.f32 %v4302_v15, %v1593_v0  ;;  %v4382_v22 = vld [vmem:[#allocation2 + $0x4e] sm:$0xff] }
 0x2fa   : > { %v4277_v2 = vmul.f32 %v4251_v35, %v1437_v48  ;;  %v1489_v14 = vld [vmem:[#allocation2 + $0x38] sm:$0xff]  ;;  %7248 = vst [vmem:[#allocation62_spill] sm:$0xff] %v4378_v34 }
 0x2fb   : > { %v1217_v8 = vadd.f32 %v1209_v50, %v1192_v54  ;;  %v4263_v50 = vstv %s4213_s8  ;;  %v645_v54 = vadd.f32 %v637_v38, %v611_v24  ;;  %v4288_v24 = vstv %s4226_s12  ;;  %s4304_s8 = sld [smem:[#allocation3 + $0x18]]  ;;  %s4338_s12 = sld [smem:[#allocation3 + $0x1a]] }
 0x2fc   : > { %7236 = vst [vmem:[#allocation50_spill] sm:$0xff] %v4263_v50  ;;  %7240 = vst [vmem:[#allocation54_spill] sm:$0xff] %v4288_v24  ;;  %v4322_v63 = vmul.f32 %v4288_v24, %v1566_v12 }
 0x2fd   : > { %v1244_v27 = vadd.f32 %v1236_v55, %v1217_v8  ;;  %v689_v55 = vmul.f32 %v1410_v32, %v4135_v62  ;;  %v1462_v8 = vld [vmem:[#allocation2 + $0x187] sm:$0xff] }
 0x2fe   : > { %v4296_v38 = vmul.f32 %v4263_v50, %v1462_v8 }
 0x2ff   : > { %v1269_v40 = vadd.f32 %v1261_v9, %v1244_v27  ;;  %v4280_v9 = vstv %s4218_s10  ;;  %v672_v27 = vadd.f32 %v664_v39, %v645_v54  ;;  %v4310_v39 = vstv %s4242_s20  ;;  %s4324_s10 = sld [smem:[#allocation3 + $0x19]]  ;;  %s4366_s20 = sld [smem:[#allocation3 + $0x4c]] }
 0x300   : > { %7238 = vst [vmem:[#allocation52_spill] sm:$0xff] %v4280_v9  ;;  %7243 = vst [vmem:[#allocation57_spill] sm:$0xff] %v4310_v39 }
 0x301   : > { %v1296_v60 = vadd.f32 %v1288_v28, %v1269_v40  ;;  %v716_v28 = vmul.f32 %v1437_v48, %v4138_v3  ;;  %v4299_v40 = vmul.f32 %v4266_v51, %v1489_v14  ;;  %v741_v48 = vmul.f32 %v1462_v8, %v4141_v10  ;;  %v4326_v51 = vld [vmem:[#allocation2 + $0x18a] sm:$0xff] }
 0x302   : > { %v4331_v8 = vstv %s4253_s22  ;;  %s4390_s22 = sld [smem:[#allocation3 + $0x1c]]  ;;  %v4407_v6 = vstv %s4304_s8  ;;  %s4466_s8 = sld [smem:[#allocation3 + $0x50]] }
 0x303   : > { %v1321_v32 = vadd.f32 %v1313_v30, %v1296_v60  ;;  %v697_v30 = vadd.f32 %v689_v55, %v672_v27  ;;  %v4316_v60 = vmul.f32 %v4280_v9, %v1514_v16  ;;  %v4328_v55 = vld [vmem:[#allocation2 + $0x3b] sm:$0xff]  ;;  %7244 = vst [vmem:[#allocation58_spill] sm:$0xff] %v4331_v8  ;;  %v4346_v9 = vmul.f32 %v4307_v7, %v4326_v51 }
 0x304   : > { %v4350_v50 = vmul.f32 %v4310_v39, %v4328_v55  ;;  %v793_v39 = vmul.f32 %v1514_v16, %v4147_v21  ;;  %v4388_v16 = vstv %s4292_s6  ;;  %7251 = vst [vmem:[#allocation65_spill] sm:$0xff] %v4407_v6  ;;  %s4451_s6 = sld [smem:[#allocation3 + $0x1f]]  ;;  %v4464_v21 = vstv %s4352_s13  ;;  %s4530_s13 = sld [smem:[#allocation3 + $0x22]] }
 0x305   : > { %v1349_v54 = vadd.f32 %v1341_v43, %v1321_v32  ;;  %v4334_v43 = vstv %s4255_s23  ;;  %v724_v27 = vadd.f32 %v716_v28, %v697_v30  ;;  %v768_v32 = vmul.f32 %v1489_v14, %v4144_v17  ;;  %v4354_v28 = vld [vmem:[#allocation2 + $0x18b] sm:$0xff]  ;;  %7250 = vst [vmem:[#allocation64_spill] sm:$0xff] %v4388_v16  ;;  %s4392_s23 = sld [smem:[#allocation3 + $0x4d]]  ;;  %7259 = vst [vmem:[#allocation73_spill] sm:$0xff] %v4464_v21 }
 0x306   : > { %7245 = vst [vmem:[#allocation59_spill] sm:$0xff] %v4334_v43  ;;  %v4356_v14 = vld [vmem:[#allocation2 + $0x4d] sm:$0xff]  ;;  %v4362_v30 = vstv %s4270_s28  ;;  %v4371_v15 = vmul.f32 %v4331_v8, %v4354_v28  ;;  %s4422_s28 = sld [smem:[#allocation3 + $0x4e]] }
 0x307   : > { %v1375_v24 = vadd.f32 %v1367_v44, %v1349_v54  ;;  %v4359_v44 = vstv %s4268_s27  ;;  %7247 = vst [vmem:[#allocation61_spill] sm:$0xff] %v4362_v30  ;;  %v749_v54 = vadd.f32 %v741_v48, %v724_v27  ;;  %v4375_v35 = vmul.f32 %v4334_v43, %v4356_v14  ;;  %s4420_s27 = sld [smem:[#allocation3 + $0x1d]] }
 0x308   : > { %7246 = vst [vmem:[#allocation60_spill] sm:$0xff] %v4359_v44  ;;  %v4385_v48 = vstv %s4290_s5  ;;  %v4398_v43 = vmul.f32 %v4359_v44, %v4380_v23  ;;  %v4402_v8 = vmul.f32 %v4362_v30, %v4382_v22  ;;  %v845_v30 = vmul.f32 %v1566_v12, %v4153_v29  ;;  %s4449_s5 = sld [smem:[#allocation3 + $0x4f]] }
 0x309   : > { %v1402_v7 = vadd.f32 %v1394_v46, %v1375_v24  ;;  %7249 = vst [vmem:[#allocation63_spill] sm:$0xff] %v4385_v48  ;;  %v776_v46 = vadd.f32 %v768_v32, %v749_v54  ;;  %v820_v24 = vmul.f32 %v1541_v11, %v4150_v25  ;;  %v4411_v32 = vmul.f32 %v4378_v34, %v4404_v19  ;;  %v4415_v11 = vld [vmem:[#allocation2 + $0x19f] sm:$0xff] }
 0x30a   : > { %v4432_v1 = vmul.f32 %v4388_v16, %v4415_v11  ;;  %v4435_v25 = vstv %s4324_s10  ;;  %v4444_v12 = vstv %s4336_s11  ;;  %s4497_s10 = sld [smem:[#allocation3 + $0x51]] }
 0x30b   : > { %v1427_v27 = vadd.f32 %v4274_v58, %v1402_v7  ;;  %v4413_v7 = vld [vmem:[#allocation2 + $0x4f] sm:$0xff]  ;;  %v4418_v58 = vstv %s4312_s9  ;;  %v801_v54 = vadd.f32 %v793_v39, %v776_v46  ;;  %7254 = vst [vmem:[#allocation68_spill] sm:$0xff] %v4435_v25  ;;  %v4441_v39 = vld [vmem:[#allocation2 + $0x1a0] sm:$0xff]  ;;  %7255 = vst [vmem:[#allocation69_spill] sm:$0xff] %v4444_v12  ;;  %s4480_s9 = sld [smem:[#allocation3 + $0x20]]  ;;  %s4511_s11 = sld [smem:[#allocation3 + $0x21]] }
 0x30c   : > { %7252 = vst [vmem:[#allocation66_spill] sm:$0xff] %v4418_v58  ;;  %v4428_v34 = vmul.f32 %v4385_v48, %v4413_v7  ;;  %7253 = vst [vmem:[#allocation67_spill] sm:$0xff] %v4432_v1  ;;  %v4457_v48 = vmul.f32 %v4407_v6, %v4439_v52  ;;  %v4461_v29 = vmul.f32 %v4418_v58, %v4441_v39  ;;  %v4468_v1 = vld [vmem:[#allocation2 + $0x51] sm:$0xff] }
 0x30d   : > { %v1454_v44 = vadd.f32 %v4277_v2, %v1427_v27  ;;  %v4447_v2 = vstv %s4338_s12  ;;  %v828_v46 = vadd.f32 %v820_v24, %v801_v54  ;;  %v872_v27 = vmul.f32 %v1593_v0, %v4156_v33  ;;  %v4470_v24 = vld [vmem:[#allocation2 + $0x1a1] sm:$0xff]  ;;  %v4472_v0 = vld [vmem:[#allocation2 + $0x52] sm:$0xff]  ;;  %s4528_s12 = sld [smem:[#allocation3 + $0x52]] }
 0x30e   : > { %7256 = vst [vmem:[#allocation70_spill] sm:$0xff] %v4447_v2  ;;  %7257 = vst [vmem:[#allocation71_spill] sm:$0xff] %v4457_v48  ;;  %v897_v58 = vmul.f32 %v4326_v51, %v4159_v37  ;;  %v4487_v33 = vmul.f32 %v4435_v25, %v4468_v1  ;;  %v4495_v48 = vmul.f32 %v4447_v2, %v4472_v0  ;;  %v4501_v51 = vld [vmem:[#allocation2 + $0x53] sm:$0xff] }
 0x30f   : > { %v1479_v16 = vadd.f32 %v4296_v38, %v1454_v44  ;;  %7258 = vst [vmem:[#allocation72_spill] sm:$0xff] %v4461_v29  ;;  %v4475_v38 = vstv %s4364_s14  ;;  %v4478_v44 = vstv %s4366_s20  ;;  %v853_v54 = vadd.f32 %v845_v30, %v828_v46  ;;  %v4499_v30 = vld [vmem:[#allocation2 + $0x1a2] sm:$0xff]  ;;  %s4542_s14 = sld [smem:[#allocation3 + $0x53]] }
 0x310   : > { %7260 = vst [vmem:[#allocation74_spill] sm:$0xff] %v4475_v38  ;;  %7261 = vst [vmem:[#allocation75_spill] sm:$0xff] %v4478_v44  ;;  %v4491_v29 = vmul.f32 %v4444_v12, %v4470_v24  ;;  %v4509_v46 = vstv %s4392_s23  ;;  %v924_v2 = vmul.f32 %v4328_v55, %v4162_v41  ;;  %v4522_v37 = vmul.f32 %v4475_v38, %v4501_v51  ;;  %v4532_v55 = vld [vmem:[#allocation2 + $0x65] sm:$0xff]  ;;  %s4544_s20 = sld [smem:[#allocation3 + $0x23]]  ;;  %s4588_s23 = sld [smem:[#allocation3 + $0x24]] }
 0x311   : > { %v1506_v6 = vadd.f32 %v4299_v40, %v1479_v16  ;;  %7263 = vst [vmem:[#allocation77_spill] sm:$0xff] %v4495_v48  ;;  %v4503_v40 = vld [vmem:[#allocation2 + $0x1a3] sm:$0xff]  ;;  %v4506_v16 = vstv %s4390_s22  ;;  %7265 = vst [vmem:[#allocation79_spill] sm:$0xff] %v4509_v46  ;;  %v880_v12 = vadd.f32 %v872_v27, %v853_v54  ;;  %v4518_v48 = vmul.f32 %v4464_v21, %v4499_v30  ;;  %s4560_s22 = sld [smem:[#allocation3 + $0x54]] }
 0x312   : > { %7262 = vst [vmem:[#allocation76_spill] sm:$0xff] %v4491_v29  ;;  %7264 = vst [vmem:[#allocation78_spill] sm:$0xff] %v4506_v16  ;;  %v4526_v29 = vmul.f32 %v4478_v44, %v4503_v40  ;;  %v4540_v27 = vstv %s4422_s28  ;;  %v949_v44 = vmul.f32 %v4354_v28, %v4165_v45  ;;  %v4551_v21 = vmul.f32 %v4506_v16, %v4532_v55  ;;  %v4583_v45 = vld [vmem:[#allocation2 + $0x67] sm:$0xff]  ;;  %s4628_s28 = sld [smem:[#allocation3 + $0x25]] }
 0x313   : > { %v1531_v25 = vadd.f32 %v4316_v60, %v1506_v6  ;;  %7266 = vst [vmem:[#allocation80_spill] sm:$0xff] %v4518_v48  ;;  %7267 = vst [vmem:[#allocation81_spill] sm:$0xff] %v4522_v37  ;;  %v4534_v6 = vld [vmem:[#allocation2 + $0x1b5] sm:$0xff]  ;;  %v4537_v60 = vstv %s4420_s27  ;;  %v905_v54 = vadd.f32 %v897_v58, %v880_v12  ;;  %v4558_v37 = vstv %s4437_s30  ;;  %v4562_v58 = vld [vmem:[#allocation2 + $0x66] sm:$0xff]  ;;  %s4617_s27 = sld [smem:[#allocation3 + $0x55]]  ;;  %s4643_s30 = sld [smem:[#allocation3 + $0x56]] }
 0x314   : > { %7268 = vst [vmem:[#allocation82_spill] sm:$0xff] %v4526_v29  ;;  %7269 = vst [vmem:[#allocation83_spill] sm:$0xff] %v4537_v60  ;;  %v4555_v29 = vmul.f32 %v4509_v46, %v4534_v6  ;;  %v4564_v12 = vld [vmem:[#allocation2 + $0x1b6] sm:$0xff]  ;;  %v4567_v28 = vstv %s4449_s5  ;;  %v977_v16 = vmul.f32 %v4356_v14, %v4168_v49  ;;  %v4586_v48 = vstv %s4466_s8  ;;  %s4657_s5 = sld [smem:[#allocation3 + $0x26]]  ;;  %s4705_s8 = sld [smem:[#allocation3 + $0x27]] }
 0x315   : > { %7270 = vst [vmem:[#allocation84_spill] sm:$0xff] %v4540_v27  ;;  %v1558_v38 = vadd.f32 %v4319_v5, %v1531_v25  ;;  %7271 = vst [vmem:[#allocation85_spill] sm:$0xff] %v4551_v21  ;;  %v4570_v5 = vstv %s4451_s6  ;;  %v932_v25 = vadd.f32 %v924_v2, %v905_v54  ;;  %v4581_v21 = vmul.f32 %v4540_v27, %v4564_v12  ;;  %v4596_v2 = vld [vmem:[#allocation2 + $0x68] sm:$0xff]  ;;  %s4687_s6 = sld [smem:[#allocation3 + $0x57]] }
 0x316   : > { %7272 = vst [vmem:[#allocation86_spill] sm:$0xff] %v4555_v29  ;;  %7273 = vst [vmem:[#allocation87_spill] sm:$0xff] %v4558_v37  ;;  %v4577_v29 = vmul.f32 %v4537_v60, %v4562_v58  ;;  %v4592_v14 = vmul.f32 %v4558_v37, %v4583_v45  ;;  %v1003_v27 = vmul.f32 %v4380_v23, %v4171_v53 }
 0x317   : > { %7274 = vst [vmem:[#allocation88_spill] sm:$0xff] %v4567_v28  ;;  %7275 = vst [vmem:[#allocation89_spill] sm:$0xff] %v4570_v5  ;;  %v1583_v46 = vadd.f32 %v4322_v63, %v1558_v38  ;;  %v4594_v63 = vld [vmem:[#allocation2 + $0x1b7] sm:$0xff]  ;;  %v4599_v38 = vstv %s4480_s9  ;;  %v957_v54 = vadd.f32 %v949_v44, %v932_v25  ;;  %v4610_v37 = vmul.f32 %v4570_v5, %v4596_v2  ;;  %s4711_s9 = sld [smem:[#allocation3 + $0x58]] }
 0x318   : > { %7276 = vst [vmem:[#allocation90_spill] sm:$0xff] %v4577_v29  ;;  %7277 = vst [vmem:[#allocation91_spill] sm:$0xff] %v4581_v21  ;;  %v4606_v21 = vmul.f32 %v4567_v28, %v4594_v63  ;;  %v4615_v29 = vstv %s4497_s10  ;;  %v4626_v44 = vstv %s4511_s11  ;;  %v1030_v25 = vmul.f32 %v4382_v22, %v4174_v59  ;;  %s4731_s10 = sld [smem:[#allocation3 + $0x28]]  ;;  %s4741_s11 = sld [smem:[#allocation3 + $0x59]] }
 0x319   : > { %7278 = vst [vmem:[#allocation92_spill] sm:$0xff] %v4586_v48  ;;  %7279 = vst [vmem:[#allocation93_spill] sm:$0xff] %v4592_v14  ;;  %v1610_v60 = vadd.f32 %v4342_v18, %v1583_v46  ;;  %v4612_v14 = vld [vmem:[#allocation2 + $0x1b8] sm:$0xff]  ;;  %v4623_v18 = vld [vmem:[#allocation2 + $0x69] sm:$0xff]  ;;  %v985_v46 = vadd.f32 %v977_v16, %v957_v54  ;;  %v4652_v22 = vstv %s4542_s14  ;;  %v1055_v54 = vmul.f32 %v4404_v19, %v4177_v4  ;;  %s4782_s14 = sld [smem:[#allocation3 + $0x2a]] }
 0x31a   : > { %7280 = vst [vmem:[#allocation94_spill] sm:$0xff] %v4596_v2  ;;  %7281 = vst [vmem:[#allocation95_spill] sm:$0xff] %v4599_v38  ;;  %v4621_v23 = vmul.f32 %v4586_v48, %v4612_v14  ;;  %v4635_v28 = vmul.f32 %v4599_v38, %v4623_v18  ;;  %v4641_v48 = vstv %s4530_s13  ;;  %v4649_v16 = vld [vmem:[#allocation2 + $0x1ba] sm:$0xff]  ;;  %v4675_v59 = vstv %s4560_s22  ;;  %s4764_s13 = sld [smem:[#allocation3 + $0x5a]]  ;;  %s4813_s22 = sld [smem:[#allocation3 + $0x2b]] }
 0x31b   : > { %7282 = vst [vmem:[#allocation96_spill] sm:$0xff] %v4606_v21  ;;  %7283 = vst [vmem:[#allocation97_spill] sm:$0xff] %v4610_v37  ;;  %v1635_v5 = vadd.f32 %v4346_v9, %v1610_v60  ;;  %v4638_v37 = vstv %s4528_s12  ;;  %v4647_v21 = vld [vmem:[#allocation2 + $0x6a] sm:$0xff]  ;;  %v4655_v9 = vstv %s4544_s20  ;;  %v1011_v60 = vadd.f32 %v1003_v27, %v985_v46  ;;  %v4672_v2 = vld [vmem:[#allocation2 + $0x1bb] sm:$0xff]  ;;  %s4753_s12 = sld [smem:[#allocation3 + $0x29]]  ;;  %s4803_s20 = sld [smem:[#allocation3 + $0x5b]] }
 0x31c   : > { %7284 = vst [vmem:[#allocation98_spill] sm:$0xff] %v4612_v14  ;;  %7285 = vst [vmem:[#allocation99_spill] sm:$0xff] %v4615_v29  ;;  %v4670_v14 = vld [vmem:[#allocation2 + $0x6b] sm:$0xff]  ;;  %v601_v27 = vld [vmem:[#allocation2 + $0x1d] sm:$0xff]  ;;  %v4679_v19 = vmul.f32 %v4638_v37, %v4649_v16 }
 0x31d   : > { %7286 = vst [vmem:[#allocation100_spill] sm:$0xff] %v4621_v23  ;;  %7287 = vst [vmem:[#allocation101_spill] sm:$0xff] %v4623_v18  ;;  %v4645_v23 = vld [vmem:[#allocation2 + $0x1b9] sm:$0xff]  ;;  %v1662_v38 = vadd.f32 %v4350_v50, %v1635_v5  ;;  %v4668_v18 = vmul.f32 %v4626_v44, %v4647_v21  ;;  %v4683_v50 = vmul.f32 %v4641_v48, %v4670_v14 }
 0x31e   : > { %7288 = vst [vmem:[#allocation102_spill] sm:$0xff] %v4626_v44  ;;  %7289 = vst [vmem:[#allocation103_spill] sm:$0xff] %v4635_v28  ;;  %v4664_v28 = vmul.f32 %v4615_v29, %v4645_v23  ;;  %v4685_v5 = vld [vmem:[#allocation2 + $0x7d] sm:$0xff]  ;;  %v1038_v46 = vadd.f32 %v1030_v25, %v1011_v60  ;;  %v1082_v44 = vmul.f32 %v4413_v7, %v4180_v13  ;;  %v627_v29 = vld [vmem:[#allocation2 + $0x16d] sm:$0xff]  ;;  %v4703_v25 = vstv %s4588_s23  ;;  %s4823_s23 = sld [smem:[#allocation3 + $0x5c]] }
 0x31f   : > { %7290 = vst [vmem:[#allocation104_spill] sm:$0xff] %v4638_v37  ;;  %7291 = vst [vmem:[#allocation105_spill] sm:$0xff] %v4641_v48  ;;  %v4694_v37 = vmul.f32 %v4652_v22, %v4672_v2  ;;  %v4698_v48 = vmul.f32 %v4655_v9, %v4685_v5  ;;  %v610_v60 = vmul.f32 %v4127_v56, %v601_v27 }
 0x320   : > { %7292 = vst [vmem:[#allocation106_spill] sm:$0xff] %v4652_v22  ;;  %7293 = vst [vmem:[#allocation107_spill] sm:$0xff] %v4655_v9  ;;  %v679_v9 = vld [vmem:[#allocation2 + $0x16e] sm:$0xff] }
 0x321   : > { %7294 = vst [vmem:[#allocation108_spill] sm:$0xff] %v4664_v28  ;;  %7295 = vst [vmem:[#allocation109_spill] sm:$0xff] %v4668_v18  ;;  %v654_v18 = vld [vmem:[#allocation2 + $0x1e] sm:$0xff]  ;;  %v1687_v28 = vadd.f32 %v4371_v15, %v1662_v38  ;;  %v1063_v15 = vadd.f32 %v1055_v54, %v1038_v46  ;;  %v1107_v38 = vmul.f32 %v4415_v11, %v4183_v20  ;;  %v4729_v11 = vstv %s4628_s28  ;;  %s4845_s28 = sld [smem:[#allocation3 + $0x5d]] }
 0x322   : > { %7296 = vst [vmem:[#allocation110_spill] sm:$0xff] %v4675_v59  ;;  %7297 = vst [vmem:[#allocation111_spill] sm:$0xff] %v4679_v19  ;;  %v636_v19 = vmul.f32 %v4129_v57, %v627_v29  ;;  %v4739_v29 = vstv %s4643_s30  ;;  %s4866_s30 = sld [smem:[#allocation3 + $0x2d]] }
 0x323   : > { %7298 = vst [vmem:[#allocation112_spill] sm:$0xff] %v4683_v50  ;;  %7299 = vst [vmem:[#allocation113_spill] sm:$0xff] %v4694_v37  ;;  %v4700_v50 = vld [vmem:[#allocation2 + $0x1cd] sm:$0xff]  ;;  %v1714_v22 = vadd.f32 %v4375_v35, %v1687_v28  ;;  %v4720_v37 = vstv %s4617_s27  ;;  %v1090_v27 = vadd.f32 %v1082_v44, %v1063_v15  ;;  %v1134_v35 = vmul.f32 %v4439_v52, %v4186_v26  ;;  %v706_v28 = vld [vmem:[#allocation2 + $0x1f] sm:$0xff]  ;;  %s4833_s27 = sld [smem:[#allocation3 + $0x2c]] }
 0x324   : > { %7300 = vst [vmem:[#allocation114_spill] sm:$0xff] %v4698_v48  ;;  %7301 = vst [vmem:[#allocation115_spill] sm:$0xff] %v4703_v25  ;;  %v4709_v7 = vmul.f32 %v4675_v59, %v4700_v50  ;;  %v4717_v48 = vld [vmem:[#allocation2 + $0x7e] sm:$0xff]  ;;  %v663_v59 = vmul.f32 %v4133_v61, %v654_v18  ;;  %v644_v18 = vadd.f32 %v636_v19, %v610_v60  ;;  %v4751_v52 = vstv %s4657_s5  ;;  %v731_v15 = vld [vmem:[#allocation2 + $0x16f] sm:$0xff]  ;;  %s4885_s5 = sld [smem:[#allocation3 + $0x5e]] }
 0x325   : > { %7303 = vst [vmem:[#allocation117_spill] sm:$0xff] %v4720_v37  ;;  %v4726_v54 = vmul.f32 %v4703_v25, %v4717_v48  ;;  %7305 = vst [vmem:[#allocation119_spill] sm:$0xff] %v4729_v11  ;;  %v1739_v46 = vadd.f32 %v4398_v43, %v1714_v22  ;;  %v688_v25 = vmul.f32 %v4135_v62, %v679_v9  ;;  %v4748_v44 = vld [vmem:[#allocation2 + $0x7f] sm:$0xff]  ;;  %v4762_v60 = vld [vmem:[#allocation2 + $0x1cf] sm:$0xff]  ;;  %v4780_v62 = vstv %s4705_s8  ;;  %s4905_s8 = sld [smem:[#allocation3 + $0x5f]] }
 0x326   : > { %7302 = vst [vmem:[#allocation116_spill] sm:$0xff] %v4709_v7  ;;  %v4736_v7 = vld [vmem:[#allocation2 + $0x1ce] sm:$0xff]  ;;  %7306 = vst [vmem:[#allocation120_spill] sm:$0xff] %v4739_v29  ;;  %v1115_v43 = vadd.f32 %v1107_v38, %v1090_v27  ;;  %v1159_v22 = vmul.f32 %v4441_v39, %v4189_v31  ;;  %v4760_v9 = vmul.f32 %v4729_v11, %v4748_v44  ;;  %v4772_v39 = vstv %s4687_s6  ;;  %s4895_s6 = sld [smem:[#allocation3 + $0x2e]] }
 0x327   : > { %7304 = vst [vmem:[#allocation118_spill] sm:$0xff] %v4726_v54  ;;  %v4746_v54 = vmul.f32 %v4720_v37, %v4736_v7  ;;  %7308 = vst [vmem:[#allocation122_spill] sm:$0xff] %v4751_v52  ;;  %v1766_v19 = vadd.f32 %v4402_v8, %v1739_v46  ;;  %v671_v37 = vadd.f32 %v663_v59, %v644_v18  ;;  %v758_v46 = vld [vmem:[#allocation2 + $0x20] sm:$0xff] }
 0x328   : > { %7309 = vst [vmem:[#allocation123_spill] sm:$0xff] %v4760_v9  ;;  %v4769_v38 = vmul.f32 %v4739_v29, %v4762_v60  ;;  %7311 = vst [vmem:[#allocation125_spill] sm:$0xff] %v4772_v39  ;;  %v1142_v27 = vadd.f32 %v1134_v35, %v1115_v43  ;;  %v1186_v8 = vmul.f32 %v4468_v1, %v4192_v36  ;;  %v4777_v9 = vld [vmem:[#allocation2 + $0x80] sm:$0xff]  ;;  %v4789_v35 = vld [vmem:[#allocation2 + $0x1d0] sm:$0xff]  ;;  %v4792_v1 = vstv %s4711_s9  ;;  %s4915_s9 = sld [smem:[#allocation3 + $0x2f]] }
 0x329   : > { %7307 = vst [vmem:[#allocation121_spill] sm:$0xff] %v4746_v54  ;;  %v715_v54 = vmul.f32 %v4138_v3, %v706_v28  ;;  %v1791_v11 = vadd.f32 %v4411_v32, %v1766_v19  ;;  %7312 = vst [vmem:[#allocation126_spill] sm:$0xff] %v4780_v62  ;;  %v696_v59 = vadd.f32 %v688_v25, %v671_v37  ;;  %v783_v19 = vld [vmem:[#allocation2 + $0x170] sm:$0xff]  ;;  %v4801_v25 = vld [vmem:[#allocation2 + $0x81] sm:$0xff] }
 0x32a   : > { %7310 = vst [vmem:[#allocation124_spill] sm:$0xff] %v4769_v38  ;;  %v740_v28 = vmul.f32 %v4141_v10, %v731_v15  ;;  %v4787_v18 = vmul.f32 %v4751_v52, %v4777_v9  ;;  %7314 = vst [vmem:[#allocation128_spill] sm:$0xff] %v4792_v1  ;;  %v1167_v43 = vadd.f32 %v1159_v22, %v1142_v27  ;;  %v810_v27 = vld [vmem:[#allocation2 + $0x21] sm:$0xff]  ;;  %v7325_v38 = vld [vmem:[#allocation71_spill] sm:$0xff] }
 0x32b   : > { %v1211_v32 = vmul.f32 %v4470_v24, %v4197_v42  ;;  %v1818_v29 = vadd.f32 %v4428_v34, %v1791_v11  ;;  %v4799_v37 = vmul.f32 %v4772_v39, %v4789_v35  ;;  %v723_v15 = vadd.f32 %v715_v54, %v696_v59  ;;  %v7318_v39 = vld [vmem:[#allocation67_spill] sm:$0xff]  ;;  %v7321_v59 = vld [vmem:[#allocation24_spill] sm:$0xff]  ;;  %v4838_v10 = vld [vmem:[#allocation2 + $0x82] sm:$0xff] }
 0x32c   : > { %7313 = vst [vmem:[#allocation127_spill] sm:$0xff] %v4787_v18  ;;  %v767_v52 = vmul.f32 %v4144_v17, %v758_v46  ;;  %v4808_v22 = vmul.f32 %v4780_v62, %v4801_v25  ;;  %v4811_v24 = vstv %s4731_s10  ;;  %v1194_v34 = vadd.f32 %v1186_v8, %v1167_v43  ;;  %v4818_v18 = vld [vmem:[#allocation2 + $0x1d1] sm:$0xff]  ;;  %v7324_v43 = vld [vmem:[#allocation42_spill] sm:$0xff]  ;;  %s4927_s10 = sld [smem:[#allocation3 + $0x60]] }
 0x32d   : > { %7315 = vst [vmem:[#allocation129_spill] sm:$0xff] %v4799_v37  ;;  %7317 = vst [vmem:[#allocation131_spill] sm:$0xff] %v4811_v24  ;;  %v1238_v11 = vmul.f32 %v4472_v0, %v4204_v47  ;;  %v1843_v37 = vadd.f32 %v7318_v39, %v1818_v29  ;;  %v4821_v54 = vstv %s4741_s11  ;;  %v748_v46 = vadd.f32 %v740_v28, %v723_v15  ;;  %v835_v39 = vld [vmem:[#allocation2 + $0x171] sm:$0xff]  ;;  %v4859_v47 = vld [vmem:[#allocation2 + $0x83] sm:$0xff]  ;;  %s4957_s11 = sld [smem:[#allocation3 + $0x30]] }
 0x32e   : > { %7316 = vst [vmem:[#allocation130_spill] sm:$0xff] %v4808_v22  ;;  %7319 = vst [vmem:[#allocation67_spill] sm:$0xff] %v4818_v18  ;;  %v792_v62 = vmul.f32 %v7321_v59, %v783_v19  ;;  %v4828_v22 = vmul.f32 %v4792_v1, %v4818_v18  ;;  %v4831_v8 = vstv %s4753_s12  ;;  %v1219_v0 = vadd.f32 %v1211_v32, %v1194_v34  ;;  %v4840_v28 = vld [vmem:[#allocation2 + $0x1d2] sm:$0xff]  ;;  %v862_v59 = vld [vmem:[#allocation2 + $0x22] sm:$0xff]  ;;  %s4967_s12 = sld [smem:[#allocation3 + $0x61]] }
 0x32f   : > { %7320 = vst [vmem:[#allocation132_spill] sm:$0xff] %v4821_v54  ;;  %7323 = vst [vmem:[#allocation134_spill] sm:$0xff] %v4831_v8  ;;  %v1263_v29 = vmul.f32 %v4499_v30, %v7324_v43  ;;  %v1870_v17 = vadd.f32 %v7325_v38, %v1843_v37  ;;  %v4843_v19 = vstv %s4764_s13  ;;  %v775_v15 = vadd.f32 %v767_v52, %v748_v46  ;;  %v7330_v37 = vld [vmem:[#allocation43_spill] sm:$0xff]  ;;  %v7331_v43 = vld [vmem:[#allocation72_spill] sm:$0xff]  ;;  %s3474_s13 = sshll.u32 %s3735_s19, 10 }
 0x330   : > { %7322 = vst [vmem:[#allocation133_spill] sm:$0xff] %v4828_v22  ;;  %7326 = vst [vmem:[#allocation71_spill] sm:$0xff] %v4843_v19  ;;  %v7327_v22 = vld [vmem:[#allocation25_spill] sm:$0xff]  ;;  %v4850_v32 = vmul.f32 %v4811_v24, %v4838_v10  ;;  %v4854_v30 = vmul.f32 %v4821_v54, %v4840_v28  ;;  %v1246_v38 = vadd.f32 %v1238_v11, %v1219_v0  ;;  %v4861_v52 = vld [vmem:[#allocation2 + $0x1d3] sm:$0xff] }
 0x331   : > { %v819_v1 = vmul.f32 %v7327_v22, %v810_v27  ;;  %v1290_v34 = vmul.f32 %v4501_v51, %v7330_v37  ;;  %v1895_v18 = vadd.f32 %v7331_v43, %v1870_v17  ;;  %v4864_v27 = vstv %s4782_s14  ;;  %v7336_v0 = vld [vmem:[#allocation44_spill] sm:$0xff]  ;;  %s3275_s14 = sshll.u32 %s3923_s29, 4  ;;  %s6856_s14 = int_to_ptr.vmem [resolvable:$true] %s3275_s14 }
 0x332   : > { %7328 = vst [vmem:[#allocation135_spill] sm:$0xff] %v4850_v32  ;;  %7329 = vst [vmem:[#allocation136_spill] sm:$0xff] %v4854_v30  ;;  %v800_v46 = vadd.f32 %v792_v62, %v775_v15  ;;  %v7333_v32 = vld [vmem:[#allocation26_spill] sm:$0xff]  ;;  %v4871_v11 = vmul.f32 %v4831_v8, %v4859_v47  ;;  %v4875_v51 = vmul.f32 %v4843_v19, %v4861_v52  ;;  %v887_v54 = vld [vmem:[#allocation2 + $0x172] sm:$0xff]  ;;  %v4883_v62 = vstv %s4803_s20  ;;  %s3612_s19 = scalar_lea.vmem %s6856_s14, 1024 }
 0x333   : > { %7332 = vst [vmem:[#allocation72_spill] sm:$0xff] %v4864_v27  ;;  %v844_v30 = vmul.f32 %v7333_v32, %v835_v39  ;;  %v1271_v17 = vadd.f32 %v1263_v29, %v1246_v38  ;;  %v1315_v43 = vmul.f32 %v4503_v40, %v7336_v0  ;;  %v1922_v24 = vadd.f32 %v4487_v33, %v1895_v18  ;;  %v4880_v22 = vld [vmem:[#allocation2 + $0x95] sm:$0xff]  ;;  %v7341_v33 = vld [vmem:[#allocation45_spill] sm:$0xff]  ;;  %p3613_p11 = scmp.ne.s32.totalorder %s6856_s14, %s3612_s19 }
 0x334   : > { %7334 = vst [vmem:[#allocation137_spill] sm:$0xff] %v4871_v11  ;;  %7335 = vst [vmem:[#allocation138_spill] sm:$0xff] %v4875_v51  ;;  %v827_v39 = vadd.f32 %v819_v1, %v800_v46  ;;  %v7338_v15 = vld [vmem:[#allocation27_spill] sm:$0xff]  ;;  %v4890_v29 = vmul.f32 %v4864_v27, %v4880_v22  ;;  %v4893_v38 = vstv %s4813_s22  ;;  %v1343_v18 = vmul.f32 %v4532_v55, %v7341_v33  ;;  %v914_v51 = vld [vmem:[#allocation2 + $0x23] sm:$0xff] }
 0x335   : > { %7337 = vst [vmem:[#allocation139_spill] sm:$0xff] %v4883_v62  ;;  %v871_v11 = vmul.f32 %v7338_v15, %v862_v59  ;;  %7340 = vst [vmem:[#allocation141_spill] sm:$0xff] %v4893_v38  ;;  %v1298_v40 = vadd.f32 %v1290_v34, %v1271_v17  ;;  %v7342_v19 = vld [vmem:[#allocation76_spill] sm:$0xff]  ;;  %v4900_v32 = vld [vmem:[#allocation2 + $0x1e5] sm:$0xff]  ;;  %v4903_v1 = vstv %s4823_s23  ;;  %v4913_v34 = vstv %s4833_s27  ;;  %s6854_s23 = scalar_lea.hbm %s6908_s4, %s3474_s13  ;;  %s6863_s27 = scalar_lea.sflag [#allocation4], %s202_s7 }
 0x336   : > { %7339 = vst [vmem:[#allocation140_spill] sm:$0xff] %v4890_v29  ;;  %v1947_v8 = vadd.f32 %v7342_v19, %v1922_v24  ;;  %7343 = vst [vmem:[#allocation76_spill] sm:$0xff] %v4900_v32  ;;  %v852_v59 = vadd.f32 %v844_v30, %v827_v39  ;;  %v7345_v46 = vld [vmem:[#allocation28_spill] sm:$0xff]  ;;  %v4910_v27 = vmul.f32 %v4883_v62, %v4900_v32  ;;  %v7348_v17 = vld [vmem:[#allocation46_spill] sm:$0xff]  ;;  %p3614_p12 = pnand %p3613_p11, %p3752_p5 }
 0x337   : > { %7344 = vst [vmem:[#allocation142_spill] sm:$0xff] %v4903_v1  ;;  %v896_v29 = vmul.f32 %v7345_v46, %v887_v54  ;;  %7347 = vst [vmem:[#allocation144_spill] sm:$0xff] %v4913_v34  ;;  %v1323_v55 = vadd.f32 %v1315_v43, %v1298_v40  ;;  %v1369_v24 = vmul.f32 %v4534_v6, %v7348_v17  ;;  %v939_v19 = vld [vmem:[#allocation2 + $0x173] sm:$0xff]  ;;  %v7349_v15 = vld [vmem:[#allocation77_spill] sm:$0xff]  ;;  %v4925_v54 = vstv %s4845_s28  ;;  %s3686_s28 = smov [#allocation6]  }
 0x338   : > { %7346 = vst [vmem:[#allocation143_spill] sm:$0xff] %v4910_v27  ;;  %v1974_v33 = vadd.f32 %v7349_v15, %v1947_v8  ;;  %v4920_v0 = vld [vmem:[#allocation2 + $0x96] sm:$0xff]  ;;  %v4922_v30 = vld [vmem:[#allocation2 + $0x1e6] sm:$0xff]  ;;  %7350 = vst [vmem:[#allocation77_spill] sm:$0xff] %v4925_v54  ;;  %v879_v39 = vadd.f32 %v871_v11, %v852_v59  ;;  %v923_v27 = vmul.f32 %v4162_v41, %v914_v51  ;;  %v4946_v51 = vstv %s4866_s30  ;;  %p3615_p13 = pneg %p3614_p12  ;;  %s3616_s30 = sshll.u32 %s3686_s28, 4  ;;  %s3617_s30 = int_to_ptr.vmem [resolvable:$false] %s3616_s30 }
 0x339   : > { %v4932_v43 = vmul.f32 %v4893_v38, %v4920_v0  ;;  %v4936_v6 = vmul.f32 %v4903_v1, %v4922_v30  ;;  %v1351_v8 = vadd.f32 %v1343_v18, %v1323_v55  ;;  %v7353_v15 = vld [vmem:[#allocation47_spill] sm:$0xff]  ;;  %v7354_v46 = vld [vmem:[#allocation80_spill] sm:$0xff]  ;;  %v4943_v11 = vld [vmem:[#allocation2 + $0x1e7] sm:$0xff]  ;;  %p3619_p0 = scmp.lt.s32.totalorder %s6856_s14, %s3617_s30 }
 0x33a   : > { %v1396_v40 = vmul.f32 %v4562_v58, %v7353_v15  ;;  %v967_v62 = vld [vmem:[#allocation2 + $0x35] sm:$0xff]  ;;  %v1999_v17 = vadd.f32 %v7354_v46, %v1974_v33  ;;  %7355 = vst [vmem:[#allocation80_spill] sm:$0xff] %v4946_v51  ;;  %v904_v59 = vadd.f32 %v896_v29, %v879_v39  ;;  %v4955_v58 = vmul.f32 %v4925_v54, %v4943_v11  ;;  %v7360_v1 = vld [vmem:[#allocation81_spill] sm:$0xff]  ;;  %v4980_v41 = vld [vmem:[#allocation2 + $0x1e8] sm:$0xff] }
 0x33b   : > { %7351 = vst [vmem:[#allocation145_spill] sm:$0xff] %v4932_v43  ;;  %7352 = vst [vmem:[#allocation146_spill] sm:$0xff] %v4936_v6  ;;  %v4941_v32 = vld [vmem:[#allocation2 + $0x97] sm:$0xff]  ;;  %v7356_v43 = vld [vmem:[#allocation30_spill] sm:$0xff]  ;;  %v1377_v33 = vadd.f32 %v1369_v24, %v1351_v8  ;;  %v4975_v8 = vstv %s4895_s6 }
 0x33c   : > { %v948_v38 = vmul.f32 %v7356_v43, %v939_v19  ;;  %v4951_v18 = vmul.f32 %v4913_v34, %v4941_v32  ;;  %7358 = vst [vmem:[#allocation148_spill] sm:$0xff] %v4955_v58  ;;  %v7359_v46 = vld [vmem:[#allocation48_spill] sm:$0xff]  ;;  %v993_v6 = vld [vmem:[#allocation2 + $0x185] sm:$0xff]  ;;  %v2026_v29 = vadd.f32 %v7360_v1, %v1999_v17  ;;  %v4965_v19 = vstv %s4885_s5  ;;  %7363 = vst [vmem:[#allocation150_spill] sm:$0xff] %v4975_v8  ;;  %s3618_s5 = scalar_lea.vmem %s3617_s30, 2048 }
 0x33d   : > { %v1421_v55 = vmul.f32 %v4564_v12, %v7359_v46  ;;  %v4962_v39 = vld [vmem:[#allocation2 + $0x98] sm:$0xff]  ;;  %7361 = vst [vmem:[#allocation81_spill] sm:$0xff] %v4965_v19  ;;  %v976_v58 = vmul.f32 %v4168_v49, %v967_v62  ;;  %v1404_v12 = vadd.f32 %v1396_v40, %v1377_v33  ;;  %v7364_v54 = vld [vmem:[#allocation49_spill] sm:$0xff]  ;;  %v7365_v34 = vld [vmem:[#allocation82_spill] sm:$0xff]  ;;  %v4983_v46 = vstv %s4905_s8  ;;  %p3620_p1 = scmp.lt.s32.totalorder %s3618_s5, %s3612_s19 }
 0x33e   : > { %7357 = vst [vmem:[#allocation147_spill] sm:$0xff] %v4951_v18  ;;  %v931_v18 = vadd.f32 %v923_v27, %v904_v59  ;;  %v4972_v24 = vmul.f32 %v4946_v51, %v4962_v39  ;;  %v1448_v1 = vmul.f32 %v4583_v45, %v7364_v54  ;;  %v1020_v17 = vld [vmem:[#allocation2 + $0x36] sm:$0xff]  ;;  %v2051_v43 = vadd.f32 %v7365_v34, %v2026_v29  ;;  %v7370_v33 = vld [vmem:[#allocation50_spill] sm:$0xff]  ;;  %v7371_v49 = vld [vmem:[#allocation85_spill] sm:$0xff] }
 0x33f   : > { %7366 = vst [vmem:[#allocation82_spill] sm:$0xff] %v4980_v41  ;;  %7367 = vst [vmem:[#allocation151_spill] sm:$0xff] %v4983_v46  ;;  %v1002_v62 = vmul.f32 %v4171_v53, %v993_v6  ;;  %v4988_v59 = vmul.f32 %v4965_v19, %v4980_v41  ;;  %v1429_v40 = vadd.f32 %v1421_v55, %v1404_v12  ;;  %v1045_v51 = vld [vmem:[#allocation2 + $0x186] sm:$0xff]  ;;  %v4996_v29 = vld [vmem:[#allocation2 + $0x99] sm:$0xff]  ;;  %p3621_p2 = por %p3620_p1, %p3619_p0 }
 0x340   : > { %7362 = vst [vmem:[#allocation149_spill] sm:$0xff] %v4972_v24  ;;  %v956_v27 = vadd.f32 %v948_v38, %v931_v18  ;;  %v4991_v24 = vstv %s4915_s9  ;;  %v1473_v45 = vmul.f32 %v4594_v63, %v7370_v33  ;;  %v2079_v34 = vadd.f32 %v7371_v49, %v2051_v43  ;;  %v4998_v54 = vld [vmem:[#allocation2 + $0x1e9] sm:$0xff]  ;;  %v7374_v18 = vld [vmem:[#allocation33_spill] sm:$0xff]  ;;  %v1072_v33 = vld [vmem:[#allocation2 + $0x37] sm:$0xff] }
 0x341   : > { %7368 = vst [vmem:[#allocation152_spill] sm:$0xff] %v4988_v59  ;;  %7369 = vst [vmem:[#allocation153_spill] sm:$0xff] %v4991_v24  ;;  %v5001_v38 = vstv %s4927_s10  ;;  %v1029_v19 = vmul.f32 %v7374_v18, %v1020_v17  ;;  %v5006_v59 = vmul.f32 %v4975_v8, %v4996_v29  ;;  %v5010_v63 = vmul.f32 %v4983_v46, %v4998_v54  ;;  %v5012_v49 = vld [vmem:[#allocation2 + $0x9a] sm:$0xff]  ;;  %v7378_v55 = vld [vmem:[#allocation51_spill] sm:$0xff]  ;;  %p3622_p3 = pnand %p3621_p2, %p3615_p13 }
 0x342   : > { %7372 = vst [vmem:[#allocation85_spill] sm:$0xff] %v4998_v54  ;;  %7373 = vst [vmem:[#allocation154_spill] sm:$0xff] %v5001_v38  ;;  %v984_v6 = vadd.f32 %v976_v58, %v956_v27  ;;  %v1456_v43 = vadd.f32 %v1448_v1, %v1429_v40  ;;  %v7379_v12 = vld [vmem:[#allocation94_spill] sm:$0xff]  ;;  %v5019_v17 = vmul.f32 %v4991_v24, %v5012_v49  ;;  %v5029_v1 = vstv %s4957_s11  ;;  %v5045_v54 = vld [vmem:[#allocation2 + $0x9b] sm:$0xff] }
 0x343   : > { %7375 = vst [vmem:[#allocation155_spill] sm:$0xff] %v5006_v59  ;;  %7376 = vst [vmem:[#allocation156_spill] sm:$0xff] %v5010_v63  ;;  %v1500_v53 = vmul.f32 %v7379_v12, %v7378_v55  ;;  %v7380_v41 = vld [vmem:[#allocation86_spill] sm:$0xff]  ;;  %v1054_v46 = vmul.f32 %v4177_v4, %v1045_v51  ;;  %v7385_v12 = vld [vmem:[#allocation52_spill] sm:$0xff]  ;;  %v5035_v24 = vstv %s4967_s12 }
 0x344   : > { %7377 = vst [vmem:[#allocation157_spill] sm:$0xff] %v5012_v49  ;;  %v2105_v58 = vadd.f32 %v7380_v41, %v2079_v34  ;;  %7381 = vst [vmem:[#allocation94_spill] sm:$0xff] %v5019_v17  ;;  %v5021_v27 = vld [vmem:[#allocation2 + $0x1ea] sm:$0xff]  ;;  %v1010_v59 = vadd.f32 %v1002_v62, %v984_v6  ;;  %v1481_v40 = vadd.f32 %v1473_v45, %v1456_v43  ;;  %v7389_v51 = vld [vmem:[#allocation53_spill] sm:$0xff] }
 0x345   : > { %7382 = vst [vmem:[#allocation86_spill] sm:$0xff] %v5021_v27  ;;  %v5026_v63 = vmul.f32 %v5001_v38, %v5021_v27  ;;  %7384 = vst [vmem:[#allocation159_spill] sm:$0xff] %v5029_v1  ;;  %v7386_v8 = vld [vmem:[#allocation98_spill] sm:$0xff]  ;;  %v1081_v62 = vmul.f32 %v4180_v13, %v1072_v33  ;;  %v7390_v4 = vld [vmem:[#allocation101_spill] sm:$0xff] }
 0x346   : > { %v1525_v18 = vmul.f32 %v7386_v8, %v7385_v12  ;;  %v1097_v41 = vld [vmem:[#allocation2 + $0x187] sm:$0xff]  ;;  %7388 = vst [vmem:[#allocation98_spill] sm:$0xff] %v5035_v24  ;;  %v1037_v17 = vadd.f32 %v1029_v19, %v1010_v59  ;;  %v1508_v6 = vadd.f32 %v1500_v53, %v1481_v40  ;;  %v1552_v49 = vmul.f32 %v7390_v4, %v7389_v51  ;;  %v7392_v27 = vld [vmem:[#allocation55_spill] sm:$0xff]  ;;  %v1124_v43 = vld [vmem:[#allocation2 + $0x38] sm:$0xff] }
 0x347   : > { %7383 = vst [vmem:[#allocation158_spill] sm:$0xff] %v5026_v63  ;;  %v7387_v34 = vld [vmem:[#allocation90_spill] sm:$0xff]  ;;  %v1604_v45 = vmul.f32 %v4647_v21, %v7392_v27  ;;  %v7393_v8 = vld [vmem:[#allocation91_spill] sm:$0xff]  ;;  %v7394_v19 = vld [vmem:[#allocation56_spill] sm:$0xff]  ;;  %v1106_v33 = vmul.f32 %v4183_v20, %v1097_v41  ;;  %v5054_v4 = vmul.f32 %v5029_v1, %v5045_v54 }
 0x348   : > { %v2132_v55 = vadd.f32 %v7387_v34, %v2105_v58  ;;  %v7391_v38 = vld [vmem:[#allocation54_spill] sm:$0xff]  ;;  %v1629_v59 = vmul.f32 %v4649_v16, %v7394_v19  ;;  %v1062_v53 = vadd.f32 %v1054_v46, %v1037_v17  ;;  %v1133_v17 = vmul.f32 %v4186_v26, %v1124_v43  ;;  %v5068_v1 = vld [vmem:[#allocation2 + $0x19d] sm:$0xff] }
 0x349   : > { %v1577_v63 = vmul.f32 %v4645_v23, %v7391_v38  ;;  %v5047_v58 = vld [vmem:[#allocation2 + $0x1eb] sm:$0xff]  ;;  %7395 = vst [vmem:[#allocation90_spill] sm:$0xff] %v5054_v4  ;;  %v1533_v23 = vadd.f32 %v1525_v18, %v1508_v6  ;;  %v7401_v6 = vld [vmem:[#allocation60_spill] sm:$0xff] }
 0x34a   : > { %v2157_v12 = vadd.f32 %v7393_v8, %v2132_v55  ;;  %v5058_v21 = vmul.f32 %v5035_v24, %v5047_v58  ;;  %v7397_v55 = vld [vmem:[#allocation57_spill] sm:$0xff]  ;;  %v1149_v34 = vld [vmem:[#allocation2 + $0x188] sm:$0xff]  ;;  %v1089_v46 = vadd.f32 %v1081_v62, %v1062_v53  ;;  %v7400_v24 = vld [vmem:[#allocation59_spill] sm:$0xff] }
 0x34b   : > { %v1656_v40 = vmul.f32 %v4670_v14, %v7397_v55  ;;  %v7398_v8 = vld [vmem:[#allocation93_spill] sm:$0xff]  ;;  %v7399_v13 = vld [vmem:[#allocation58_spill] sm:$0xff]  ;;  %v1560_v4 = vadd.f32 %v1552_v49, %v1533_v23  ;;  %v1708_v18 = vmul.f32 %v4685_v5, %v7400_v24  ;;  %v5074_v14 = vmul.f32 %v4700_v50, %v7401_v6  ;;  %v7403_v43 = vld [vmem:[#allocation96_spill] sm:$0xff] }
 0x34c   : > { %7396 = vst [vmem:[#allocation101_spill] sm:$0xff] %v5058_v21  ;;  %v2184_v27 = vadd.f32 %v7398_v8, %v2157_v12  ;;  %v1681_v16 = vmul.f32 %v4672_v2, %v7399_v13  ;;  %v5066_v41 = vld [vmem:[#allocation2 + $0x4d] sm:$0xff]  ;;  %v7402_v21 = vld [vmem:[#allocation61_spill] sm:$0xff]  ;;  %v1114_v49 = vadd.f32 %v1106_v33, %v1089_v46  ;;  %v1158_v5 = vmul.f32 %v4189_v31, %v1149_v34  ;;  %v7408_v31 = vld [vmem:[#allocation20_spill] sm:$0xff] }
 0x34d   : > { %v5078_v12 = vmul.f32 %v4717_v48, %v7402_v21  ;;  %v1176_v2 = vld [vmem:[#allocation2 + $0x39] sm:$0xff]  ;;  %v5080_v62 = vld [vmem:[#allocation2 + $0x4e] sm:$0xff]  ;;  %v1585_v50 = vadd.f32 %v1577_v63, %v1560_v4  ;;  %v612_v21 = vmul.f32 %v5066_v41, %v4127_v56 }
 0x34e   : > { %v2209_v53 = vadd.f32 %v7403_v43, %v2184_v27  ;;  %v7404_v8 = vld [vmem:[#allocation62_spill] sm:$0xff]  ;;  %v5088_v23 = vld [vmem:[#allocation2 + $0x19e] sm:$0xff]  ;;  %v7405_v6 = vld [vmem:[#allocation63_spill] sm:$0xff]  ;;  %v638_v27 = vmul.f32 %v5068_v1, %v4129_v57  ;;  %v1185_v33 = vmul.f32 %v4192_v36, %v1176_v2  ;;  %v665_v63 = vmul.f32 %v5080_v62, %v4133_v61 }
 0x34f   : > { %v5085_v13 = vmul.f32 %v4736_v7, %v7404_v8  ;;  %v5092_v24 = vmul.f32 %v4748_v44, %v7405_v6  ;;  %v1201_v48 = vld [vmem:[#allocation2 + $0x189] sm:$0xff]  ;;  %v7406_v43 = vld [vmem:[#allocation97_spill] sm:$0xff]  ;;  %v1141_v8 = vadd.f32 %v1133_v17, %v1114_v49  ;;  %v1612_v4 = vadd.f32 %v1604_v45, %v1585_v50  ;;  %v7407_v44 = vld [vmem:[#allocation64_spill] sm:$0xff] }
 0x350   : > { %v2236_v7 = vadd.f32 %v7406_v43, %v2209_v53  ;;  %v5100_v34 = vld [vmem:[#allocation2 + $0x4f] sm:$0xff]  ;;  %v5106_v46 = vmul.f32 %v4762_v60, %v7407_v44  ;;  %v1228_v6 = vld [vmem:[#allocation2 + $0x3a] sm:$0xff]  ;;  %v646_v56 = vadd.f32 %v638_v27, %v612_v21  ;;  %v690_v57 = vmul.f32 %v5088_v23, %v7408_v31 }
 0x351   : > { %v7409_v55 = vld [vmem:[#allocation100_spill] sm:$0xff]  ;;  %v7410_v17 = vld [vmem:[#allocation65_spill] sm:$0xff]  ;;  %v1166_v49 = vadd.f32 %v1158_v5, %v1141_v8  ;;  %v1210_v43 = vmul.f32 %v4197_v42, %v1201_v48  ;;  %v1637_v45 = vadd.f32 %v1629_v59, %v1612_v4  ;;  %v7411_v50 = vld [vmem:[#allocation66_spill] sm:$0xff]  ;;  %v717_v31 = vmul.f32 %v5100_v34, %v4138_v3 }
 0x352   : > { %v2261_v53 = vadd.f32 %v7409_v55, %v2236_v7  ;;  %v5113_v2 = vmul.f32 %v4777_v9, %v7410_v17  ;;  %v5116_v61 = vld [vmem:[#allocation2 + $0x19f] sm:$0xff]  ;;  %v5120_v60 = vmul.f32 %v4789_v35, %v7411_v50  ;;  %v1253_v21 = vld [vmem:[#allocation2 + $0x18a] sm:$0xff]  ;;  %v673_v27 = vadd.f32 %v665_v63, %v646_v56 }
 0x353   : > { %v7412_v55 = vld [vmem:[#allocation103_spill] sm:$0xff]  ;;  %v7413_v44 = vld [vmem:[#allocation68_spill] sm:$0xff]  ;;  %v1193_v8 = vadd.f32 %v1185_v33, %v1166_v49  ;;  %v7414_v5 = vld [vmem:[#allocation41_spill] sm:$0xff]  ;;  %v1664_v59 = vadd.f32 %v1656_v40, %v1637_v45 }
 0x354   : > { %v2288_v7 = vadd.f32 %v7412_v55, %v2261_v53  ;;  %v5127_v9 = vmul.f32 %v4801_v25, %v7413_v44  ;;  %v1237_v48 = vmul.f32 %v7414_v5, %v1228_v6  ;;  %v5130_v17 = vld [vmem:[#allocation2 + $0x50] sm:$0xff]  ;;  %v7415_v4 = vld [vmem:[#allocation69_spill] sm:$0xff]  ;;  %v698_v63 = vadd.f32 %v690_v57, %v673_v27  ;;  %v7417_v42 = vld [vmem:[#allocation22_spill] sm:$0xff] }
 0x355   : > { %v7416_v35 = vld [vmem:[#allocation67_spill] sm:$0xff]  ;;  %v1280_v56 = vld [vmem:[#allocation2 + $0x3b] sm:$0xff]  ;;  %v742_v3 = vmul.f32 %v5116_v61, %v7417_v42  ;;  %v7419_v36 = vld [vmem:[#allocation70_spill] sm:$0xff]  ;;  %v1218_v33 = vadd.f32 %v1210_v43, %v1193_v8  ;;  %v1689_v40 = vadd.f32 %v1681_v16, %v1664_v59 }
 0x356   : > { %v5134_v50 = vmul.f32 %v7416_v35, %v7415_v4  ;;  %v7418_v53 = vld [vmem:[#allocation108_spill] sm:$0xff]  ;;  %v5141_v25 = vmul.f32 %v4838_v10, %v7419_v36  ;;  %v7420_v6 = vld [vmem:[#allocation42_spill] sm:$0xff]  ;;  %v5144_v44 = vld [vmem:[#allocation2 + $0x1a0] sm:$0xff]  ;;  %v725_v27 = vadd.f32 %v717_v31, %v698_v63 }
 0x357   : > { %v2313_v55 = vadd.f32 %v7418_v53, %v2288_v7  ;;  %v1262_v49 = vmul.f32 %v7420_v6, %v1253_v21  ;;  %v7421_v45 = vld [vmem:[#allocation73_spill] sm:$0xff]  ;;  %v1305_v57 = vld [vmem:[#allocation2 + $0x18b] sm:$0xff]  ;;  %v1245_v43 = vadd.f32 %v1237_v48, %v1218_v33  ;;  %v1289_v21 = vmul.f32 %v7330_v37, %v1280_v56  ;;  %v7426_v63 = vld [vmem:[#allocation24_spill] sm:$0xff] }
 0x358   : > { %v5148_v35 = vmul.f32 %v4840_v28, %v7421_v45  ;;  %v7422_v4 = vld [vmem:[#allocation23_spill] sm:$0xff]  ;;  %v7423_v7 = vld [vmem:[#allocation109_spill] sm:$0xff]  ;;  %v7424_v5 = vld [vmem:[#allocation74_spill] sm:$0xff]  ;;  %v1716_v16 = vadd.f32 %v1708_v18, %v1689_v40  ;;  %v750_v31 = vadd.f32 %v742_v3, %v725_v27  ;;  %v794_v45 = vmul.f32 %v5144_v44, %v7426_v63 }
 0x359   : > { %v769_v42 = vmul.f32 %v5130_v17, %v7422_v4  ;;  %v2340_v53 = vadd.f32 %v7423_v7, %v2313_v55  ;;  %v5155_v10 = vmul.f32 %v4859_v47, %v7424_v5  ;;  %v5158_v8 = vld [vmem:[#allocation2 + $0x51] sm:$0xff]  ;;  %v7428_v7 = vld [vmem:[#allocation78_spill] sm:$0xff]  ;;  %v1270_v48 = vadd.f32 %v1262_v49, %v1245_v43  ;;  %v7432_v27 = vld [vmem:[#allocation25_spill] sm:$0xff] }
 0x35a   : > { %v7425_v59 = vld [vmem:[#allocation75_spill] sm:$0xff]  ;;  %v5169_v47 = vmul.f32 %v4880_v22, %v7428_v7  ;;  %v7429_v33 = vld [vmem:[#allocation44_spill] sm:$0xff]  ;;  %v5172_v5 = vld [vmem:[#allocation2 + $0x1a1] sm:$0xff]  ;;  %v1741_v18 = vadd.f32 %v5074_v14, %v1716_v16  ;;  %v821_v63 = vmul.f32 %v5158_v8, %v7432_v27 }
 0x35b   : > { %v5162_v28 = vmul.f32 %v4861_v52, %v7425_v59  ;;  %v7427_v4 = vld [vmem:[#allocation111_spill] sm:$0xff]  ;;  %v1314_v56 = vmul.f32 %v7429_v33, %v1305_v57  ;;  %v7431_v52 = vld [vmem:[#allocation76_spill] sm:$0xff]  ;;  %v777_v3 = vadd.f32 %v769_v42, %v750_v31  ;;  %v1297_v49 = vadd.f32 %v1289_v21, %v1270_v48  ;;  %v7435_v57 = vld [vmem:[#allocation45_spill] sm:$0xff] }
 0x35c   : > { %v2365_v55 = vadd.f32 %v7427_v4, %v2340_v53  ;;  %v7430_v40 = vld [vmem:[#allocation79_spill] sm:$0xff]  ;;  %v7433_v4 = vld [vmem:[#allocation112_spill] sm:$0xff]  ;;  %v1342_v43 = vmul.f32 %v7435_v57, %v5066_v41  ;;  %v1768_v14 = vadd.f32 %v5078_v12, %v1741_v18  ;;  %v7440_v41 = vld [vmem:[#allocation46_spill] sm:$0xff] }
 0x35d   : > { %v5177_v59 = vmul.f32 %v7431_v52, %v7430_v40  ;;  %v7434_v36 = vld [vmem:[#allocation83_spill] sm:$0xff]  ;;  %v7436_v16 = vld [vmem:[#allocation84_spill] sm:$0xff]  ;;  %v802_v31 = vadd.f32 %v794_v45, %v777_v3  ;;  %v7437_v52 = vld [vmem:[#allocation26_spill] sm:$0xff]  ;;  %v1322_v48 = vadd.f32 %v1314_v56, %v1297_v49 }
 0x35e   : > { %v2392_v53 = vadd.f32 %v7433_v4, %v2365_v55  ;;  %v5184_v22 = vmul.f32 %v4920_v0, %v7434_v36  ;;  %v5188_v7 = vld [vmem:[#allocation2 + $0x52] sm:$0xff]  ;;  %v5193_v42 = vmul.f32 %v4922_v30, %v7436_v16  ;;  %v846_v55 = vmul.f32 %v5172_v5, %v7437_v52  ;;  %v7438_v4 = vld [vmem:[#allocation113_spill] sm:$0xff] }
 0x35f   : > { %v7439_v0 = vld [vmem:[#allocation87_spill] sm:$0xff]  ;;  %v1368_v36 = vmul.f32 %v7440_v41, %v5068_v1  ;;  %v5204_v27 = vld [vmem:[#allocation2 + $0x1a2] sm:$0xff]  ;;  %v1793_v12 = vadd.f32 %v5085_v13, %v1768_v14  ;;  %v7441_v30 = vld [vmem:[#allocation88_spill] sm:$0xff]  ;;  %v829_v18 = vadd.f32 %v821_v63, %v802_v31  ;;  %v1350_v49 = vadd.f32 %v1342_v43, %v1322_v48 }
 0x360   : > { %v2417_v40 = vadd.f32 %v7438_v4, %v2392_v53  ;;  %v5200_v21 = vmul.f32 %v4941_v32, %v7439_v0  ;;  %v5209_v45 = vmul.f32 %v4943_v11, %v7441_v30  ;;  %v7442_v3 = vld [vmem:[#allocation27_spill] sm:$0xff]  ;;  %v7443_v4 = vld [vmem:[#allocation114_spill] sm:$0xff]  ;;  %v7444_v32 = vld [vmem:[#allocation89_spill] sm:$0xff]  ;;  %v1395_v1 = vmul.f32 %v7353_v15, %v5080_v62 }
 0x361   : > { %v873_v53 = vmul.f32 %v5188_v7, %v7442_v3  ;;  %v5216_v56 = vmul.f32 %v4962_v39, %v7444_v32  ;;  %v5220_v0 = vld [vmem:[#allocation2 + $0x53] sm:$0xff]  ;;  %v1820_v13 = vadd.f32 %v5092_v24, %v1793_v12  ;;  %v7446_v14 = vld [vmem:[#allocation82_spill] sm:$0xff]  ;;  %v854_v31 = vadd.f32 %v846_v55, %v829_v18 }
 0x362   : > { %v2445_v16 = vadd.f32 %v7443_v4, %v2417_v40  ;;  %v7445_v11 = vld [vmem:[#allocation92_spill] sm:$0xff]  ;;  %v7449_v39 = vld [vmem:[#allocation95_spill] sm:$0xff]  ;;  %v1376_v48 = vadd.f32 %v1368_v36, %v1350_v49  ;;  %v5236_v52 = vld [vmem:[#allocation2 + $0x1a3] sm:$0xff] }
 0x363   : > { %v5225_v63 = vmul.f32 %v7446_v14, %v7445_v11  ;;  %v7447_v30 = vld [vmem:[#allocation28_spill] sm:$0xff]  ;;  %v5232_v43 = vmul.f32 %v4996_v29, %v7449_v39  ;;  %v1845_v24 = vadd.f32 %v5106_v46, %v1820_v13  ;;  %v7451_v12 = vld [vmem:[#allocation99_spill] sm:$0xff]  ;;  %v7452_v14 = vld [vmem:[#allocation85_spill] sm:$0xff]  ;;  %v881_v18 = vadd.f32 %v873_v53, %v854_v31 }
 0x364   : > { %v898_v40 = vmul.f32 %v5204_v27, %v7447_v30  ;;  %v7448_v4 = vld [vmem:[#allocation116_spill] sm:$0xff]  ;;  %v5241_v55 = vmul.f32 %v7452_v14, %v7451_v12  ;;  %v7453_v11 = vld [vmem:[#allocation29_spill] sm:$0xff]  ;;  %v7455_v29 = vld [vmem:[#allocation102_spill] sm:$0xff]  ;;  %v1403_v49 = vadd.f32 %v1395_v1, %v1376_v48 }
 0x365   : > { %v2471_v3 = vadd.f32 %v7448_v4, %v2445_v16  ;;  %v7450_v62 = vld [vmem:[#allocation48_spill] sm:$0xff]  ;;  %v925_v16 = vmul.f32 %v5220_v0, %v7453_v11  ;;  %v7454_v4 = vld [vmem:[#allocation118_spill] sm:$0xff]  ;;  %v7456_v39 = vld [vmem:[#allocation157_spill] sm:$0xff]  ;;  %v1872_v46 = vadd.f32 %v5113_v2, %v1845_v24 }
 0x366   : > { %v1420_v32 = vmul.f32 %v7450_v62, %v5088_v23  ;;  %v5248_v36 = vmul.f32 %v7456_v39, %v7455_v29  ;;  %v7457_v23 = vld [vmem:[#allocation49_spill] sm:$0xff]  ;;  %v7458_v13 = vld [vmem:[#allocation104_spill] sm:$0xff]  ;;  %v7459_v15 = vld [vmem:[#allocation86_spill] sm:$0xff]  ;;  %v906_v31 = vadd.f32 %v898_v40, %v881_v18 }
 0x367   : > { %v2498_v30 = vadd.f32 %v7454_v4, %v2471_v3  ;;  %v1447_v62 = vmul.f32 %v7457_v23, %v5100_v34  ;;  %v5255_v14 = vmul.f32 %v7459_v15, %v7458_v13  ;;  %v5257_v53 = vld [vmem:[#allocation2 + $0xad] sm:$0xff]  ;;  %v7462_v4 = vld [vmem:[#allocation121_spill] sm:$0xff]  ;;  %v1897_v13 = vadd.f32 %v5120_v60, %v1872_v46 }
 0x368   : > { %7460 = vst [vmem:[#allocation91_spill] sm:$0xff] %v5257_v53  ;;  %v7461_v12 = vld [vmem:[#allocation30_spill] sm:$0xff]  ;;  %v7463_v39 = vld [vmem:[#allocation105_spill] sm:$0xff]  ;;  %v1428_v34 = vadd.f32 %v1420_v32, %v1403_v49  ;;  %v7470_v32 = vld [vmem:[#allocation107_spill] sm:$0xff] }
 0x369   : > { %v950_v3 = vmul.f32 %v5236_v52, %v7461_v12  ;;  %v2523_v11 = vadd.f32 %v7462_v4, %v2498_v30  ;;  %v5264_v1 = vmul.f32 %v5045_v54, %v7463_v39  ;;  %v5266_v48 = vld [vmem:[#allocation2 + $0x1fd] sm:$0xff]  ;;  %v7465_v2 = vld [vmem:[#allocation50_spill] sm:$0xff]  ;;  %v933_v30 = vadd.f32 %v925_v16, %v906_v31  ;;  %v7468_v4 = vld [vmem:[#allocation31_spill] sm:$0xff] }
 0x36a   : > { %7464 = vst [vmem:[#allocation93_spill] sm:$0xff] %v5266_v48  ;;  %v1472_v24 = vmul.f32 %v7465_v2, %v5116_v61  ;;  %v5270_v15 = vld [vmem:[#allocation2 + $0x65] sm:$0xff]  ;;  %v5277_v29 = vld [vmem:[#allocation2 + $0xae] sm:$0xff]  ;;  %v5284_v49 = vmul.f32 %v7470_v32, %v5257_v53  ;;  %v1455_v2 = vadd.f32 %v1447_v62, %v1428_v34  ;;  %v7478_v32 = vld [vmem:[#allocation124_spill] sm:$0xff] }
 0x36b   : > { %v7466_v40 = vld [vmem:[#allocation106_spill] sm:$0xff]  ;;  %7467 = vst [vmem:[#allocation96_spill] sm:$0xff] %v5277_v29  ;;  %v978_v54 = vmul.f32 %v5270_v15, %v7468_v4  ;;  %v7469_v39 = vld [vmem:[#allocation123_spill] sm:$0xff]  ;;  %v5286_v61 = vld [vmem:[#allocation2 + $0x1fe] sm:$0xff] }
 0x36c   : > { %v5275_v18 = vmul.f32 %v5047_v58, %v7466_v40  ;;  %v2550_v12 = vadd.f32 %v7469_v39, %v2523_v11  ;;  %7471 = vst [vmem:[#allocation97_spill] sm:$0xff] %v5284_v49  ;;  %7472 = vst [vmem:[#allocation100_spill] sm:$0xff] %v5286_v61  ;;  %v7473_v60 = vld [vmem:[#allocation51_spill] sm:$0xff]  ;;  %v1924_v40 = vadd.f32 %v5127_v9, %v1897_v13  ;;  %v7474_v16 = vld [vmem:[#allocation110_spill] sm:$0xff] }
 0x36d   : > { %v1499_v46 = vmul.f32 %v7473_v60, %v5130_v17  ;;  %v5290_v58 = vld [vmem:[#allocation2 + $0x1b5] sm:$0xff]  ;;  %v5295_v31 = vmul.f32 %v7474_v16, %v5266_v48  ;;  %v958_v11 = vadd.f32 %v950_v3, %v933_v30  ;;  %v5306_v17 = vld [vmem:[#allocation2 + $0x1ff] sm:$0xff]  ;;  %v1480_v60 = vadd.f32 %v1472_v24, %v1455_v2 }
 0x36e   : > { %v5297_v4 = vld [vmem:[#allocation2 + $0xaf] sm:$0xff]  ;;  %v7477_v39 = vld [vmem:[#allocation32_spill] sm:$0xff]  ;;  %v2575_v49 = vadd.f32 %v7478_v32, %v2550_v12  ;;  %7481 = vst [vmem:[#allocation109_spill] sm:$0xff] %v5306_v17  ;;  %v5310_v48 = vld [vmem:[#allocation2 + $0x66] sm:$0xff]  ;;  %v1949_v16 = vadd.f32 %v5134_v50, %v1924_v40  ;;  %v1551_v50 = vmul.f32 %v7389_v51, %v5158_v8 }
 0x36f   : > { %7475 = vst [vmem:[#allocation103_spill] sm:$0xff] %v5295_v31  ;;  %7476 = vst [vmem:[#allocation67_spill] sm:$0xff] %v5297_v4  ;;  %v1004_v53 = vmul.f32 %v5290_v58, %v7477_v39  ;;  %v7479_v62 = vld [vmem:[#allocation115_spill] sm:$0xff]  ;;  %v7482_v9 = vld [vmem:[#allocation52_spill] sm:$0xff]  ;;  %v986_v12 = vadd.f32 %v978_v54, %v958_v11  ;;  %v1507_v31 = vadd.f32 %v1499_v46, %v1480_v60 }
 0x370   : > { %v5304_v34 = vmul.f32 %v7479_v62, %v5277_v29  ;;  %v1524_v13 = vmul.f32 %v7482_v9, %v5144_v44  ;;  %v7483_v3 = vld [vmem:[#allocation117_spill] sm:$0xff]  ;;  %v5317_v39 = vld [vmem:[#allocation2 + $0xb0] sm:$0xff]  ;;  %v7490_v54 = vld [vmem:[#allocation120_spill] sm:$0xff] }
 0x371   : > { %v5315_v30 = vmul.f32 %v7483_v3, %v5286_v61  ;;  %7485 = vst [vmem:[#allocation76_spill] sm:$0xff] %v5317_v39  ;;  %v7486_v32 = vld [vmem:[#allocation33_spill] sm:$0xff]  ;;  %v7487_v62 = vld [vmem:[#allocation127_spill] sm:$0xff]  ;;  %v1976_v61 = vadd.f32 %v5141_v25, %v1949_v16  ;;  %v5333_v11 = vmul.f32 %v7490_v54, %v5306_v17  ;;  %v7494_v60 = vld [vmem:[#allocation122_spill] sm:$0xff]  ;;  %v1576_v25 = vmul.f32 %v7391_v38, %v5172_v5 }
 0x372   : > { %7480 = vst [vmem:[#allocation108_spill] sm:$0xff] %v5304_v34  ;;  %v1031_v29 = vmul.f32 %v5310_v48, %v7486_v32  ;;  %v2602_v34 = vadd.f32 %v7487_v62, %v2575_v49  ;;  %v7488_v2 = vld [vmem:[#allocation119_spill] sm:$0xff]  ;;  %v2612_v44 = vld [vmem:[#allocation2 + $0x200] sm:$0xff]  ;;  %v1012_v32 = vadd.f32 %v1004_v53, %v986_v12  ;;  %v7492_v49 = vld [vmem:[#allocation34_spill] sm:$0xff]  ;;  %v5340_v46 = vmul.f32 %v7494_v60, %v5317_v39 }
 0x373   : > { %7484 = vst [vmem:[#allocation111_spill] sm:$0xff] %v5315_v30  ;;  %v5324_v24 = vmul.f32 %v7488_v2, %v5297_v4  ;;  %v5328_v40 = vld [vmem:[#allocation2 + $0x1b6] sm:$0xff]  ;;  %7491 = vst [vmem:[#allocation113_spill] sm:$0xff] %v5333_v11  ;;  %v7493_v4 = vld [vmem:[#allocation129_spill] sm:$0xff]  ;;  %v2001_v17 = vadd.f32 %v5148_v35, %v1976_v61 }
 0x374   : > { %v2639_v3 = vld [vmem:[#allocation2 + $0xb1] sm:$0xff]  ;;  %v1056_v62 = vmul.f32 %v5328_v40, %v7492_v49  ;;  %v2627_v2 = vadd.f32 %v7493_v4, %v2602_v34  ;;  %7495 = vst [vmem:[#allocation114_spill] sm:$0xff] %v5340_v46  ;;  %v2664_v8 = vld [vmem:[#allocation2 + $0x201] sm:$0xff]  ;;  %v1039_v49 = vadd.f32 %v1031_v29, %v1012_v32 }
 0x375   : > { %7489 = vst [vmem:[#allocation112_spill] sm:$0xff] %v5324_v24  ;;  %v1532_v24 = vadd.f32 %v1524_v13, %v1507_v31  ;;  %v5344_v16 = vld [vmem:[#allocation2 + $0x67] sm:$0xff]  ;;  %v2691_v12 = vld [vmem:[#allocation2 + $0xb2] sm:$0xff]  ;;  %v2028_v35 = vadd.f32 %v5155_v10, %v2001_v17 }
 0x376   : > { %v7496_v54 = vld [vmem:[#allocation125_spill] sm:$0xff]  ;;  %v7497_v11 = vld [vmem:[#allocation35_spill] sm:$0xff]  ;;  %v7498_v34 = vld [vmem:[#allocation130_spill] sm:$0xff]  ;;  %v1064_v32 = vadd.f32 %v1056_v62, %v1039_v49 }
 0x377   : > { %v5348_v53 = vmul.f32 %v7496_v54, %v2612_v44  ;;  %v1083_v4 = vmul.f32 %v5344_v16, %v7497_v11  ;;  %v2654_v39 = vadd.f32 %v7498_v34, %v2627_v2  ;;  %v7499_v60 = vld [vmem:[#allocation126_spill] sm:$0xff]  ;;  %v1559_v13 = vadd.f32 %v1551_v50, %v1532_v24  ;;  %v7500_v5 = vld [vmem:[#allocation55_spill] sm:$0xff]  ;;  %v7501_v61 = vld [vmem:[#allocation128_spill] sm:$0xff] }
 0x378   : > { %v5354_v46 = vmul.f32 %v7499_v60, %v2639_v3  ;;  %v2716_v31 = vld [vmem:[#allocation2 + $0x202] sm:$0xff]  ;;  %v1603_v30 = vmul.f32 %v7500_v5, %v5188_v7  ;;  %v5358_v38 = vld [vmem:[#allocation2 + $0x1b7] sm:$0xff]  ;;  %v5362_v44 = vmul.f32 %v7501_v61, %v2664_v8  ;;  %v1628_v7 = vmul.f32 %v7394_v19, %v5204_v27 }
 0x379   : > { %v2743_v29 = vld [vmem:[#allocation2 + $0xb3] sm:$0xff]  ;;  %v1108_v2 = vmul.f32 %v5358_v38, %v4183_v20  ;;  %v7503_v34 = vld [vmem:[#allocation133_spill] sm:$0xff]  ;;  %v1584_v50 = vadd.f32 %v1576_v25, %v1559_v13  ;;  %v5372_v11 = vld [vmem:[#allocation2 + $0x68] sm:$0xff]  ;;  %v2053_v10 = vadd.f32 %v5162_v28, %v2028_v35  ;;  %v1091_v62 = vadd.f32 %v1083_v4, %v1064_v32 }
 0x37a   : > { %7502 = vst [vmem:[#allocation82_spill] sm:$0xff] %v5362_v44  ;;  %v2679_v3 = vadd.f32 %v7503_v34, %v2654_v39  ;;  %v7504_v60 = vld [vmem:[#allocation131_spill] sm:$0xff]  ;;  %v2768_v24 = vld [vmem:[#allocation2 + $0x203] sm:$0xff]  ;;  %v7506_v17 = vld [vmem:[#allocation132_spill] sm:$0xff]  ;;  %v1135_v39 = vmul.f32 %v5372_v11, %v4186_v26 }
 0x37b   : > { %v5368_v54 = vmul.f32 %v7504_v60, %v2691_v12  ;;  %v5376_v8 = vmul.f32 %v7506_v17, %v2716_v31  ;;  %v2796_v49 = vld [vmem:[#allocation2 + $0xc5] sm:$0xff]  ;;  %v7508_v34 = vld [vmem:[#allocation135_spill] sm:$0xff]  ;;  %v1611_v13 = vadd.f32 %v1603_v30, %v1584_v50  ;;  %v2081_v28 = vadd.f32 %v5169_v47, %v2053_v10 }
 0x37c   : > { %v2706_v12 = vadd.f32 %v7508_v34, %v2679_v3  ;;  %v7509_v60 = vld [vmem:[#allocation134_spill] sm:$0xff]  ;;  %v2822_v25 = vld [vmem:[#allocation2 + $0x215] sm:$0xff]  ;;  %v7511_v27 = vld [vmem:[#allocation57_spill] sm:$0xff]  ;;  %v1116_v32 = vadd.f32 %v1108_v2, %v1091_v62 }
 0x37d   : > { %7505 = vst [vmem:[#allocation116_spill] sm:$0xff] %v5368_v54  ;;  %7507 = vst [vmem:[#allocation85_spill] sm:$0xff] %v5376_v8  ;;  %v5382_v61 = vmul.f32 %v7509_v60, %v2743_v29  ;;  %v1655_v20 = vmul.f32 %v7511_v27, %v5220_v0  ;;  %v5386_v54 = vld [vmem:[#allocation2 + $0x1b8] sm:$0xff]  ;;  %v7512_v31 = vld [vmem:[#allocation71_spill] sm:$0xff]  ;;  %v1636_v50 = vadd.f32 %v1628_v7, %v1611_v13 }
 0x37e   : > { %v5390_v35 = vmul.f32 %v7512_v31, %v2768_v24  ;;  %v2849_v4 = vld [vmem:[#allocation2 + $0xc6] sm:$0xff]  ;;  %v7515_v34 = vld [vmem:[#allocation136_spill] sm:$0xff]  ;;  %v2107_v47 = vadd.f32 %v5177_v59, %v2081_v28  ;;  %v7519_v24 = vld [vmem:[#allocation139_spill] sm:$0xff]  ;;  %v1143_v62 = vadd.f32 %v1135_v39, %v1116_v32 }
 0x37f   : > { %7510 = vst [vmem:[#allocation118_spill] sm:$0xff] %v5382_v61  ;;  %v7514_v17 = vld [vmem:[#allocation38_spill] sm:$0xff]  ;;  %v2731_v29 = vadd.f32 %v7515_v34, %v2706_v12  ;;  %v7516_v60 = vld [vmem:[#allocation72_spill] sm:$0xff]  ;;  %v5404_v10 = vmul.f32 %v7519_v24, %v2822_v25  ;;  %v7521_v31 = vld [vmem:[#allocation39_spill] sm:$0xff]  ;;  %v1663_v13 = vadd.f32 %v1655_v20, %v1636_v50 }
 0x380   : > { %7513 = vst [vmem:[#allocation157_spill] sm:$0xff] %v5390_v35  ;;  %v1160_v3 = vmul.f32 %v5386_v54, %v7514_v17  ;;  %v5396_v61 = vmul.f32 %v7516_v60, %v2796_v49  ;;  %v2874_v30 = vld [vmem:[#allocation2 + $0x216] sm:$0xff]  ;;  %v7518_v0 = vld [vmem:[#allocation58_spill] sm:$0xff]  ;;  %v7522_v34 = vld [vmem:[#allocation137_spill] sm:$0xff]  ;;  %v2134_v59 = vadd.f32 %v5184_v22, %v2107_v47 }
 0x381   : > { %v1680_v26 = vmul.f32 %v7518_v0, %v5236_v52  ;;  %v5400_v8 = vld [vmem:[#allocation2 + $0x69] sm:$0xff]  ;;  %7520 = vst [vmem:[#allocation121_spill] sm:$0xff] %v5404_v10  ;;  %v2758_v49 = vadd.f32 %v7522_v34, %v2731_v29  ;;  %v7523_v60 = vld [vmem:[#allocation141_spill] sm:$0xff]  ;;  %v2926_v7 = vld [vmem:[#allocation2 + $0x217] sm:$0xff] }
 0x382   : > { %7517 = vst [vmem:[#allocation86_spill] sm:$0xff] %v5396_v61  ;;  %v2901_v2 = vld [vmem:[#allocation2 + $0xc7] sm:$0xff]  ;;  %v1187_v12 = vmul.f32 %v5400_v8, %v7521_v31  ;;  %v5410_v61 = vmul.f32 %v7523_v60, %v2849_v4  ;;  %v7525_v52 = vld [vmem:[#allocation59_spill] sm:$0xff]  ;;  %v5414_v17 = vld [vmem:[#allocation2 + $0x1b9] sm:$0xff]  ;;  %v1168_v32 = vadd.f32 %v1160_v3, %v1143_v62  ;;  %v2159_v22 = vadd.f32 %v5193_v42, %v2134_v59 }
 0x383   : > { %v1707_v35 = vmul.f32 %v7525_v52, %v5270_v15  ;;  %v7526_v25 = vld [vmem:[#allocation142_spill] sm:$0xff]  ;;  %v7528_v24 = vld [vmem:[#allocation40_spill] sm:$0xff]  ;;  %v1688_v50 = vadd.f32 %v1680_v26, %v1663_v13 }
 0x384   : > { %7524 = vst [vmem:[#allocation123_spill] sm:$0xff] %v5410_v61  ;;  %v5418_v28 = vmul.f32 %v7526_v25, %v2874_v30  ;;  %v2953_v39 = vld [vmem:[#allocation2 + $0xc8] sm:$0xff]  ;;  %v1212_v29 = vmul.f32 %v5414_v17, %v7528_v24  ;;  %v7530_v60 = vld [vmem:[#allocation144_spill] sm:$0xff]  ;;  %v7533_v30 = vld [vmem:[#allocation77_spill] sm:$0xff]  ;;  %v1195_v62 = vadd.f32 %v1187_v12, %v1168_v32  ;;  %v2186_v42 = vadd.f32 %v5200_v21, %v2159_v22 }
 0x385   : > { %v7529_v34 = vld [vmem:[#allocation138_spill] sm:$0xff]  ;;  %v5424_v61 = vmul.f32 %v7530_v60, %v2901_v2  ;;  %v2978_v20 = vld [vmem:[#allocation2 + $0x218] sm:$0xff]  ;;  %v5432_v47 = vmul.f32 %v7533_v30, %v2926_v7  ;;  %v7535_v25 = vld [vmem:[#allocation41_spill] sm:$0xff]  ;;  %v1715_v13 = vadd.f32 %v1707_v35, %v1688_v50 }
 0x386   : > { %7527 = vst [vmem:[#allocation124_spill] sm:$0xff] %v5418_v28  ;;  %v2783_v4 = vadd.f32 %v7529_v34, %v2758_v49  ;;  %v7532_v10 = vld [vmem:[#allocation60_spill] sm:$0xff]  ;;  %v5428_v44 = vld [vmem:[#allocation2 + $0x6a] sm:$0xff]  ;;  %v7539_v28 = vld [vmem:[#allocation61_spill] sm:$0xff]  ;;  %v1220_v12 = vadd.f32 %v1212_v29, %v1195_v62  ;;  %v2211_v21 = vadd.f32 %v5209_v45, %v2186_v42 }
 0x387   : > { %7531 = vst [vmem:[#allocation127_spill] sm:$0xff] %v5424_v61  ;;  %v1732_v31 = vmul.f32 %v7532_v10, %v5290_v58  ;;  %7534 = vst [vmem:[#allocation129_spill] sm:$0xff] %v5432_v47  ;;  %v3005_v3 = vld [vmem:[#allocation2 + $0xc9] sm:$0xff]  ;;  %v1239_v49 = vmul.f32 %v5428_v44, %v7535_v25  ;;  %v7536_v34 = vld [vmem:[#allocation140_spill] sm:$0xff]  ;;  %v1759_v24 = vmul.f32 %v7539_v28, %v5310_v48 }
 0x388   : > { %v2811_v2 = vadd.f32 %v7536_v34, %v2783_v4  ;;  %v7537_v60 = vld [vmem:[#allocation80_spill] sm:$0xff]  ;;  %v7540_v7 = vld [vmem:[#allocation81_spill] sm:$0xff]  ;;  %v7542_v4 = vld [vmem:[#allocation143_spill] sm:$0xff]  ;;  %v2238_v45 = vadd.f32 %v5216_v56, %v2211_v21 }
 0x389   : > { %v5438_v61 = vmul.f32 %v7537_v60, %v2953_v39  ;;  %v3030_v26 = vld [vmem:[#allocation2 + $0x219] sm:$0xff]  ;;  %v5446_v59 = vmul.f32 %v7540_v7, %v2978_v20  ;;  %v7543_v39 = vld [vmem:[#allocation150_spill] sm:$0xff]  ;;  %v1740_v50 = vadd.f32 %v1732_v31, %v1715_v13  ;;  %v7546_v20 = vld [vmem:[#allocation151_spill] sm:$0xff]  ;;  %v1247_v29 = vadd.f32 %v1239_v49, %v1220_v12 }
 0x38a   : > { %v5442_v10 = vld [vmem:[#allocation2 + $0x1ba] sm:$0xff]  ;;  %v2837_v34 = vadd.f32 %v7542_v4, %v2811_v2  ;;  %v5452_v60 = vmul.f32 %v7543_v39, %v3005_v3  ;;  %v3057_v35 = vld [vmem:[#allocation2 + $0xca] sm:$0xff]  ;;  %v5460_v22 = vmul.f32 %v7546_v20, %v3030_v26  ;;  %v2263_v56 = vadd.f32 %v5225_v63, %v2238_v45 }
 0x38b   : > { %7538 = vst [vmem:[#allocation130_spill] sm:$0xff] %v5438_v61  ;;  %7541 = vst [vmem:[#allocation133_spill] sm:$0xff] %v5446_v59  ;;  %v1264_v32 = vmul.f32 %v5442_v10, %v7420_v6  ;;  %v7545_v30 = vld [vmem:[#allocation62_spill] sm:$0xff]  ;;  %v7548_v2 = vld [vmem:[#allocation145_spill] sm:$0xff]  ;;  %v1767_v3 = vadd.f32 %v1759_v24, %v1740_v50 }
 0x38c   : > { %7544 = vst [vmem:[#allocation135_spill] sm:$0xff] %v5452_v60  ;;  %v1784_v61 = vmul.f32 %v7545_v30, %v5328_v40  ;;  %v5456_v47 = vld [vmem:[#allocation2 + $0x6b] sm:$0xff]  ;;  %7547 = vst [vmem:[#allocation136_spill] sm:$0xff] %v5460_v22  ;;  %v2864_v4 = vadd.f32 %v7548_v2, %v2837_v34  ;;  %v7550_v13 = vld [vmem:[#allocation64_spill] sm:$0xff]  ;;  %v2290_v63 = vadd.f32 %v5232_v43, %v2263_v56 }
 0x38d   : > { %v1291_v62 = vmul.f32 %v5456_v47, %v7330_v37  ;;  %v7549_v39 = vld [vmem:[#allocation63_spill] sm:$0xff]  ;;  %v1836_v7 = vmul.f32 %v7550_v13, %v5358_v38  ;;  %v5469_v60 = vld [vmem:[#allocation2 + $0x1bb] sm:$0xff]  ;;  %v1272_v49 = vadd.f32 %v1264_v32, %v1247_v29  ;;  %v7553_v20 = vld [vmem:[#allocation146_spill] sm:$0xff] }
 0x38e   : > { %v1811_v31 = vmul.f32 %v7549_v39, %v5344_v16  ;;  %v7551_v42 = vld [vmem:[#allocation153_spill] sm:$0xff]  ;;  %v1316_v12 = vmul.f32 %v5469_v60, %v7429_v33  ;;  %v2889_v34 = vadd.f32 %v7553_v20, %v2864_v4  ;;  %v1792_v24 = vadd.f32 %v1784_v61, %v1767_v3  ;;  %v7555_v22 = vld [vmem:[#allocation66_spill] sm:$0xff]  ;;  %v7559_v33 = vld [vmem:[#allocation19_spill] sm:$0xff] }
 0x38f   : > { %v5473_v26 = vmul.f32 %v7551_v42, %v3057_v35  ;;  %v7554_v50 = vld [vmem:[#allocation65_spill] sm:$0xff]  ;;  %v1888_v59 = vmul.f32 %v7555_v22, %v5386_v54  ;;  %v1299_v21 = vadd.f32 %v1291_v62, %v1272_v49  ;;  %v7557_v42 = vld [vmem:[#allocation147_spill] sm:$0xff]  ;;  %v7558_v3 = vld [vmem:[#allocation18_spill] sm:$0xff]  ;;  %v666_v6 = vmul.f32 %v5310_v48, %v7559_v33 }
 0x390   : > { %v1863_v2 = vmul.f32 %v7554_v50, %v5372_v11  ;;  %v5482_v37 = vld [vmem:[#allocation2 + $0x7d] sm:$0xff]  ;;  %v2916_v20 = vadd.f32 %v7557_v42, %v2889_v34  ;;  %v1819_v61 = vadd.f32 %v1811_v31, %v1792_v24  ;;  %v5490_v4 = vld [vmem:[#allocation2 + $0x1cd] sm:$0xff]  ;;  %v2315_v48 = vadd.f32 %v5241_v55, %v2290_v63 }
 0x391   : > { %7552 = vst [vmem:[#allocation137_spill] sm:$0xff] %v5473_v26  ;;  %v1344_v32 = vmul.f32 %v5482_v37, %v7435_v57  ;;  %v7556_v35 = vld [vmem:[#allocation17_spill] sm:$0xff]  ;;  %v639_v26 = vmul.f32 %v5290_v58, %v7558_v3  ;;  %v7560_v62 = vld [vmem:[#allocation68_spill] sm:$0xff]  ;;  %v1324_v49 = vadd.f32 %v1316_v12, %v1299_v21  ;;  %v7564_v12 = vld [vmem:[#allocation47_spill] sm:$0xff] }
 0x392   : > { %v613_v29 = vmul.f32 %v5270_v15, %v7556_v35  ;;  %v1915_v45 = vmul.f32 %v7560_v62, %v5400_v8  ;;  %v1370_v15 = vmul.f32 %v5490_v4, %v7440_v41  ;;  %v7561_v35 = vld [vmem:[#allocation148_spill] sm:$0xff]  ;;  %v1844_v34 = vadd.f32 %v1836_v7, %v1819_v61  ;;  %v7563_v43 = vld [vmem:[#allocation69_spill] sm:$0xff] }
 0x393   : > { %v2941_v42 = vadd.f32 %v7561_v35, %v2916_v20  ;;  %v3082_v31 = vld [vmem:[#allocation2 + $0x21a] sm:$0xff]  ;;  %v1940_v56 = vmul.f32 %v7563_v43, %v5414_v17  ;;  %v1352_v33 = vadd.f32 %v1344_v32, %v1324_v49  ;;  %v5512_v20 = vld [vmem:[#allocation2 + $0x1ce] sm:$0xff] }
 0x394   : > { %v5502_v24 = vld [vmem:[#allocation2 + $0x7e] sm:$0xff]  ;;  %v647_v57 = vadd.f32 %v639_v26, %v613_v29  ;;  %v1871_v35 = vadd.f32 %v1863_v2, %v1844_v34  ;;  %v7567_v29 = vld [vmem:[#allocation154_spill] sm:$0xff] }
 0x395   : > { %v7562_v58 = vld [vmem:[#allocation20_spill] sm:$0xff]  ;;  %v1397_v21 = vmul.f32 %v5502_v24, %v7564_v12  ;;  %v7565_v41 = vld [vmem:[#allocation149_spill] sm:$0xff]  ;;  %v5518_v55 = vmul.f32 %v7567_v29, %v3082_v31  ;;  %v1378_v63 = vadd.f32 %v1370_v15, %v1352_v33  ;;  %v7573_v15 = vld [vmem:[#allocation155_spill] sm:$0xff] }
 0x396   : > { %v691_v3 = vmul.f32 %v5328_v40, %v7562_v58  ;;  %v2968_v25 = vadd.f32 %v7565_v41, %v2941_v42  ;;  %v674_v7 = vadd.f32 %v666_v6, %v647_v57  ;;  %v7566_v61 = vld [vmem:[#allocation21_spill] sm:$0xff]  ;;  %v2342_v40 = vadd.f32 %v5248_v36, %v2315_v48  ;;  %v7569_v58 = vld [vmem:[#allocation48_spill] sm:$0xff]  ;;  %v7571_v42 = vld [vmem:[#allocation22_spill] sm:$0xff] }
 0x397   : > { %v718_v26 = vmul.f32 %v5344_v16, %v7566_v61  ;;  %7568 = vst [vmem:[#allocation138_spill] sm:$0xff] %v5518_v55  ;;  %v1422_v32 = vmul.f32 %v5512_v20, %v7569_v58  ;;  %v7570_v49 = vld [vmem:[#allocation152_spill] sm:$0xff]  ;;  %v1896_v43 = vadd.f32 %v1888_v59, %v1871_v35  ;;  %v743_v6 = vmul.f32 %v5358_v38, %v7571_v42  ;;  %v7572_v36 = vld [vmem:[#allocation70_spill] sm:$0xff]  ;;  %v7574_v35 = vld [vmem:[#allocation23_spill] sm:$0xff] }
 0x398   : > { %v2993_v12 = vadd.f32 %v7570_v49, %v2968_v25  ;;  %v5523_v41 = vld [vmem:[#allocation2 + $0x7f] sm:$0xff]  ;;  %v699_v2 = vadd.f32 %v691_v3, %v674_v7  ;;  %v2367_v57 = vadd.f32 %v5255_v14, %v2342_v40  ;;  %v1967_v16 = vmul.f32 %v7572_v36, %v5428_v44  ;;  %v5533_v25 = vld [vmem:[#allocation2 + $0x1cf] sm:$0xff] }
 0x399   : > { %v1405_v31 = vadd.f32 %v1397_v21, %v1378_v63  ;;  %v1449_v33 = vmul.f32 %v5523_v41, %v7457_v23  ;;  %v1923_v48 = vadd.f32 %v1915_v45, %v1896_v43  ;;  %v770_v3 = vmul.f32 %v5372_v11, %v7574_v35  ;;  %v7575_v14 = vld [vmem:[#allocation73_spill] sm:$0xff]  ;;  %v7576_v49 = vld [vmem:[#allocation50_spill] sm:$0xff]  ;;  %v7577_v63 = vld [vmem:[#allocation156_spill] sm:$0xff] }
 0x39a   : > { %v3020_v34 = vadd.f32 %v7573_v15, %v2993_v12  ;;  %v726_v59 = vadd.f32 %v718_v26, %v699_v2  ;;  %v2394_v38 = vadd.f32 %v5264_v1, %v2367_v57  ;;  %v1992_v7 = vmul.f32 %v7575_v14, %v5442_v10  ;;  %v5543_v12 = vld [vmem:[#allocation2 + $0x80] sm:$0xff]  ;;  %v7578_v43 = vld [vmem:[#allocation24_spill] sm:$0xff]  ;;  %v7579_v1 = vld [vmem:[#allocation74_spill] sm:$0xff] }
 0x39b   : > { %v1430_v40 = vadd.f32 %v1422_v32, %v1405_v31  ;;  %v1474_v21 = vmul.f32 %v5533_v25, %v7576_v49  ;;  %v1948_v55 = vadd.f32 %v1940_v56, %v1923_v48  ;;  %v795_v26 = vmul.f32 %v5386_v54, %v7578_v43  ;;  %v7580_v15 = vld [vmem:[#allocation51_spill] sm:$0xff]  ;;  %v7581_v31 = vld [vmem:[#allocation94_spill] sm:$0xff]  ;;  %v7582_v48 = vld [vmem:[#allocation25_spill] sm:$0xff] }
 0x39c   : > { %v3045_v29 = vadd.f32 %v7577_v63, %v3020_v34  ;;  %v751_v45 = vadd.f32 %v743_v6, %v726_v59  ;;  %v2419_v11 = vadd.f32 %v5275_v18, %v2394_v38  ;;  %v2019_v2 = vmul.f32 %v7579_v1, %v5456_v47  ;;  %v5553_v34 = vld [vmem:[#allocation2 + $0x1d0] sm:$0xff]  ;;  %v7583_v59 = vld [vmem:[#allocation97_spill] sm:$0xff] }
 0x39d   : > { %v1457_v57 = vadd.f32 %v1449_v33, %v1430_v40  ;;  %v1501_v32 = vmul.f32 %v5543_v12, %v7580_v15  ;;  %v1975_v42 = vadd.f32 %v1967_v16, %v1948_v55  ;;  %v822_v6 = vmul.f32 %v5400_v8, %v7582_v48  ;;  %v7584_v18 = vld [vmem:[#allocation75_spill] sm:$0xff]  ;;  %v7585_v40 = vld [vmem:[#allocation158_spill] sm:$0xff] }
 0x39e   : > { %v3072_v35 = vadd.f32 %v7581_v31, %v3045_v29  ;;  %v778_v56 = vadd.f32 %v770_v3, %v751_v45  ;;  %v2447_v54 = vadd.f32 %v7583_v59, %v2419_v11  ;;  %v2044_v38 = vmul.f32 %v7584_v18, %v5469_v60  ;;  %v5563_v29 = vld [vmem:[#allocation2 + $0x81] sm:$0xff]  ;;  %v7587_v45 = vld [vmem:[#allocation103_spill] sm:$0xff] }
 0x39f   : > { %v1482_v63 = vadd.f32 %v1474_v21, %v1457_v57  ;;  %v1526_v33 = vmul.f32 %v5553_v34, %v7482_v9  ;;  %v2000_v15 = vadd.f32 %v1992_v7, %v1975_v42  ;;  %v7586_v16 = vld [vmem:[#allocation26_spill] sm:$0xff]  ;;  %v1553_v21 = vmul.f32 %v5563_v29, %v7389_v51  ;;  %v7590_v7 = vld [vmem:[#allocation27_spill] sm:$0xff] }
 0x3a0   : > { %v3097_v43 = vadd.f32 %v7585_v40, %v3072_v35  ;;  %v803_v55 = vadd.f32 %v795_v26, %v778_v56  ;;  %v847_v3 = vmul.f32 %v5414_v17, %v7586_v16  ;;  %v2473_v8 = vadd.f32 %v7587_v45, %v2447_v54  ;;  %v7588_v11 = vld [vmem:[#allocation78_spill] sm:$0xff]  ;;  %v5573_v35 = vld [vmem:[#allocation2 + $0x1d1] sm:$0xff] }
 0x3a1   : > { %v2072_v31 = vmul.f32 %v7588_v11, %v5482_v37  ;;  %v1509_v59 = vadd.f32 %v1501_v32, %v1482_v63  ;;  %v7589_v57 = vld [vmem:[#allocation90_spill] sm:$0xff]  ;;  %v2027_v9 = vadd.f32 %v2019_v2, %v2000_v15  ;;  %v874_v26 = vmul.f32 %v5428_v44, %v7590_v7  ;;  %v7591_v56 = vld [vmem:[#allocation108_spill] sm:$0xff]  ;;  %v7592_v54 = vld [vmem:[#allocation79_spill] sm:$0xff] }
 0x3a2   : > { %v3124_v48 = vadd.f32 %v7589_v57, %v3097_v43  ;;  %v830_v42 = vadd.f32 %v822_v6, %v803_v55  ;;  %v2500_v17 = vadd.f32 %v7591_v56, %v2473_v8  ;;  %v2098_v40 = vmul.f32 %v7592_v54, %v5490_v4  ;;  %v7593_v16 = vld [vmem:[#allocation54_spill] sm:$0xff]  ;;  %v7594_v63 = vld [vmem:[#allocation101_spill] sm:$0xff]  ;;  %v7595_v15 = vld [vmem:[#allocation28_spill] sm:$0xff] }
 0x3a3   : > { %v1534_v45 = vadd.f32 %v1526_v33, %v1509_v59  ;;  %v1578_v32 = vmul.f32 %v5573_v35, %v7593_v16  ;;  %v2052_v49 = vadd.f32 %v2044_v38, %v2027_v9  ;;  %v5583_v43 = vld [vmem:[#allocation2 + $0x82] sm:$0xff]  ;;  %v899_v6 = vmul.f32 %v5442_v10, %v7595_v15  ;;  %v7596_v55 = vld [vmem:[#allocation111_spill] sm:$0xff] }
 0x3a4   : > { %v3149_v51 = vadd.f32 %v7594_v63, %v3124_v48  ;;  %v855_v2 = vadd.f32 %v847_v3, %v830_v42  ;;  %v2525_v44 = vadd.f32 %v7596_v55, %v2500_v17  ;;  %v7597_v8 = vld [vmem:[#allocation83_spill] sm:$0xff]  ;;  %v1605_v33 = vmul.f32 %v5583_v43, %v7500_v5  ;;  %v7598_v38 = vld [vmem:[#allocation29_spill] sm:$0xff]  ;;  %v7599_v42 = vld [vmem:[#allocation112_spill] sm:$0xff] }
 0x3a5   : > { %v2125_v57 = vmul.f32 %v7597_v8, %v5502_v24  ;;  %v1561_v56 = vadd.f32 %v1553_v21, %v1534_v45  ;;  %v3109_v7 = vld [vmem:[#allocation2 + $0xcb] sm:$0xff]  ;;  %v2080_v16 = vadd.f32 %v2072_v31, %v2052_v49  ;;  %v926_v3 = vmul.f32 %v5456_v47, %v7598_v38  ;;  %v7600_v17 = vld [vmem:[#allocation84_spill] sm:$0xff]  ;;  %v5601_v15 = vld [vmem:[#allocation2 + $0x83] sm:$0xff] }
 0x3a6   : > { %v3460_v59 = vmul.f32 -1.442695, %v3149_v51  ;;  %v5592_v48 = vld [vmem:[#allocation2 + $0x1d2] sm:$0xff]  ;;  %v882_v9 = vadd.f32 %v874_v26, %v855_v2  ;;  %v2552_v10 = vadd.f32 %v7599_v42, %v2525_v44  ;;  %v2150_v63 = vmul.f32 %v7600_v17, %v5512_v20  ;;  %v3134_v45 = vld [vmem:[#allocation2 + $0x21b] sm:$0xff]  ;;  %v7601_v31 = vld [vmem:[#allocation30_spill] sm:$0xff] }
 0x3a7   : > { %v1586_v55 = vadd.f32 %v1578_v32, %v1561_v56  ;;  %v1630_v21 = vmul.f32 %v5592_v48, %v7394_v19  ;;  %v2106_v51 = vadd.f32 %v2098_v40, %v2080_v16  ;;  %v951_v26 = vmul.f32 %v5469_v60, %v7601_v31  ;;  %v7602_v2 = vld [vmem:[#allocation113_spill] sm:$0xff]  ;;  %v7603_v38 = vld [vmem:[#allocation159_spill] sm:$0xff]  ;;  %v7606_v60 = vld [vmem:[#allocation114_spill] sm:$0xff] }
 0x3a8   : > { %3558 = vpow2.f32 %v3460_v59  ;;  %v907_v49 = vadd.f32 %v899_v6, %v882_v9  ;;  %v2577_v47 = vadd.f32 %v7602_v2, %v2552_v10  ;;  %v5607_v44 = vmul.f32 %v7603_v38, %v3109_v7  ;;  %v7604_v59 = vld [vmem:[#allocation87_spill] sm:$0xff]  ;;  %v7607_v10 = vld [vmem:[#allocation98_spill] sm:$0xff] }
 0x3a9   : > { %v1613_v42 = vadd.f32 %v1605_v33, %v1586_v55  ;;  %v1657_v32 = vmul.f32 %v5601_v15, %v7511_v27  ;;  %v2133_v56 = vadd.f32 %v2125_v57, %v2106_v51  ;;  %v2177_v19 = vmul.f32 %v7604_v59, %v5523_v41  ;;  %v5613_v16 = vld [vmem:[#allocation2 + $0x1d3] sm:$0xff] }
 0x3aa   : > { %v934_v40 = vadd.f32 %v926_v3, %v907_v49  ;;  %v7605_v6 = vld [vmem:[#allocation31_spill] sm:$0xff]  ;;  %v2604_v31 = vadd.f32 %v7606_v60, %v2577_v47  ;;  %v5619_v2 = vmul.f32 %v7607_v10, %v3134_v45  ;;  %v1682_v33 = vmul.f32 %v5613_v16, %v7518_v0  ;;  %v7608_v57 = vld [vmem:[#allocation88_spill] sm:$0xff]  ;;  %v7610_v47 = vld [vmem:[#allocation89_spill] sm:$0xff] }
 0x3ab   : > { %v979_v9 = vmul.f32 %v5482_v37, %v7605_v6  ;;  %v1638_v7 = vadd.f32 %v1630_v21, %v1613_v42  ;;  %v2158_v55 = vadd.f32 %v2150_v63, %v2133_v56  ;;  %v2202_v51 = vmul.f32 %v7608_v57, %v5533_v25  ;;  %v5625_v38 = vld [vmem:[#allocation2 + $0x95] sm:$0xff]  ;;  %v5636_v10 = vld [vmem:[#allocation2 + $0x1e5] sm:$0xff] }
 0x3ac   : > { %v959_v27 = vadd.f32 %v951_v26, %v934_v40  ;;  %v7609_v3 = vld [vmem:[#allocation32_spill] sm:$0xff]  ;;  %v2629_v37 = vadd.f32 %v5348_v53, %v2604_v31  ;;  %v2229_v45 = vmul.f32 %v7610_v47, %v5543_v12  ;;  %v1709_v21 = vmul.f32 %v5625_v38, %v7525_v52  ;;  %v7612_v26 = vld [vmem:[#allocation33_spill] sm:$0xff]  ;;  %v7613_v53 = vld [vmem:[#allocation95_spill] sm:$0xff] }
 0x3ad   : > { %v1005_v49 = vmul.f32 %v5490_v4, %v7609_v3  ;;  %v1665_v60 = vadd.f32 %v1657_v32, %v1638_v7  ;;  %v2185_v42 = vadd.f32 %v2177_v19, %v2158_v55  ;;  %v7611_v63 = vld [vmem:[#allocation92_spill] sm:$0xff]  ;;  %v1032_v40 = vmul.f32 %v5502_v24, %v7612_v26  ;;  %v7615_v19 = vld [vmem:[#allocation99_spill] sm:$0xff]  ;;  %v7617_v24 = vld [vmem:[#allocation82_spill] sm:$0xff] }
 0x3ae   : > { %v2254_v56 = vmul.f32 %v7611_v63, %v5553_v34  ;;  %v987_v6 = vadd.f32 %v979_v9, %v959_v27  ;;  %v2656_v4 = vadd.f32 %v5354_v46, %v2629_v37  ;;  %v2281_v31 = vmul.f32 %v7613_v53, %v5563_v29  ;;  %v7614_v32 = vld [vmem:[#allocation60_spill] sm:$0xff]  ;;  %v7616_v27 = vld [vmem:[#allocation34_spill] sm:$0xff] }
 0x3af   : > { %v1690_v3 = vadd.f32 %v1682_v33, %v1665_v60  ;;  %v1734_v7 = vmul.f32 %v5636_v10, %v7614_v32  ;;  %v2210_v52 = vadd.f32 %v2202_v51, %v2185_v42  ;;  %v2306_v55 = vmul.f32 %v7615_v19, %v5573_v35  ;;  %v5647_v0 = vld [vmem:[#allocation2 + $0x96] sm:$0xff]  ;;  %v7618_v46 = vld [vmem:[#allocation102_spill] sm:$0xff] }
 0x3b0   : > { %v1013_v5 = vadd.f32 %v1005_v49, %v987_v6  ;;  %v1057_v9 = vmul.f32 %v5512_v20, %v7616_v27  ;;  %v2681_v26 = vadd.f32 %v7617_v24, %v2656_v4  ;;  %v2333_v37 = vmul.f32 %v7618_v46, %v5583_v43  ;;  %v7619_v42 = vld [vmem:[#allocation104_spill] sm:$0xff]  ;;  %v5658_v19 = vld [vmem:[#allocation2 + $0x1e6] sm:$0xff]  ;;  %v7620_v49 = vld [vmem:[#allocation35_spill] sm:$0xff] }
 0x3b1   : > { %v1717_v53 = vadd.f32 %v1709_v21, %v1690_v3  ;;  %v1761_v33 = vmul.f32 %v5647_v0, %v7539_v28  ;;  %v2237_v51 = vadd.f32 %v2229_v45, %v2210_v52  ;;  %v2358_v32 = vmul.f32 %v7619_v42, %v5592_v48  ;;  %v7621_v4 = vld [vmem:[#allocation116_spill] sm:$0xff]  ;;  %v7622_v28 = vld [vmem:[#allocation105_spill] sm:$0xff] }
 0x3b2   : > { %v3559_v60 = vpop.eup %3558  ;;  %v1040_v6 = vadd.f32 %v1032_v40, %v1013_v5  ;;  %v1084_v20 = vmul.f32 %v5523_v41, %v7620_v49  ;;  %v2708_v24 = vadd.f32 %v7621_v4, %v2681_v26  ;;  %v1786_v3 = vmul.f32 %v5658_v19, %v7545_v30  ;;  %v5667_v45 = vld [vmem:[#allocation2 + $0x97] sm:$0xff]  ;;  %v7624_v40 = vld [vmem:[#allocation85_spill] sm:$0xff] }
 0x3b3   : > { %v3181_v27 = vadd.f32 1.0, %v3559_v60  ;;  %v1742_v63 = vadd.f32 %v1734_v7, %v1717_v53  ;;  %v2262_v21 = vadd.f32 %v2254_v56, %v2237_v51  ;;  %v2385_v52 = vmul.f32 %v7622_v28, %v5601_v15  ;;  %v7623_v46 = vld [vmem:[#allocation36_spill] sm:$0xff]  ;;  %v7625_v7 = vld [vmem:[#allocation106_spill] sm:$0xff]  ;;  %v7626_v49 = vld [vmem:[#allocation37_spill] sm:$0xff] }
 0x3b4   : > { %v1065_v42 = vadd.f32 %v1057_v9, %v1040_v6  ;;  %v1109_v5 = vmul.f32 %v5533_v25, %v7623_v46  ;;  %v2733_v41 = vadd.f32 %v7624_v40, %v2708_v24  ;;  %v1813_v26 = vmul.f32 %v5667_v45, %v7549_v39  ;;  %v5676_v51 = vld [vmem:[#allocation2 + $0x1e7] sm:$0xff]  ;;  %v7628_v25 = vld [vmem:[#allocation107_spill] sm:$0xff]  ;;  %v5687_v40 = vld [vmem:[#allocation2 + $0x98] sm:$0xff] }
 0x3b5   : > { %3560 = vrcp.f32 %v3181_v27  ;;  %v1769_v60 = vadd.f32 %v1761_v33, %v1742_v63  ;;  %v2289_v53 = vadd.f32 %v2281_v31, %v2262_v21  ;;  %v2410_v56 = vmul.f32 %v7625_v7, %v5613_v16  ;;  %v7627_v6 = vld [vmem:[#allocation118_spill] sm:$0xff] }
 0x3b6   : > { %v1092_v4 = vadd.f32 %v1084_v20, %v1065_v42  ;;  %v1136_v9 = vmul.f32 %v5543_v12, %v7626_v49  ;;  %v2760_v30 = vadd.f32 %v7627_v6, %v2733_v41  ;;  %v2438_v27 = vmul.f32 %v7628_v25, %v5625_v38  ;;  %v7629_v31 = vld [vmem:[#allocation110_spill] sm:$0xff]  ;;  %v7631_v12 = vld [vmem:[#allocation157_spill] sm:$0xff]  ;;  %v7632_v41 = vld [vmem:[#allocation115_spill] sm:$0xff] }
 0x3b7   : > { %v1794_v24 = vadd.f32 %v1786_v3, %v1769_v60  ;;  %v1838_v63 = vmul.f32 %v5676_v51, %v7550_v13  ;;  %v2314_v33 = vadd.f32 %v2306_v55, %v2289_v53  ;;  %v2464_v21 = vmul.f32 %v7629_v31, %v5636_v10  ;;  %v7630_v42 = vld [vmem:[#allocation38_spill] sm:$0xff]  ;;  %v7633_v55 = vld [vmem:[#allocation117_spill] sm:$0xff] }
 0x3b8   : > { %v1117_v46 = vadd.f32 %v1109_v5, %v1092_v4  ;;  %v1161_v20 = vmul.f32 %v5553_v34, %v7630_v42  ;;  %v2785_v49 = vadd.f32 %v7631_v12, %v2760_v30  ;;  %v2491_v6 = vmul.f32 %v7632_v41, %v5647_v0  ;;  %v5700_v13 = vld [vmem:[#allocation2 + $0x1e8] sm:$0xff]  ;;  %v7634_v4 = vld [vmem:[#allocation39_spill] sm:$0xff] }
 0x3b9   : > { %v1821_v39 = vadd.f32 %v1813_v26, %v1794_v24  ;;  %v1865_v3 = vmul.f32 %v5687_v40, %v7554_v50  ;;  %v2341_v60 = vadd.f32 %v2333_v37, %v2314_v33  ;;  %v5698_v53 = vmul.f32 %v7633_v55, %v5658_v19  ;;  %v7635_v42 = vld [vmem:[#allocation86_spill] sm:$0xff]  ;;  %v7636_v12 = vld [vmem:[#allocation119_spill] sm:$0xff]  ;;  %v7637_v33 = vld [vmem:[#allocation120_spill] sm:$0xff] }
 0x3ba   : > { %v1144_v5 = vadd.f32 %v1136_v9, %v1117_v46  ;;  %v1188_v34 = vmul.f32 %v5563_v29, %v7634_v4  ;;  %v2813_v30 = vadd.f32 %v7635_v42, %v2785_v49  ;;  %v5707_v41 = vmul.f32 %v7636_v12, %v5667_v45  ;;  %v5715_v55 = vld [vmem:[#allocation2 + $0x99] sm:$0xff]  ;;  %v7640_v4 = vld [vmem:[#allocation122_spill] sm:$0xff] }
 0x3bb   : > { %v1846_v26 = vadd.f32 %v1838_v63, %v1821_v39  ;;  %v1890_v37 = vmul.f32 %v5700_v13, %v7555_v22  ;;  %v2366_v24 = vadd.f32 %v2358_v32, %v2341_v60  ;;  %v5713_v50 = vmul.f32 %v7637_v33, %v5676_v51  ;;  %v7638_v9 = vld [vmem:[#allocation40_spill] sm:$0xff]  ;;  %v7639_v49 = vld [vmem:[#allocation121_spill] sm:$0xff]  ;;  %v5730_v33 = vld [vmem:[#allocation2 + $0x1e9] sm:$0xff] }
 0x3bc   : > { %v1169_v46 = vadd.f32 %v1161_v20, %v1144_v5  ;;  %v1213_v29 = vmul.f32 %v5573_v35, %v7638_v9  ;;  %v2839_v42 = vadd.f32 %v7639_v49, %v2813_v30  ;;  %v5722_v12 = vmul.f32 %v7640_v4, %v5687_v40  ;;  %v7641_v60 = vld [vmem:[#allocation125_spill] sm:$0xff]  ;;  %v7643_v49 = vld [vmem:[#allocation123_spill] sm:$0xff]  ;;  %v7644_v4 = vld [vmem:[#allocation126_spill] sm:$0xff] }
 0x3bd   : > { %v1873_v39 = vadd.f32 %v1865_v3, %v1846_v26  ;;  %v1917_v32 = vmul.f32 %v5715_v55, %v7560_v62  ;;  %v2393_v63 = vadd.f32 %v2385_v52, %v2366_v24  ;;  %v5728_v22 = vmul.f32 %v7641_v60, %v5700_v13  ;;  %v7642_v5 = vld [vmem:[#allocation41_spill] sm:$0xff]  ;;  %v7646_v60 = vld [vmem:[#allocation128_spill] sm:$0xff] }
 0x3be   : > { %v1196_v20 = vadd.f32 %v1188_v34, %v1169_v46  ;;  %v1240_v35 = vmul.f32 %v5583_v43, %v7642_v5  ;;  %v2866_v9 = vadd.f32 %v7643_v49, %v2839_v42  ;;  %v5737_v3 = vmul.f32 %v7644_v4, %v5715_v55  ;;  %v7645_v62 = vld [vmem:[#allocation69_spill] sm:$0xff]  ;;  %v7647_v46 = vld [vmem:[#allocation42_spill] sm:$0xff]  ;;  %v7648_v49 = vld [vmem:[#allocation124_spill] sm:$0xff] }
 0x3bf   : > { %v3561_v30 = vpop.eup %3560  ;;  %v1898_v26 = vadd.f32 %v1890_v37, %v1873_v39  ;;  %v1942_v52 = vmul.f32 %v5730_v33, %v7645_v62  ;;  %v2418_v24 = vadd.f32 %v2410_v56, %v2393_v63  ;;  %v5743_v31 = vmul.f32 %v7646_v60, %v5730_v33  ;;  %v5745_v34 = vld [vmem:[#allocation2 + $0x9a] sm:$0xff]  ;;  %v7649_v4 = vld [vmem:[#allocation131_spill] sm:$0xff] }
 0x3c0   : > { %3207 = vperm.xlu0 %3556, %v3561_v30   ;;  %v1221_v43 = vadd.f32 %v1213_v29, %v1196_v20  ;;  %v1265_v42 = vmul.f32 %v5592_v48, %v7647_v46  ;;  %v2891_v5 = vadd.f32 %v7648_v49, %v2866_v9  ;;  %v5752_v37 = vmul.f32 %v7649_v4, %v5745_v34  ;;  %v5754_v39 = vld [vmem:[#allocation2 + $0x1ea] sm:$0xff]  ;;  %v7650_v60 = vld [vmem:[#allocation132_spill] sm:$0xff] }
 0x3c1   : > { %v1925_v30 = vadd.f32 %v1917_v32, %v1898_v26  ;;  %v1969_v56 = vmul.f32 %v5745_v34, %v7572_v36  ;;  %v2446_v63 = vadd.f32 %v2438_v27, %v2418_v24  ;;  %v5760_v62 = vmul.f32 %v7650_v60, %v5754_v39  ;;  %v5762_v29 = vld [vmem:[#allocation2 + $0x9b] sm:$0xff]  ;;  %v7651_v20 = vld [vmem:[#allocation43_spill] sm:$0xff]  ;;  %v7653_v46 = vld [vmem:[#allocation134_spill] sm:$0xff] }
 0x3c2   : > { %v1248_v48 = vadd.f32 %v1240_v35, %v1221_v43  ;;  %v1292_v9 = vmul.f32 %v5601_v15, %v7651_v20  ;;  %v7652_v49 = vld [vmem:[#allocation127_spill] sm:$0xff]  ;;  %v5769_v25 = vmul.f32 %v7653_v46, %v5762_v29  ;;  %v1994_v27 = vmul.f32 %v5754_v39, %v7575_v14  ;;  %v7656_v43 = vld [vmem:[#allocation44_spill] sm:$0xff] }
 0x3c3   : > { %v2918_v4 = vadd.f32 %v7652_v49, %v2891_v5  ;;  %v5771_v32 = vld [vmem:[#allocation2 + $0x1eb] sm:$0xff]  ;;  %v1950_v26 = vadd.f32 %v1942_v52, %v1925_v30  ;;  %v2472_v24 = vadd.f32 %v2464_v21, %v2446_v63  ;;  %v1317_v15 = vmul.f32 %v5613_v16, %v7656_v43  ;;  %v7657_v5 = vld [vmem:[#allocation129_spill] sm:$0xff]  ;;  %v7659_v46 = vld [vmem:[#allocation72_spill] sm:$0xff] }
 0x3c4   : > { %v7654_v60 = vld [vmem:[#allocation71_spill] sm:$0xff]  ;;  %v1273_v35 = vadd.f32 %v1265_v42, %v1248_v48  ;;  %v2021_v52 = vmul.f32 %v5762_v29, %v7579_v1  ;;  %v7660_v21 = vld [vmem:[#allocation93_spill] sm:$0xff]  ;;  %v7663_v43 = vld [vmem:[#allocation130_spill] sm:$0xff] }
 0x3c5   : > { %v5777_v36 = vmul.f32 %v7654_v60, %v5771_v32  ;;  %v2943_v49 = vadd.f32 %v7657_v5, %v2918_v4  ;;  %v7658_v20 = vld [vmem:[#allocation91_spill] sm:$0xff]  ;;  %v1977_v28 = vadd.f32 %v1969_v56, %v1950_v26  ;;  %v2499_v30 = vadd.f32 %v2491_v6, %v2472_v24  ;;  %v7662_v42 = vld [vmem:[#allocation45_spill] sm:$0xff]  ;;  %v7664_v5 = vld [vmem:[#allocation96_spill] sm:$0xff] }
 0x3c6   : > { %v5784_v7 = vmul.f32 %v7659_v46, %v7658_v20  ;;  %v7661_v63 = vld [vmem:[#allocation139_spill] sm:$0xff]  ;;  %v1300_v60 = vadd.f32 %v1292_v9, %v1273_v35  ;;  %v1345_v48 = vmul.f32 %v5625_v38, %v7662_v42  ;;  %v605_v16 = vld [vmem:[#allocation2 + $0x7d] sm:$0xff]  ;;  %v2046_v26 = vmul.f32 %v5771_v32, %v7584_v18 }
 0x3c7   : > { %7655 = vst [vmem:[#allocation140_spill] sm:$0xff] %v5777_v36  ;;  %v5790_v14 = vmul.f32 %v7661_v63, %v7660_v21  ;;  %v2970_v4 = vadd.f32 %v7663_v43, %v2943_v49  ;;  %v7665_v36 = vld [vmem:[#allocation141_spill] sm:$0xff]  ;;  %v2002_v56 = vadd.f32 %v1994_v27, %v1977_v28  ;;  %v5801_v6 = vld [vmem:[#allocation2 + $0xad] sm:$0xff]  ;;  %v2524_v21 = vadd.f32 %v5698_v53, %v2499_v30 }
 0x3c8   : > { %v5797_v20 = vmul.f32 %v7665_v36, %v7664_v5  ;;  %v631_v24 = vld [vmem:[#allocation2 + $0x1cd] sm:$0xff]  ;;  %v2074_v9 = vmul.f32 %v7588_v11, %v5801_v6  ;;  %v5806_v38 = vld [vmem:[#allocation2 + $0x1fd] sm:$0xff]  ;;  %v1325_v35 = vadd.f32 %v1317_v15, %v1300_v60 }
 0x3c9   : > { %v7667_v43 = vld [vmem:[#allocation46_spill] sm:$0xff]  ;;  %v658_v5 = vld [vmem:[#allocation2 + $0x7e] sm:$0xff]  ;;  %v2029_v27 = vadd.f32 %v2021_v52, %v2002_v56  ;;  %v2100_v63 = vmul.f32 %v7592_v54, %v5806_v38  ;;  %v2551_v53 = vadd.f32 %v5707_v41, %v2524_v21  ;;  %v7670_v11 = vld [vmem:[#allocation47_spill] sm:$0xff] }
 0x3ca   : > { %7666 = vst [vmem:[#allocation143_spill] sm:$0xff] %v5797_v20  ;;  %v1371_v49 = vmul.f32 %v5636_v10, %v7667_v43  ;;  %v7668_v36 = vld [vmem:[#allocation133_spill] sm:$0xff]  ;;  %v683_v18 = vld [vmem:[#allocation2 + $0x1ce] sm:$0xff]  ;;  %v1353_v30 = vadd.f32 %v1345_v48, %v1325_v35  ;;  %v1398_v1 = vmul.f32 %v5647_v0, %v7670_v11  ;;  %v7674_v21 = vld [vmem:[#allocation20_spill] sm:$0xff] }
 0x3cb   : > { %v2995_v28 = vadd.f32 %v7668_v36, %v2970_v4  ;;  %v7669_v42 = vld [vmem:[#allocation17_spill] sm:$0xff]  ;;  %v7671_v60 = vld [vmem:[#allocation18_spill] sm:$0xff]  ;;  %v7672_v20 = vld [vmem:[#allocation135_spill] sm:$0xff]  ;;  %v2054_v43 = vadd.f32 %v2046_v26, %v2029_v27  ;;  %v1423_v36 = vmul.f32 %v5658_v19, %v7569_v58  ;;  %v692_v35 = vmul.f32 %v7674_v21, %v683_v18 }
 0x3cc   : > { %v614_v46 = vmul.f32 %v7669_v42, %v605_v16  ;;  %v640_v15 = vmul.f32 %v7671_v60, %v631_v24  ;;  %v7673_v52 = vld [vmem:[#allocation19_spill] sm:$0xff]  ;;  %v710_v56 = vld [vmem:[#allocation2 + $0x7f] sm:$0xff]  ;;  %v2576_v16 = vadd.f32 %v5713_v50, %v2551_v53  ;;  %v1379_v41 = vadd.f32 %v1371_v49, %v1353_v30 }
 0x3cd   : > { %v3022_v10 = vadd.f32 %v7672_v20, %v2995_v28  ;;  %v667_v4 = vmul.f32 %v7673_v52, %v658_v5  ;;  %v5823_v54 = vld [vmem:[#allocation2 + $0xae] sm:$0xff]  ;;  %v7675_v0 = vld [vmem:[#allocation136_spill] sm:$0xff]  ;;  %v2082_v24 = vadd.f32 %v2074_v9, %v2054_v43  ;;  %v1450_v19 = vmul.f32 %v5667_v45, %v7457_v23  ;;  %v7676_v49 = vld [vmem:[#allocation137_spill] sm:$0xff] }
 0x3ce   : > { %v648_v48 = vadd.f32 %v640_v15, %v614_v46  ;;  %v2127_v20 = vmul.f32 %v7597_v8, %v5823_v54  ;;  %v735_v26 = vld [vmem:[#allocation2 + $0x1cf] sm:$0xff]  ;;  %v2603_v5 = vadd.f32 %v5722_v12, %v2576_v16  ;;  %v5832_v28 = vld [vmem:[#allocation2 + $0x1fe] sm:$0xff]  ;;  %v1406_v50 = vadd.f32 %v1398_v1, %v1379_v41 }
 0x3cf   : > { %v3047_v11 = vadd.f32 %v7675_v0, %v3022_v10  ;;  %v719_v46 = vmul.f32 %v7566_v61, %v710_v56  ;;  %v2108_v53 = vadd.f32 %v2100_v63, %v2082_v24  ;;  %v2152_v9 = vmul.f32 %v7600_v17, %v5832_v28  ;;  %v7677_v43 = vld [vmem:[#allocation50_spill] sm:$0xff]  ;;  %v762_v15 = vld [vmem:[#allocation2 + $0x80] sm:$0xff]  ;;  %v7680_v63 = vld [vmem:[#allocation51_spill] sm:$0xff] }
 0x3d0   : > { %v675_v27 = vadd.f32 %v667_v4, %v648_v48  ;;  %v1475_v30 = vmul.f32 %v5676_v51, %v7677_v43  ;;  %v2628_v45 = vadd.f32 %v5728_v22, %v2603_v5  ;;  %v5841_v10 = vld [vmem:[#allocation2 + $0xaf] sm:$0xff]  ;;  %v1431_v12 = vadd.f32 %v1423_v36, %v1406_v50 }
 0x3d1   : > { %v3074_v18 = vadd.f32 %v7676_v49, %v3047_v11  ;;  %v7678_v1 = vld [vmem:[#allocation22_spill] sm:$0xff]  ;;  %v2135_v48 = vadd.f32 %v2127_v20, %v2108_v53  ;;  %v2179_v11 = vmul.f32 %v7604_v59, %v5841_v10  ;;  %v1502_v0 = vmul.f32 %v5687_v40, %v7680_v63  ;;  %v787_v24 = vld [vmem:[#allocation2 + $0x1d0] sm:$0xff]  ;;  %v5850_v49 = vld [vmem:[#allocation2 + $0x1ff] sm:$0xff] }
 0x3d2   : > { %v700_v16 = vadd.f32 %v692_v35, %v675_v27  ;;  %v744_v4 = vmul.f32 %v7678_v1, %v735_v26  ;;  %v7679_v41 = vld [vmem:[#allocation138_spill] sm:$0xff]  ;;  %v2655_v51 = vadd.f32 %v5737_v3, %v2628_v45  ;;  %v1458_v22 = vadd.f32 %v1450_v19, %v1431_v12  ;;  %v7681_v36 = vld [vmem:[#allocation23_spill] sm:$0xff]  ;;  %v7682_v27 = vld [vmem:[#allocation52_spill] sm:$0xff] }
 0x3d3   : > { %v3099_v56 = vadd.f32 %v7679_v41, %v3074_v18  ;;  %v771_v35 = vmul.f32 %v7681_v36, %v762_v15  ;;  %v2160_v50 = vadd.f32 %v2152_v9, %v2135_v48  ;;  %v2204_v20 = vmul.f32 %v7608_v57, %v5850_v49  ;;  %v814_v53 = vld [vmem:[#allocation2 + $0x81] sm:$0xff]  ;;  %v5859_v41 = vld [vmem:[#allocation2 + $0xb0] sm:$0xff]  ;;  %v7683_v19 = vld [vmem:[#allocation24_spill] sm:$0xff] }
 0x3d4   : > { %v727_v5 = vadd.f32 %v719_v46, %v700_v16  ;;  %v1527_v18 = vmul.f32 %v5700_v13, %v7682_v27  ;;  %v2680_v40 = vadd.f32 %v5743_v31, %v2655_v51  ;;  %v1483_v3 = vadd.f32 %v1475_v30, %v1458_v22  ;;  %v7684_v9 = vld [vmem:[#allocation53_spill] sm:$0xff]  ;;  %v7688_v27 = vld [vmem:[#allocation26_spill] sm:$0xff] }
 0x3d5   : > { %v3126_v26 = vadd.f32 %v5607_v44, %v3099_v56  ;;  %v796_v46 = vmul.f32 %v7683_v19, %v787_v24  ;;  %v2187_v12 = vadd.f32 %v2179_v11, %v2160_v50  ;;  %v2231_v44 = vmul.f32 %v7610_v47, %v5859_v41  ;;  %v839_v56 = vld [vmem:[#allocation2 + $0x1d1] sm:$0xff]  ;;  %v5868_v48 = vld [vmem:[#allocation2 + $0x200] sm:$0xff]  ;;  %v7737_v19 = vld [vmem:[#allocation154_spill] sm:$0xff] }
 0x3d6   : > { %v752_v45 = vadd.f32 %v744_v4, %v727_v5  ;;  %v1554_v16 = vmul.f32 %v5715_v55, %v7684_v9  ;;  %v2707_v13 = vadd.f32 %v5752_v37, %v2680_v40  ;;  %v1510_v31 = vadd.f32 %v1502_v0, %v1483_v3  ;;  %v7685_v30 = vld [vmem:[#allocation25_spill] sm:$0xff]  ;;  %v7687_v5 = vld [vmem:[#allocation54_spill] sm:$0xff]  ;;  %v5876_v9 = vld [vmem:[#allocation2 + $0xb1] sm:$0xff] }
 0x3d7   : > { %v3151_v15 = vadd.f32 %v5619_v2, %v3126_v26  ;;  %v823_v4 = vmul.f32 %v7685_v30, %v814_v53  ;;  %v2212_v24 = vadd.f32 %v2204_v20, %v2187_v12  ;;  %v7686_v2 = vld [vmem:[#allocation92_spill] sm:$0xff]  ;;  %v1579_v26 = vmul.f32 %v5730_v33, %v7687_v5  ;;  %v866_v50 = vld [vmem:[#allocation2 + $0x82] sm:$0xff]  ;;  %v7689_v53 = vld [vmem:[#allocation95_spill] sm:$0xff] }
 0x3d8   : > { %v779_v51 = vadd.f32 %v771_v35, %v752_v45  ;;  %v2256_v11 = vmul.f32 %v7686_v2, %v5868_v48  ;;  %v2732_v55 = vadd.f32 %v5760_v62, %v2707_v13  ;;  %v1535_v37 = vadd.f32 %v1527_v18, %v1510_v31  ;;  %v7690_v3 = vld [vmem:[#allocation55_spill] sm:$0xff]  ;;  %v5884_v12 = vld [vmem:[#allocation2 + $0x201] sm:$0xff] }
 0x3d9   : > { %v3462_v22 = vmul.f32 -1.442695, %v3151_v15  ;;  %v848_v0 = vmul.f32 %v7688_v27, %v839_v56  ;;  %v2239_v35 = vadd.f32 %v2231_v44, %v2212_v24  ;;  %v2283_v20 = vmul.f32 %v7689_v53, %v5876_v9  ;;  %v891_v15 = vld [vmem:[#allocation2 + $0x1d2] sm:$0xff]  ;;  %v7693_v31 = vld [vmem:[#allocation142_spill] sm:$0xff]  ;;  %v7732_v47 = vld [vmem:[#allocation153_spill] sm:$0xff] }
 0x3da   : > { %v804_v40 = vadd.f32 %v796_v46, %v779_v51  ;;  %v1606_v45 = vmul.f32 %v5745_v34, %v7690_v3  ;;  %v2759_v33 = vadd.f32 %v5769_v25, %v2732_v55  ;;  %v1562_v62 = vadd.f32 %v1554_v16, %v1535_v37  ;;  %v7691_v5 = vld [vmem:[#allocation27_spill] sm:$0xff]  ;;  %v7692_v46 = vld [vmem:[#allocation100_spill] sm:$0xff]  ;;  %v918_v34 = vld [vmem:[#allocation2 + $0x83] sm:$0xff] }
 0x3db   : > { %3562 = vpow2.f32 %v3462_v22  ;;  %v875_v18 = vmul.f32 %v7691_v5, %v866_v50  ;;  %v2882_v56 = vmul.f32 %v7693_v31, %v7692_v46  ;;  %v2264_v51 = vadd.f32 %v2256_v11, %v2239_v35  ;;  %v7694_v44 = vld [vmem:[#allocation99_spill] sm:$0xff]  ;;  %v7695_v24 = vld [vmem:[#allocation56_spill] sm:$0xff]  ;;  %v7700_v11 = vld [vmem:[#allocation102_spill] sm:$0xff] }
 0x3dc   : > { %v831_v13 = vadd.f32 %v823_v4, %v804_v40  ;;  %v2308_v22 = vmul.f32 %v7694_v44, %v5884_v12  ;;  %v1631_v53 = vmul.f32 %v5754_v39, %v7695_v24  ;;  %v7696_v3 = vld [vmem:[#allocation140_spill] sm:$0xff]  ;;  %v1587_v55 = vadd.f32 %v1579_v26, %v1562_v62  ;;  %v7698_v50 = vld [vmem:[#allocation67_spill] sm:$0xff]  ;;  %v7701_v44 = vld [vmem:[#allocation57_spill] sm:$0xff] }
 0x3dd   : > { %v2784_v27 = vadd.f32 %v7696_v3, %v2759_v33  ;;  %v5894_v25 = vld [vmem:[#allocation2 + $0xb2] sm:$0xff]  ;;  %v2291_v46 = vadd.f32 %v2283_v20, %v2264_v51  ;;  %v1658_v2 = vmul.f32 %v5762_v29, %v7701_v44  ;;  %v5904_v3 = vld [vmem:[#allocation2 + $0x202] sm:$0xff] }
 0x3de   : > { %v856_v16 = vadd.f32 %v848_v0, %v831_v13  ;;  %v7697_v4 = vld [vmem:[#allocation28_spill] sm:$0xff]  ;;  %v2335_v35 = vmul.f32 %v7700_v11, %v5894_v25  ;;  %v1614_v33 = vadd.f32 %v1606_v45, %v1587_v55  ;;  %v7702_v0 = vld [vmem:[#allocation29_spill] sm:$0xff]  ;;  %v7706_v11 = vld [vmem:[#allocation58_spill] sm:$0xff] }
 0x3df   : > { %v900_v37 = vmul.f32 %v7697_v4, %v891_v15  ;;  %v7699_v40 = vld [vmem:[#allocation144_spill] sm:$0xff]  ;;  %v2812_v24 = vadd.f32 %v5784_v7, %v2784_v27  ;;  %v927_v62 = vmul.f32 %v7702_v0, %v918_v34  ;;  %v7703_v15 = vld [vmem:[#allocation109_spill] sm:$0xff]  ;;  %v1683_v30 = vmul.f32 %v5771_v32, %v7706_v11  ;;  %v7707_v45 = vld [vmem:[#allocation30_spill] sm:$0xff] }
 0x3e0   : > { %v2909_v5 = vmul.f32 %v7699_v40, %v7698_v50  ;;  %v943_v39 = vld [vmem:[#allocation2 + $0x1d3] sm:$0xff]  ;;  %v883_v26 = vadd.f32 %v875_v18, %v856_v16  ;;  %v7704_v13 = vld [vmem:[#allocation77_spill] sm:$0xff]  ;;  %v2316_v50 = vadd.f32 %v2308_v22, %v2291_v46  ;;  %v1639_v7 = vadd.f32 %v1631_v53, %v1614_v33  ;;  %v6001_v43 = vld [vmem:[#allocation2 + $0xc8] sm:$0xff] }
 0x3e1   : > { %v2934_v4 = vmul.f32 %v7704_v13, %v7703_v15  ;;  %v7705_v20 = vld [vmem:[#allocation104_spill] sm:$0xff]  ;;  %v2838_v29 = vadd.f32 %v5790_v14, %v2812_v24  ;;  %v952_v18 = vmul.f32 %v7707_v45, %v943_v39  ;;  %v7710_v22 = vld [vmem:[#allocation105_spill] sm:$0xff]  ;;  %v7711_v15 = vld [vmem:[#allocation59_spill] sm:$0xff] }
 0x3e2   : > { %v2360_v51 = vmul.f32 %v7705_v20, %v5904_v3  ;;  %v5914_v44 = vld [vmem:[#allocation2 + $0xb3] sm:$0xff]  ;;  %v908_v27 = vadd.f32 %v900_v37, %v883_v26  ;;  %v2343_v0 = vadd.f32 %v2335_v35, %v2316_v50  ;;  %v1710_v20 = vmul.f32 %v5801_v6, %v7711_v15  ;;  %v5926_v24 = vld [vmem:[#allocation2 + $0x203] sm:$0xff] }
 0x3e3   : > { %v7708_v55 = vld [vmem:[#allocation76_spill] sm:$0xff]  ;;  %v2387_v46 = vmul.f32 %v7710_v22, %v5914_v44  ;;  %v7712_v32 = vld [vmem:[#allocation143_spill] sm:$0xff]  ;;  %v1666_v53 = vadd.f32 %v1658_v2, %v1639_v7  ;;  %v5930_v26 = vld [vmem:[#allocation2 + $0x1e5] sm:$0xff] }
 0x3e4   : > { %v7709_v34 = vld [vmem:[#allocation80_spill] sm:$0xff]  ;;  %v2865_v14 = vadd.f32 %v7712_v32, %v2838_v29  ;;  %v935_v37 = vadd.f32 %v927_v62, %v908_v27  ;;  %v7713_v39 = vld [vmem:[#allocation31_spill] sm:$0xff]  ;;  %v2368_v50 = vadd.f32 %v2360_v51, %v2343_v0  ;;  %v5938_v2 = vld [vmem:[#allocation2 + $0xc5] sm:$0xff] }
 0x3e5   : > { %v2961_v16 = vmul.f32 %v7709_v34, %v7708_v55  ;;  %v5923_v13 = vld [vmem:[#allocation2 + $0x95] sm:$0xff]  ;;  %v3563_v35 = vpop.eup %3562  ;;  %v7714_v55 = vld [vmem:[#allocation106_spill] sm:$0xff]  ;;  %v1691_v62 = vadd.f32 %v1683_v30, %v1666_v53  ;;  %v7718_v34 = vld [vmem:[#allocation61_spill] sm:$0xff] }
 0x3e6   : > { %v980_v33 = vmul.f32 %v7713_v39, %v5923_v13  ;;  %v2412_v11 = vmul.f32 %v7714_v55, %v5926_v24  ;;  %v7715_v22 = vld [vmem:[#allocation60_spill] sm:$0xff]  ;;  %v3183_v32 = vadd.f32 1.0, %v3563_v35  ;;  %v2890_v45 = vadd.f32 %v2882_v56, %v2865_v14  ;;  %v7717_v0 = vld [vmem:[#allocation107_spill] sm:$0xff]  ;;  %v3590_v30 = vld [vmem:[#allocation2 + $0x200] sm:$0xff] }
 0x3e7   : > { %v1735_v6 = vmul.f32 %v5806_v38, %v7715_v22  ;;  %v7716_v15 = vld [vmem:[#allocation32_spill] sm:$0xff]  ;;  %v960_v7 = vadd.f32 %v952_v18, %v935_v37  ;;  %v2395_v39 = vadd.f32 %v2387_v46, %v2368_v50  ;;  %v2440_v51 = vmul.f32 %v7717_v0, %v5938_v2  ;;  %v7719_v38 = vld [vmem:[#allocation33_spill] sm:$0xff]  ;;  %v7721_v46 = vld [vmem:[#allocation110_spill] sm:$0xff] }
 0x3e8   : > { %v1006_v29 = vmul.f32 %v7716_v15, %v5930_v26  ;;  %v5940_v27 = vld [vmem:[#allocation2 + $0x96] sm:$0xff]  ;;  %v1762_v55 = vmul.f32 %v5823_v54, %v7718_v34  ;;  %3564 = vrcp.f32 %v3183_v32  ;;  %v2917_v15 = vadd.f32 %v2909_v5, %v2890_v45  ;;  %v7720_v18 = vld [vmem:[#allocation81_spill] sm:$0xff]  ;;  %v7722_v0 = vld [vmem:[#allocation62_spill] sm:$0xff] }
 0x3e9   : > { %v1033_v22 = vmul.f32 %v7719_v38, %v5940_v27  ;;  %v5948_v35 = vld [vmem:[#allocation2 + $0x215] sm:$0xff]  ;;  %v1718_v56 = vadd.f32 %v1710_v20, %v1691_v62  ;;  %v988_v14 = vadd.f32 %v980_v33, %v960_v7  ;;  %v2986_v53 = vmul.f32 %v3590_v30, %v7720_v18  ;;  %v5955_v54 = vld [vmem:[#allocation2 + $0x1e6] sm:$0xff] }
 0x3ea   : > { %v2420_v37 = vadd.f32 %v2412_v11, %v2395_v39  ;;  %v2466_v50 = vmul.f32 %v7721_v46, %v5948_v35  ;;  %v1787_v63 = vmul.f32 %v5832_v28, %v7722_v0  ;;  %v2942_v34 = vadd.f32 %v2934_v4, %v2917_v15  ;;  %v5957_v38 = vld [vmem:[#allocation2 + $0xc6] sm:$0xff]  ;;  %v3591_v32 = vld [vmem:[#allocation2 + $0xb1] sm:$0xff] }
 0x3eb   : > { %v1743_v5 = vadd.f32 %v1735_v6, %v1718_v56  ;;  %v1014_v45 = vadd.f32 %v1006_v29, %v988_v14  ;;  %v7723_v20 = vld [vmem:[#allocation34_spill] sm:$0xff]  ;;  %v7725_v39 = vld [vmem:[#allocation115_spill] sm:$0xff] }
 0x3ec   : > { %v1058_v33 = vmul.f32 %v7723_v20, %v5955_v54  ;;  %v7724_v62 = vld [vmem:[#allocation150_spill] sm:$0xff]  ;;  %v2448_v11 = vadd.f32 %v2440_v51, %v2420_v37  ;;  %v2493_v30 = vmul.f32 %v7725_v39, %v5957_v38  ;;  %v7726_v46 = vld [vmem:[#allocation63_spill] sm:$0xff]  ;;  %v2969_v4 = vadd.f32 %v2961_v16, %v2942_v34  ;;  %v7729_v37 = vld [vmem:[#allocation117_spill] sm:$0xff] }
 0x3ed   : > { %v3013_v7 = vmul.f32 %v3591_v32, %v7724_v62  ;;  %v1814_v28 = vmul.f32 %v5841_v10, %v7726_v46  ;;  %v5966_v0 = vld [vmem:[#allocation2 + $0x97] sm:$0xff]  ;;  %v1770_v6 = vadd.f32 %v1762_v55, %v1743_v5  ;;  %v1041_v29 = vadd.f32 %v1033_v22, %v1014_v45  ;;  %v3592_v20 = vld [vmem:[#allocation2 + $0x201] sm:$0xff] }
 0x3ee   : > { %v5968_v15 = vld [vmem:[#allocation2 + $0x216] sm:$0xff]  ;;  %v2474_v51 = vadd.f32 %v2466_v50, %v2448_v11  ;;  %v5977_v46 = vld [vmem:[#allocation2 + $0x1e7] sm:$0xff]  ;;  %v2994_v34 = vadd.f32 %v2986_v53, %v2969_v4 }
 0x3ef   : > { %v7727_v56 = vld [vmem:[#allocation35_spill] sm:$0xff]  ;;  %v2518_v39 = vmul.f32 %v7729_v37, %v5968_v15  ;;  %v7730_v62 = vld [vmem:[#allocation64_spill] sm:$0xff]  ;;  %v5979_v16 = vld [vmem:[#allocation2 + $0xc7] sm:$0xff]  ;;  %v1795_v55 = vadd.f32 %v1787_v63, %v1770_v6  ;;  %v1066_v22 = vadd.f32 %v1058_v33, %v1041_v29 }
 0x3f0   : > { %v1085_v14 = vmul.f32 %v7727_v56, %v5966_v0  ;;  %v7728_v18 = vld [vmem:[#allocation151_spill] sm:$0xff]  ;;  %v1839_v10 = vmul.f32 %v5850_v49, %v7730_v62  ;;  %v7731_v5 = vld [vmem:[#allocation36_spill] sm:$0xff]  ;;  %v2501_v50 = vadd.f32 %v2493_v30, %v2474_v51  ;;  %v3021_v53 = vadd.f32 %v3013_v7, %v2994_v34  ;;  %v7736_v6 = vld [vmem:[#allocation37_spill] sm:$0xff] }
 0x3f1   : > { %v3038_v32 = vmul.f32 %v3592_v20, %v7728_v18  ;;  %v1110_v45 = vmul.f32 %v7731_v5, %v5977_v46  ;;  %v3593_v56 = vld [vmem:[#allocation2 + $0xb2] sm:$0xff]  ;;  %v7734_v18 = vld [vmem:[#allocation65_spill] sm:$0xff]  ;;  %v1822_v63 = vadd.f32 %v1814_v28, %v1795_v55  ;;  %v7740_v55 = vld [vmem:[#allocation38_spill] sm:$0xff] }
 0x3f2   : > { %v3065_v20 = vmul.f32 %v3593_v56, %v7732_v47  ;;  %v7733_v11 = vld [vmem:[#allocation119_spill] sm:$0xff]  ;;  %v1866_v49 = vmul.f32 %v5859_v41, %v7734_v18  ;;  %v5988_v62 = vld [vmem:[#allocation2 + $0x98] sm:$0xff]  ;;  %v1093_v33 = vadd.f32 %v1085_v14, %v1066_v22  ;;  %v3594_v5 = vld [vmem:[#allocation2 + $0x202] sm:$0xff]  ;;  %v2526_v30 = vadd.f32 %v2518_v39, %v2501_v50  ;;  %v3565_v7 = vpop.eup %3564 }
 0x3f3   : > { %v2545_v37 = vmul.f32 %v7733_v11, %v5979_v16  ;;  %v5990_v4 = vld [vmem:[#allocation2 + $0x217] sm:$0xff]  ;;  %v1137_v29 = vmul.f32 %v7736_v6, %v5988_v62  ;;  %v3090_v56 = vmul.f32 %v3594_v5, %v7737_v19  ;;  %v7739_v47 = vld [vmem:[#allocation66_spill] sm:$0xff]  ;;  %v3046_v34 = vadd.f32 %v3038_v32, %v3021_v53  ;;  %3217 = vperm.xlu1 %3557, %v3565_v7  }
 0x3f4   : > { %7735 = vst [vmem:[#allocation145_spill] sm:$0xff] %v5990_v4  ;;  %v7738_v51 = vld [vmem:[#allocation120_spill] sm:$0xff]  ;;  %v1891_v41 = vmul.f32 %v5868_v48, %v7739_v47  ;;  %v5999_v18 = vld [vmem:[#allocation2 + $0x1e8] sm:$0xff]  ;;  %v1847_v28 = vadd.f32 %v1839_v10, %v1822_v63  ;;  %v1118_v14 = vadd.f32 %v1110_v45, %v1093_v33  ;;  %v7741_v39 = vld [vmem:[#allocation159_spill] sm:$0xff] }
 0x3f5   : > { %v2570_v11 = vmul.f32 %v7738_v51, %v5990_v4  ;;  %v1162_v22 = vmul.f32 %v7740_v55, %v5999_v18  ;;  %v3595_v5 = vld [vmem:[#allocation2 + $0xb3] sm:$0xff]  ;;  %v2553_v6 = vadd.f32 %v2545_v37, %v2526_v30  ;;  %v7742_v51 = vld [vmem:[#allocation122_spill] sm:$0xff]  ;;  %v3073_v32 = vadd.f32 %v3065_v20, %v3046_v34  ;;  %v7746_v30 = vld [vmem:[#allocation125_spill] sm:$0xff] }
 0x3f6   : > { %v3117_v50 = vmul.f32 %v3595_v5, %v7741_v39  ;;  %v2597_v19 = vmul.f32 %v7742_v51, %v6001_v43  ;;  %v7743_v48 = vld [vmem:[#allocation68_spill] sm:$0xff]  ;;  %v1874_v10 = vadd.f32 %v1866_v49, %v1847_v28  ;;  %v1145_v45 = vadd.f32 %v1137_v29, %v1118_v14  ;;  %v7744_v63 = vld [vmem:[#allocation39_spill] sm:$0xff]  ;;  %v3596_v7 = vld [vmem:[#allocation2 + $0x203] sm:$0xff] }
 0x3f7   : > { %v1918_v47 = vmul.f32 %v5876_v9, %v7743_v48  ;;  %v6010_v4 = vld [vmem:[#allocation2 + $0x99] sm:$0xff]  ;;  %v7745_v55 = vld [vmem:[#allocation98_spill] sm:$0xff]  ;;  %v2578_v37 = vadd.f32 %v2570_v11, %v2553_v6  ;;  %v3098_v20 = vadd.f32 %v3090_v56, %v3073_v32 }
 0x3f8   : > { %v6012_v53 = vld [vmem:[#allocation2 + $0x218] sm:$0xff]  ;;  %v1189_v33 = vmul.f32 %v7744_v63, %v6010_v4  ;;  %v3142_v5 = vmul.f32 %v3596_v7, %v7745_v55  ;;  %v7747_v39 = vld [vmem:[#allocation69_spill] sm:$0xff]  ;;  %v6021_v48 = vld [vmem:[#allocation2 + $0x1e9] sm:$0xff]  ;;  %v1899_v49 = vadd.f32 %v1891_v41, %v1874_v10  ;;  %v1170_v29 = vadd.f32 %v1162_v22, %v1145_v45 }
 0x3f9   : > { %v2622_v51 = vmul.f32 %v7746_v30, %v6012_v53  ;;  %v1943_v9 = vmul.f32 %v5884_v12, %v7747_v39  ;;  %v6023_v34 = vld [vmem:[#allocation2 + $0xc9] sm:$0xff]  ;;  %v7748_v28 = vld [vmem:[#allocation40_spill] sm:$0xff]  ;;  %v2605_v63 = vadd.f32 %v2597_v19, %v2578_v37  ;;  %v3125_v12 = vadd.f32 %v3117_v50, %v3098_v20  ;;  %v7751_v41 = vld [vmem:[#allocation41_spill] sm:$0xff] }
 0x3fa   : > { %v1214_v14 = vmul.f32 %v7748_v28, %v6021_v48  ;;  %v7749_v7 = vld [vmem:[#allocation126_spill] sm:$0xff]  ;;  %v6031_v55 = vld [vmem:[#allocation2 + $0x9a] sm:$0xff]  ;;  %v1926_v56 = vadd.f32 %v1918_v47, %v1899_v49  ;;  %v1197_v32 = vadd.f32 %v1189_v33, %v1170_v29  ;;  %v7756_v29 = vld [vmem:[#allocation131_spill] sm:$0xff] }
 0x3fb   : > { %v2649_v11 = vmul.f32 %v7749_v7, %v6023_v34  ;;  %v7750_v6 = vld [vmem:[#allocation70_spill] sm:$0xff]  ;;  %v6033_v39 = vld [vmem:[#allocation2 + $0x219] sm:$0xff]  ;;  %v1241_v22 = vmul.f32 %v7751_v41, %v6031_v55  ;;  %v2630_v10 = vadd.f32 %v2622_v51, %v2605_v63 }
 0x3fc   : > { %v1970_v30 = vmul.f32 %v5894_v25, %v7750_v6  ;;  %v7752_v45 = vld [vmem:[#allocation128_spill] sm:$0xff]  ;;  %v7753_v37 = vld [vmem:[#allocation73_spill] sm:$0xff]  ;;  %v6041_v7 = vld [vmem:[#allocation2 + $0x1ea] sm:$0xff]  ;;  %v3150_v25 = vadd.f32 %v3142_v5, %v3125_v12  ;;  %v1951_v50 = vadd.f32 %v1943_v9, %v1926_v56  ;;  %v1222_v20 = vadd.f32 %v1214_v14, %v1197_v32 }
 0x3fd   : > { %v2674_v19 = vmul.f32 %v7752_v45, %v6033_v39  ;;  %v1995_v28 = vmul.f32 %v5904_v3, %v7753_v37  ;;  %v6043_v6 = vld [vmem:[#allocation2 + $0xca] sm:$0xff]  ;;  %v2657_v49 = vadd.f32 %v2649_v11, %v2630_v10  ;;  %v6051_v45 = vld [vmem:[#allocation2 + $0x9b] sm:$0xff] }
 0x3fe   : > { %7754 = vst [vmem:[#allocation146_spill] sm:$0xff] %v6043_v6  ;;  %v7755_v47 = vld [vmem:[#allocation42_spill] sm:$0xff]  ;;  %v2701_v51 = vmul.f32 %v7756_v29, %v6043_v6  ;;  %7758 = vst [vmem:[#allocation147_spill] sm:$0xff] %v6051_v45  ;;  %v3461_v3 = vmul.f32 -1.442695, %v3150_v25  ;;  %v6053_v37 = vld [vmem:[#allocation2 + $0x21a] sm:$0xff]  ;;  %v1978_v12 = vadd.f32 %v1970_v30, %v1951_v50  ;;  %v1249_v9 = vadd.f32 %v1241_v22, %v1222_v20 }
 0x3ff   : > { %v1266_v33 = vmul.f32 %v7755_v47, %v6041_v7  ;;  %v7757_v63 = vld [vmem:[#allocation74_spill] sm:$0xff]  ;;  %7759 = vst [vmem:[#allocation148_spill] sm:$0xff] %v6053_v37  ;;  %v7761_v14 = vld [vmem:[#allocation43_spill] sm:$0xff]  ;;  %v2682_v32 = vadd.f32 %v2674_v19, %v2657_v49  ;;  %v7762_v11 = vld [vmem:[#allocation132_spill] sm:$0xff] }
 0x400   : > { %v2022_v41 = vmul.f32 %v5914_v44, %v7757_v63  ;;  %v6055_v5 = vld [vmem:[#allocation2 + $0xcb] sm:$0xff]  ;;  %v1293_v56 = vmul.f32 %v7761_v14, %v6051_v45  ;;  %v2726_v10 = vmul.f32 %v7762_v11, %v6053_v37  ;;  %3566 = vpow2.f32 %v3461_v3  ;;  %v6067_v6 = vld [vmem:[#allocation2 + $0x21b] sm:$0xff] }
 0x401   : > { %7760 = vst [vmem:[#allocation149_spill] sm:$0xff] %v6055_v5  ;;  %v7763_v47 = vld [vmem:[#allocation134_spill] sm:$0xff]  ;;  %v7764_v44 = vld [vmem:[#allocation75_spill] sm:$0xff]  ;;  %v6069_v30 = vld [vmem:[#allocation2 + $0xdd] sm:$0xff]  ;;  %v2003_v22 = vadd.f32 %v1995_v28, %v1978_v12  ;;  %v1274_v50 = vadd.f32 %v1266_v33, %v1249_v9  ;;  %v2709_v49 = vadd.f32 %v2701_v51, %v2682_v32  ;;  %v615_v51 = vmul.f32 %v5923_v13, %v7669_v42 }
 0x402   : > { %v2753_v29 = vmul.f32 %v7763_v47, %v6055_v5  ;;  %v2047_v63 = vmul.f32 %v5926_v24, %v7764_v44  ;;  %v6065_v25 = vld [vmem:[#allocation2 + $0x1eb] sm:$0xff]  ;;  %v7765_v19 = vld [vmem:[#allocation44_spill] sm:$0xff]  ;;  %v7769_v33 = vld [vmem:[#allocation45_spill] sm:$0xff] }
 0x403   : > { %v1318_v20 = vmul.f32 %v7765_v19, %v6065_v25  ;;  %v7766_v14 = vld [vmem:[#allocation71_spill] sm:$0xff]  ;;  %v7767_v47 = vld [vmem:[#allocation72_spill] sm:$0xff]  ;;  %v7768_v24 = vld [vmem:[#allocation78_spill] sm:$0xff]  ;;  %v2030_v45 = vadd.f32 %v2022_v41, %v2003_v22  ;;  %v1301_v28 = vadd.f32 %v1293_v56, %v1274_v50  ;;  %v2734_v9 = vadd.f32 %v2726_v10, %v2709_v49 }
 0x404   : > { %v2778_v11 = vmul.f32 %v7766_v14, %v6067_v6  ;;  %v2806_v5 = vmul.f32 %v7767_v47, %v6069_v30  ;;  %v2075_v44 = vmul.f32 %v5938_v2, %v7768_v24  ;;  %v6079_v3 = vld [vmem:[#allocation2 + $0xad] sm:$0xff]  ;;  %v6089_v47 = vld [vmem:[#allocation2 + $0x1fd] sm:$0xff]  ;;  %v641_v2 = vmul.f32 %v5930_v26, %v7671_v60 }
 0x405   : > { %v6081_v37 = vld [vmem:[#allocation2 + $0x22d] sm:$0xff]  ;;  %v1346_v12 = vmul.f32 %v7769_v33, %v6079_v3  ;;  %v668_v24 = vmul.f32 %v5940_v27, %v7673_v52  ;;  %v6095_v41 = vld [vmem:[#allocation2 + $0xde] sm:$0xff]  ;;  %v2055_v56 = vadd.f32 %v2047_v63, %v2030_v45  ;;  %v1326_v33 = vadd.f32 %v1318_v20, %v1301_v28 }
 0x406   : > { %v7770_v32 = vld [vmem:[#allocation139_spill] sm:$0xff]  ;;  %v7772_v13 = vld [vmem:[#allocation46_spill] sm:$0xff]  ;;  %v2761_v49 = vadd.f32 %v2753_v29, %v2734_v9  ;;  %v649_v26 = vadd.f32 %v641_v2, %v615_v51  ;;  %v693_v27 = vmul.f32 %v5955_v54, %v7674_v21  ;;  %v720_v54 = vmul.f32 %v5966_v0, %v7566_v61  ;;  %v6119_v2 = vld [vmem:[#allocation2 + $0xdf] sm:$0xff] }
 0x407   : > { %v2832_v14 = vmul.f32 %v7770_v32, %v6081_v37  ;;  %v7771_v22 = vld [vmem:[#allocation79_spill] sm:$0xff]  ;;  %v1372_v10 = vmul.f32 %v7772_v13, %v6089_v47  ;;  %v7773_v32 = vld [vmem:[#allocation141_spill] sm:$0xff]  ;;  %v2083_v45 = vadd.f32 %v2075_v44, %v2055_v56  ;;  %v1354_v63 = vadd.f32 %v1346_v12, %v1326_v33 }
 0x408   : > { %v2101_v50 = vmul.f32 %v5948_v35, %v7771_v22  ;;  %v2859_v19 = vmul.f32 %v7773_v32, %v6095_v41  ;;  %v6103_v42 = vld [vmem:[#allocation2 + $0xae] sm:$0xff]  ;;  %v2128_v35 = vmul.f32 %v5957_v38, %v7597_v8  ;;  %v2786_v29 = vadd.f32 %v2778_v11, %v2761_v49  ;;  %v6115_v32 = vld [vmem:[#allocation2 + $0x1fe] sm:$0xff] }
 0x409   : > { %v6107_v52 = vld [vmem:[#allocation2 + $0x22e] sm:$0xff]  ;;  %v676_v51 = vadd.f32 %v668_v24, %v649_v26  ;;  %v2153_v38 = vmul.f32 %v5968_v15, %v7600_v17  ;;  %v1380_v33 = vadd.f32 %v1372_v10, %v1354_v63  ;;  %v1424_v12 = vmul.f32 %v7569_v58, %v6115_v32  ;;  %v6135_v63 = vld [vmem:[#allocation2 + $0x1ff] sm:$0xff] }
 0x40a   : > { %v7774_v20 = vld [vmem:[#allocation47_spill] sm:$0xff]  ;;  %v2884_v9 = vmul.f32 %v7693_v31, %v6107_v52  ;;  %v2109_v44 = vadd.f32 %v2101_v50, %v2083_v45  ;;  %v2814_v11 = vadd.f32 %v2806_v5, %v2786_v29  ;;  %v2911_v56 = vmul.f32 %v7699_v40, %v6119_v2  ;;  %v3567_v26 = vpop.eup %3566  ;;  %v6203_v17 = vld [vmem:[#allocation2 + $0x202] sm:$0xff] }
 0x40b   : > { %v1399_v28 = vmul.f32 %v7774_v20, %v6103_v42  ;;  %v6127_v49 = vld [vmem:[#allocation2 + $0xaf] sm:$0xff]  ;;  %v701_v24 = vadd.f32 %v693_v27, %v676_v51  ;;  %v745_v0 = vmul.f32 %v5977_v46, %v7678_v1  ;;  %v2180_v50 = vmul.f32 %v5979_v16, %v7604_v59  ;;  %v7775_v46 = vld [vmem:[#allocation145_spill] sm:$0xff] }
 0x40c   : > { %v2136_v31 = vadd.f32 %v2128_v35, %v2109_v44  ;;  %v1451_v10 = vmul.f32 %v7457_v23, %v6127_v49  ;;  %v3182_v45 = vadd.f32 1.0, %v3567_v26  ;;  %v2840_v5 = vadd.f32 %v2832_v14, %v2814_v11  ;;  %v7776_v44 = vld [vmem:[#allocation50_spill] sm:$0xff]  ;;  %v7777_v14 = vld [vmem:[#allocation24_spill] sm:$0xff] }
 0x40d   : > { %v1407_v15 = vadd.f32 %v1399_v28, %v1380_v33  ;;  %v728_v29 = vadd.f32 %v720_v54, %v701_v24  ;;  %v772_v27 = vmul.f32 %v5988_v62, %v7681_v36  ;;  %v2205_v40 = vmul.f32 %v7775_v46, %v7608_v57  ;;  %v6143_v33 = vld [vmem:[#allocation2 + $0xb0] sm:$0xff]  ;;  %v7778_v62 = vld [vmem:[#allocation89_spill] sm:$0xff]  ;;  %v7795_v23 = vld [vmem:[#allocation146_spill] sm:$0xff] }
 0x40e   : > { %v2161_v51 = vadd.f32 %v2153_v38, %v2136_v31  ;;  %v1476_v16 = vmul.f32 %v7776_v44, %v6135_v63  ;;  %3568 = vrcp.f32 %v3182_v45  ;;  %v2867_v28 = vadd.f32 %v2859_v19, %v2840_v5  ;;  %v6147_v54 = vld [vmem:[#allocation2 + $0x22f] sm:$0xff]  ;;  %v7780_v45 = vld [vmem:[#allocation77_spill] sm:$0xff] }
 0x40f   : > { %v1432_v35 = vadd.f32 %v1424_v12, %v1407_v15  ;;  %v753_v26 = vadd.f32 %v745_v0, %v728_v29  ;;  %v797_v11 = vmul.f32 %v5999_v18, %v7777_v14  ;;  %v2232_v31 = vmul.f32 %v6001_v43, %v7778_v62  ;;  %v7779_v12 = vld [vmem:[#allocation51_spill] sm:$0xff]  ;;  %v6155_v5 = vld [vmem:[#allocation2 + $0x200] sm:$0xff] }
 0x410   : > { %v2188_v24 = vadd.f32 %v2180_v50, %v2161_v51  ;;  %v1503_v15 = vmul.f32 %v7779_v12, %v6143_v33  ;;  %v2892_v46 = vadd.f32 %v2884_v9, %v2867_v28  ;;  %v2936_v19 = vmul.f32 %v7780_v45, %v6147_v54  ;;  %v7781_v29 = vld [vmem:[#allocation25_spill] sm:$0xff]  ;;  %v7782_v51 = vld [vmem:[#allocation92_spill] sm:$0xff]  ;;  %v6171_v44 = vld [vmem:[#allocation2 + $0x230] sm:$0xff] }
 0x411   : > { %v1459_v38 = vadd.f32 %v1451_v10, %v1432_v35  ;;  %v780_v0 = vadd.f32 %v772_v27, %v753_v26  ;;  %v824_v18 = vmul.f32 %v6010_v4, %v7781_v29  ;;  %v6159_v57 = vld [vmem:[#allocation2 + $0xe0] sm:$0xff]  ;;  %v2257_v43 = vmul.f32 %v6012_v53, %v7782_v51  ;;  %v7783_v35 = vld [vmem:[#allocation52_spill] sm:$0xff]  ;;  %v7785_v26 = vld [vmem:[#allocation26_spill] sm:$0xff] }
 0x412   : > { %v2213_v50 = vadd.f32 %v2205_v40, %v2188_v24  ;;  %v1528_v62 = vmul.f32 %v7783_v35, %v6155_v5  ;;  %v2919_v9 = vadd.f32 %v2911_v56, %v2892_v46  ;;  %v7784_v28 = vld [vmem:[#allocation80_spill] sm:$0xff]  ;;  %v849_v4 = vmul.f32 %v6021_v48, %v7785_v26  ;;  %v7786_v24 = vld [vmem:[#allocation95_spill] sm:$0xff]  ;;  %v7788_v46 = vld [vmem:[#allocation81_spill] sm:$0xff] }
 0x413   : > { %v1484_v10 = vadd.f32 %v1476_v16, %v1459_v38  ;;  %v2963_v12 = vmul.f32 %v7784_v28, %v6159_v57  ;;  %v6167_v45 = vld [vmem:[#allocation2 + $0xb1] sm:$0xff]  ;;  %v805_v27 = vadd.f32 %v797_v11, %v780_v0  ;;  %v2284_v53 = vmul.f32 %v6023_v34, %v7786_v24  ;;  %v7787_v38 = vld [vmem:[#allocation53_spill] sm:$0xff]  ;;  %v7818_v29 = vld [vmem:[#allocation110_spill] sm:$0xff] }
 0x414   : > { %v2240_v40 = vadd.f32 %v2232_v31, %v2213_v50  ;;  %v1555_v51 = vmul.f32 %v7787_v38, %v6167_v45  ;;  %v2944_v56 = vadd.f32 %v2936_v19, %v2919_v9  ;;  %v2988_v35 = vmul.f32 %v7788_v46, %v6171_v44  ;;  %v6179_v28 = vld [vmem:[#allocation2 + $0x201] sm:$0xff]  ;;  %v7789_v0 = vld [vmem:[#allocation27_spill] sm:$0xff] }
 0x415   : > { %v1511_v16 = vadd.f32 %v1503_v15, %v1484_v10  ;;  %v832_v11 = vadd.f32 %v824_v18, %v805_v27  ;;  %v876_v48 = vmul.f32 %v6031_v55, %v7789_v0  ;;  %v6183_v59 = vld [vmem:[#allocation2 + $0xe1] sm:$0xff]  ;;  %v7790_v50 = vld [vmem:[#allocation99_spill] sm:$0xff]  ;;  %v7793_v27 = vld [vmem:[#allocation28_spill] sm:$0xff] }
 0x416   : > { %v2265_v31 = vadd.f32 %v2257_v43, %v2240_v40  ;;  %v2309_v34 = vmul.f32 %v6033_v39, %v7790_v50  ;;  %v7791_v10 = vld [vmem:[#allocation54_spill] sm:$0xff]  ;;  %v2971_v19 = vadd.f32 %v2963_v12, %v2944_v56  ;;  %v6191_v46 = vld [vmem:[#allocation2 + $0xb2] sm:$0xff]  ;;  %v901_v55 = vmul.f32 %v6041_v7, %v7793_v27 }
 0x417   : > { %v1536_v15 = vadd.f32 %v1528_v62, %v1511_v16  ;;  %v1580_v24 = vmul.f32 %v7791_v10, %v6179_v28  ;;  %v7792_v9 = vld [vmem:[#allocation150_spill] sm:$0xff]  ;;  %v857_v18 = vadd.f32 %v849_v4, %v832_v11  ;;  %v6195_v0 = vld [vmem:[#allocation2 + $0x231] sm:$0xff]  ;;  %v7798_v11 = vld [vmem:[#allocation29_spill] sm:$0xff] }
 0x418   : > { %v3015_v38 = vmul.f32 %v7792_v9, %v6183_v59  ;;  %v2292_v43 = vadd.f32 %v2284_v53, %v2265_v31  ;;  %v7794_v40 = vld [vmem:[#allocation102_spill] sm:$0xff]  ;;  %v7796_v16 = vld [vmem:[#allocation55_spill] sm:$0xff]  ;;  %v3569_v12 = vpop.eup %3568  ;;  %v2996_v56 = vadd.f32 %v2988_v35, %v2971_v19 }
 0x419   : > { %v2336_v39 = vmul.f32 %v7795_v23, %v7794_v40  ;;  %v1563_v62 = vadd.f32 %v1555_v51, %v1536_v15  ;;  %v1607_v50 = vmul.f32 %v7796_v16, %v6191_v46  ;;  %v7797_v10 = vld [vmem:[#allocation151_spill] sm:$0xff]  ;;  %v884_v4 = vadd.f32 %v876_v48, %v857_v18  ;;  %3212 = vperm.xlu0 %3556, %v3569_v12   ;;  %v6207_v53 = vld [vmem:[#allocation2 + $0xe2] sm:$0xff]  ;;  %v7800_v23 = vld [vmem:[#allocation104_spill] sm:$0xff] }
 0x41a   : > { %v3040_v9 = vmul.f32 %v7797_v10, %v6195_v0  ;;  %v7799_v7 = vld [vmem:[#allocation147_spill] sm:$0xff]  ;;  %v2317_v31 = vadd.f32 %v2309_v34, %v2292_v43  ;;  %v7801_v51 = vld [vmem:[#allocation148_spill] sm:$0xff]  ;;  %v3023_v19 = vadd.f32 %v3015_v38, %v2996_v56  ;;  %v7803_v10 = vld [vmem:[#allocation153_spill] sm:$0xff] }
 0x41b   : > { %v928_v27 = vmul.f32 %v7799_v7, %v7798_v11  ;;  %v2361_v15 = vmul.f32 %v7801_v51, %v7800_v23  ;;  %v1588_v40 = vadd.f32 %v1580_v24, %v1563_v62  ;;  %v7802_v16 = vld [vmem:[#allocation56_spill] sm:$0xff]  ;;  %v3067_v26 = vmul.f32 %v7803_v10, %v6207_v53  ;;  %v7804_v18 = vld [vmem:[#allocation30_spill] sm:$0xff]  ;;  %v7805_v43 = vld [vmem:[#allocation105_spill] sm:$0xff] }
 0x41c   : > { %v1632_v35 = vmul.f32 %v7802_v16, %v6203_v17  ;;  %v6215_v58 = vld [vmem:[#allocation2 + $0xb3] sm:$0xff]  ;;  %v909_v48 = vadd.f32 %v901_v55, %v884_v4  ;;  %v953_v12 = vmul.f32 %v6065_v25, %v7804_v18  ;;  %v2344_v34 = vadd.f32 %v2336_v39, %v2317_v31  ;;  %v7806_v11 = vld [vmem:[#allocation149_spill] sm:$0xff]  ;;  %v7808_v56 = vld [vmem:[#allocation154_spill] sm:$0xff] }
 0x41d   : > { %v6219_v7 = vld [vmem:[#allocation2 + $0x232] sm:$0xff]  ;;  %v2388_v51 = vmul.f32 %v7806_v11, %v7805_v43  ;;  %v1615_v24 = vadd.f32 %v1607_v50, %v1588_v40  ;;  %v7807_v62 = vld [vmem:[#allocation57_spill] sm:$0xff]  ;;  %v3048_v38 = vadd.f32 %v3040_v9, %v3023_v19  ;;  %v7810_v31 = vld [vmem:[#allocation106_spill] sm:$0xff] }
 0x41e   : > { %v1659_v23 = vmul.f32 %v7807_v62, %v6215_v58  ;;  %v3092_v16 = vmul.f32 %v7808_v56, %v6219_v7  ;;  %v6227_v10 = vld [vmem:[#allocation2 + $0x203] sm:$0xff]  ;;  %v936_v55 = vadd.f32 %v928_v27, %v909_v48  ;;  %v7809_v4 = vld [vmem:[#allocation31_spill] sm:$0xff]  ;;  %v2369_v39 = vadd.f32 %v2361_v15, %v2344_v34  ;;  %v7813_v48 = vld [vmem:[#allocation32_spill] sm:$0xff] }
 0x41f   : > { %v981_v25 = vmul.f32 %v6079_v3, %v7809_v4  ;;  %v6231_v18 = vld [vmem:[#allocation2 + $0xe3] sm:$0xff]  ;;  %v2413_v11 = vmul.f32 %v6067_v6, %v7810_v31  ;;  %v1640_v50 = vadd.f32 %v1632_v35, %v1615_v24  ;;  %v3075_v9 = vadd.f32 %v3067_v26, %v3048_v38  ;;  %v7812_v19 = vld [vmem:[#allocation159_spill] sm:$0xff] }
 0x420   : > { %v7811_v40 = vld [vmem:[#allocation58_spill] sm:$0xff]  ;;  %v3119_v62 = vmul.f32 %v7812_v19, %v6231_v18  ;;  %v961_v27 = vadd.f32 %v953_v12, %v936_v55  ;;  %v1007_v3 = vmul.f32 %v6089_v47, %v7813_v48  ;;  %v6243_v4 = vld [vmem:[#allocation2 + $0x233] sm:$0xff]  ;;  %v2396_v15 = vadd.f32 %v2388_v51, %v2369_v39  ;;  %v7817_v55 = vld [vmem:[#allocation33_spill] sm:$0xff] }
 0x421   : > { %v1684_v43 = vmul.f32 %v7811_v40, %v6227_v10  ;;  %v6239_v56 = vld [vmem:[#allocation2 + $0xc5] sm:$0xff]  ;;  %v7814_v34 = vld [vmem:[#allocation107_spill] sm:$0xff]  ;;  %v1667_v35 = vadd.f32 %v1659_v23, %v1640_v50  ;;  %v3100_v26 = vadd.f32 %v3092_v16, %v3075_v9  ;;  %v1034_v48 = vmul.f32 %v6103_v42, %v7817_v55 }
 0x422   : > { %v2441_v6 = vmul.f32 %v6069_v30, %v7814_v34  ;;  %v7815_v24 = vld [vmem:[#allocation59_spill] sm:$0xff]  ;;  %v7816_v38 = vld [vmem:[#allocation98_spill] sm:$0xff]  ;;  %v989_v12 = vadd.f32 %v981_v25, %v961_v27  ;;  %v2421_v8 = vadd.f32 %v2413_v11, %v2396_v15  ;;  %v2467_v51 = vmul.f32 %v6081_v37, %v7818_v29  ;;  %v7819_v30 = vld [vmem:[#allocation60_spill] sm:$0xff] }
 0x423   : > { %v1711_v31 = vmul.f32 %v7815_v24, %v6239_v56  ;;  %v3144_v40 = vmul.f32 %v7816_v38, %v6243_v4  ;;  %v6251_v19 = vld [vmem:[#allocation2 + $0x215] sm:$0xff]  ;;  %v1692_v39 = vadd.f32 %v1684_v43, %v1667_v35  ;;  %v3127_v50 = vadd.f32 %v3119_v62, %v3100_v26  ;;  %v6259_v34 = vld [vmem:[#allocation2 + $0xc6] sm:$0xff] }
 0x424   : > { %v1736_v23 = vmul.f32 %v7819_v30, %v6251_v19  ;;  %v1015_v16 = vadd.f32 %v1007_v3, %v989_v12  ;;  %v7820_v9 = vld [vmem:[#allocation34_spill] sm:$0xff]  ;;  %v2449_v38 = vadd.f32 %v2441_v6, %v2421_v8  ;;  %v7821_v25 = vld [vmem:[#allocation115_spill] sm:$0xff]  ;;  %v7822_v11 = vld [vmem:[#allocation61_spill] sm:$0xff] }
 0x425   : > { %v1059_v24 = vmul.f32 %v6115_v32, %v7820_v9  ;;  %v2494_v27 = vmul.f32 %v6095_v41, %v7821_v25  ;;  %v1719_v55 = vadd.f32 %v1711_v31, %v1692_v39  ;;  %v1763_v15 = vmul.f32 %v7822_v11, %v6259_v34  ;;  %v6267_v43 = vld [vmem:[#allocation2 + $0x216] sm:$0xff]  ;;  %v7824_v3 = vld [vmem:[#allocation117_spill] sm:$0xff]  ;;  %v7825_v8 = vld [vmem:[#allocation62_spill] sm:$0xff] }
 0x426   : > { %v3152_v37 = vadd.f32 %v3144_v40, %v3127_v50  ;;  %v1042_v35 = vadd.f32 %v1034_v48, %v1015_v16  ;;  %v7823_v29 = vld [vmem:[#allocation35_spill] sm:$0xff]  ;;  %v2475_v26 = vadd.f32 %v2467_v51, %v2449_v38  ;;  %v2519_v12 = vmul.f32 %v6107_v52, %v7824_v3  ;;  %v6275_v31 = vld [vmem:[#allocation2 + $0xc7] sm:$0xff]  ;;  %v7826_v25 = vld [vmem:[#allocation36_spill] sm:$0xff] }
 0x427   : > { %v1086_v62 = vmul.f32 %v6127_v49, %v7823_v29  ;;  %v1744_v30 = vadd.f32 %v1736_v23, %v1719_v55  ;;  %v1788_v6 = vmul.f32 %v7825_v8, %v6267_v43  ;;  %v1111_v40 = vmul.f32 %v6135_v63, %v7826_v25  ;;  %v7827_v48 = vld [vmem:[#allocation119_spill] sm:$0xff]  ;;  %v7829_v23 = vld [vmem:[#allocation37_spill] sm:$0xff]  ;;  %v7849_v29 = vld [vmem:[#allocation42_spill] sm:$0xff] }
 0x428   : > { %v3463_v41 = vmul.f32 -1.442695, %v3152_v37  ;;  %v1067_v39 = vadd.f32 %v1059_v24, %v1042_v35  ;;  %v2502_v50 = vadd.f32 %v2494_v27, %v2475_v26  ;;  %v2546_v16 = vmul.f32 %v6119_v2, %v7827_v48  ;;  %v7828_v38 = vld [vmem:[#allocation63_spill] sm:$0xff]  ;;  %v7830_v24 = vld [vmem:[#allocation120_spill] sm:$0xff]  ;;  %v6291_v2 = vld [vmem:[#allocation2 + $0xc8] sm:$0xff] }
 0x429   : > { %v1771_v11 = vadd.f32 %v1763_v15, %v1744_v30  ;;  %v1815_v51 = vmul.f32 %v7828_v38, %v6275_v31  ;;  %v6283_v52 = vld [vmem:[#allocation2 + $0x217] sm:$0xff]  ;;  %v1138_v37 = vmul.f32 %v6143_v33, %v7829_v23  ;;  %v2571_v35 = vmul.f32 %v6147_v54, %v7830_v24  ;;  %v7832_v15 = vld [vmem:[#allocation38_spill] sm:$0xff]  ;;  %v7835_v23 = vld [vmem:[#allocation125_spill] sm:$0xff] }
 0x42a   : > { %3570 = vpow2.f32 %v3463_v41  ;;  %v1094_v55 = vadd.f32 %v1086_v62, %v1067_v39  ;;  %v2527_v3 = vadd.f32 %v2519_v12, %v2502_v50  ;;  %v7831_v27 = vld [vmem:[#allocation64_spill] sm:$0xff]  ;;  %v1163_v41 = vmul.f32 %v6155_v5, %v7832_v15  ;;  %v7833_v38 = vld [vmem:[#allocation122_spill] sm:$0xff]  ;;  %v7834_v12 = vld [vmem:[#allocation65_spill] sm:$0xff] }
 0x42b   : > { %v1796_v8 = vadd.f32 %v1788_v6, %v1771_v11  ;;  %v1840_v26 = vmul.f32 %v7831_v27, %v6283_v52  ;;  %v2598_v62 = vmul.f32 %v6159_v57, %v7833_v38  ;;  %v1867_v50 = vmul.f32 %v7834_v12, %v6291_v2  ;;  %v6301_v11 = vld [vmem:[#allocation2 + $0x218] sm:$0xff]  ;;  %v7836_v24 = vld [vmem:[#allocation39_spill] sm:$0xff]  ;;  %v7837_v27 = vld [vmem:[#allocation126_spill] sm:$0xff] }
 0x42c   : > { %v1119_v30 = vadd.f32 %v1111_v40, %v1094_v55  ;;  %v2554_v48 = vadd.f32 %v2546_v16, %v2527_v3  ;;  %v2623_v54 = vmul.f32 %v6171_v44, %v7835_v23  ;;  %v1190_v40 = vmul.f32 %v6167_v45, %v7836_v24  ;;  %v7838_v57 = vld [vmem:[#allocation66_spill] sm:$0xff]  ;;  %v7840_v12 = vld [vmem:[#allocation131_spill] sm:$0xff]  ;;  %v7842_v15 = vld [vmem:[#allocation132_spill] sm:$0xff] }
 0x42d   : > { %v1823_v39 = vadd.f32 %v1815_v51, %v1796_v8  ;;  %v2650_v3 = vmul.f32 %v6183_v59, %v7837_v27  ;;  %v1892_v8 = vmul.f32 %v7838_v57, %v6301_v11  ;;  %v7839_v51 = vld [vmem:[#allocation128_spill] sm:$0xff]  ;;  %v2702_v44 = vmul.f32 %v6207_v53, %v7840_v12  ;;  %v6313_v23 = vld [vmem:[#allocation2 + $0xc9] sm:$0xff]  ;;  %v7845_v53 = vld [vmem:[#allocation69_spill] sm:$0xff] }
 0x42e   : > { %v1146_v6 = vadd.f32 %v1138_v37, %v1119_v30  ;;  %v2579_v55 = vadd.f32 %v2571_v35, %v2554_v48  ;;  %v2675_v38 = vmul.f32 %v6195_v0, %v7839_v51  ;;  %v7841_v30 = vld [vmem:[#allocation40_spill] sm:$0xff]  ;;  %v607_v48 = vld [vmem:[#allocation2 + $0xad] sm:$0xff]  ;;  %v2727_v59 = vmul.f32 %v6219_v7, %v7842_v15 }
 0x42f   : > { %v1848_v16 = vadd.f32 %v1840_v26, %v1823_v39  ;;  %v1215_v24 = vmul.f32 %v6179_v28, %v7841_v30  ;;  %v7843_v39 = vld [vmem:[#allocation68_spill] sm:$0xff]  ;;  %v6323_v0 = vld [vmem:[#allocation2 + $0xca] sm:$0xff]  ;;  %v7847_v30 = vld [vmem:[#allocation41_spill] sm:$0xff]  ;;  %v642_v15 = vmul.f32 %v6089_v47, %v7671_v60  ;;  %v1267_v9 = vmul.f32 %v6203_v17, %v7849_v29 }
 0x430   : > { %v1171_v37 = vadd.f32 %v1163_v41, %v1146_v6  ;;  %v2606_v35 = vadd.f32 %v2598_v62, %v2579_v55  ;;  %v1919_v27 = vmul.f32 %v7843_v39, %v6313_v23  ;;  %v6321_v57 = vld [vmem:[#allocation2 + $0x219] sm:$0xff]  ;;  %v7846_v41 = vld [vmem:[#allocation70_spill] sm:$0xff]  ;;  %v1242_v62 = vmul.f32 %v6191_v46, %v7847_v30 }
 0x431   : > { %v1875_v26 = vadd.f32 %v1867_v50, %v1848_v16  ;;  %7844 = vst [vmem:[#allocation21_spill] sm:$0xff] %v6321_v57  ;;  %v1944_v12 = vmul.f32 %v7845_v53, %v6321_v57  ;;  %v1971_v6 = vmul.f32 %v7846_v41, %v6323_v0  ;;  %v7848_v50 = vld [vmem:[#allocation17_spill] sm:$0xff]  ;;  %v7850_v53 = vld [vmem:[#allocation19_spill] sm:$0xff] }
 0x432   : > { %v1198_v51 = vadd.f32 %v1190_v40, %v1171_v37  ;;  %v2631_v55 = vadd.f32 %v2623_v54, %v2606_v35  ;;  %v616_v16 = vmul.f32 %v7848_v50, %v607_v48  ;;  %v669_v57 = vmul.f32 %v6103_v42, %v7850_v53  ;;  %v7851_v35 = vld [vmem:[#allocation73_spill] sm:$0xff] }
 0x433   : > { %v1900_v7 = vadd.f32 %v1892_v8, %v1875_v26  ;;  %v694_v40 = vmul.f32 %v6115_v32, %v7674_v21  ;;  %v6340_v8 = vld [vmem:[#allocation2 + $0x21a] sm:$0xff]  ;;  %v721_v26 = vmul.f32 %v6127_v49, %v7566_v61  ;;  %v6348_v21 = vld [vmem:[#allocation2 + $0xcb] sm:$0xff]  ;;  %v746_v49 = vmul.f32 %v6135_v63, %v7678_v1 }
 0x434   : > { %v3571_v39 = vpop.eup %3570  ;;  %v1223_v25 = vadd.f32 %v1215_v24, %v1198_v51  ;;  %v2658_v41 = vadd.f32 %v2650_v3, %v2631_v55  ;;  %v650_v48 = vadd.f32 %v642_v15, %v616_v16  ;;  %v1996_v60 = vmul.f32 %v7851_v35, %v6340_v8  ;;  %v7852_v24 = vld [vmem:[#allocation43_spill] sm:$0xff]  ;;  %v7854_v15 = vld [vmem:[#allocation74_spill] sm:$0xff]  ;;  %v6356_v16 = vld [vmem:[#allocation2 + $0x21b] sm:$0xff] }
 0x435   : > { %v3184_v37 = vadd.f32 1.0, %v3571_v39  ;;  %v1927_v54 = vadd.f32 %v1919_v27, %v1900_v7  ;;  %v1294_v51 = vmul.f32 %v6215_v58, %v7852_v24  ;;  %v7853_v27 = vld [vmem:[#allocation134_spill] sm:$0xff]  ;;  %v2023_v39 = vmul.f32 %v7854_v15, %v6348_v21  ;;  %v7859_v63 = vld [vmem:[#allocation72_spill] sm:$0xff]  ;;  %v7880_v15 = vld [vmem:[#allocation89_spill] sm:$0xff] }
 0x436   : > { %v1250_v47 = vadd.f32 %v1242_v62, %v1223_v25  ;;  %v2683_v42 = vadd.f32 %v2675_v38, %v2658_v41  ;;  %v677_v32 = vadd.f32 %v669_v57, %v650_v48  ;;  %v2754_v3 = vmul.f32 %v6231_v18, %v7853_v27  ;;  %v7855_v25 = vld [vmem:[#allocation44_spill] sm:$0xff]  ;;  %v7856_v38 = vld [vmem:[#allocation71_spill] sm:$0xff] }
 0x437   : > { %3572 = vrcp.f32 %v3184_v37  ;;  %v1952_v53 = vadd.f32 %v1944_v12, %v1927_v54  ;;  %v1319_v62 = vmul.f32 %v6227_v10, %v7855_v25  ;;  %v2779_v12 = vmul.f32 %v6243_v4, %v7856_v38  ;;  %v7857_v18 = vld [vmem:[#allocation75_spill] sm:$0xff]  ;;  %v7858_v37 = vld [vmem:[#allocation45_spill] sm:$0xff] }
 0x438   : > { %v1275_v55 = vadd.f32 %v1267_v9, %v1250_v47  ;;  %v2710_v7 = vadd.f32 %v2702_v44, %v2683_v42  ;;  %v702_v61 = vadd.f32 %v694_v40, %v677_v32  ;;  %v2048_v57 = vmul.f32 %v7857_v18, %v6356_v16  ;;  %v6366_v48 = vld [vmem:[#allocation2 + $0xf5] sm:$0xff]  ;;  %v7860_v47 = vld [vmem:[#allocation78_spill] sm:$0xff] }
 0x439   : > { %v1979_v50 = vadd.f32 %v1971_v6, %v1952_v53  ;;  %v1347_v9 = vmul.f32 %v6239_v56, %v7858_v37  ;;  %v6368_v6 = vld [vmem:[#allocation2 + $0xdd] sm:$0xff]  ;;  %v773_v1 = vmul.f32 %v6143_v33, %v7681_v36  ;;  %v2807_v4 = vmul.f32 %v7859_v63, %v6366_v48  ;;  %v6378_v32 = vld [vmem:[#allocation2 + $0x245] sm:$0xff]  ;;  %v7861_v33 = vld [vmem:[#allocation139_spill] sm:$0xff] }
 0x43a   : > { %v1302_v41 = vadd.f32 %v1294_v51, %v1275_v55  ;;  %v2735_v54 = vadd.f32 %v2727_v59, %v2710_v7  ;;  %v729_v40 = vadd.f32 %v721_v26, %v702_v61  ;;  %v2076_v42 = vmul.f32 %v7860_v47, %v6368_v6  ;;  %v6380_v55 = vld [vmem:[#allocation2 + $0x22d] sm:$0xff]  ;;  %v7869_v47 = vld [vmem:[#allocation49_spill] sm:$0xff]  ;;  %v6414_v27 = vld [vmem:[#allocation2 + $0xf7] sm:$0xff] }
 0x43b   : > { %v2004_v44 = vadd.f32 %v1996_v60, %v1979_v50  ;;  %v1373_v53 = vmul.f32 %v6251_v19, %v7772_v13  ;;  %v798_v36 = vmul.f32 %v6155_v5, %v7777_v14  ;;  %v2833_v7 = vmul.f32 %v7861_v33, %v6378_v32  ;;  %v7863_v5 = vld [vmem:[#allocation141_spill] sm:$0xff]  ;;  %v7864_v33 = vld [vmem:[#allocation83_spill] sm:$0xff] }
 0x43c   : > { %v1327_v51 = vadd.f32 %v1319_v62, %v1302_v41  ;;  %v2762_v59 = vadd.f32 %v2754_v3, %v2735_v54  ;;  %v754_v26 = vadd.f32 %v746_v49, %v729_v40  ;;  %v2102_v50 = vmul.f32 %v7771_v22, %v6380_v55  ;;  %v6390_v41 = vld [vmem:[#allocation2 + $0xf6] sm:$0xff]  ;;  %v6392_v54 = vld [vmem:[#allocation2 + $0xde] sm:$0xff]  ;;  %v6402_v38 = vld [vmem:[#allocation2 + $0x246] sm:$0xff] }
 0x43d   : > { %v2031_v60 = vadd.f32 %v2023_v39, %v2004_v44  ;;  %v1400_v61 = vmul.f32 %v6259_v34, %v7774_v20  ;;  %v7862_v44 = vld [vmem:[#allocation25_spill] sm:$0xff]  ;;  %v2860_v40 = vmul.f32 %v7863_v5, %v6390_v41  ;;  %v2129_v63 = vmul.f32 %v7864_v33, %v6392_v54  ;;  %v7888_v35 = vld [vmem:[#allocation95_spill] sm:$0xff] }
 0x43e   : > { %v1355_v62 = vadd.f32 %v1347_v9, %v1327_v51  ;;  %v2787_v3 = vadd.f32 %v2779_v12, %v2762_v59  ;;  %v781_v49 = vadd.f32 %v773_v1, %v754_v26  ;;  %v825_v14 = vmul.f32 %v6167_v45, %v7862_v44  ;;  %v7865_v51 = vld [vmem:[#allocation48_spill] sm:$0xff]  ;;  %v7866_v26 = vld [vmem:[#allocation26_spill] sm:$0xff]  ;;  %v7890_v20 = vld [vmem:[#allocation21_spill] sm:$0xff] }
 0x43f   : > { %v2056_v39 = vadd.f32 %v2048_v57, %v2031_v60  ;;  %v1425_v22 = vmul.f32 %v6267_v43, %v7865_v51  ;;  %v6404_v60 = vld [vmem:[#allocation2 + $0x22e] sm:$0xff]  ;;  %v850_v45 = vmul.f32 %v6179_v28, %v7866_v26  ;;  %v7884_v51 = vld [vmem:[#allocation92_spill] sm:$0xff] }
 0x440   : > { %v1381_v9 = vadd.f32 %v1373_v53, %v1355_v62  ;;  %v2815_v59 = vadd.f32 %v2807_v4, %v2787_v3  ;;  %v806_v1 = vadd.f32 %v798_v36, %v781_v49  ;;  %v7867_v44 = vld [vmem:[#allocation142_spill] sm:$0xff]  ;;  %v7868_v53 = vld [vmem:[#allocation84_spill] sm:$0xff]  ;;  %v1452_v4 = vmul.f32 %v6275_v31, %v7869_v47  ;;  %v7870_v49 = vld [vmem:[#allocation27_spill] sm:$0xff] }
 0x441   : > { %v3573_v12 = vpop.eup %3572  ;;  %v2084_v57 = vadd.f32 %v2076_v42, %v2056_v39  ;;  %v2885_v5 = vmul.f32 %v7867_v44, %v6402_v38  ;;  %v2154_v62 = vmul.f32 %v7868_v53, %v6404_v60  ;;  %v6416_v39 = vld [vmem:[#allocation2 + $0xdf] sm:$0xff]  ;;  %v877_v28 = vmul.f32 %v6191_v46, %v7870_v49  ;;  %v7872_v44 = vld [vmem:[#allocation87_spill] sm:$0xff] }
 0x442   : > { %3222 = vperm.xlu1 %3557, %v3573_v12   ;;  %v1408_v33 = vadd.f32 %v1400_v61, %v1381_v9  ;;  %v2841_v3 = vadd.f32 %v2833_v7, %v2815_v59  ;;  %v833_v36 = vadd.f32 %v825_v14, %v806_v1  ;;  %v7871_v12 = vld [vmem:[#allocation144_spill] sm:$0xff]  ;;  %v2181_v53 = vmul.f32 %v7872_v44, %v6416_v39  ;;  %v7873_v9 = vld [vmem:[#allocation50_spill] sm:$0xff]  ;;  %v7875_v49 = vld [vmem:[#allocation77_spill] sm:$0xff] }
 0x443   : > { %v2110_v42 = vadd.f32 %v2102_v50, %v2084_v57  ;;  %v2912_v26 = vmul.f32 %v7871_v12, %v6414_v27  ;;  %v1477_v18 = vmul.f32 %v6283_v52, %v7873_v9  ;;  %v6426_v59 = vld [vmem:[#allocation2 + $0x247] sm:$0xff]  ;;  %v6428_v57 = vld [vmem:[#allocation2 + $0x22f] sm:$0xff]  ;;  %v7874_v1 = vld [vmem:[#allocation28_spill] sm:$0xff] }
 0x444   : > { %v1433_v61 = vadd.f32 %v1425_v22, %v1408_v33  ;;  %v2868_v7 = vadd.f32 %v2860_v40, %v2841_v3  ;;  %v858_v14 = vadd.f32 %v850_v45, %v833_v36  ;;  %v902_v46 = vmul.f32 %v6203_v17, %v7874_v1  ;;  %v7876_v47 = vld [vmem:[#allocation88_spill] sm:$0xff]  ;;  %v7877_v33 = vld [vmem:[#allocation51_spill] sm:$0xff]  ;;  %v7878_v36 = vld [vmem:[#allocation29_spill] sm:$0xff] }
 0x445   : > { %v2137_v50 = vadd.f32 %v2129_v63, %v2110_v42  ;;  %v2937_v12 = vmul.f32 %v7875_v49, %v6426_v59  ;;  %v2206_v44 = vmul.f32 %v7876_v47, %v6428_v57  ;;  %v1504_v9 = vmul.f32 %v6291_v2, %v7877_v33  ;;  %v6438_v3 = vld [vmem:[#allocation2 + $0xf8] sm:$0xff]  ;;  %v6440_v42 = vld [vmem:[#allocation2 + $0xe0] sm:$0xff]  ;;  %v7894_v13 = vld [vmem:[#allocation99_spill] sm:$0xff] }
 0x446   : > { %v1460_v22 = vadd.f32 %v1452_v4, %v1433_v61  ;;  %v2893_v40 = vadd.f32 %v2885_v5, %v2868_v7  ;;  %v885_v45 = vadd.f32 %v877_v28, %v858_v14  ;;  %v929_v17 = vmul.f32 %v6215_v58, %v7878_v36  ;;  %v7879_v1 = vld [vmem:[#allocation80_spill] sm:$0xff]  ;;  %v6450_v7 = vld [vmem:[#allocation2 + $0x248] sm:$0xff]  ;;  %v7883_v36 = vld [vmem:[#allocation81_spill] sm:$0xff] }
 0x447   : > { %v2162_v63 = vadd.f32 %v2154_v62, %v2137_v50  ;;  %v2964_v49 = vmul.f32 %v7879_v1, %v6438_v3  ;;  %v2233_v47 = vmul.f32 %v7880_v15, %v6440_v42  ;;  %v7881_v61 = vld [vmem:[#allocation52_spill] sm:$0xff]  ;;  %v6452_v50 = vld [vmem:[#allocation2 + $0x230] sm:$0xff]  ;;  %v7882_v14 = vld [vmem:[#allocation30_spill] sm:$0xff]  ;;  %v2989_v1 = vmul.f32 %v7883_v36, %v6450_v7 }
 0x448   : > { %v1485_v4 = vadd.f32 %v1477_v18, %v1460_v22  ;;  %v1529_v33 = vmul.f32 %v6301_v11, %v7881_v61  ;;  %v2920_v5 = vadd.f32 %v2912_v26, %v2893_v40  ;;  %v910_v28 = vadd.f32 %v902_v46, %v885_v45  ;;  %v7885_v22 = vld [vmem:[#allocation53_spill] sm:$0xff]  ;;  %v7886_v45 = vld [vmem:[#allocation31_spill] sm:$0xff] }
 0x449   : > { %v2189_v62 = vadd.f32 %v2181_v53, %v2162_v63  ;;  %v954_v58 = vmul.f32 %v6227_v10, %v7882_v14  ;;  %v2258_v15 = vmul.f32 %v7884_v51, %v6452_v50  ;;  %v1556_v61 = vmul.f32 %v6313_v23, %v7885_v22  ;;  %v6462_v40 = vld [vmem:[#allocation2 + $0xf9] sm:$0xff]  ;;  %v6464_v63 = vld [vmem:[#allocation2 + $0xe1] sm:$0xff] }
 0x44a   : > { %v1512_v18 = vadd.f32 %v1504_v9, %v1485_v4  ;;  %v2945_v26 = vadd.f32 %v2937_v12, %v2920_v5  ;;  %v937_v46 = vadd.f32 %v929_v17, %v910_v28  ;;  %v982_v10 = vmul.f32 %v6239_v56, %v7886_v45  ;;  %v7887_v14 = vld [vmem:[#allocation150_spill] sm:$0xff]  ;;  %v7892_v28 = vld [vmem:[#allocation32_spill] sm:$0xff]  ;;  %v7893_v45 = vld [vmem:[#allocation151_spill] sm:$0xff] }
 0x44b   : > { %v2214_v53 = vadd.f32 %v2206_v44, %v2189_v62  ;;  %v3016_v36 = vmul.f32 %v7887_v14, %v6462_v40  ;;  %v2285_v51 = vmul.f32 %v7888_v35, %v6464_v63  ;;  %v7889_v4 = vld [vmem:[#allocation54_spill] sm:$0xff]  ;;  %v6476_v62 = vld [vmem:[#allocation2 + $0x231] sm:$0xff]  ;;  %v1008_v56 = vmul.f32 %v6251_v19, %v7892_v28  ;;  %v7898_v28 = vld [vmem:[#allocation153_spill] sm:$0xff] }
 0x44c   : > { %v1537_v9 = vadd.f32 %v1529_v33, %v1512_v18  ;;  %v1581_v22 = vmul.f32 %v7890_v20, %v7889_v4  ;;  %v2972_v12 = vadd.f32 %v2964_v49, %v2945_v26  ;;  %v6474_v5 = vld [vmem:[#allocation2 + $0x249] sm:$0xff]  ;;  %v962_v17 = vadd.f32 %v954_v58, %v937_v46  ;;  %v6486_v26 = vld [vmem:[#allocation2 + $0xfa] sm:$0xff] }
 0x44d   : > { %7891 = vst [vmem:[#allocation152_spill] sm:$0xff] %v6474_v5  ;;  %v2241_v44 = vadd.f32 %v2233_v47, %v2214_v53  ;;  %v3041_v14 = vmul.f32 %v7893_v45, %v6474_v5  ;;  %v2310_v35 = vmul.f32 %v7894_v13, %v6476_v62  ;;  %v7895_v18 = vld [vmem:[#allocation55_spill] sm:$0xff]  ;;  %7896 = vst [vmem:[#allocation155_spill] sm:$0xff] %v6486_v26  ;;  %v6488_v53 = vld [vmem:[#allocation2 + $0xe2] sm:$0xff] }
 0x44e   : > { %v1564_v33 = vadd.f32 %v1556_v61, %v1537_v9  ;;  %v1608_v4 = vmul.f32 %v6323_v0, %v7895_v18  ;;  %v2997_v49 = vadd.f32 %v2989_v1, %v2972_v12  ;;  %v990_v58 = vadd.f32 %v982_v10, %v962_v17  ;;  %v7897_v46 = vld [vmem:[#allocation33_spill] sm:$0xff]  ;;  %v7899_v5 = vld [vmem:[#allocation102_spill] sm:$0xff]  ;;  %v7900_v9 = vld [vmem:[#allocation56_spill] sm:$0xff] }
 0x44f   : > { %v2266_v47 = vadd.f32 %v2258_v15, %v2241_v44  ;;  %v1035_v19 = vmul.f32 %v6259_v34, %v7897_v46  ;;  %v3068_v45 = vmul.f32 %v7898_v28, %v6486_v26  ;;  %v2337_v13 = vmul.f32 %v7899_v5, %v6488_v53  ;;  %v6498_v12 = vld [vmem:[#allocation2 + $0x24a] sm:$0xff]  ;;  %v6500_v44 = vld [vmem:[#allocation2 + $0x232] sm:$0xff] }
 0x450   : > { %v1589_v61 = vadd.f32 %v1581_v22, %v1564_v33  ;;  %v1633_v18 = vmul.f32 %v6340_v8, %v7900_v9  ;;  %v3024_v1 = vadd.f32 %v3016_v36, %v2997_v49  ;;  %7901 = vst [vmem:[#allocation156_spill] sm:$0xff] %v6498_v12  ;;  %7902 = vst [vmem:[#allocation94_spill] sm:$0xff] %v6500_v44  ;;  %v7903_v17 = vld [vmem:[#allocation34_spill] sm:$0xff]  ;;  %v7905_v26 = vld [vmem:[#allocation104_spill] sm:$0xff] }
 0x451   : > { %v2293_v15 = vadd.f32 %v2285_v51, %v2266_v47  ;;  %v1016_v10 = vadd.f32 %v1008_v56, %v990_v58  ;;  %v1060_v34 = vmul.f32 %v6267_v43, %v7903_v17  ;;  %v7904_v46 = vld [vmem:[#allocation154_spill] sm:$0xff]  ;;  %v2362_v5 = vmul.f32 %v7905_v26, %v6500_v44  ;;  %v7906_v33 = vld [vmem:[#allocation57_spill] sm:$0xff]  ;;  %v7909_v58 = vld [vmem:[#allocation35_spill] sm:$0xff] }
 0x452   : > { %v3093_v28 = vmul.f32 %v7904_v46, %v6498_v12  ;;  %v1616_v22 = vadd.f32 %v1608_v4, %v1589_v61  ;;  %v1660_v9 = vmul.f32 %v6348_v21, %v7906_v33  ;;  %v3049_v36 = vadd.f32 %v3041_v14, %v3024_v1  ;;  %v6510_v49 = vld [vmem:[#allocation2 + $0xfb] sm:$0xff]  ;;  %v6512_v47 = vld [vmem:[#allocation2 + $0xe3] sm:$0xff]  ;;  %v7910_v17 = vld [vmem:[#allocation159_spill] sm:$0xff] }
 0x453   : > { %7907 = vst [vmem:[#allocation97_spill] sm:$0xff] %v6510_v49  ;;  %v2318_v51 = vadd.f32 %v2310_v35, %v2293_v15  ;;  %7908 = vst [vmem:[#allocation158_spill] sm:$0xff] %v6512_v47  ;;  %v1043_v56 = vadd.f32 %v1035_v19, %v1016_v10  ;;  %v1087_v43 = vmul.f32 %v6275_v31, %v7909_v58  ;;  %v7911_v12 = vld [vmem:[#allocation105_spill] sm:$0xff]  ;;  %v7912_v61 = vld [vmem:[#allocation58_spill] sm:$0xff] }
 0x454   : > { %v3120_v46 = vmul.f32 %v7910_v17, %v6510_v49  ;;  %v2389_v26 = vmul.f32 %v7911_v12, %v6512_v47  ;;  %v1641_v4 = vadd.f32 %v1633_v18, %v1616_v22  ;;  %v1685_v33 = vmul.f32 %v6356_v16, %v7912_v61  ;;  %v6522_v1 = vld [vmem:[#allocation2 + $0x24b] sm:$0xff]  ;;  %v6524_v15 = vld [vmem:[#allocation2 + $0x233] sm:$0xff] }
 0x455   : > { %v3076_v14 = vadd.f32 %v3068_v45, %v3049_v36  ;;  %7913 = vst [vmem:[#allocation103_spill] sm:$0xff] %v6522_v1  ;;  %v2345_v35 = vadd.f32 %v2337_v13, %v2318_v51  ;;  %v1068_v19 = vadd.f32 %v1060_v34, %v1043_v56  ;;  %v7914_v10 = vld [vmem:[#allocation36_spill] sm:$0xff]  ;;  %v7915_v58 = vld [vmem:[#allocation98_spill] sm:$0xff]  ;;  %v7917_v22 = vld [vmem:[#allocation59_spill] sm:$0xff] }
 0x456   : > { %v1112_v31 = vmul.f32 %v6283_v52, %v7914_v10  ;;  %v3145_v17 = vmul.f32 %v7915_v58, %v6522_v1  ;;  %v7916_v49 = vld [vmem:[#allocation106_spill] sm:$0xff]  ;;  %v1668_v18 = vadd.f32 %v1660_v9, %v1641_v4  ;;  %v1712_v61 = vmul.f32 %v6368_v6, %v7917_v22  ;;  %v7918_v13 = vld [vmem:[#allocation37_spill] sm:$0xff]  ;;  %v7919_v34 = vld [vmem:[#allocation107_spill] sm:$0xff] }
 0x457   : > { %v2414_v12 = vmul.f32 %v7916_v49, %v6524_v15  ;;  %v3101_v45 = vadd.f32 %v3093_v28, %v3076_v14  ;;  %v2370_v36 = vadd.f32 %v2362_v5, %v2345_v35  ;;  %v1095_v47 = vadd.f32 %v1087_v43, %v1068_v19  ;;  %v7920_v10 = vld [vmem:[#allocation60_spill] sm:$0xff]  ;;  %v7921_v9 = vld [vmem:[#allocation38_spill] sm:$0xff]  ;;  %v7923_v43 = vld [vmem:[#allocation61_spill] sm:$0xff] }
 0x458   : > { %v1139_v51 = vmul.f32 %v6291_v2, %v7918_v13  ;;  %v2442_v56 = vmul.f32 %v6366_v48, %v7919_v34  ;;  %v1693_v52 = vadd.f32 %v1685_v33, %v1668_v18  ;;  %v1737_v58 = vmul.f32 %v6380_v55, %v7920_v10  ;;  %v7922_v22 = vld [vmem:[#allocation110_spill] sm:$0xff]  ;;  %v7924_v33 = vld [vmem:[#allocation39_spill] sm:$0xff] }
 0x459   : > { %v3128_v1 = vadd.f32 %v3120_v46, %v3101_v45  ;;  %v2397_v44 = vadd.f32 %v2389_v26, %v2370_v36  ;;  %v1120_v49 = vadd.f32 %v1112_v31, %v1095_v47  ;;  %v1164_v4 = vmul.f32 %v6301_v11, %v7921_v9  ;;  %v7925_v13 = vld [vmem:[#allocation115_spill] sm:$0xff]  ;;  %v7926_v47 = vld [vmem:[#allocation62_spill] sm:$0xff]  ;;  %v7928_v9 = vld [vmem:[#allocation117_spill] sm:$0xff] }
 0x45a   : > { %v2468_v5 = vmul.f32 %v6378_v32, %v7922_v22  ;;  %v1720_v28 = vadd.f32 %v1712_v61, %v1693_v52  ;;  %v1764_v2 = vmul.f32 %v6392_v54, %v7923_v43  ;;  %v1191_v18 = vmul.f32 %v6313_v23, %v7924_v33  ;;  %v7927_v61 = vld [vmem:[#allocation40_spill] sm:$0xff]  ;;  %v7932_v33 = vld [vmem:[#allocation65_spill] sm:$0xff] }
 0x45b   : > { %v3153_v14 = vadd.f32 %v3145_v17, %v3128_v1  ;;  %v2422_v35 = vadd.f32 %v2414_v12, %v2397_v44  ;;  %v1147_v19 = vadd.f32 %v1139_v51, %v1120_v49  ;;  %v2495_v26 = vmul.f32 %v6390_v41, %v7925_v13  ;;  %v7929_v49 = vld [vmem:[#allocation63_spill] sm:$0xff] }
 0x45c   : > { %v1745_v46 = vadd.f32 %v1737_v58, %v1720_v28  ;;  %v1789_v11 = vmul.f32 %v6404_v60, %v7926_v47  ;;  %v1216_v52 = vmul.f32 %v7890_v20, %v7927_v61  ;;  %v2520_v12 = vmul.f32 %v6402_v38, %v7928_v9  ;;  %v7930_v28 = vld [vmem:[#allocation64_spill] sm:$0xff]  ;;  %v7935_v61 = vld [vmem:[#allocation122_spill] sm:$0xff] }
 0x45d   : > { %v3464_v31 = vmul.f32 -1.442695, %v3153_v14  ;;  %v2450_v45 = vadd.f32 %v2442_v56, %v2422_v35  ;;  %v1172_v36 = vadd.f32 %v1164_v4, %v1147_v19  ;;  %v1816_v23 = vmul.f32 %v6416_v39, %v7929_v49  ;;  %v7931_v14 = vld [vmem:[#allocation119_spill] sm:$0xff] }
 0x45e   : > { %v1772_v44 = vadd.f32 %v1764_v2, %v1745_v46  ;;  %v1243_v58 = vmul.f32 %v6323_v0, %v7847_v30  ;;  %v1841_v56 = vmul.f32 %v6428_v57, %v7930_v28  ;;  %v2547_v20 = vmul.f32 %v6414_v27, %v7931_v14  ;;  %v7933_v46 = vld [vmem:[#allocation120_spill] sm:$0xff] }
 0x45f   : > { %3574 = vpow2.f32 %v3464_v31  ;;  %v2476_v17 = vadd.f32 %v2468_v5, %v2450_v45  ;;  %v1199_v1 = vadd.f32 %v1191_v18, %v1172_v36  ;;  %v1268_v2 = vmul.f32 %v6340_v8, %v7849_v29  ;;  %v7934_v31 = vld [vmem:[#allocation66_spill] sm:$0xff] }
 0x460   : > { %v1797_v51 = vadd.f32 %v1789_v11, %v1772_v44  ;;  %v1868_v5 = vmul.f32 %v6440_v42, %v7932_v33  ;;  %v2572_v30 = vmul.f32 %v6426_v59, %v7933_v46  ;;  %v1295_v11 = vmul.f32 %v6348_v21, %v7852_v24  ;;  %v7936_v44 = vld [vmem:[#allocation68_spill] sm:$0xff] }
 0x461   : > { %v2503_v4 = vadd.f32 %v2495_v26, %v2476_v17  ;;  %v1224_v35 = vadd.f32 %v1216_v52, %v1199_v1  ;;  %v1893_v45 = vmul.f32 %v6452_v50, %v7934_v31  ;;  %v2599_v29 = vmul.f32 %v6438_v3, %v7935_v61  ;;  %v7937_v1 = vld [vmem:[#allocation125_spill] sm:$0xff]  ;;  %v7952_v61 = vld [vmem:[#allocation132_spill] sm:$0xff] }
 0x462   : > { %v1824_v19 = vadd.f32 %v1816_v23, %v1797_v51  ;;  %v1320_v52 = vmul.f32 %v6356_v16, %v7855_v25  ;;  %v1920_v23 = vmul.f32 %v6464_v63, %v7936_v44  ;;  %v2624_v24 = vmul.f32 %v6450_v7, %v7937_v1  ;;  %v7950_v1 = vld [vmem:[#allocation74_spill] sm:$0xff] }
 0x463   : > { %v2528_v18 = vadd.f32 %v2520_v12, %v2503_v4  ;;  %v1251_v0 = vadd.f32 %v1243_v58, %v1224_v35  ;;  %v1348_v58 = vmul.f32 %v6368_v6, %v7858_v37  ;;  %v7942_v37 = vld [vmem:[#allocation128_spill] sm:$0xff] }
 0x464   : > { %v1849_v26 = vadd.f32 %v1841_v56, %v1824_v19  ;;  %v7938_v56 = vld [vmem:[#allocation69_spill] sm:$0xff]  ;;  %v7940_v19 = vld [vmem:[#allocation46_spill] sm:$0xff]  ;;  %v7943_v6 = vld [vmem:[#allocation152_spill] sm:$0xff] }
 0x465   : > { %v2555_v36 = vadd.f32 %v2547_v20, %v2528_v18  ;;  %v1276_v8 = vadd.f32 %v1268_v2, %v1251_v0  ;;  %v1945_v4 = vmul.f32 %v6476_v62, %v7938_v56  ;;  %v7939_v2 = vld [vmem:[#allocation126_spill] sm:$0xff] }
 0x466   : > { %v1876_v12 = vadd.f32 %v1868_v5, %v1849_v26  ;;  %v2651_v25 = vmul.f32 %v6462_v40, %v7939_v2  ;;  %v1374_v5 = vmul.f32 %v6380_v55, %v7940_v19  ;;  %v7941_v0 = vld [vmem:[#allocation70_spill] sm:$0xff]  ;;  %v7947_v55 = vld [vmem:[#allocation131_spill] sm:$0xff]  ;;  %v7949_v19 = vld [vmem:[#allocation48_spill] sm:$0xff] }
 0x467   : > { %v2580_v17 = vadd.f32 %v2572_v30, %v2555_v36  ;;  %v1303_v21 = vadd.f32 %v1295_v11, %v1276_v8  ;;  %v1972_v11 = vmul.f32 %v6488_v53, %v7941_v0  ;;  %v7944_v8 = vld [vmem:[#allocation47_spill] sm:$0xff] }
 0x468   : > { %v1901_v51 = vadd.f32 %v1893_v45, %v1876_v12  ;;  %v2676_v45 = vmul.f32 %v7943_v6, %v7942_v37  ;;  %v7951_v37 = vld [vmem:[#allocation158_spill] sm:$0xff] }
 0x469   : > { %v3575_v20 = vpop.eup %3574  ;;  %v2607_v35 = vadd.f32 %v2599_v29, %v2580_v17  ;;  %v1328_v16 = vadd.f32 %v1320_v52, %v1303_v21  ;;  %v1401_v29 = vmul.f32 %v6392_v54, %v7944_v8  ;;  %v7945_v17 = vld [vmem:[#allocation73_spill] sm:$0xff]  ;;  %v7946_v52 = vld [vmem:[#allocation94_spill] sm:$0xff]  ;;  %v7953_v54 = vld [vmem:[#allocation156_spill] sm:$0xff] }
 0x46a   : > { %v3185_v18 = vadd.f32 1.0, %v3575_v20  ;;  %v1928_v30 = vadd.f32 %v1920_v23, %v1901_v51  ;;  %v1997_v21 = vmul.f32 %v7946_v52, %v7945_v17  ;;  %v7948_v20 = vld [vmem:[#allocation155_spill] sm:$0xff]  ;;  %v7957_v17 = vld [vmem:[#allocation97_spill] sm:$0xff] }
 0x46b   : > { %v2632_v26 = vadd.f32 %v2624_v24, %v2607_v35  ;;  %v1356_v36 = vadd.f32 %v1348_v58, %v1328_v16  ;;  %v2703_v23 = vmul.f32 %v7948_v20, %v7947_v55  ;;  %v1426_v24 = vmul.f32 %v6404_v60, %v7949_v19 }
 0x46c   : > { %3576 = vrcp.f32 %v3185_v18  ;;  %v1953_v12 = vadd.f32 %v1945_v4, %v1928_v30  ;;  %v2024_v58 = vmul.f32 %v7951_v37, %v7950_v1  ;;  %v2728_v18 = vmul.f32 %v7953_v54, %v7952_v61  ;;  %v7954_v30 = vld [vmem:[#allocation49_spill] sm:$0xff]  ;;  %v7961_v1 = vld [vmem:[#allocation103_spill] sm:$0xff] }
 0x46d   : > { %v2659_v2 = vadd.f32 %v2651_v25, %v2632_v26  ;;  %v1382_v51 = vadd.f32 %v1374_v5, %v1356_v36  ;;  %v1453_v8 = vmul.f32 %v6416_v39, %v7954_v30  ;;  %v7955_v26 = vld [vmem:[#allocation75_spill] sm:$0xff]  ;;  %v7956_v36 = vld [vmem:[#allocation134_spill] sm:$0xff] }
 0x46e   : > { %v1980_v35 = vadd.f32 %v1972_v11, %v1953_v12  ;;  %v2049_v55 = vmul.f32 %v6524_v15, %v7955_v26  ;;  %v2755_v60 = vmul.f32 %v7957_v17, %v7956_v36  ;;  %v7958_v12 = vld [vmem:[#allocation50_spill] sm:$0xff]  ;;  %v7963_v36 = vld [vmem:[#allocation79_spill] sm:$0xff] }
 0x46f   : > { %v2684_v16 = vadd.f32 %v2676_v45, %v2659_v2  ;;  %v1409_v4 = vadd.f32 %v1401_v29, %v1382_v51  ;;  %v1478_v19 = vmul.f32 %v6428_v57, %v7958_v12  ;;  %v7959_v45 = vld [vmem:[#allocation78_spill] sm:$0xff]  ;;  %v7960_v51 = vld [vmem:[#allocation71_spill] sm:$0xff]  ;;  %v7964_v57 = vld [vmem:[#allocation72_spill] sm:$0xff] }
 0x470   : > { %v2005_v25 = vadd.f32 %v1997_v21, %v1980_v35  ;;  %v2077_v61 = vmul.f32 %v6366_v48, %v7959_v45  ;;  %v2780_v39 = vmul.f32 %v7961_v1, %v7960_v51  ;;  %v7962_v35 = vld [vmem:[#allocation51_spill] sm:$0xff]  ;;  %v7965_v48 = vld [vmem:[#allocation52_spill] sm:$0xff] }
 0x471   : > { %v2711_v5 = vadd.f32 %v2703_v23, %v2684_v16  ;;  %v1434_v11 = vadd.f32 %v1426_v24, %v1409_v4  ;;  %v1505_v30 = vmul.f32 %v6440_v42, %v7962_v35  ;;  %v6620_v23 = vld [vmem:[#allocation2 + $0x10d] sm:$0xff]  ;;  %v2103_v24 = vmul.f32 %v6378_v32, %v7963_v36  ;;  %v6628_v12 = vld [vmem:[#allocation2 + $0x25d] sm:$0xff] }
 0x472   : > { %v2032_v2 = vadd.f32 %v2024_v58, %v2005_v25  ;;  %v2808_v58 = vmul.f32 %v7964_v57, %v6620_v23 }
 0x473   : > { %v2736_v29 = vadd.f32 %v2728_v18, %v2711_v5  ;;  %v1461_v21 = vadd.f32 %v1453_v8, %v1434_v11  ;;  %v1530_v18 = vmul.f32 %v6452_v50, %v7965_v48  ;;  %v7966_v11 = vld [vmem:[#allocation83_spill] sm:$0xff]  ;;  %v7969_v50 = vld [vmem:[#allocation84_spill] sm:$0xff] }
 0x474   : > { %v2057_v16 = vadd.f32 %v2049_v55, %v2032_v2  ;;  %v2130_v42 = vmul.f32 %v6390_v41, %v7966_v11  ;;  %v7967_v2 = vld [vmem:[#allocation139_spill] sm:$0xff]  ;;  %v2155_v48 = vmul.f32 %v6402_v38, %v7969_v50 }
 0x475   : > { %v2763_v4 = vadd.f32 %v2755_v60, %v2736_v29  ;;  %v1486_v25 = vadd.f32 %v1478_v19, %v1461_v21  ;;  %v2834_v32 = vmul.f32 %v7967_v2, %v6628_v12  ;;  %v7968_v29 = vld [vmem:[#allocation53_spill] sm:$0xff]  ;;  %v6636_v19 = vld [vmem:[#allocation2 + $0x10e] sm:$0xff] }
 0x476   : > { %v3577_v5 = vpop.eup %3576  ;;  %v2085_v8 = vadd.f32 %v2077_v61, %v2057_v16  ;;  %v1557_v35 = vmul.f32 %v6464_v63, %v7968_v29  ;;  %v7970_v61 = vld [vmem:[#allocation141_spill] sm:$0xff]  ;;  %v7974_v38 = vld [vmem:[#allocation55_spill] sm:$0xff] }
 0x477   : > { %3227 = vperm.xlu0 %3556, %v3577_v5   ;;  %v2788_v55 = vadd.f32 %v2780_v39, %v2763_v4  ;;  %v1513_v60 = vadd.f32 %v1505_v30, %v1486_v25  ;;  %v2861_v16 = vmul.f32 %v7970_v61, %v6636_v19  ;;  %v7971_v5 = vld [vmem:[#allocation54_spill] sm:$0xff]  ;;  %v6644_v4 = vld [vmem:[#allocation2 + $0x25e] sm:$0xff]  ;;  %v7972_v25 = vld [vmem:[#allocation87_spill] sm:$0xff] }
 0x478   : > { %v2111_v21 = vadd.f32 %v2103_v24, %v2085_v8  ;;  %v1582_v39 = vmul.f32 %v6476_v62, %v7971_v5  ;;  %v2182_v63 = vmul.f32 %v6414_v27, %v7972_v25  ;;  %v7973_v24 = vld [vmem:[#allocation142_spill] sm:$0xff]  ;;  %v7977_v27 = vld [vmem:[#allocation56_spill] sm:$0xff] }
 0x479   : > { %v2816_v57 = vadd.f32 %v2808_v58, %v2788_v55  ;;  %v1538_v41 = vadd.f32 %v1530_v18, %v1513_v60  ;;  %v2886_v8 = vmul.f32 %v7973_v24, %v6644_v4  ;;  %v1609_v58 = vmul.f32 %v6488_v53, %v7974_v38  ;;  %v6652_v55 = vld [vmem:[#allocation2 + $0x10f] sm:$0xff]  ;;  %v7975_v60 = vld [vmem:[#allocation88_spill] sm:$0xff] }
 0x47a   : > { %v2138_v30 = vadd.f32 %v2130_v42, %v2111_v21  ;;  %v2207_v62 = vmul.f32 %v6426_v59, %v7975_v60  ;;  %v7976_v42 = vld [vmem:[#allocation144_spill] sm:$0xff]  ;;  %v7980_v59 = vld [vmem:[#allocation57_spill] sm:$0xff] }
 0x47b   : > { %v2842_v29 = vadd.f32 %v2834_v32, %v2816_v57  ;;  %v1565_v2 = vadd.f32 %v1557_v35, %v1538_v41  ;;  %v2913_v21 = vmul.f32 %v7976_v42, %v6652_v55  ;;  %v1634_v57 = vmul.f32 %v7946_v52, %v7977_v27  ;;  %v6660_v32 = vld [vmem:[#allocation2 + $0x25f] sm:$0xff]  ;;  %v1704_v27 = vld [vmem:[#allocation2 + $0xf5] sm:$0xff] }
 0x47c   : > { %v2163_v18 = vadd.f32 %v2155_v48, %v2138_v30  ;;  %v7978_v41 = vld [vmem:[#allocation89_spill] sm:$0xff] }
 0x47d   : > { %v2869_v5 = vadd.f32 %v2861_v16, %v2842_v29  ;;  %v1590_v61 = vadd.f32 %v1582_v39, %v1565_v2  ;;  %v2234_v53 = vmul.f32 %v6438_v3, %v7978_v41  ;;  %v7979_v48 = vld [vmem:[#allocation77_spill] sm:$0xff]  ;;  %v1661_v16 = vmul.f32 %v7951_v37, %v7980_v59  ;;  %v6668_v29 = vld [vmem:[#allocation2 + $0x110] sm:$0xff]  ;;  %v7981_v39 = vld [vmem:[#allocation92_spill] sm:$0xff] }
 0x47e   : > { %v2190_v35 = vadd.f32 %v2182_v63, %v2163_v18  ;;  %v2938_v30 = vmul.f32 %v7979_v48, %v6660_v32  ;;  %v2259_v52 = vmul.f32 %v6450_v7, %v7981_v39  ;;  %v7982_v63 = vld [vmem:[#allocation80_spill] sm:$0xff]  ;;  %v6676_v48 = vld [vmem:[#allocation2 + $0x260] sm:$0xff] }
 0x47f   : > { %v2894_v38 = vadd.f32 %v2886_v8, %v2869_v5  ;;  %v1617_v24 = vadd.f32 %v1609_v58, %v1590_v61  ;;  %v2965_v18 = vmul.f32 %v7982_v63, %v6668_v29  ;;  %v7983_v8 = vld [vmem:[#allocation58_spill] sm:$0xff]  ;;  %v7984_v58 = vld [vmem:[#allocation95_spill] sm:$0xff] }
 0x480   : > { %v2215_v2 = vadd.f32 %v2207_v62, %v2190_v35  ;;  %v1686_v5 = vmul.f32 %v6524_v15, %v7983_v8  ;;  %v2286_v37 = vmul.f32 %v6462_v40, %v7984_v58  ;;  %v1729_v59 = vld [vmem:[#allocation2 + $0x245] sm:$0xff]  ;;  %v6683_v41 = vld [vmem:[#allocation2 + $0x111] sm:$0xff] }
 0x481   : > { %v2921_v42 = vadd.f32 %v2913_v21, %v2894_v38  ;;  %v1642_v3 = vadd.f32 %v1634_v57, %v1617_v24  ;;  %v7985_v35 = vld [vmem:[#allocation81_spill] sm:$0xff]  ;;  %v7986_v21 = vld [vmem:[#allocation59_spill] sm:$0xff] }
 0x482   : > { %v2242_v61 = vadd.f32 %v2234_v53, %v2215_v2  ;;  %v2990_v7 = vmul.f32 %v7985_v35, %v6676_v48  ;;  %v1713_v38 = vmul.f32 %v7986_v21, %v1704_v27  ;;  %v7987_v57 = vld [vmem:[#allocation99_spill] sm:$0xff]  ;;  %v7988_v53 = vld [vmem:[#allocation150_spill] sm:$0xff] }
 0x483   : > { %v2946_v62 = vadd.f32 %v2938_v30, %v2921_v42  ;;  %v1669_v39 = vadd.f32 %v1661_v16, %v1642_v3  ;;  %v2311_v15 = vmul.f32 %v7943_v6, %v7987_v57  ;;  %v1756_v8 = vld [vmem:[#allocation2 + $0xf6] sm:$0xff]  ;;  %v3017_v2 = vmul.f32 %v7988_v53, %v6683_v41  ;;  %v6690_v30 = vld [vmem:[#allocation2 + $0x261] sm:$0xff] }
 0x484   : > { %v2267_v24 = vadd.f32 %v2259_v52, %v2242_v61  ;;  %v1738_v42 = vmul.f32 %v7920_v10, %v1729_v59  ;;  %v7989_v16 = vld [vmem:[#allocation102_spill] sm:$0xff]  ;;  %v7990_v52 = vld [vmem:[#allocation151_spill] sm:$0xff] }
 0x485   : > { %v2973_v63 = vadd.f32 %v2965_v18, %v2946_v62  ;;  %v1694_v40 = vadd.f32 %v1686_v5, %v1669_v39  ;;  %v2338_v27 = vmul.f32 %v7948_v20, %v7989_v16  ;;  %v1781_v3 = vld [vmem:[#allocation2 + $0x246] sm:$0xff]  ;;  %v3042_v61 = vmul.f32 %v7990_v52, %v6690_v30  ;;  %v6697_v62 = vld [vmem:[#allocation2 + $0x112] sm:$0xff] }
 0x486   : > { %v2294_v35 = vadd.f32 %v2286_v37, %v2267_v24  ;;  %v1765_v18 = vmul.f32 %v7923_v43, %v1756_v8  ;;  %v7991_v39 = vld [vmem:[#allocation104_spill] sm:$0xff]  ;;  %v7992_v37 = vld [vmem:[#allocation153_spill] sm:$0xff] }
 0x487   : > { %v2998_v21 = vadd.f32 %v2990_v7, %v2973_v63  ;;  %v1721_v6 = vadd.f32 %v1713_v38, %v1694_v40  ;;  %v2363_v10 = vmul.f32 %v7953_v54, %v7991_v39  ;;  %v1808_v5 = vld [vmem:[#allocation2 + $0xf7] sm:$0xff]  ;;  %v3069_v24 = vmul.f32 %v7992_v37, %v6697_v62  ;;  %v6704_v7 = vld [vmem:[#allocation2 + $0x262] sm:$0xff] }
 0x488   : > { %v2319_v53 = vadd.f32 %v2311_v15, %v2294_v35  ;;  %v1790_v63 = vmul.f32 %v7926_v47, %v1781_v3  ;;  %v7993_v38 = vld [vmem:[#allocation105_spill] sm:$0xff]  ;;  %v7994_v35 = vld [vmem:[#allocation154_spill] sm:$0xff]  ;;  %v1860_v3 = vld [vmem:[#allocation2 + $0xf8] sm:$0xff] }
 0x489   : > { %v3025_v59 = vadd.f32 %v3017_v2, %v2998_v21  ;;  %v1746_v20 = vadd.f32 %v1738_v42, %v1721_v6  ;;  %v2390_v43 = vmul.f32 %v7957_v17, %v7993_v38  ;;  %v1833_v8 = vld [vmem:[#allocation2 + $0x247] sm:$0xff]  ;;  %v3094_v15 = vmul.f32 %v7994_v35, %v6704_v7  ;;  %v6711_v21 = vld [vmem:[#allocation2 + $0x113] sm:$0xff] }
 0x48a   : > { %v2346_v52 = vadd.f32 %v2338_v27, %v2319_v53  ;;  %v1817_v2 = vmul.f32 %v7929_v49, %v1808_v5  ;;  %v7995_v42 = vld [vmem:[#allocation106_spill] sm:$0xff]  ;;  %v7996_v53 = vld [vmem:[#allocation159_spill] sm:$0xff]  ;;  %v2443_v49 = vmul.f32 %v6620_v23, %v7919_v34 }
 0x48b   : > { %v3050_v40 = vadd.f32 %v3042_v61, %v3025_v59  ;;  %v1773_v54 = vadd.f32 %v1765_v18, %v1746_v20  ;;  %v2415_v47 = vmul.f32 %v7961_v1, %v7995_v42  ;;  %v3121_v27 = vmul.f32 %v7996_v53, %v6711_v21  ;;  %v6718_v59 = vld [vmem:[#allocation2 + $0x263] sm:$0xff] }
 0x48c   : > { %v2371_v37 = vadd.f32 %v2363_v10, %v2346_v52  ;;  %v1842_v61 = vmul.f32 %v7930_v28, %v1833_v8  ;;  %v1885_v18 = vld [vmem:[#allocation2 + $0x248] sm:$0xff] }
 0x48d   : > { %v3077_v6 = vadd.f32 %v3069_v24, %v3050_v40  ;;  %v1798_v17 = vadd.f32 %v1790_v63, %v1773_v54  ;;  %v7997_v52 = vld [vmem:[#allocation98_spill] sm:$0xff]  ;;  %v1869_v24 = vmul.f32 %v7932_v33, %v1860_v3  ;;  %v2469_v63 = vmul.f32 %v6628_v12, %v7922_v22  ;;  %v1912_v40 = vld [vmem:[#allocation2 + $0xf9] sm:$0xff] }
 0x48e   : > { %v2398_v35 = vadd.f32 %v2390_v43, %v2371_v37  ;;  %v3146_v10 = vmul.f32 %v7997_v52, %v6718_v59  ;;  %v1894_v37 = vmul.f32 %v7934_v31, %v1885_v18  ;;  %v2496_v54 = vmul.f32 %v6636_v19, %v7925_v13 }
 0x48f   : > { %v3102_v5 = vadd.f32 %v3094_v15, %v3077_v6  ;;  %v1825_v1 = vadd.f32 %v1817_v2, %v1798_v17  ;;  %v1937_v15 = vld [vmem:[#allocation2 + $0x249] sm:$0xff]  ;;  %v1921_v2 = vmul.f32 %v7936_v44, %v1912_v40  ;;  %v2521_v33 = vmul.f32 %v6644_v4, %v7928_v9 }
 0x490   : > { %v2423_v20 = vadd.f32 %v2415_v47, %v2398_v35  ;;  %v1964_v35 = vld [vmem:[#allocation2 + $0xfa] sm:$0xff]  ;;  %v2548_v31 = vmul.f32 %v6652_v55, %v7931_v14  ;;  %v2573_v44 = vmul.f32 %v6660_v32, %v7933_v46  ;;  %v7999_v40 = vld [vmem:[#allocation122_spill] sm:$0xff] }
 0x491   : > { %v3129_v28 = vadd.f32 %v3121_v27, %v3102_v5  ;;  %v1850_v8 = vadd.f32 %v1842_v61, %v1825_v1  ;;  %v1946_v27 = vmul.f32 %v7938_v56, %v1937_v15  ;;  %v1973_v5 = vmul.f32 %v7941_v0, %v1964_v35  ;;  %v2016_v1 = vld [vmem:[#allocation2 + $0xfb] sm:$0xff] }
 0x492   : > { %v2451_v43 = vadd.f32 %v2443_v49, %v2423_v20  ;;  %v1989_v49 = vld [vmem:[#allocation2 + $0x24a] sm:$0xff]  ;;  %v7998_v20 = vld [vmem:[#allocation73_spill] sm:$0xff]  ;;  %v2600_v56 = vmul.f32 %v6668_v29, %v7999_v40 }
 0x493   : > { %v3154_v6 = vadd.f32 %v3146_v10, %v3129_v28  ;;  %v1877_v53 = vadd.f32 %v1869_v24, %v1850_v8  ;;  %v2041_v28 = vld [vmem:[#allocation2 + $0x24b] sm:$0xff]  ;;  %v8001_v15 = vld [vmem:[#allocation125_spill] sm:$0xff] }
 0x494   : > { %v2477_v17 = vadd.f32 %v2469_v63, %v2451_v43  ;;  %v1998_v63 = vmul.f32 %v7998_v20, %v1989_v49  ;;  %v2625_v0 = vmul.f32 %v6676_v48, %v8001_v15  ;;  %v2131_v20 = vmul.f32 %v6636_v19, %v7966_v11  ;;  %v2800_v19 = vld [vmem:[#allocation2 + $0x125] sm:$0xff] }
 0x495   : > { %v3465_v47 = vmul.f32 -1.442695, %v3154_v6  ;;  %v1902_v3 = vadd.f32 %v1894_v37, %v1877_v53  ;;  %v8000_v37 = vld [vmem:[#allocation74_spill] sm:$0xff]  ;;  %v2781_v11 = vmul.f32 %v6718_v59, %v7960_v51 }
 0x496   : > { %v2504_v61 = vadd.f32 %v2496_v54, %v2477_v17  ;;  %v2025_v43 = vmul.f32 %v8000_v37, %v2016_v1  ;;  %v2183_v37 = vmul.f32 %v6652_v55, %v7972_v25  ;;  %v2853_v55 = vld [vmem:[#allocation2 + $0x126] sm:$0xff] }
 0x497   : > { %3578 = vpow2.f32 %v3465_v47  ;;  %v1929_v18 = vadd.f32 %v1921_v2, %v1902_v3  ;;  %v2050_v2 = vmul.f32 %v7955_v26, %v2041_v28  ;;  %v2078_v3 = vmul.f32 %v6620_v23, %v7959_v45  ;;  %v8004_v26 = vld [vmem:[#allocation131_spill] sm:$0xff]  ;;  %v8005_v23 = vld [vmem:[#allocation132_spill] sm:$0xff] }
 0x498   : > { %v2529_v10 = vadd.f32 %v2521_v33, %v2504_v61  ;;  %v8002_v33 = vld [vmem:[#allocation126_spill] sm:$0xff]  ;;  %v8003_v61 = vld [vmem:[#allocation128_spill] sm:$0xff]  ;;  %v2704_v1 = vmul.f32 %v6697_v62, %v8004_v26 }
 0x499   : > { %v1954_v24 = vadd.f32 %v1946_v27, %v1929_v18  ;;  %v2652_v35 = vmul.f32 %v6683_v41, %v8002_v33 }
 0x49a   : > { %v2556_v53 = vadd.f32 %v2548_v31, %v2529_v10  ;;  %v2677_v31 = vmul.f32 %v6690_v30, %v8003_v61 }
 0x49b   : > { %v1981_v8 = vadd.f32 %v1973_v5, %v1954_v24  ;;  %v2104_v5 = vmul.f32 %v6628_v12, %v7963_v36  ;;  %v8006_v36 = vld [vmem:[#allocation134_spill] sm:$0xff] }
 0x49c   : > { %v2581_v54 = vadd.f32 %v2573_v44, %v2556_v53  ;;  %v2756_v12 = vmul.f32 %v6711_v21, %v8006_v36 }
 0x49d   : > { %v2006_v6 = vadd.f32 %v1998_v63, %v1981_v8  ;;  %v2729_v63 = vmul.f32 %v6704_v7, %v8005_v23 }
 0x49e   : > { %v2608_v17 = vadd.f32 %v2600_v56, %v2581_v54  ;;  %v2156_v56 = vmul.f32 %v6644_v4, %v7969_v50  ;;  %v2826_v4 = vld [vmem:[#allocation2 + $0x275] sm:$0xff] }
 0x49f   : > { %v2033_v47 = vadd.f32 %v2025_v43, %v2006_v6 }
 0x4a0   : > { %v2633_v27 = vadd.f32 %v2625_v0, %v2608_v17  ;;  %v2208_v0 = vmul.f32 %v6660_v32, %v7975_v60  ;;  %v2878_v32 = vld [vmem:[#allocation2 + $0x276] sm:$0xff] }
 0x4a1   : > { %v3579_v49 = vpop.eup %3578  ;;  %v2058_v18 = vadd.f32 %v2050_v2, %v2033_v47  ;;  %v8007_v2 = vld [vmem:[#allocation72_spill] sm:$0xff] }
 0x4a2   : > { %v3186_v10 = vadd.f32 1.0, %v3579_v49  ;;  %v2660_v44 = vadd.f32 %v2652_v35, %v2633_v27  ;;  %v2809_v50 = vmul.f32 %v8007_v2, %v2800_v19  ;;  %v8008_v35 = vld [vmem:[#allocation89_spill] sm:$0xff]  ;;  %v8009_v27 = vld [vmem:[#allocation139_spill] sm:$0xff]  ;;  %v8010_v49 = vld [vmem:[#allocation92_spill] sm:$0xff] }
 0x4a3   : > { %v2086_v24 = vadd.f32 %v2078_v3, %v2058_v18  ;;  %v2235_v47 = vmul.f32 %v6668_v29, %v8008_v35  ;;  %v2835_v25 = vmul.f32 %v8009_v27, %v2826_v4  ;;  %v2260_v18 = vmul.f32 %v6676_v48, %v8010_v49  ;;  %v8012_v29 = vld [vmem:[#allocation142_spill] sm:$0xff]  ;;  %v8013_v48 = vld [vmem:[#allocation144_spill] sm:$0xff] }
 0x4a4   : > { %3580 = vrcp.f32 %v3186_v10  ;;  %v2685_v45 = vadd.f32 %v2677_v31, %v2660_v44  ;;  %v8011_v44 = vld [vmem:[#allocation141_spill] sm:$0xff]  ;;  %v2416_v49 = vmul.f32 %v6718_v59, %v7995_v42  ;;  %v2497_v42 = vmul.f32 %v2853_v55, %v7925_v13 }
 0x4a5   : > { %v2112_v53 = vadd.f32 %v2104_v5, %v2086_v24  ;;  %v2862_v60 = vmul.f32 %v8011_v44, %v2853_v55  ;;  %v2287_v24 = vmul.f32 %v6683_v41, %v7984_v58  ;;  %v2957_v41 = vld [vmem:[#allocation2 + $0x128] sm:$0xff] }
 0x4a6   : > { %v2712_v28 = vadd.f32 %v2704_v1, %v2685_v45  ;;  %v2887_v45 = vmul.f32 %v8012_v29, %v2878_v32 }
 0x4a7   : > { %v2139_v8 = vadd.f32 %v2131_v20, %v2112_v53 }
 0x4a8   : > { %v2737_v43 = vadd.f32 %v2729_v63, %v2712_v28  ;;  %v2905_v63 = vld [vmem:[#allocation2 + $0x127] sm:$0xff] }
 0x4a9   : > { %v2164_v54 = vadd.f32 %v2156_v56, %v2139_v8  ;;  %v2312_v56 = vmul.f32 %v6690_v30, %v7987_v57  ;;  %v2930_v8 = vld [vmem:[#allocation2 + $0x277] sm:$0xff] }
 0x4aa   : > { %v2764_v6 = vadd.f32 %v2756_v12, %v2737_v43  ;;  %v2914_v12 = vmul.f32 %v8013_v48, %v2905_v63  ;;  %v2339_v43 = vmul.f32 %v6697_v62, %v7989_v16  ;;  %v2982_v57 = vld [vmem:[#allocation2 + $0x278] sm:$0xff]  ;;  %v3009_v16 = vld [vmem:[#allocation2 + $0x129] sm:$0xff]  ;;  %v2574_v13 = vmul.f32 %v2930_v8, %v7933_v46 }
 0x4ab   : > { %v2191_v17 = vadd.f32 %v2183_v37, %v2164_v54  ;;  %v8014_v54 = vld [vmem:[#allocation77_spill] sm:$0xff] }
 0x4ac   : > { %v2789_v3 = vadd.f32 %v2781_v11, %v2764_v6  ;;  %v2364_v6 = vmul.f32 %v6704_v7, %v7991_v39  ;;  %v3034_v39 = vld [vmem:[#allocation2 + $0x279] sm:$0xff] }
 0x4ad   : > { %v2216_v31 = vadd.f32 %v2208_v0, %v2191_v17  ;;  %v2939_v0 = vmul.f32 %v8014_v54, %v2930_v8  ;;  %v8015_v17 = vld [vmem:[#allocation80_spill] sm:$0xff] }
 0x4ae   : > { %v3581_v5 = vpop.eup %3580  ;;  %v2817_v10 = vadd.f32 %v2809_v50, %v2789_v3  ;;  %v2966_v35 = vmul.f32 %v8015_v17, %v2957_v41 }
 0x4af   : > { %3232 = vperm.xlu1 %3557, %v3581_v5   ;;  %v2243_v1 = vadd.f32 %v2235_v47, %v2216_v31  ;;  %v2391_v47 = vmul.f32 %v6711_v21, %v7993_v38  ;;  %v8017_v5 = vld [vmem:[#allocation150_spill] sm:$0xff]  ;;  %v2470_v21 = vmul.f32 %v2826_v4, %v7922_v22  ;;  %v2549_v22 = vmul.f32 %v2905_v63, %v7931_v14 }
 0x4b0   : > { %v2843_v20 = vadd.f32 %v2835_v25, %v2817_v10  ;;  %v8016_v25 = vld [vmem:[#allocation81_spill] sm:$0xff]  ;;  %v3018_v10 = vmul.f32 %v8017_v5, %v3009_v16  ;;  %v2678_v63 = vmul.f32 %v3034_v39, %v8003_v61 }
 0x4b1   : > { %v2268_v53 = vadd.f32 %v2260_v18, %v2243_v1  ;;  %v2991_v31 = vmul.f32 %v8016_v25, %v2982_v57  ;;  %v2854_v61 = vld [vmem:[#allocation2 + $0x13e] sm:$0xff] }
 0x4b2   : > { %v2870_v28 = vadd.f32 %v2862_v60, %v2843_v20  ;;  %v2444_v60 = vmul.f32 %v2800_v19, %v7919_v34  ;;  %v2522_v34 = vmul.f32 %v2878_v32, %v7928_v9  ;;  %v2626_v9 = vmul.f32 %v2982_v57, %v8001_v15 }
 0x4b3   : > { %v2295_v37 = vadd.f32 %v2287_v24, %v2268_v53  ;;  %v8018_v24 = vld [vmem:[#allocation151_spill] sm:$0xff] }
 0x4b4   : > { %v2895_v11 = vadd.f32 %v2887_v45, %v2870_v28  ;;  %v3043_v20 = vmul.f32 %v8018_v24, %v3034_v39  ;;  %v3061_v45 = vld [vmem:[#allocation2 + $0x12a] sm:$0xff] }
 0x4b5   : > { %v2320_v58 = vadd.f32 %v2312_v56, %v2295_v37  ;;  %v8019_v56 = vld [vmem:[#allocation153_spill] sm:$0xff] }
 0x4b6   : > { %v2922_v50 = vadd.f32 %v2914_v12, %v2895_v11  ;;  %v3070_v28 = vmul.f32 %v8019_v56, %v3061_v45  ;;  %v3086_v12 = vld [vmem:[#allocation2 + $0x27a] sm:$0xff] }
 0x4b7   : > { %v2347_v30 = vadd.f32 %v2339_v43, %v2320_v58  ;;  %v8020_v43 = vld [vmem:[#allocation154_spill] sm:$0xff]  ;;  %v2730_v8 = vmul.f32 %v3086_v12, %v8005_v23 }
 0x4b8   : > { %v2947_v3 = vadd.f32 %v2939_v0, %v2922_v50  ;;  %v3095_v11 = vmul.f32 %v8020_v43, %v3086_v12  ;;  %v3113_v0 = vld [vmem:[#allocation2 + $0x12b] sm:$0xff] }
 0x4b9   : > { %v2372_v62 = vadd.f32 %v2364_v6, %v2347_v30  ;;  %v8021_v6 = vld [vmem:[#allocation159_spill] sm:$0xff] }
 0x4ba   : > { %v2974_v18 = vadd.f32 %v2966_v35, %v2947_v3  ;;  %v3122_v50 = vmul.f32 %v8021_v6, %v3113_v0  ;;  %v3138_v35 = vld [vmem:[#allocation2 + $0x27b] sm:$0xff] }
 0x4bb   : > { %v2399_v7 = vadd.f32 %v2391_v47, %v2372_v62  ;;  %v3147_v47 = vmul.f32 %v7997_v52, %v3138_v35  ;;  %v2601_v62 = vmul.f32 %v2957_v41, %v7999_v40  ;;  %v2757_v40 = vmul.f32 %v3113_v0, %v8006_v36  ;;  %v2801_v41 = vld [vmem:[#allocation2 + $0x13d] sm:$0xff] }
 0x4bc   : > { %v2999_v1 = vadd.f32 %v2991_v31, %v2974_v18  ;;  %v2782_v15 = vmul.f32 %v3138_v35, %v7960_v51  ;;  %v2906_v36 = vld [vmem:[#allocation2 + $0x13f] sm:$0xff]  ;;  %v2931_v51 = vld [vmem:[#allocation2 + $0x28f] sm:$0xff] }
 0x4bd   : > { %v2424_v38 = vadd.f32 %v2416_v49, %v2399_v7  ;;  %v2653_v7 = vmul.f32 %v3009_v16, %v8002_v33 }
 0x4be   : > { %v3026_v53 = vadd.f32 %v3018_v10, %v2999_v1  ;;  %v2705_v1 = vmul.f32 %v3061_v45, %v8004_v26  ;;  %v2879_v45 = vld [vmem:[#allocation2 + $0x28e] sm:$0xff] }
 0x4bf   : > { %v2452_v37 = vadd.f32 %v2444_v60, %v2424_v38 }
 0x4c0   : > { %v3051_v59 = vadd.f32 %v3043_v20, %v3026_v53  ;;  %v2810_v53 = vmul.f32 %v8007_v2, %v2801_v41  ;;  %v2940_v2 = vmul.f32 %v8014_v54, %v2931_v51 }
 0x4c1   : > { %v2478_v58 = vadd.f32 %v2470_v21, %v2452_v37  ;;  %v2827_v21 = vld [vmem:[#allocation2 + $0x28d] sm:$0xff]  ;;  %v2888_v37 = vmul.f32 %v8012_v29, %v2879_v45 }
 0x4c2   : > { %v3078_v19 = vadd.f32 %v3070_v28, %v3051_v59  ;;  %v2836_v26 = vmul.f32 %v8009_v27, %v2827_v21  ;;  %v2863_v28 = vmul.f32 %v8011_v44, %v2854_v61  ;;  %v2915_v59 = vmul.f32 %v8013_v48, %v2906_v36  ;;  %v8028_v61 = vld [vmem:[#allocation16_spill] sm:$0xff]  ;;  %v8029_v45 = vld [vmem:[#allocation15_spill] sm:$0xff] }
 0x4c3   : > { %v2505_v30 = vadd.f32 %v2497_v42, %v2478_v58  ;;  %v2983_v58 = vld [vmem:[#allocation2 + $0x290] sm:$0xff] }
 0x4c4   : > { %v3103_v4 = vadd.f32 %v3095_v11, %v3078_v19  ;;  %v2958_v11 = vld [vmem:[#allocation2 + $0x140] sm:$0xff]  ;;  %v2992_v35 = vmul.f32 %v8016_v25, %v2983_v58 }
 0x4c5   : > { %v2530_v3 = vadd.f32 %v2522_v34, %v2505_v30  ;;  %v2967_v27 = vmul.f32 %v8015_v17, %v2958_v11  ;;  %v3035_v30 = vld [vmem:[#allocation2 + $0x291] sm:$0xff] }
 0x4c6   : > { %v3130_v55 = vadd.f32 %v3122_v50, %v3103_v4  ;;  %v3010_v50 = vld [vmem:[#allocation2 + $0x141] sm:$0xff] }
 0x4c7   : > { %v2557_v31 = vadd.f32 %v2549_v22, %v2530_v3  ;;  %v3019_v22 = vmul.f32 %v8017_v5, %v3010_v50  ;;  %v3062_v4 = vld [vmem:[#allocation2 + $0x142] sm:$0xff]  ;;  %v3087_v3 = vld [vmem:[#allocation2 + $0x292] sm:$0xff] }
 0x4c8   : > { %v3155_v49 = vadd.f32 %v3147_v47, %v3130_v55  ;;  %v3044_v47 = vmul.f32 %v8018_v24, %v3035_v30  ;;  %v3114_v55 = vld [vmem:[#allocation2 + $0x143] sm:$0xff]  ;;  %v3096_v17 = vmul.f32 %v8020_v43, %v3087_v3 }
 0x4c9   : > { %v2582_v18 = vadd.f32 %v2574_v13, %v2557_v31  ;;  %v3071_v13 = vmul.f32 %v8019_v56, %v3062_v4  ;;  %v3123_v25 = vmul.f32 %v8021_v6, %v3114_v55  ;;  %v3208_v56 = vpop.permute.xlu0 %3207  ;;  %v8023_v6 = vld [vmem:[#allocation9_spill] sm:$0xff] }
 0x4ca   : > { %v3466_v32 = vmul.f32 -1.442695, %v3155_v49 }
 0x4cb   : > { %v2609_v10 = vadd.f32 %v2601_v62, %v2582_v18  ;;  %v3139_v62 = vld [vmem:[#allocation2 + $0x293] sm:$0xff] }
 0x4cc   : > { %3582 = vpow2.f32 %v3466_v32  ;;  %v3148_v5 = vmul.f32 %v7997_v52, %v3139_v62  ;;  %v8024_v52 = vld [vmem:[#allocation12_spill] sm:$0xff] }
 0x4cd   : > { %v2634_v14 = vadd.f32 %v2626_v9, %v2609_v10  ;;  %v3218_v10 = vpop.permute.xlu1 %3217 }
 0x4cf   : > { %v2661_v60 = vadd.f32 %v2653_v7, %v2634_v14  ;;  %v3213_v14 = vpop.permute.xlu0 %3212 }
 0x4d1   : > { %v2686_v46 = vadd.f32 %v2678_v63, %v2661_v60  ;;  %v8022_v63 = vld [vmem:[#allocation10_spill] sm:$0xff] }
 0x4d2   : > { %v3245_v60 = vmul.f32 %v3208_v56, %v8022_v63 }
 0x4d3   : > { %v2713_v20 = vadd.f32 %v2705_v1, %v2686_v46  ;;  %v3247_v1 = vmul.f32 %v3218_v10, %v8023_v6  ;;  %v3223_v46 = vpop.permute.xlu1 %3222 }
 0x4d4   : > { %3253 = vst.msk [vmem:[%s3923_s29] sm:$0xff] %vm226_vm1, %v3245_v60 }
 0x4d5   : > { %v2738_v38 = vadd.f32 %v2730_v8, %v2713_v20  ;;  %3255 = vst.msk [vmem:[%s3923_s29 + $0x10] sm:$0xff] %vm226_vm1, %v3247_v1  ;;  %v3246_v8 = vmul.f32 %v3213_v14, %v8024_v52  ;;  %v8025_v20 = vld [vmem:[#allocation11_spill] sm:$0xff] }
 0x4d6   : > { %v3583_v57 = vpop.eup %3582 }
 0x4d7   : > { %v3187_v33 = vadd.f32 1.0, %v3583_v57  ;;  %v2765_v16 = vadd.f32 %v2757_v40, %v2738_v38  ;;  %v3248_v40 = vmul.f32 %v3223_v46, %v8025_v20  ;;  %3254 = vst.msk [vmem:[%s3923_s29 + $0x8] sm:$0xff] %vm226_vm1, %v3246_v8  ;;  %v8026_v38 = vld [vmem:[#allocation14_spill] sm:$0xff] }
 0x4d9   : > { %3584 = vrcp.f32 %v3187_v33  ;;  %v2790_v39 = vadd.f32 %v2782_v15, %v2765_v16  ;;  %3256 = vst.msk [vmem:[%s3923_s29 + $0x18] sm:$0xff] %vm226_vm1, %v3248_v40  ;;  %v8027_v33 = vld [vmem:[#allocation13_spill] sm:$0xff] }
 0x4db   : > { %v2818_v23 = vadd.f32 %v2810_v53, %v2790_v39 }
 0x4dd   : > { %v2844_v12 = vadd.f32 %v2836_v26, %v2818_v23 }
 0x4df   : > { %v2871_v42 = vadd.f32 %v2863_v28, %v2844_v12 }
 0x4e1   : > { %v2896_v0 = vadd.f32 %v2888_v37, %v2871_v42 }
 0x4e3   : > { %v3585_v34 = vpop.eup %3584  ;;  %v2923_v19 = vadd.f32 %v2915_v59, %v2896_v0 }
 0x4e4   : > { %3237 = vperm.xlu0 %3556, %v3585_v34  }
 0x4e5   : > { %v2948_v44 = vadd.f32 %v2940_v2, %v2923_v19 }
 0x4e7   : > { %v2975_v29 = vadd.f32 %v2967_v27, %v2948_v44 }
 0x4e9   : > { %v3000_v48 = vadd.f32 %v2992_v35, %v2975_v29 }
 0x4eb   : > { %v3027_v54 = vadd.f32 %v3019_v22, %v3000_v48 }
 0x4ed   : > { %v3052_v31 = vadd.f32 %v3044_v47, %v3027_v54 }
 0x4ef   : > { %v3079_v49 = vadd.f32 %v3071_v13, %v3052_v31 }
 0x4f1   : > { %v3104_v18 = vadd.f32 %v3096_v17, %v3079_v49 }
 0x4f3   : > { %v3131_v9 = vadd.f32 %v3123_v25, %v3104_v18 }
 0x4f5   : > { %v3156_v32 = vadd.f32 %v3148_v5, %v3131_v9 }
 0x4f6   : > { %v3228_v41 = vpop.permute.xlu0 %3227 }
 0x4f7   : > { %v3467_v24 = vmul.f32 -1.442695, %v3156_v32  ;;  %v3249_v15 = vmul.f32 %v3228_v41, %v8026_v38 }
 0x4f9   : > { %3586 = vpow2.f32 %v3467_v24  ;;  %3257 = vst.msk [vmem:[%s3923_s29 + $0x20] sm:$0xff] %vm226_vm1, %v3249_v15 }
 0x503   : > { %v3587_v7 = vpop.eup %3586 }
 0x504   : > { %v3188_v43 = vadd.f32 1.0, %v3587_v7 }
 0x506   : > { %3588 = vrcp.f32 %v3188_v43 }
 0x510   : > { %v3589_v57 = vpop.eup %3588 }
 0x511   : > { %3242 = vperm.xlu1 %3557, %v3589_v57  }
 0x52e   : > { %v3233_v21 = vpop.permute.xlu1 %3232 }
 0x52f   : > { %v3250_v16 = vmul.f32 %v3233_v21, %v8027_v33 }
 0x531   : > { %3258 = vst.msk [vmem:[%s3923_s29 + $0x28] sm:$0xff] %vm226_vm1, %v3250_v16 }
 0x563   : > { %v3238_v53 = vpop.permute.xlu0 %3237 }
 0x564   : > { %v3251_v39 = vmul.f32 %v3238_v53, %v8028_v61 }
 0x566   : > { %3259 = vst.msk [vmem:[%s3923_s29 + $0x30] sm:$0xff] %vm226_vm1, %v3251_v39 }
 0x590   : > { %v3243_v26 = vpop.permute.xlu1 %3242 }
 0x591   : > { %v3252_v23 = vmul.f32 %v3243_v26, %v8029_v45 }
 0x593   : > { %3260 = vst.msk [vmem:[%s3923_s29 + $0x38] sm:$0xff] %vm226_vm1, %v3252_v23 }
 0x594   : > { %3625 = shalt.err (!%p3622_p3)
}
 0x595   : > { %s3626_s7 = scalar_lea.hbm %s6854_s23, 1024  ;;  %s3630_s8 = scalar_lea.hbm %s6908_s4, 2048 }
 0x596   : > { %p3627_p4 = scmp.ne.s32.totalorder %s6854_s23, %s3626_s7  ;;  %p3631_p9 = scmp.lt.u32.totalorder %s6854_s23, %s6908_s4 }
 0x597   : > { %p3632_p10 = scmp.lt.u32.totalorder %s3630_s8, %s3626_s7  ;;  %p3634_p12 = scmp.lt.u32.totalorder %s3626_s7, %s6854_s23 }
 0x598   : > { %p3628_p7 = pnand %p3627_p4, %p3752_p5 }
 0x599   : > { %p3633_p11 = por %p3632_p10, %p3631_p9 }
 0x59a   : > { %p3629_p8 = pneg %p3628_p7 }
 0x59b   : > { %p3635_p13 = por %p3634_p12, %p3633_p11 }
 0x59d   : > { %p3636_p0 = pnand %p3635_p13, %p3629_p8 }
 0x59f   : > { %3639 = shalt.err (!%p3636_p0)
}
 0x5a0   : > { %s3687_s11 = smov 128   ;;  %s3688_s12 = smov 8  }
 0x5a1   : > { %3499 = dma.vmem_to_hbm [thread:$0]  (%p3752_p5), %s6856_s14, 1024, %s6854_s23, %s6863_s27, %s3687_s11, %s3687_s11, %s3688_s12  }
 0x5a2 PF: > { %p3511_p1 = scmp.ge.s32.totalorder %s3678_s18, 2  ;;  %s3290_s13 = sand.u32 1, %s3666_s15  }
 0x5a3   : > { %s3291_s20 = scalar_lea.sflag [#allocation4], %s3290_s13 }
 0x5a4   : > { %p3506_p2 = pnand %p3511_p1, %p3756_p6 }
 0x5a6   : > { %3661 = dma.done.wait (!%p3506_p2), %s3291_s20, 1024  }
 0x5a7   : > { %3663 = vsyncadd (!%p3506_p2), %s3291_s20, 4294966272  ;;  %p15_p3 = scmp.ge.s32.totalorder %s3739_s21, 4   ;;  %s8030_s15 = smov %s3670_s16 }
 0x5a8   : > { %s8031_s16 = smov %s3674_s17  ;;  %s8032_s17 = smov %s3750_s24 }
 0x5a9   : > { %s8033_s18 = smov %s3739_s21  ;;  %17 = sbr.rel (!%p15_p3) target bundleno = 4 (0x4), region = 93 }
 0x5b0   :  { %3296 = vsyncpa [#allocation4], 1 }
 0x5b1   :  { %3298 = vsyncpa [#allocation4 + $0x1], 1 }
 0x5b2   :  { %3299 = vsyncpa [#allocation5], 1 }
 0x5b3   :  { %3301 = vsyncpa [#allocation5 + $0x1], 1 }

</bundles_post_ra>
